<compile_context>
chip_gen: v5e
topology: v5e:2x2
jax: 0.10.0
libtpu: 0.0.40
codegen_flags: <defaults>
</compile_context>

<pallas_src>
import functools

import jax
import jax.numpy as jnp
from jax import lax
from jax.experimental import pallas as pl
from jax.experimental.pallas import tpu as pltpu

EPSILON = 1e-8
_NEG_LARGE = -1e30          # finite "-inf" used to mask padded rows out of column stats


def _tpu_vmem_capacity_bytes():
    """Physical per-core VMEM; conservative 64 MiB fallback (v7x) if the query fails."""
    try:
        info = pltpu.get_tpu_info()
        cap = getattr(info, "vmem_capacity_bytes", None)
        if cap:
            return int(cap)
    except Exception:
        pass
    return 64 * 1024 * 1024


_VMEM_CAP = _tpu_vmem_capacity_bytes()
_VMEM_LIMIT = int(_VMEM_CAP * 0.8)              # leave headroom for compiler scratch / double buffers
_TM3_CAP = 1024 if _VMEM_CAP >= (100 << 20) else 512   # big phase-3 i-tile only on 128 MiB parts


def _pick_tile(n_pad, cap):
    """Largest lane-aligned tile <= cap dividing n_pad; tiny n falls back to one full block."""
    for c in (1024, 512, 256, 128):
        if c <= cap and n_pad % c == 0:
            return c
    return n_pad


def walker_visit_losses(a, b, a_labels, *, tile_phase3=None):
    """a: [n, d] float, b: [m, d] float, a_labels: [n] int -> (walker_loss, visit_loss)."""
    n, d = a.shape
    m, d2 = b.shape
    assert d == d2

    a = a.astype(jnp.float32)
    b = b.astype(jnp.float32)
    labels = a_labels.astype(jnp.int32)

    # Both losses are invariant to a simultaneous row permutation of (a, labels):
    # sort rows by label so phase 3 can skip label-disjoint (i, k) blocks.
    perm = jnp.argsort(labels)
    labels_s = labels[perm]
    a_s = a[perm]

    # O(n log n) per-row same-label counts (labels_s is sorted) — replaces the old
    # O(n^2) in-kernel compare.
    left = jnp.searchsorted(labels_s, labels_s, side="left")
    right = jnp.searchsorted(labels_s, labels_s, side="right")
    counts_s = (right - left).astype(jnp.float32)

    # Pad n to a multiple of 128 (keeps the tiled, double-buffered path); small n stays a
    # single full block.  Padded rows: zero features, label -1 (never matches), count 1;
    # they are masked out of the column stats / visit sums and sliced off the walker mean.
    n_pad = n if n <= 128 else ((n + 127) // 128) * 128
    pad = n_pad - n
    if pad:
        a_s = jnp.pad(a_s, ((0, pad), (0, 0)))
        labels_s = jnp.pad(labels_s, (0, pad), constant_values=-1)
        counts_s = jnp.pad(counts_s, (0, pad), constant_values=1.0)
    valid = jnp.pad(jnp.ones((n, 1), jnp.float32), ((0, pad), (0, 0)))

    labels_col = labels_s.reshape(n_pad, 1)
    labels_row = labels_s.reshape(1, n_pad)
    counts_col = counts_s.reshape(n_pad, 1)

    # bf16 feeds the MXU (native on v5e/v6e/v7x, ~3-4x f32 throughput and half the
    # a/b HBM+VMEM footprint); all softmax/exp/log elementwise math stays f32.
    a_bf = a_s.astype(jnp.bfloat16)
    b_bf = b.astype(jnp.bfloat16)

    t12 = _pick_tile(n_pad, 512)
    if tile_phase3 is not None:
        tm3, tk3 = tile_phase3
        assert n_pad % tm3 == 0 and n_pad % tk3 == 0
    else:
        tm3 = _pick_tile(n_pad, _TM3_CAP)   # big resident ab tile keeps v6e MXU-bound
        tk3 = _pick_tile(n_pad, 512)        # streamed ba tile
    nb1 = n_pad // t12
    nbi = n_pad // tm3
    nbk = n_pad // tk3

    # ---------------- phase 1: ab (row softmax), per-block column stats ----------------
    def phase1_kernel(a_ref, b_ref, valid_ref, ab_ref, bmax_ref, bsum_ref, absum_ref):
        # p_i = a_i @ b^T : contract last (feature) dims -> no transpose materialized.
        p = lax.dot_general(a_ref[...], b_ref[...], (((1,), (1,)), ((), ())),
                            preferred_element_type=jnp.float32)          # [t12, m] f32
        valid_rows = valid_ref[...]                                      # [t12, 1]

        # ab = softmax(p, axis=1); exact 1/x on a [t12, 1] vector is negligible.
        rmax = jnp.max(p, axis=1, keepdims=True)
        e = jnp.exp(p - rmax)
        ab = e * (1.0 / jnp.sum(e, axis=1, keepdims=True))
        ab_ref[...] = ab.astype(jnp.bfloat16)                            # bf16 MXU feed for phase 3

        # Per-block column (axis-0) stats with padded rows masked out; folded in XLA.
        p_m = jnp.where(valid_rows > 0.0, p, _NEG_LARGE)
        bmax = jnp.max(p_m, axis=0, keepdims=True)                       # [1, m]
        bmax_ref[...] = bmax[None]
        bsum_ref[...] = jnp.sum(jnp.exp(p_m - bmax), axis=0, keepdims=True)[None]
        absum_ref[...] = jnp.sum(ab * valid_rows, axis=0, keepdims=True)[None]

    ab_bf16, blk_max, blk_sum, blk_absum = pl.pallas_call(
        phase1_kernel,
        grid=(nb1,),
        in_specs=[
            pl.BlockSpec((t12, d), lambda i: (i, 0)),
            # TODO(synk): tile b over m (online row-softmax) for very large m*d; for now
            # the bf16 cast halves the resident b block.
            pl.BlockSpec((m, d), lambda i: (0, 0)),
            pl.BlockSpec((t12, 1), lambda i: (i, 0)),
        ],
        out_specs=(
            pl.BlockSpec((t12, m), lambda i: (i, 0)),
            pl.BlockSpec((1, 1, m), lambda i: (i, 0, 0)),
            pl.BlockSpec((1, 1, m), lambda i: (i, 0, 0)),
            pl.BlockSpec((1, 1, m), lambda i: (i, 0, 0)),
        ),
        out_shape=(
            jax.ShapeDtypeStruct((n_pad, m), jnp.bfloat16),
            jax.ShapeDtypeStruct((nb1, 1, m), jnp.float32),
            jax.ShapeDtypeStruct((nb1, 1, m), jnp.float32),
            jax.ShapeDtypeStruct((nb1, 1, m), jnp.float32),
        ),
        compiler_params=pltpu.CompilerParams(
            dimension_semantics=("parallel",), vmem_limit_bytes=_VMEM_LIMIT),
    )(a_bf, b_bf, valid)

    # Tiny O(nb1*m) fold in XLA: global column log-normalizer + visit loss.
    col_max = jnp.max(blk_max, axis=0)                                   # [1, m]
    col_sum = jnp.sum(blk_sum * jnp.exp(blk_max - col_max), axis=0)      # [1, m]
    col_logz = col_max + jnp.log(col_sum)                                # exact normalizer
    visit_prob = jnp.sum(blk_absum, axis=(0, 1)) / n                     # ab.mean(0) over true rows
    visit_loss = jnp.mean((1.0 / m) * jnp.log(EPSILON + visit_prob))

    # ---------------- phase 2: ba (axis-0 softmax of p), stored un-transposed ----------
    def phase2_kernel(a_ref, b_ref, logz_ref, ba_ref):
        p = lax.dot_general(a_ref[...], b_ref[...], (((1,), (1,)), ((), ())),
                            preferred_element_type=jnp.float32)          # [t12, m]
        # ba_unT[r, j] == softmax(p.T, dim=1)[j, r]; exact normalizer, no approx recip.
        ba_ref[...] = jnp.exp(p - logz_ref[...]).astype(jnp.bfloat16)

    ba_unT = pl.pallas_call(
        phase2_kernel,
        grid=(nb1,),
        in_specs=[
            pl.BlockSpec((t12, d), lambda k: (k, 0)),
            pl.BlockSpec((m, d), lambda k: (0, 0)),
            pl.BlockSpec((1, m), lambda k: (0, 0)),
        ],
        out_specs=pl.BlockSpec((t12, m), lambda k: (k, 0)),
        out_shape=jax.ShapeDtypeStruct((n_pad, m), jnp.bfloat16),
        compiler_params=pltpu.CompilerParams(
            dimension_semantics=("parallel",), vmem_limit_bytes=_VMEM_LIMIT),
    )(a_bf, b_bf, col_logz)

    # Conservative block match table: labels are sorted, so "label ranges overlap" is a
    # superset of "some label is shared"; blocks failing it contribute exactly zero.
    lab_i = labels_s.reshape(nbi, tm3)
    lab_k = labels_s.reshape(nbk, tk3)
    i_min, i_max = jnp.min(lab_i, axis=1), jnp.max(lab_i, axis=1)
    k_min, k_max = jnp.min(lab_k, axis=1), jnp.max(lab_k, axis=1)
    match_tbl = ((i_min[:, None] <= k_max[None, :]) &
                 (k_min[None, :] <= i_max[:, None])).astype(jnp.int32).reshape(-1)

    # ---------------- phase 3: aba blocks + walker per-row partial sums ----------------
    def walker_kernel(match_ref, ab_ref, ba_ref, cnt_ref, labi_ref, labk_ref,
                      wrow_ref, wacc):
        i = pl.program_id(0)
        k = pl.program_id(1)

        @pl.when(k == 0)
        def _():
            wacc[...] = jnp.zeros_like(wacc)

        @pl.when(match_ref[i * nbk + k] != 0)
        def _():
            # aba block = ab_i @ ba_unT_k^T, contracting the shared m axis (bf16 MXU,
            # f32 accumulate).  Accumulate lane-dense; defer the cross-lane reduce.
            aba = lax.dot_general(ab_ref[...], ba_ref[...], (((1,), (1,)), ((), ())),
                                  preferred_element_type=jnp.float32)    # [tm3, tk3]
            same = (labi_ref[...] == labk_ref[...]).astype(jnp.float32)  # targets numerator
            wacc[...] += same * jnp.log(EPSILON + aba)

        @pl.when(k == nbk - 1)
        def _():
            # single XLU reduce + fold of 1/count, once per i block.
            wrow_ref[...] = jnp.sum(wacc[...], axis=1, keepdims=True) / cnt_ref[...]

    walker_rows = pl.pallas_call(
        walker_kernel,
        out_shape=jax.ShapeDtypeStruct((n_pad, 1), jnp.float32),
        grid_spec=pltpu.PrefetchScalarGridSpec(
            num_scalar_prefetch=1,                 # block-match table -> SMEM
            grid=(nbi, nbk),
            in_specs=[
                pl.BlockSpec((tm3, m), lambda i, k, mt: (i, 0)),
                # TODO(synk): a data-dependent index_map over non-empty k blocks (or
                # pipeline_mode=pl.Buffered(3)) would also skip/hide the ba DMA.
                pl.BlockSpec((tk3, m), lambda i, k, mt: (k, 0)),
                pl.BlockSpec((tm3, 1), lambda i, k, mt: (i, 0)),
                pl.BlockSpec((tm3, 1), lambda i, k, mt: (i, 0)),
                pl.BlockSpec((1, tk3), lambda i, k, mt: (0, k)),
            ],
            out_specs=pl.BlockSpec((tm3, 1), lambda i, k, mt: (i, 0)),
            scratch_shapes=[pltpu.VMEM((tm3, tk3), jnp.float32)],
        ),
        compiler_params=pltpu.CompilerParams(
            dimension_semantics=("parallel", "arbitrary"),   # i across cores, k = reduction
            vmem_limit_bytes=_VMEM_LIMIT),
    )(match_tbl, ab_bf16, ba_unT, counts_col, labels_col, labels_row)

    walker_loss = -jnp.mean(walker_rows[:n, 0])     # tiny O(n) glue reduction (+ negation)
    return walker_loss, visit_loss


def _reference(a, b, a_labels):
    """Pure-JAX reference mirroring the PyTorch forward exactly (f32 everywhere)."""
    p = a @ b.T
    ab = jax.nn.softmax(p, axis=1)
    ba = jax.nn.softmax(p.T, axis=1)
    aba = ab @ ba
    lab = a_labels.reshape(1, -1)
    is_same = (lab == lab.T).astype(jnp.float32)
    targets = is_same / jnp.sum(is_same, axis=1, keepdims=True)
    walker = -jnp.mean(jnp.sum(targets * jnp.log(EPSILON + aba), axis=1))
    visit_prob = jnp.mean(ab, axis=0)
    visit = jnp.mean((1.0 / b.shape[0]) * jnp.log(EPSILON + visit_prob))
    return walker, visit


def _check(n, m, d, num_labels, key, labels=None, tile_phase3=None):
    ka, kb, kl = jax.random.split(key, 3)
    scale = 1.0 / (d ** 0.25)       # keep logits ~N(0,1) so the softmax is well conditioned
    a = jax.random.normal(ka, (n, d), dtype=jnp.float32) * scale
    b = jax.random.normal(kb, (m, d), dtype=jnp.float32) * scale
    if labels is None:
        labels = jax.random.randint(kl, (n,), 0, num_labels, dtype=jnp.int32)

    fn = jax.jit(functools.partial(walker_visit_losses, tile_phase3=tile_phase3))
    walker_loss, visit_loss = fn(a, b, labels)
    walker_loss = jax.block_until_ready(walker_loss)
    visit_loss = jax.block_until_ready(visit_loss)

    ref_w, ref_v = _reference(a, b, labels)
    # bf16 MXU feed + bf16 ab/ba storage -> loose tolerances.
    assert jnp.allclose(walker_loss, ref_w, rtol=3e-2, atol=3e-3), \
        (n, m, d, float(walker_loss), float(ref_w))
    assert jnp.allclose(visit_loss, ref_v, rtol=3e-2, atol=3e-3), \
        (n, m, d, float(visit_loss), float(ref_v))


if __name__ == "__main__":
    key = jax.random.PRNGKey(0)
    k1, k2, k3, k4 = jax.random.split(key, 4)

    # aligned shapes -> fully tiled path.
    _check(n=256, m=256, d=128, num_labels=10, key=k1)
    # tiny shapes -> single-full-block path.
    _check(n=8, m=16, d=32, num_labels=4, key=k2)
    # n not a multiple of 128 -> pad-and-mask path.
    _check(n=200, m=128, d=64, num_labels=6, key=k3)
    # deterministic two-class labels + forced 128-tiles -> off-diagonal phase-3 blocks are
    # provably label-disjoint and exercised through the SMEM skip table.
    _check(n=256, m=192, d=64, num_labels=2, key=k4,
           labels=jnp.arange(256, dtype=jnp.int32) // 128, tile_phase3=(128, 128))

    print("KERNEL_OK")
</pallas_src>

<mosaic_0001>
module attributes {stable_mosaic.version = 11 : i64} {
  func.func @phase1_kernel(%arg0: i32, %arg1: memref<256x128xbf16, #tpu.memory_space<vmem>>, %arg2: memref<256x128xbf16, #tpu.memory_space<vmem>>, %arg3: memref<256x1xf32, #tpu.memory_space<vmem>>, %arg4: memref<256x256xbf16, #tpu.memory_space<vmem>>, %arg5: memref<1x1x256xf32, #tpu.memory_space<vmem>>, %arg6: memref<1x1x256xf32, #tpu.memory_space<vmem>>, %arg7: memref<1x1x256xf32, #tpu.memory_space<vmem>>) attributes {dimension_semantics = [#tpu.dimension_semantics<parallel>], iteration_bounds = array<i64: 1>, scalar_prefetch = 0 : i64, scratch_operands = 0 : i64, tpu.core_type = #tpu.core_type<tc>, window_params = [{transform_indices = @transform_0, window_bounds = array<i64: 256, 128>}, {pipeline_mode = #tpu.pipeline_mode<synchronous>, transform_indices = @transform_1, window_bounds = array<i64: 256, 128>}, {transform_indices = @transform_2, window_bounds = array<i64: 256, 1>}, {transform_indices = @transform_3, window_bounds = array<i64: 256, 256>}, {transform_indices = @transform_4, window_bounds = array<i64: 1, 1, 256>}, {transform_indices = @transform_5, window_bounds = array<i64: 1, 1, 256>}, {transform_indices = @transform_6, window_bounds = array<i64: 1, 1, 256>}]} {
    %c0 = arith.constant 0 : index
    %c0_0 = arith.constant 0 : index
    %0 = vector.load %arg1[%c0, %c0_0] : memref<256x128xbf16, #tpu.memory_space<vmem>>, vector<256x128xbf16>
    %c0_1 = arith.constant 0 : index
    %c0_2 = arith.constant 0 : index
    %1 = vector.load %arg2[%c0_1, %c0_2] : memref<256x128xbf16, #tpu.memory_space<vmem>>, vector<256x128xbf16>
    %cst = arith.constant dense<0.000000e+00> : vector<256x256xf32>
    %2 = tpu.matmul %0, %1, %cst {dimension_numbers = #tpu.dot_dimension_numbers<[1], [1], [0], [0], [0, 0, 1, 0], [], []>} : vector<256x128xbf16>, vector<256x128xbf16>, vector<256x256xf32> -> vector<256x256xf32>
    %c0_3 = arith.constant 0 : index
    %c0_4 = arith.constant 0 : index
    %3 = vector.load %arg3[%c0_3, %c0_4] : memref<256x1xf32, #tpu.memory_space<vmem>>, vector<256x1xf32>
    %cst_5 = arith.constant dense<0xFF800000> : vector<256xf32>
    %4 = vector.multi_reduction <maximumf>, %2, %cst_5 [1] : vector<256x256xf32> to vector<256xf32>
    %5 = vector.shape_cast %4 : vector<256xf32> to vector<256x1xf32>
    %6 = vector.broadcast %5 : vector<256x1xf32> to vector<256x256xf32>
    %7 = arith.subf %2, %6 : vector<256x256xf32>
    %8 = math.exp %7 : vector<256x256xf32>
    %cst_6 = arith.constant dense<0.000000e+00> : vector<256xf32>
    %9 = vector.multi_reduction <add>, %8, %cst_6 [1] : vector<256x256xf32> to vector<256xf32>
    %10 = vector.shape_cast %9 : vector<256xf32> to vector<256x1xf32>
    %cst_7 = arith.constant 1.000000e+00 : f32
    %11 = vector.broadcast %cst_7 : f32 to vector<256x1xf32>
    %12 = arith.divf %11, %10 : vector<256x1xf32>
    %13 = vector.broadcast %12 : vector<256x1xf32> to vector<256x256xf32>
    %14 = arith.mulf %8, %13 : vector<256x256xf32>
    %15 = arith.truncf %14 : vector<256x256xf32> to vector<256x256xbf16>
    %c0_8 = arith.constant 0 : index
    %c0_9 = arith.constant 0 : index
    %16 = vector.load %arg4[%c0_8, %c0_9] : memref<256x256xbf16, #tpu.memory_space<vmem>>, vector<256x256xbf16>
    tpu.vector_store %arg4[%c0_8, %c0_9], %15 {strides = array<i32>} : memref<256x256xbf16, #tpu.memory_space<vmem>>, vector<256x256xbf16>,
    %cst_10 = arith.constant 0.000000e+00 : f32
    %17 = vector.broadcast %cst_10 : f32 to vector<256x1xf32>
    %18 = arith.cmpf ogt, %3, %17 : vector<256x1xf32>
    %cst_11 = arith.constant -1.000000e+30 : f32
    %19 = vector.shape_cast %18 : vector<256x1xi1> to vector<256x1xi1>
    %20 = vector.broadcast %19 : vector<256x1xi1> to vector<256x256xi1>
    %21 = vector.broadcast %cst_11 : f32 to vector<256x256xf32>
    %22 = arith.select %20, %2, %21 : vector<256x256xi1>, vector<256x256xf32>
    %cst_12 = arith.constant dense<0xFF800000> : vector<256xf32>
    %23 = vector.multi_reduction <maximumf>, %22, %cst_12 [0] : vector<256x256xf32> to vector<256xf32>
    %24 = vector.shape_cast %23 : vector<256xf32> to vector<1x256xf32>
    %25 = vector.shape_cast %24 : vector<1x256xf32> to vector<1x1x256xf32>
    %c0_13 = arith.constant 0 : index
    %c0_14 = arith.constant 0 : index
    %c0_15 = arith.constant 0 : index
    %26 = vector.load %arg5[%c0_13, %c0_14, %c0_15] : memref<1x1x256xf32, #tpu.memory_space<vmem>>, vector<1x1x256xf32>
    tpu.vector_store %arg5[%c0_13, %c0_14, %c0_15], %25 {strides = array<i32>} : memref<1x1x256xf32, #tpu.memory_space<vmem>>, vector<1x1x256xf32>,
    %27 = vector.broadcast %24 : vector<1x256xf32> to vector<256x256xf32>
    %28 = arith.subf %22, %27 : vector<256x256xf32>
    %29 = math.exp %28 : vector<256x256xf32>
    %cst_16 = arith.constant dense<0.000000e+00> : vector<256xf32>
    %30 = vector.multi_reduction <add>, %29, %cst_16 [0] : vector<256x256xf32> to vector<256xf32>
    %31 = vector.shape_cast %30 : vector<256xf32> to vector<1x256xf32>
    %32 = vector.shape_cast %31 : vector<1x256xf32> to vector<1x1x256xf32>
    %c0_17 = arith.constant 0 : index
    %c0_18 = arith.constant 0 : index
    %c0_19 = arith.constant 0 : index
    %33 = vector.load %arg6[%c0_17, %c0_18, %c0_19] : memref<1x1x256xf32, #tpu.memory_space<vmem>>, vector<1x1x256xf32>
    tpu.vector_store %arg6[%c0_17, %c0_18, %c0_19], %32 {strides = array<i32>} : memref<1x1x256xf32, #tpu.memory_space<vmem>>, vector<1x1x256xf32>,
    %34 = vector.broadcast %3 : vector<256x1xf32> to vector<256x256xf32>
    %35 = arith.mulf %14, %34 : vector<256x256xf32>
    %cst_20 = arith.constant dense<0.000000e+00> : vector<256xf32>
    %36 = vector.multi_reduction <add>, %35, %cst_20 [0] : vector<256x256xf32> to vector<256xf32>
    %37 = vector.shape_cast %36 : vector<256xf32> to vector<1x256xf32>
    %38 = vector.shape_cast %37 : vector<1x256xf32> to vector<1x1x256xf32>
    %c0_21 = arith.constant 0 : index
    %c0_22 = arith.constant 0 : index
    %c0_23 = arith.constant 0 : index
    %39 = vector.load %arg7[%c0_21, %c0_22, %c0_23] : memref<1x1x256xf32, #tpu.memory_space<vmem>>, vector<1x1x256xf32>
    tpu.vector_store %arg7[%c0_21, %c0_22, %c0_23], %38 {strides = array<i32>} : memref<1x1x256xf32, #tpu.memory_space<vmem>>, vector<1x1x256xf32>,
    return
  }
  func.func @transform_0(%arg0: i32) -> (i32, i32) {
    %c0_i32 = arith.constant 0 : i32
    %c0_i32_0 = arith.constant 0 : i32
    return %arg0, %c0_i32 : i32, i32
  }
  func.func @transform_1(%arg0: i32) -> (i32, i32) {
    %c0_i32 = arith.constant 0 : i32
    %c0_i32_0 = arith.constant 0 : i32
    %c0_i32_1 = arith.constant 0 : i32
    return %c0_i32, %c0_i32_0 : i32, i32
  }
  func.func @transform_2(%arg0: i32) -> (i32, i32) {
    %c0_i32 = arith.constant 0 : i32
    %c0_i32_0 = arith.constant 0 : i32
    return %arg0, %c0_i32 : i32, i32
  }
  func.func @transform_3(%arg0: i32) -> (i32, i32) {
    %c0_i32 = arith.constant 0 : i32
    %c0_i32_0 = arith.constant 0 : i32
    return %arg0, %c0_i32 : i32, i32
  }
  func.func @transform_4(%arg0: i32) -> (i32, i32, i32) {
    %c0_i32 = arith.constant 0 : i32
    %c0_i32_0 = arith.constant 0 : i32
    %c0_i32_1 = arith.constant 0 : i32
    return %arg0, %c0_i32, %c0_i32_0 : i32, i32, i32
  }
  func.func @transform_5(%arg0: i32) -> (i32, i32, i32) {
    %c0_i32 = arith.constant 0 : i32
    %c0_i32_0 = arith.constant 0 : i32
    %c0_i32_1 = arith.constant 0 : i32
    return %arg0, %c0_i32, %c0_i32_0 : i32, i32, i32
  }
  func.func @transform_6(%arg0: i32) -> (i32, i32, i32) {
    %c0_i32 = arith.constant 0 : i32
    %c0_i32_0 = arith.constant 0 : i32
    %c0_i32_1 = arith.constant 0 : i32
    return %arg0, %c0_i32, %c0_i32_0 : i32, i32, i32
  }
}

module attributes {stable_mosaic.version = 11 : i64} {
  func.func @phase2_kernel(%arg0: i32, %arg1: memref<256x128xbf16, #tpu.memory_space<vmem>>, %arg2: memref<256x128xbf16, #tpu.memory_space<vmem>>, %arg3: memref<1x256xf32, #tpu.memory_space<vmem>>, %arg4: memref<256x256xbf16, #tpu.memory_space<vmem>>) attributes {dimension_semantics = [#tpu.dimension_semantics<parallel>], iteration_bounds = array<i64: 1>, scalar_prefetch = 0 : i64, scratch_operands = 0 : i64, tpu.core_type = #tpu.core_type<tc>, window_params = [{transform_indices = @transform_0, window_bounds = array<i64: 256, 128>}, {pipeline_mode = #tpu.pipeline_mode<synchronous>, transform_indices = @transform_1, window_bounds = array<i64: 256, 128>}, {pipeline_mode = #tpu.pipeline_mode<synchronous>, transform_indices = @transform_2, window_bounds = array<i64: 1, 256>}, {transform_indices = @transform_3, window_bounds = array<i64: 256, 256>}]} {
    %c0 = arith.constant 0 : index
    %c0_0 = arith.constant 0 : index
    %0 = vector.load %arg1[%c0, %c0_0] : memref<256x128xbf16, #tpu.memory_space<vmem>>, vector<256x128xbf16>
    %c0_1 = arith.constant 0 : index
    %c0_2 = arith.constant 0 : index
    %1 = vector.load %arg2[%c0_1, %c0_2] : memref<256x128xbf16, #tpu.memory_space<vmem>>, vector<256x128xbf16>
    %cst = arith.constant dense<0.000000e+00> : vector<256x256xf32>
    %2 = tpu.matmul %0, %1, %cst {dimension_numbers = #tpu.dot_dimension_numbers<[1], [1], [0], [0], [0, 0, 1, 0], [], []>} : vector<256x128xbf16>, vector<256x128xbf16>, vector<256x256xf32> -> vector<256x256xf32>
    %c0_3 = arith.constant 0 : index
    %c0_4 = arith.constant 0 : index
    %3 = vector.load %arg3[%c0_3, %c0_4] : memref<1x256xf32, #tpu.memory_space<vmem>>, vector<1x256xf32>
    %4 = vector.broadcast %3 : vector<1x256xf32> to vector<256x256xf32>
    %5 = arith.subf %2, %4 : vector<256x256xf32>
    %6 = math.exp %5 : vector<256x256xf32>
    %7 = arith.truncf %6 : vector<256x256xf32> to vector<256x256xbf16>
    %c0_5 = arith.constant 0 : index
    %c0_6 = arith.constant 0 : index
    %8 = vector.load %arg4[%c0_5, %c0_6] : memref<256x256xbf16, #tpu.memory_space<vmem>>, vector<256x256xbf16>
    tpu.vector_store %arg4[%c0_5, %c0_6], %7 {strides = array<i32>} : memref<256x256xbf16, #tpu.memory_space<vmem>>, vector<256x256xbf16>,
    return
  }
  func.func @transform_0(%arg0: i32) -> (i32, i32) {
    %c0_i32 = arith.constant 0 : i32
    %c0_i32_0 = arith.constant 0 : i32
    return %arg0, %c0_i32 : i32, i32
  }
  func.func @transform_1(%arg0: i32) -> (i32, i32) {
    %c0_i32 = arith.constant 0 : i32
    %c0_i32_0 = arith.constant 0 : i32
    %c0_i32_1 = arith.constant 0 : i32
    return %c0_i32, %c0_i32_0 : i32, i32
  }
  func.func @transform_2(%arg0: i32) -> (i32, i32) {
    %c0_i32 = arith.constant 0 : i32
    %c0_i32_0 = arith.constant 0 : i32
    %c0_i32_1 = arith.constant 0 : i32
    return %c0_i32, %c0_i32_0 : i32, i32
  }
  func.func @transform_3(%arg0: i32) -> (i32, i32) {
    %c0_i32 = arith.constant 0 : i32
    %c0_i32_0 = arith.constant 0 : i32
    return %arg0, %c0_i32 : i32, i32
  }
}

module attributes {stable_mosaic.version = 11 : i64} {
  func.func @walker_kernel(%arg0: i32, %arg1: i32, %arg2: memref<1xi32, #tpu.memory_space<smem>>, %arg3: memref<256x256xbf16, #tpu.memory_space<vmem>>, %arg4: memref<256x256xbf16, #tpu.memory_space<vmem>>, %arg5: memref<256x1xf32, #tpu.memory_space<vmem>>, %arg6: memref<256x1xi32, #tpu.memory_space<vmem>>, %arg7: memref<1x256xi32, #tpu.memory_space<vmem>>, %arg8: memref<256x1xf32, #tpu.memory_space<vmem>>, %arg9: memref<256x256xf32, #tpu.memory_space<vmem>>) attributes {dimension_semantics = [#tpu.dimension_semantics<parallel>, #tpu.dimension_semantics<arbitrary>], iteration_bounds = array<i64: 1, 1>, scalar_prefetch = 1 : i64, scratch_operands = 1 : i64, tpu.core_type = #tpu.core_type<tc>, window_params = [{transform_indices = @transform_0, window_bounds = array<i64: 256, 256>}, {transform_indices = @transform_1, window_bounds = array<i64: 256, 256>}, {transform_indices = @transform_2, window_bounds = array<i64: 256, 1>}, {transform_indices = @transform_3, window_bounds = array<i64: 256, 1>}, {transform_indices = @transform_4, window_bounds = array<i64: 1, 256>}, {transform_indices = @transform_5, window_bounds = array<i64: 256, 1>}]} {
    %c0_i32 = arith.constant 0 : i32
    %0 = arith.cmpi eq, %arg1, %c0_i32 : i32
    %1 = arith.extui %0 : i1 to i32
    %c0_i32_0 = arith.constant 0 : i32
    %2 = arith.cmpi ne, %1, %c0_i32_0 : i32
    scf.if %2 {
      %cst = arith.constant 0.000000e+00 : f32
      %13 = vector.broadcast %cst : f32 to vector<256x256xf32>
      %c0 = arith.constant 0 : index
      %c0_5 = arith.constant 0 : index
      %14 = vector.load %arg9[%c0, %c0_5] : memref<256x256xf32, #tpu.memory_space<vmem>>, vector<256x256xf32>
      tpu.vector_store %arg9[%c0, %c0_5], %13 {strides = array<i32>} : memref<256x256xf32, #tpu.memory_space<vmem>>, vector<256x256xf32>,
    } else {
    }
    %c1_i32 = arith.constant 1 : i32
    %3 = arith.muli %arg0, %c1_i32 : i32
    %4 = arith.addi %3, %arg1 : i32
    %5 = arith.index_cast %4 : i32 to index
    %6 = memref.load %arg2[%5] : memref<1xi32, #tpu.memory_space<smem>>
    %c0_i32_1 = arith.constant 0 : i32
    %7 = arith.cmpi ne, %6, %c0_i32_1 : i32
    %8 = arith.extui %7 : i1 to i32
    %c0_i32_2 = arith.constant 0 : i32
    %9 = arith.cmpi ne, %8, %c0_i32_2 : i32
    scf.if %9 {
      %c0 = arith.constant 0 : index
      %c0_5 = arith.constant 0 : index
      %13 = vector.load %arg3[%c0, %c0_5] : memref<256x256xbf16, #tpu.memory_space<vmem>>, vector<256x256xbf16>
      %c0_6 = arith.constant 0 : index
      %c0_7 = arith.constant 0 : index
      %14 = vector.load %arg4[%c0_6, %c0_7] : memref<256x256xbf16, #tpu.memory_space<vmem>>, vector<256x256xbf16>
      %cst = arith.constant dense<0.000000e+00> : vector<256x256xf32>
      %15 = tpu.matmul %13, %14, %cst {dimension_numbers = #tpu.dot_dimension_numbers<[1], [1], [0], [0], [0, 0, 1, 0], [], []>} : vector<256x256xbf16>, vector<256x256xbf16>, vector<256x256xf32> -> vector<256x256xf32>
      %c0_8 = arith.constant 0 : index
      %c0_9 = arith.constant 0 : index
      %16 = vector.load %arg6[%c0_8, %c0_9] : memref<256x1xi32, #tpu.memory_space<vmem>>, vector<256x1xi32>
      %c0_10 = arith.constant 0 : index
      %c0_11 = arith.constant 0 : index
      %17 = vector.load %arg7[%c0_10, %c0_11] : memref<1x256xi32, #tpu.memory_space<vmem>>, vector<1x256xi32>
      %18 = vector.broadcast %16 : vector<256x1xi32> to vector<256x256xi32>
      %19 = vector.broadcast %17 : vector<1x256xi32> to vector<256x256xi32>
      %20 = arith.cmpi eq, %18, %19 : vector<256x256xi32>
      %21 = arith.extui %20 : vector<256x256xi1> to vector<256x256xi32>
      %22 = arith.sitofp %21 : vector<256x256xi32> to vector<256x256xf32>
      %c0_12 = arith.constant 0 : index
      %c0_13 = arith.constant 0 : index
      %23 = vector.load %arg9[%c0_12, %c0_13] : memref<256x256xf32, #tpu.memory_space<vmem>>, vector<256x256xf32>
      %cst_14 = arith.constant 9.99999993E-9 : f32
      %24 = vector.broadcast %cst_14 : f32 to vector<256x256xf32>
      %25 = arith.addf %24, %15 : vector<256x256xf32>
      %26 = math.log %25 : vector<256x256xf32>
      %27 = arith.mulf %22, %26 : vector<256x256xf32>
      %28 = arith.addf %23, %27 : vector<256x256xf32>
      %c0_15 = arith.constant 0 : index
      %c0_16 = arith.constant 0 : index
      %29 = vector.load %arg9[%c0_15, %c0_16] : memref<256x256xf32, #tpu.memory_space<vmem>>, vector<256x256xf32>
      tpu.vector_store %arg9[%c0_15, %c0_16], %28 {strides = array<i32>} : memref<256x256xf32, #tpu.memory_space<vmem>>, vector<256x256xf32>,
    } else {
    }
    %c0_i32_3 = arith.constant 0 : i32
    %10 = arith.cmpi eq, %arg1, %c0_i32_3 : i32
    %11 = arith.extui %10 : i1 to i32
    %c0_i32_4 = arith.constant 0 : i32
    %12 = arith.cmpi ne, %11, %c0_i32_4 : i32
    scf.if %12 {
      %c0 = arith.constant 0 : index
      %c0_5 = arith.constant 0 : index
      %13 = vector.load %arg9[%c0, %c0_5] : memref<256x256xf32, #tpu.memory_space<vmem>>, vector<256x256xf32>
      %cst = arith.constant dense<0.000000e+00> : vector<256xf32>
      %14 = vector.multi_reduction <add>, %13, %cst [1] : vector<256x256xf32> to vector<256xf32>
      %15 = vector.shape_cast %14 : vector<256xf32> to vector<256x1xf32>
      %c0_6 = arith.constant 0 : index
      %c0_7 = arith.constant 0 : index
      %16 = vector.load %arg5[%c0_6, %c0_7] : memref<256x1xf32, #tpu.memory_space<vmem>>, vector<256x1xf32>
      %17 = arith.divf %15, %16 : vector<256x1xf32>
      %c0_8 = arith.constant 0 : index
      %c0_9 = arith.constant 0 : index
      %18 = vector.load %arg8[%c0_8, %c0_9] : memref<256x1xf32, #tpu.memory_space<vmem>>, vector<256x1xf32>
      tpu.vector_store %arg8[%c0_8, %c0_9], %17 {strides = array<i32>} : memref<256x1xf32, #tpu.memory_space<vmem>>, vector<256x1xf32>,
    } else {
    }
    return
  }
  func.func @transform_0(%arg0: i32, %arg1: i32, %arg2: memref<1xi32, #tpu.memory_space<smem>>) -> (i32, i32) {
    %c0_i32 = arith.constant 0 : i32
    %c0_i32_0 = arith.constant 0 : i32
    return %arg0, %c0_i32 : i32, i32
  }
  func.func @transform_1(%arg0: i32, %arg1: i32, %arg2: memref<1xi32, #tpu.memory_space<smem>>) -> (i32, i32) {
    %c0_i32 = arith.constant 0 : i32
    %c0_i32_0 = arith.constant 0 : i32
    return %arg1, %c0_i32 : i32, i32
  }
  func.func @transform_2(%arg0: i32, %arg1: i32, %arg2: memref<1xi32, #tpu.memory_space<smem>>) -> (i32, i32) {
    %c0_i32 = arith.constant 0 : i32
    %c0_i32_0 = arith.constant 0 : i32
    return %arg0, %c0_i32 : i32, i32
  }
  func.func @transform_3(%arg0: i32, %arg1: i32, %arg2: memref<1xi32, #tpu.memory_space<smem>>) -> (i32, i32) {
    %c0_i32 = arith.constant 0 : i32
    %c0_i32_0 = arith.constant 0 : i32
    return %arg0, %c0_i32 : i32, i32
  }
  func.func @transform_4(%arg0: i32, %arg1: i32, %arg2: memref<1xi32, #tpu.memory_space<smem>>) -> (i32, i32) {
    %c0_i32 = arith.constant 0 : i32
    %c0_i32_0 = arith.constant 0 : i32
    return %c0_i32, %arg1 : i32, i32
  }
  func.func @transform_5(%arg0: i32, %arg1: i32, %arg2: memref<1xi32, #tpu.memory_space<smem>>) -> (i32, i32) {
    %c0_i32 = arith.constant 0 : i32
    %c0_i32_0 = arith.constant 0 : i32
    return %arg0, %c0_i32 : i32, i32
  }
}

</mosaic_0001>

<bundles_post_ra>
// kernel: custom-call
= control target key start
LH: loop header
LB: loop body
LE: loop exit
PB: predicated region body
PF: predicated region fallthrough
CT: control target
= control target key end

     0   :  { %s6_s0 = inlined_call_operand.vmem [shape: u32[256], index: 0, kind: output, shape index: {}]  }

// kernel: walker_visit_losses.4
= control target key start
LH: loop header
LB: loop body
LE: loop exit
PB: predicated region body
PF: predicated region fallthrough
CT: control target
= control target key end

     0   :  { %s1301_s1 = inlined_call_operand.vmem [shape: bf16[256,128], index: 1, kind: input, shape index: {}]   ;;  %s1302_s0 = inlined_call_operand.vmem [shape: bf16[256,128], index: 0, kind: input, shape index: {}]   ;;  %s1303_s2 = inlined_call_operand.vmem [shape: f32[1,256], index: 2, kind: input, shape index: {}]   ;;  %s1304_s3 = inlined_call_operand.vmem [shape: bf16[256,256], index: 3, kind: output, shape index: {}]  }
   0x1   :  { %v865_v0 = vld [vmem:[%s1301_s1 + $0x38] sm:$0xff]  ;;  %v864_v2 = vld [vmem:[%s1301_s1 + $0x30] sm:$0xff]  ;;  %v863_v4 = vld [vmem:[%s1301_s1 + $0x28] sm:$0xff] }
   0x2   :  { %v873_v1 = vld [vmem:[%s1301_s1 + $0x78] sm:$0xff]  ;;  %270 = vmatpush.bf16.xpose.msra.mxu0 %v865_v0  ;;  %874 = vmatpush.bf16.xpose.msra.mxu2 %v865_v0  ;;  %v872_v3 = vld [vmem:[%s1301_s1 + $0x70] sm:$0xff]  ;;  %v871_v5 = vld [vmem:[%s1301_s1 + $0x68] sm:$0xff] }
   0x3   :  { %359 = vmatpush.bf16.xpose.msra.mxu1 %v873_v1  ;;  %882 = vmatpush.bf16.xpose.msra.mxu3 %v873_v1  ;;  %v862_v6 = vld [vmem:[%s1301_s1 + $0x20] sm:$0xff]  ;;  %v861_v8 = vld [vmem:[%s1301_s1 + $0x18] sm:$0xff]  ;;  %v860_v10 = vld [vmem:[%s1301_s1 + $0x10] sm:$0xff] }
   0x4   :  { %v870_v7 = vld [vmem:[%s1301_s1 + $0x60] sm:$0xff]  ;;  %v869_v9 = vld [vmem:[%s1301_s1 + $0x58] sm:$0xff]  ;;  %v868_v11 = vld [vmem:[%s1301_s1 + $0x50] sm:$0xff] }
   0x5   :  { %v859_v12 = vld [vmem:[%s1301_s1 + $0x8] sm:$0xff]  ;;  %v858_v14 = vld [vmem:[%s1301_s1] sm:$0xff]  ;;  %v844_v20 = vld [vmem:[%s1302_s0 + $0x10] sm:$0xff] }
   0x6   :  { %v867_v13 = vld [vmem:[%s1301_s1 + $0x48] sm:$0xff]  ;;  %v866_v15 = vld [vmem:[%s1301_s1 + $0x40] sm:$0xff]  ;;  %v852_v21 = vld [vmem:[%s1302_s0 + $0x50] sm:$0xff] }
   0x7   :  { %v842_v16 = vld [vmem:[%s1302_s0] sm:$0xff]  ;;  %v843_v18 = vld [vmem:[%s1302_s0 + $0x8] sm:$0xff]  ;;  %v845_v22 = vld [vmem:[%s1302_s0 + $0x18] sm:$0xff] }
   0x8   :  { %v850_v17 = vld [vmem:[%s1302_s0 + $0x40] sm:$0xff]  ;;  %v851_v19 = vld [vmem:[%s1302_s0 + $0x48] sm:$0xff]  ;;  %v853_v23 = vld [vmem:[%s1302_s0 + $0x58] sm:$0xff] }
   0x9   :  { %v846_v24 = vld [vmem:[%s1302_s0 + $0x20] sm:$0xff]  ;;  %v847_v26 = vld [vmem:[%s1302_s0 + $0x28] sm:$0xff]  ;;  %v848_v28 = vld [vmem:[%s1302_s0 + $0x30] sm:$0xff] }
   0xa   :  { %271 = vmatpush.bf16.xpose.msra.mxu0 %v864_v2  ;;  %875 = vmatpush.bf16.xpose.msra.mxu2 %v864_v2  ;;  %v854_v25 = vld [vmem:[%s1302_s0 + $0x60] sm:$0xff]  ;;  %v855_v27 = vld [vmem:[%s1302_s0 + $0x68] sm:$0xff]  ;;  %v856_v29 = vld [vmem:[%s1302_s0 + $0x70] sm:$0xff] }
   0xb   :  { %360 = vmatpush.bf16.xpose.msra.mxu1 %v872_v3  ;;  %883 = vmatpush.bf16.xpose.msra.mxu3 %v872_v3  ;;  %v849_v30 = vld [vmem:[%s1302_s0 + $0x38] sm:$0xff]  ;;  %v448_v32 = vld [vmem:[%s1303_s2] sm:$0x3] }
   0xc   :  { %v857_v31 = vld [vmem:[%s1302_s0 + $0x78] sm:$0xff]  ;;  %v1137_v33 = vperm.slane %v448_v32, 0  ;;  %v1139_v34 = vperm.slane %v448_v32, 1 }
  0x12   :  { %272 = vmatpush.bf16.xpose.msra.mxu0 %v863_v4  ;;  %876 = vmatpush.bf16.xpose.msra.mxu2 %v863_v4 }
  0x13   :  { %361 = vmatpush.bf16.xpose.msra.mxu1 %v871_v5  ;;  %884 = vmatpush.bf16.xpose.msra.mxu3 %v871_v5 }
  0x1a   :  { %273 = vmatpush.bf16.xpose.msra.mxu0 %v862_v6  ;;  %877 = vmatpush.bf16.xpose.msra.mxu2 %v862_v6 }
  0x1b   :  { %362 = vmatpush.bf16.xpose.msra.mxu1 %v870_v7  ;;  %885 = vmatpush.bf16.xpose.msra.mxu3 %v870_v7 }
  0x22   :  { %274 = vmatpush.bf16.xpose.msra.mxu0 %v861_v8  ;;  %878 = vmatpush.bf16.xpose.msra.mxu2 %v861_v8 }
  0x23   :  { %363 = vmatpush.bf16.xpose.msra.mxu1 %v869_v9  ;;  %886 = vmatpush.bf16.xpose.msra.mxu3 %v869_v9 }
  0x2a   :  { %275 = vmatpush.bf16.xpose.msra.mxu0 %v860_v10  ;;  %879 = vmatpush.bf16.xpose.msra.mxu2 %v860_v10 }
  0x2b   :  { %364 = vmatpush.bf16.xpose.msra.mxu1 %v868_v11  ;;  %887 = vmatpush.bf16.xpose.msra.mxu3 %v868_v11 }
  0x32   :  { %276 = vmatpush.bf16.xpose.msra.mxu0 %v859_v12  ;;  %880 = vmatpush.bf16.xpose.msra.mxu2 %v859_v12 }
  0x33   :  { %365 = vmatpush.bf16.xpose.msra.mxu1 %v867_v13  ;;  %888 = vmatpush.bf16.xpose.msra.mxu3 %v867_v13 }
  0x3a   :  { %277 = vmatpush.bf16.xpose.msra.mxu0 %v858_v14  ;;  %881 = vmatpush.bf16.xpose.msra.mxu2 %v858_v14 }
  0x3b   :  { %366 = vmatpush.bf16.xpose.msra.mxu1 %v866_v15  ;;  %889 = vmatpush.bf16.xpose.msra.mxu3 %v866_v15 }
  0x41   :  { %278 = vmatmul.bf16.vlgmr.msra.gmra.mxu0 %v842_v16  ;;  %318 = vmatmul.bf16.vlgmr.msra.gmra.mxu2 %v850_v17 }
  0x42   :  { %367 = vmatmul.bf16.vlgmr.msra.gmra.mxu1 %v842_v16  ;;  %407 = vmatmul.bf16.vlgmr.msra.gmra.mxu3 %v850_v17 }
  0x51   :  { %283 = vmatmul.bf16.gmra.mxu0 %v843_v18  ;;  %323 = vmatmul.bf16.gmra.mxu2 %v851_v19 }
  0x52   :  { %372 = vmatmul.bf16.gmra.mxu1 %v843_v18  ;;  %412 = vmatmul.bf16.gmra.mxu3 %v851_v19 }
  0x61   :  { %288 = vmatmul.bf16.gmra.mxu0 %v844_v20  ;;  %328 = vmatmul.bf16.gmra.mxu2 %v852_v21 }
  0x62   :  { %377 = vmatmul.bf16.gmra.mxu1 %v844_v20  ;;  %417 = vmatmul.bf16.gmra.mxu3 %v852_v21 }
  0x71   :  { %293 = vmatmul.bf16.gmra.mxu0 %v845_v22  ;;  %333 = vmatmul.bf16.gmra.mxu2 %v853_v23 }
  0x72   :  { %382 = vmatmul.bf16.gmra.mxu1 %v845_v22  ;;  %422 = vmatmul.bf16.gmra.mxu3 %v853_v23 }
  0x81   :  { %298 = vmatmul.bf16.gmra.mxu0 %v846_v24  ;;  %338 = vmatmul.bf16.gmra.mxu2 %v854_v25 }
  0x82   :  { %387 = vmatmul.bf16.gmra.mxu1 %v846_v24  ;;  %427 = vmatmul.bf16.gmra.mxu3 %v854_v25 }
  0x91   :  { %303 = vmatmul.bf16.gmra.mxu0 %v847_v26  ;;  %343 = vmatmul.bf16.gmra.mxu2 %v855_v27 }
  0x92   :  { %392 = vmatmul.bf16.gmra.mxu1 %v847_v26  ;;  %432 = vmatmul.bf16.gmra.mxu3 %v855_v27 }
  0xa1   :  { %308 = vmatmul.bf16.gmra.mxu0 %v848_v28  ;;  %348 = vmatmul.bf16.gmra.mxu2 %v856_v29 }
  0xa2   :  { %397 = vmatmul.bf16.gmra.mxu1 %v848_v28  ;;  %437 = vmatmul.bf16.gmra.mxu3 %v856_v29 }
  0xb1   :  { %313 = vmatmul.bf16.gmra.mxu0 %v849_v30  ;;  %353 = vmatmul.bf16.gmra.mxu2 %v857_v31 }
  0xb2   :  { %402 = vmatmul.bf16.gmra.mxu1 %v849_v30  ;;  %442 = vmatmul.bf16.gmra.mxu3 %v857_v31 }
  0xbe   :  { %v279_v35 = vpop.f32.mrf.mxu0 }
  0xbf   :  { %v454_v36 = vsub.f32 %v279_v35, %v1137_v33  ;;  %v368_v37 = vpop.f32.mrf.mxu1 }
  0xc0   :  { %v455_v38 = vsub.f32 %v368_v37, %v1139_v34 }
  0xc1   :  { %v518_v39 = vmul.f32 1.442695, %v454_v36 }
  0xc2   :  { %v520_v40 = vmul.f32 1.442695, %v455_v38 }
  0xc3   :  { %890 = vpow2.f32 %v518_v39 }
  0xc4   :  { %892 = vpow2.f32 %v520_v40  ;;  %v319_v41 = vpop.f32.mrf.mxu2 }
  0xc5   :  { %v486_v42 = vsub.f32 %v319_v41, %v1137_v33  ;;  %v408_v43 = vpop.f32.mrf.mxu3 }
  0xc6   :  { %v487_v44 = vsub.f32 %v408_v43, %v1139_v34  ;;  %v281_v45 = vpop.f32.mrf.mxu0 }
  0xc7   :  { %v582_v46 = vmul.f32 1.442695, %v486_v42  ;;  %v456_v47 = vsub.f32 %v281_v45, %v1137_v33  ;;  %v370_v48 = vpop.f32.mrf.mxu1 }
  0xc8   :  { %v584_v49 = vmul.f32 1.442695, %v487_v44  ;;  %v457_v50 = vsub.f32 %v370_v48, %v1139_v34 }
  0xc9   :  { %v891_v51 = vpop.eup %890  ;;  %894 = vpow2.f32 %v582_v46  ;;  %v522_v52 = vmul.f32 1.442695, %v456_v47 }
  0xca   :  { %v893_v53 = vpop.eup %892  ;;  %896 = vpow2.f32 %v584_v49  ;;  %v524_v54 = vmul.f32 1.442695, %v457_v50 }
  0xcb   :  { %v646_v55 = vpack.c.bf16 %v893_v53, %v891_v51  ;;  %898 = vpow2.f32 %v522_v52 }
  0xcc   :  { %900 = vpow2.f32 %v524_v54  ;;  %v321_v56 = vpop.f32.mrf.mxu2 }
  0xcd   :  { %678 = vst [vmem:[%s1304_s3] sm:$0xff] %v646_v55  ;;  %v488_v57 = vsub.f32 %v321_v56, %v1137_v33  ;;  %v410_v58 = vpop.f32.mrf.mxu3 }
  0xce   :  { %v489_v59 = vsub.f32 %v410_v58, %v1139_v34  ;;  %v284_v60 = vpop.f32.mrf.mxu0 }
  0xcf   :  { %v895_v61 = vpop.eup %894  ;;  %v586_v62 = vmul.f32 1.442695, %v488_v57  ;;  %v458_v63 = vsub.f32 %v284_v60, %v1137_v33  ;;  %v373_v0 = vpop.f32.mrf.mxu1 }
  0xd0   :  { %v897_v1 = vpop.eup %896  ;;  %v588_v2 = vmul.f32 1.442695, %v489_v59  ;;  %v459_v3 = vsub.f32 %v373_v0, %v1139_v34 }
  0xd1   :  { %v899_v4 = vpop.eup %898  ;;  %v662_v5 = vpack.c.bf16 %v897_v1, %v895_v61  ;;  %902 = vpow2.f32 %v586_v62  ;;  %v526_v6 = vmul.f32 1.442695, %v458_v63 }
  0xd2   :  { %v901_v7 = vpop.eup %900  ;;  %904 = vpow2.f32 %v588_v2  ;;  %v528_v8 = vmul.f32 1.442695, %v459_v3 }
  0xd3   :  { %694 = vst [vmem:[%s1304_s3 + $0x80] sm:$0xff] %v662_v5  ;;  %v647_v9 = vpack.c.bf16 %v901_v7, %v899_v4  ;;  %906 = vpow2.f32 %v526_v6 }
  0xd4   :  { %908 = vpow2.f32 %v528_v8  ;;  %v324_v10 = vpop.f32.mrf.mxu2 }
  0xd5   :  { %679 = vst [vmem:[%s1304_s3 + $0x8] sm:$0xff] %v647_v9  ;;  %v490_v11 = vsub.f32 %v324_v10, %v1137_v33  ;;  %v413_v12 = vpop.f32.mrf.mxu3 }
  0xd6   :  { %v491_v13 = vsub.f32 %v413_v12, %v1139_v34  ;;  %v286_v14 = vpop.f32.mrf.mxu0 }
  0xd7   :  { %v903_v15 = vpop.eup %902  ;;  %v590_v16 = vmul.f32 1.442695, %v490_v11  ;;  %v460_v17 = vsub.f32 %v286_v14, %v1137_v33  ;;  %v375_v18 = vpop.f32.mrf.mxu1 }
  0xd8   :  { %v905_v19 = vpop.eup %904  ;;  %v592_v20 = vmul.f32 1.442695, %v491_v13  ;;  %v461_v21 = vsub.f32 %v375_v18, %v1139_v34 }
  0xd9   :  { %v907_v22 = vpop.eup %906  ;;  %v663_v23 = vpack.c.bf16 %v905_v19, %v903_v15  ;;  %910 = vpow2.f32 %v590_v16  ;;  %v530_v24 = vmul.f32 1.442695, %v460_v17 }
  0xda   :  { %v909_v25 = vpop.eup %908  ;;  %912 = vpow2.f32 %v592_v20  ;;  %v532_v26 = vmul.f32 1.442695, %v461_v21 }
  0xdb   :  { %695 = vst [vmem:[%s1304_s3 + $0x88] sm:$0xff] %v663_v23  ;;  %v648_v27 = vpack.c.bf16 %v909_v25, %v907_v22  ;;  %914 = vpow2.f32 %v530_v24 }
  0xdc   :  { %916 = vpow2.f32 %v532_v26  ;;  %v326_v28 = vpop.f32.mrf.mxu2 }
  0xdd   :  { %680 = vst [vmem:[%s1304_s3 + $0x10] sm:$0xff] %v648_v27  ;;  %v492_v29 = vsub.f32 %v326_v28, %v1137_v33  ;;  %v415_v30 = vpop.f32.mrf.mxu3 }
  0xde   :  { %v493_v31 = vsub.f32 %v415_v30, %v1139_v34  ;;  %v289_v32 = vpop.f32.mrf.mxu0 }
  0xdf   :  { %v911_v35 = vpop.eup %910  ;;  %v594_v36 = vmul.f32 1.442695, %v492_v29  ;;  %v462_v37 = vsub.f32 %v289_v32, %v1137_v33  ;;  %v378_v38 = vpop.f32.mrf.mxu1 }
  0xe0   :  { %v913_v39 = vpop.eup %912  ;;  %v596_v40 = vmul.f32 1.442695, %v493_v31  ;;  %v463_v41 = vsub.f32 %v378_v38, %v1139_v34 }
  0xe1   :  { %v915_v42 = vpop.eup %914  ;;  %v664_v43 = vpack.c.bf16 %v913_v39, %v911_v35  ;;  %918 = vpow2.f32 %v594_v36  ;;  %v534_v44 = vmul.f32 1.442695, %v462_v37 }
  0xe2   :  { %v917_v45 = vpop.eup %916  ;;  %920 = vpow2.f32 %v596_v40  ;;  %v536_v46 = vmul.f32 1.442695, %v463_v41 }
  0xe3   :  { %696 = vst [vmem:[%s1304_s3 + $0x90] sm:$0xff] %v664_v43  ;;  %v649_v47 = vpack.c.bf16 %v917_v45, %v915_v42  ;;  %922 = vpow2.f32 %v534_v44 }
  0xe4   :  { %924 = vpow2.f32 %v536_v46  ;;  %v329_v48 = vpop.f32.mrf.mxu2 }
  0xe5   :  { %681 = vst [vmem:[%s1304_s3 + $0x18] sm:$0xff] %v649_v47  ;;  %v494_v49 = vsub.f32 %v329_v48, %v1137_v33  ;;  %v418_v50 = vpop.f32.mrf.mxu3 }
  0xe6   :  { %v495_v51 = vsub.f32 %v418_v50, %v1139_v34  ;;  %v291_v52 = vpop.f32.mrf.mxu0 }
  0xe7   :  { %v919_v53 = vpop.eup %918  ;;  %v598_v54 = vmul.f32 1.442695, %v494_v49  ;;  %v464_v55 = vsub.f32 %v291_v52, %v1137_v33  ;;  %v380_v56 = vpop.f32.mrf.mxu1 }
  0xe8   :  { %v921_v57 = vpop.eup %920  ;;  %v600_v58 = vmul.f32 1.442695, %v495_v51  ;;  %v465_v59 = vsub.f32 %v380_v56, %v1139_v34 }
  0xe9   :  { %v923_v60 = vpop.eup %922  ;;  %v665_v61 = vpack.c.bf16 %v921_v57, %v919_v53  ;;  %926 = vpow2.f32 %v598_v54  ;;  %v538_v62 = vmul.f32 1.442695, %v464_v55 }
  0xea   :  { %v925_v63 = vpop.eup %924  ;;  %928 = vpow2.f32 %v600_v58  ;;  %v540_v0 = vmul.f32 1.442695, %v465_v59 }
  0xeb   :  { %697 = vst [vmem:[%s1304_s3 + $0x98] sm:$0xff] %v665_v61  ;;  %v650_v1 = vpack.c.bf16 %v925_v63, %v923_v60  ;;  %930 = vpow2.f32 %v538_v62 }
  0xec   :  { %932 = vpow2.f32 %v540_v0  ;;  %v331_v2 = vpop.f32.mrf.mxu2 }
  0xed   :  { %682 = vst [vmem:[%s1304_s3 + $0x20] sm:$0xff] %v650_v1  ;;  %v496_v3 = vsub.f32 %v331_v2, %v1137_v33  ;;  %v420_v4 = vpop.f32.mrf.mxu3 }
  0xee   :  { %v497_v5 = vsub.f32 %v420_v4, %v1139_v34  ;;  %v294_v6 = vpop.f32.mrf.mxu0 }
  0xef   :  { %v927_v7 = vpop.eup %926  ;;  %v602_v8 = vmul.f32 1.442695, %v496_v3  ;;  %v466_v9 = vsub.f32 %v294_v6, %v1137_v33  ;;  %v383_v10 = vpop.f32.mrf.mxu1 }
  0xf0   :  { %v929_v11 = vpop.eup %928  ;;  %v604_v12 = vmul.f32 1.442695, %v497_v5  ;;  %v467_v13 = vsub.f32 %v383_v10, %v1139_v34 }
  0xf1   :  { %v931_v14 = vpop.eup %930  ;;  %v666_v15 = vpack.c.bf16 %v929_v11, %v927_v7  ;;  %934 = vpow2.f32 %v602_v8  ;;  %v542_v16 = vmul.f32 1.442695, %v466_v9 }
  0xf2   :  { %v933_v17 = vpop.eup %932  ;;  %936 = vpow2.f32 %v604_v12  ;;  %v544_v18 = vmul.f32 1.442695, %v467_v13 }
  0xf3   :  { %698 = vst [vmem:[%s1304_s3 + $0xa0] sm:$0xff] %v666_v15  ;;  %v651_v19 = vpack.c.bf16 %v933_v17, %v931_v14  ;;  %938 = vpow2.f32 %v542_v16 }
  0xf4   :  { %940 = vpow2.f32 %v544_v18  ;;  %v334_v20 = vpop.f32.mrf.mxu2 }
  0xf5   :  { %683 = vst [vmem:[%s1304_s3 + $0x28] sm:$0xff] %v651_v19  ;;  %v498_v21 = vsub.f32 %v334_v20, %v1137_v33  ;;  %v423_v22 = vpop.f32.mrf.mxu3 }
  0xf6   :  { %v499_v23 = vsub.f32 %v423_v22, %v1139_v34  ;;  %v296_v24 = vpop.f32.mrf.mxu0 }
  0xf7   :  { %v935_v25 = vpop.eup %934  ;;  %v606_v26 = vmul.f32 1.442695, %v498_v21  ;;  %v468_v27 = vsub.f32 %v296_v24, %v1137_v33  ;;  %v385_v28 = vpop.f32.mrf.mxu1 }
  0xf8   :  { %v937_v29 = vpop.eup %936  ;;  %v608_v30 = vmul.f32 1.442695, %v499_v23  ;;  %v469_v31 = vsub.f32 %v385_v28, %v1139_v34 }
  0xf9   :  { %v939_v32 = vpop.eup %938  ;;  %v667_v35 = vpack.c.bf16 %v937_v29, %v935_v25  ;;  %942 = vpow2.f32 %v606_v26  ;;  %v546_v36 = vmul.f32 1.442695, %v468_v27 }
  0xfa   :  { %v941_v37 = vpop.eup %940  ;;  %944 = vpow2.f32 %v608_v30  ;;  %v548_v38 = vmul.f32 1.442695, %v469_v31 }
  0xfb   :  { %699 = vst [vmem:[%s1304_s3 + $0xa8] sm:$0xff] %v667_v35  ;;  %v652_v39 = vpack.c.bf16 %v941_v37, %v939_v32  ;;  %946 = vpow2.f32 %v546_v36 }
  0xfc   :  { %948 = vpow2.f32 %v548_v38  ;;  %v336_v40 = vpop.f32.mrf.mxu2 }
  0xfd   :  { %684 = vst [vmem:[%s1304_s3 + $0x30] sm:$0xff] %v652_v39  ;;  %v500_v41 = vsub.f32 %v336_v40, %v1137_v33  ;;  %v425_v42 = vpop.f32.mrf.mxu3 }
  0xfe   :  { %v501_v43 = vsub.f32 %v425_v42, %v1139_v34  ;;  %v299_v44 = vpop.f32.mrf.mxu0 }
  0xff   :  { %v943_v45 = vpop.eup %942  ;;  %v610_v46 = vmul.f32 1.442695, %v500_v41  ;;  %v470_v47 = vsub.f32 %v299_v44, %v1137_v33  ;;  %v388_v48 = vpop.f32.mrf.mxu1 }
 0x100   :  { %v945_v49 = vpop.eup %944  ;;  %v612_v50 = vmul.f32 1.442695, %v501_v43  ;;  %v471_v51 = vsub.f32 %v388_v48, %v1139_v34 }
 0x101   :  { %v947_v52 = vpop.eup %946  ;;  %v668_v53 = vpack.c.bf16 %v945_v49, %v943_v45  ;;  %950 = vpow2.f32 %v610_v46  ;;  %v550_v54 = vmul.f32 1.442695, %v470_v47 }
 0x102   :  { %v949_v55 = vpop.eup %948  ;;  %952 = vpow2.f32 %v612_v50  ;;  %v552_v56 = vmul.f32 1.442695, %v471_v51 }
 0x103   :  { %700 = vst [vmem:[%s1304_s3 + $0xb0] sm:$0xff] %v668_v53  ;;  %v653_v57 = vpack.c.bf16 %v949_v55, %v947_v52  ;;  %954 = vpow2.f32 %v550_v54 }
 0x104   :  { %956 = vpow2.f32 %v552_v56  ;;  %v339_v58 = vpop.f32.mrf.mxu2 }
 0x105   :  { %685 = vst [vmem:[%s1304_s3 + $0x38] sm:$0xff] %v653_v57  ;;  %v502_v59 = vsub.f32 %v339_v58, %v1137_v33  ;;  %v428_v60 = vpop.f32.mrf.mxu3 }
 0x106   :  { %v503_v61 = vsub.f32 %v428_v60, %v1139_v34  ;;  %v301_v62 = vpop.f32.mrf.mxu0 }
 0x107   :  { %v951_v63 = vpop.eup %950  ;;  %v614_v0 = vmul.f32 1.442695, %v502_v59  ;;  %v472_v1 = vsub.f32 %v301_v62, %v1137_v33  ;;  %v390_v2 = vpop.f32.mrf.mxu1 }
 0x108   :  { %v953_v3 = vpop.eup %952  ;;  %v616_v4 = vmul.f32 1.442695, %v503_v61  ;;  %v473_v5 = vsub.f32 %v390_v2, %v1139_v34 }
 0x109   :  { %v955_v6 = vpop.eup %954  ;;  %v669_v7 = vpack.c.bf16 %v953_v3, %v951_v63  ;;  %958 = vpow2.f32 %v614_v0  ;;  %v554_v8 = vmul.f32 1.442695, %v472_v1 }
 0x10a   :  { %v957_v9 = vpop.eup %956  ;;  %960 = vpow2.f32 %v616_v4  ;;  %v556_v10 = vmul.f32 1.442695, %v473_v5 }
 0x10b   :  { %701 = vst [vmem:[%s1304_s3 + $0xb8] sm:$0xff] %v669_v7  ;;  %v654_v11 = vpack.c.bf16 %v957_v9, %v955_v6  ;;  %962 = vpow2.f32 %v554_v8 }
 0x10c   :  { %964 = vpow2.f32 %v556_v10  ;;  %v341_v12 = vpop.f32.mrf.mxu2 }
 0x10d   :  { %686 = vst [vmem:[%s1304_s3 + $0x40] sm:$0xff] %v654_v11  ;;  %v504_v13 = vsub.f32 %v341_v12, %v1137_v33  ;;  %v430_v14 = vpop.f32.mrf.mxu3 }
 0x10e   :  { %v505_v15 = vsub.f32 %v430_v14, %v1139_v34  ;;  %v304_v16 = vpop.f32.mrf.mxu0 }
 0x10f   :  { %v959_v17 = vpop.eup %958  ;;  %v618_v18 = vmul.f32 1.442695, %v504_v13  ;;  %v474_v19 = vsub.f32 %v304_v16, %v1137_v33  ;;  %v393_v20 = vpop.f32.mrf.mxu1 }
 0x110   :  { %v961_v21 = vpop.eup %960  ;;  %v620_v22 = vmul.f32 1.442695, %v505_v15  ;;  %v475_v23 = vsub.f32 %v393_v20, %v1139_v34 }
 0x111   :  { %v963_v24 = vpop.eup %962  ;;  %v670_v25 = vpack.c.bf16 %v961_v21, %v959_v17  ;;  %966 = vpow2.f32 %v618_v18  ;;  %v558_v26 = vmul.f32 1.442695, %v474_v19 }
 0x112   :  { %v965_v27 = vpop.eup %964  ;;  %968 = vpow2.f32 %v620_v22  ;;  %v560_v28 = vmul.f32 1.442695, %v475_v23 }
 0x113   :  { %702 = vst [vmem:[%s1304_s3 + $0xc0] sm:$0xff] %v670_v25  ;;  %v655_v29 = vpack.c.bf16 %v965_v27, %v963_v24  ;;  %970 = vpow2.f32 %v558_v26 }
 0x114   :  { %972 = vpow2.f32 %v560_v28  ;;  %v344_v30 = vpop.f32.mrf.mxu2 }
 0x115   :  { %687 = vst [vmem:[%s1304_s3 + $0x48] sm:$0xff] %v655_v29  ;;  %v506_v31 = vsub.f32 %v344_v30, %v1137_v33  ;;  %v433_v32 = vpop.f32.mrf.mxu3 }
 0x116   :  { %v507_v35 = vsub.f32 %v433_v32, %v1139_v34  ;;  %v306_v36 = vpop.f32.mrf.mxu0 }
 0x117   :  { %v967_v37 = vpop.eup %966  ;;  %v622_v38 = vmul.f32 1.442695, %v506_v31  ;;  %v476_v39 = vsub.f32 %v306_v36, %v1137_v33  ;;  %v395_v40 = vpop.f32.mrf.mxu1 }
 0x118   :  { %v969_v41 = vpop.eup %968  ;;  %v624_v42 = vmul.f32 1.442695, %v507_v35  ;;  %v477_v43 = vsub.f32 %v395_v40, %v1139_v34 }
 0x119   :  { %v971_v44 = vpop.eup %970  ;;  %v671_v45 = vpack.c.bf16 %v969_v41, %v967_v37  ;;  %974 = vpow2.f32 %v622_v38  ;;  %v562_v46 = vmul.f32 1.442695, %v476_v39 }
 0x11a   :  { %v973_v47 = vpop.eup %972  ;;  %976 = vpow2.f32 %v624_v42  ;;  %v564_v48 = vmul.f32 1.442695, %v477_v43 }
 0x11b   :  { %703 = vst [vmem:[%s1304_s3 + $0xc8] sm:$0xff] %v671_v45  ;;  %v656_v49 = vpack.c.bf16 %v973_v47, %v971_v44  ;;  %978 = vpow2.f32 %v562_v46 }
 0x11c   :  { %980 = vpow2.f32 %v564_v48  ;;  %v346_v50 = vpop.f32.mrf.mxu2 }
 0x11d   :  { %688 = vst [vmem:[%s1304_s3 + $0x50] sm:$0xff] %v656_v49  ;;  %v508_v51 = vsub.f32 %v346_v50, %v1137_v33  ;;  %v435_v52 = vpop.f32.mrf.mxu3 }
 0x11e   :  { %v509_v53 = vsub.f32 %v435_v52, %v1139_v34  ;;  %v309_v54 = vpop.f32.mrf.mxu0 }
 0x11f   :  { %v975_v55 = vpop.eup %974  ;;  %v626_v56 = vmul.f32 1.442695, %v508_v51  ;;  %v478_v57 = vsub.f32 %v309_v54, %v1137_v33  ;;  %v398_v58 = vpop.f32.mrf.mxu1 }
 0x120   :  { %v977_v59 = vpop.eup %976  ;;  %v628_v60 = vmul.f32 1.442695, %v509_v53  ;;  %v479_v61 = vsub.f32 %v398_v58, %v1139_v34 }
 0x121   :  { %v979_v62 = vpop.eup %978  ;;  %v672_v63 = vpack.c.bf16 %v977_v59, %v975_v55  ;;  %982 = vpow2.f32 %v626_v56  ;;  %v566_v0 = vmul.f32 1.442695, %v478_v57 }
 0x122   :  { %v981_v1 = vpop.eup %980  ;;  %984 = vpow2.f32 %v628_v60  ;;  %v568_v2 = vmul.f32 1.442695, %v479_v61 }
 0x123   :  { %704 = vst [vmem:[%s1304_s3 + $0xd0] sm:$0xff] %v672_v63  ;;  %v657_v3 = vpack.c.bf16 %v981_v1, %v979_v62  ;;  %986 = vpow2.f32 %v566_v0 }
 0x124   :  { %988 = vpow2.f32 %v568_v2  ;;  %v349_v4 = vpop.f32.mrf.mxu2 }
 0x125   :  { %689 = vst [vmem:[%s1304_s3 + $0x58] sm:$0xff] %v657_v3  ;;  %v510_v5 = vsub.f32 %v349_v4, %v1137_v33  ;;  %v438_v6 = vpop.f32.mrf.mxu3 }
 0x126   :  { %v511_v7 = vsub.f32 %v438_v6, %v1139_v34  ;;  %v311_v8 = vpop.f32.mrf.mxu0 }
 0x127   :  { %v983_v9 = vpop.eup %982  ;;  %v630_v10 = vmul.f32 1.442695, %v510_v5  ;;  %v480_v11 = vsub.f32 %v311_v8, %v1137_v33  ;;  %v400_v12 = vpop.f32.mrf.mxu1 }
 0x128   :  { %v985_v13 = vpop.eup %984  ;;  %v632_v14 = vmul.f32 1.442695, %v511_v7  ;;  %v481_v15 = vsub.f32 %v400_v12, %v1139_v34 }
 0x129   :  { %v987_v16 = vpop.eup %986  ;;  %v673_v17 = vpack.c.bf16 %v985_v13, %v983_v9  ;;  %990 = vpow2.f32 %v630_v10  ;;  %v570_v18 = vmul.f32 1.442695, %v480_v11 }
 0x12a   :  { %v989_v19 = vpop.eup %988  ;;  %992 = vpow2.f32 %v632_v14  ;;  %v572_v20 = vmul.f32 1.442695, %v481_v15 }
 0x12b   :  { %705 = vst [vmem:[%s1304_s3 + $0xd8] sm:$0xff] %v673_v17  ;;  %v658_v21 = vpack.c.bf16 %v989_v19, %v987_v16  ;;  %994 = vpow2.f32 %v570_v18 }
 0x12c   :  { %996 = vpow2.f32 %v572_v20  ;;  %v351_v22 = vpop.f32.mrf.mxu2 }
 0x12d   :  { %690 = vst [vmem:[%s1304_s3 + $0x60] sm:$0xff] %v658_v21  ;;  %v512_v23 = vsub.f32 %v351_v22, %v1137_v33  ;;  %v440_v24 = vpop.f32.mrf.mxu3 }
 0x12e   :  { %v513_v25 = vsub.f32 %v440_v24, %v1139_v34  ;;  %v314_v26 = vpop.f32.mrf.mxu0 }
 0x12f   :  { %v991_v27 = vpop.eup %990  ;;  %v634_v28 = vmul.f32 1.442695, %v512_v23  ;;  %v482_v29 = vsub.f32 %v314_v26, %v1137_v33  ;;  %v403_v30 = vpop.f32.mrf.mxu1 }
 0x130   :  { %v993_v31 = vpop.eup %992  ;;  %v636_v32 = vmul.f32 1.442695, %v513_v25  ;;  %v483_v35 = vsub.f32 %v403_v30, %v1139_v34 }
 0x131   :  { %v995_v36 = vpop.eup %994  ;;  %v674_v37 = vpack.c.bf16 %v993_v31, %v991_v27  ;;  %998 = vpow2.f32 %v634_v28  ;;  %v574_v38 = vmul.f32 1.442695, %v482_v29 }
 0x132   :  { %v997_v39 = vpop.eup %996  ;;  %1000 = vpow2.f32 %v636_v32  ;;  %v576_v40 = vmul.f32 1.442695, %v483_v35 }
 0x133   :  { %706 = vst [vmem:[%s1304_s3 + $0xe0] sm:$0xff] %v674_v37  ;;  %v659_v41 = vpack.c.bf16 %v997_v39, %v995_v36  ;;  %1002 = vpow2.f32 %v574_v38 }
 0x134   :  { %1004 = vpow2.f32 %v576_v40  ;;  %v354_v42 = vpop.f32.mrf.mxu2 }
 0x135   :  { %691 = vst [vmem:[%s1304_s3 + $0x68] sm:$0xff] %v659_v41  ;;  %v514_v43 = vsub.f32 %v354_v42, %v1137_v33  ;;  %v443_v44 = vpop.f32.mrf.mxu3 }
 0x136   :  { %v515_v45 = vsub.f32 %v443_v44, %v1139_v34  ;;  %v316_v46 = vpop.f32.mrf.mxu0 }
 0x137   :  { %v999_v47 = vpop.eup %998  ;;  %v638_v48 = vmul.f32 1.442695, %v514_v43  ;;  %v484_v49 = vsub.f32 %v316_v46, %v1137_v33  ;;  %v405_v50 = vpop.f32.mrf.mxu1 }
 0x138   :  { %v1001_v51 = vpop.eup %1000  ;;  %v640_v52 = vmul.f32 1.442695, %v515_v45  ;;  %v485_v53 = vsub.f32 %v405_v50, %v1139_v34 }
 0x139   :  { %v1003_v54 = vpop.eup %1002  ;;  %v675_v55 = vpack.c.bf16 %v1001_v51, %v999_v47  ;;  %1006 = vpow2.f32 %v638_v48  ;;  %v578_v56 = vmul.f32 1.442695, %v484_v49 }
 0x13a   :  { %v1005_v57 = vpop.eup %1004  ;;  %1008 = vpow2.f32 %v640_v52  ;;  %v580_v58 = vmul.f32 1.442695, %v485_v53 }
 0x13b   :  { %707 = vst [vmem:[%s1304_s3 + $0xe8] sm:$0xff] %v675_v55  ;;  %v660_v59 = vpack.c.bf16 %v1005_v57, %v1003_v54  ;;  %1010 = vpow2.f32 %v578_v56 }
 0x13c   :  { %1012 = vpow2.f32 %v580_v58  ;;  %v356_v60 = vpop.f32.mrf.mxu2 }
 0x13d   :  { %692 = vst [vmem:[%s1304_s3 + $0x70] sm:$0xff] %v660_v59  ;;  %v516_v61 = vsub.f32 %v356_v60, %v1137_v33  ;;  %v445_v62 = vpop.f32.mrf.mxu3 }
 0x13e   :  { %v517_v63 = vsub.f32 %v445_v62, %v1139_v34 }
 0x13f   :  { %v1007_v0 = vpop.eup %1006  ;;  %v642_v1 = vmul.f32 1.442695, %v516_v61 }
 0x140   :  { %v1009_v2 = vpop.eup %1008  ;;  %v644_v3 = vmul.f32 1.442695, %v517_v63 }
 0x141   :  { %v1011_v4 = vpop.eup %1010  ;;  %v676_v5 = vpack.c.bf16 %v1009_v2, %v1007_v0  ;;  %1014 = vpow2.f32 %v642_v1 }
 0x142   :  { %v1013_v6 = vpop.eup %1012  ;;  %1016 = vpow2.f32 %v644_v3 }
 0x143   :  { %708 = vst [vmem:[%s1304_s3 + $0xf0] sm:$0xff] %v676_v5  ;;  %v661_v7 = vpack.c.bf16 %v1013_v6, %v1011_v4 }
 0x145   :  { %693 = vst [vmem:[%s1304_s3 + $0x78] sm:$0xff] %v661_v7 }
 0x147   :  { %v1015_v33 = vpop.eup %1014 }
 0x148   :  { %v1017_v34 = vpop.eup %1016 }
 0x149   :  { %v677_v8 = vpack.c.bf16 %v1017_v34, %v1015_v33 }
 0x14b   :  { %709 = vst [vmem:[%s1304_s3 + $0xf8] sm:$0xff] %v677_v8 }

// kernel: walker_visit_losses.3
= control target key start
LH: loop header
LB: loop body
LE: loop exit
PB: predicated region body
PF: predicated region fallthrough
CT: control target
= control target key end

     0   :  { %v2917_v0 = vmov 0   ;;  %s5408_s2 = inlined_call_operand.vmem [shape: f32[256,1], index: 2, kind: input, shape index: {}]   ;;  %s5409_s1 = inlined_call_operand.vmem [shape: bf16[256,128], index: 1, kind: input, shape index: {}]   ;;  %s5410_s0 = inlined_call_operand.vmem [shape: bf16[256,128], index: 0, kind: input, shape index: {}]   ;;  %s5411_s4 = inlined_call_operand.vmem [shape: f32[1,1,256], index: 4, kind: output, shape index: {1}]   ;;  %s5412_s3 = inlined_call_operand.vmem [shape: bf16[256,256], index: 3, kind: output, shape index: {0}]   ;;  %s5413_s5 = inlined_call_operand.vmem [shape: f32[1,1,256], index: 5, kind: output, shape index: {2}]   ;;  %s5414_s6 = inlined_call_operand.vmem [shape: f32[1,1,256], index: 6, kind: output, shape index: {3}]  }
   0x1   :  { %2588 = vset.pattern.permute.xlu0 %v2917_v0  ;;  %2587 = vset.pattern.permute.xlu2 %v2917_v0  ;;  %v2958_v1 = vld [vmem:[%s5408_s2 + $0x10] sm:$0xff]  ;;  %v2963_v2 = vld [vmem:[%s5408_s2 + $0x8] sm:$0xff]  ;;  %v2968_v3 = vld [vmem:[%s5408_s2] sm:$0xff] }
   0x2   :  { %2586 = vset.pattern.permute.xlu1 %v2917_v0  ;;  %vm1478_vm0 = vcmp.gt.f32.partialorder %v2958_v1, 0.0  ;;  %vm1477_vm1 = vcmp.gt.f32.partialorder %v2963_v2, 0.0  ;;  %vm1476_vm2 = vcmp.gt.f32.partialorder %v2968_v3, 0.0  ;;  %v2560_v4 = vld [vmem:[%s5409_s1 + $0x38] sm:$0xff]  ;;  %v2986_v9 = vld [vmem:[%s5408_s2 + $0x48] sm:$0xff]  ;;  %v2996_v11 = vld [vmem:[%s5408_s2 + $0x20] sm:$0xff] }
   0x3   :  { %v2568_v5 = vld [vmem:[%s5409_s1 + $0x78] sm:$0xff]  ;;  %v1510_v6 = vsel %vm1478_vm0, 1, %v2917_v0  ;;  %v1509_v7 = vsel %vm1477_vm1, 1, %v2917_v0  ;;  %v1508_v8 = vsel %vm1476_vm2, 1, %v2917_v0  ;;  %274 = vmatpush.bf16.xpose.msra.mxu0 %v2560_v4  ;;  %2569 = vmatpush.bf16.xpose.msra.mxu2 %v2560_v4  ;;  %vm1485_vm3 = vcmp.gt.f32.partialorder %v2986_v9, 0.0  ;;  %v2559_v14 = vld [vmem:[%s5409_s1 + $0x30] sm:$0xff] }
   0x4   :  { %v2991_v10 = vld [vmem:[%s5408_s2 + $0x18] sm:$0xff]  ;;  %1547 = vperm.xlu0 %2588, %v1510_v6   ;;  %1544 = vperm.xlu2 %2587, %v1509_v7   ;;  %vm1480_vm5 = vcmp.gt.f32.partialorder %v2996_v11, 0.0  ;;  %v1517_v12 = vsel %vm1485_vm3, 1, %v2917_v0  ;;  %v2567_v16 = vld [vmem:[%s5409_s1 + $0x70] sm:$0xff]  ;;  %v3013_v17 = vld [vmem:[%s5408_s2 + $0x60] sm:$0xff] }
   0x5   :  { %1541 = vperm.xlu1 %2586, %v1508_v8   ;;  %363 = vmatpush.bf16.xpose.msra.mxu1 %v2568_v5  ;;  %vm1479_vm4 = vcmp.gt.f32.partialorder %v2991_v10, 0.0  ;;  %v1512_v15 = vsel %vm1480_vm5, 1, %v2917_v0  ;;  %v3018_v18 = vld [vmem:[%s5408_s2 + $0x28] sm:$0xff]  ;;  %v3023_v19 = vld [vmem:[%s5408_s2 + $0x30] sm:$0xff]  ;;  %vm1488_vm6 = vcmp.gt.f32.partialorder %v3013_v17, 0.0  ;;  %v3040_v25 = vld [vmem:[%s5408_s2 + $0x78] sm:$0xff] }
   0x6   :  { %2577 = vmatpush.bf16.xpose.msra.mxu3 %v2568_v5  ;;  %v1511_v13 = vsel %vm1479_vm4, 1, %v2917_v0  ;;  %vm1481_vm7 = vcmp.gt.f32.partialorder %v3018_v18, 0.0  ;;  %vm1482_vm8 = vcmp.gt.f32.partialorder %v3023_v19, 0.0  ;;  %v1520_v20 = vsel %vm1488_vm6, 1, %v2917_v0  ;;  %v2558_v22 = vld [vmem:[%s5409_s1 + $0x28] sm:$0xff]  ;;  %v3045_v26 = vld [vmem:[%s5408_s2 + $0x38] sm:$0xff] }
   0x7   :  { %v1513_v21 = vsel %vm1481_vm7, 1, %v2917_v0  ;;  %v1514_v23 = vsel %vm1482_vm8, 1, %v2917_v0  ;;  %v2566_v24 = vld [vmem:[%s5409_s1 + $0x68] sm:$0xff]  ;;  %v3050_v27 = vld [vmem:[%s5408_s2 + $0x40] sm:$0xff]  ;;  %vm1491_vm9 = vcmp.gt.f32.partialorder %v3040_v25, 0.0  ;;  %vm1483_vm10 = vcmp.gt.f32.partialorder %v3045_v26, 0.0 }
   0x8   :  { %vm1484_vm11 = vcmp.gt.f32.partialorder %v3050_v27, 0.0  ;;  %v1523_v28 = vsel %vm1491_vm9, 1, %v2917_v0  ;;  %v1515_v29 = vsel %vm1483_vm10, 1, %v2917_v0  ;;  %v2557_v30 = vld [vmem:[%s5409_s1 + $0x20] sm:$0xff]  ;;  %v3067_v33 = vld [vmem:[%s5408_s2 + $0x90] sm:$0xff]  ;;  %v3077_v35 = vld [vmem:[%s5408_s2 + $0x58] sm:$0xff] }
   0x9   :  { %v1516_v31 = vsel %vm1484_vm11, 1, %v2917_v0  ;;  %v2565_v32 = vld [vmem:[%s5409_s1 + $0x60] sm:$0xff]  ;;  %v3072_v34 = vld [vmem:[%s5408_s2 + $0x50] sm:$0xff]  ;;  %vm1494_vm12 = vcmp.gt.f32.partialorder %v3067_v33, 0.0  ;;  %vm1487_vm14 = vcmp.gt.f32.partialorder %v3077_v35, 0.0  ;;  %v2556_v38 = vld [vmem:[%s5409_s1 + $0x18] sm:$0xff] }
   0xa   :  { %vm1486_vm13 = vcmp.gt.f32.partialorder %v3072_v34, 0.0  ;;  %v1526_v36 = vsel %vm1494_vm12, 1, %v2917_v0  ;;  %v1519_v39 = vsel %vm1487_vm14, 1, %v2917_v0  ;;  %v2564_v40 = vld [vmem:[%s5409_s1 + $0x58] sm:$0xff]  ;;  %v3094_v41 = vld [vmem:[%s5408_s2 + $0xa8] sm:$0xff]  ;;  %v3104_v43 = vld [vmem:[%s5408_s2 + $0x70] sm:$0xff] }
   0xb   :  { %275 = vmatpush.bf16.xpose.msra.mxu0 %v2559_v14  ;;  %2570 = vmatpush.bf16.xpose.msra.mxu2 %v2559_v14  ;;  %v1518_v37 = vsel %vm1486_vm13, 1, %v2917_v0  ;;  %v3099_v42 = vld [vmem:[%s5408_s2 + $0x68] sm:$0xff]  ;;  %v3109_v44 = vld [vmem:[%s5408_s2 + $0xb0] sm:$0xff]  ;;  %vm1497_vm15 = vcmp.gt.f32.partialorder %v3094_v41, 0.0  ;;  %vm1490_vm2 = vcmp.gt.f32.partialorder %v3104_v43, 0.0  ;;  %v476_v51 = vld [vmem:[%s5408_s2 + $0xc0] sm:$0xff] }
   0xc   :  { %1568 = vperm.xlu0 %2588, %v1517_v12   ;;  %1550 = vperm.xlu2 %2587, %v1511_v13   ;;  %vm1489_vm0 = vcmp.gt.f32.partialorder %v3099_v42, 0.0  ;;  %vm1498_vm1 = vcmp.gt.f32.partialorder %v3109_v44, 0.0  ;;  %v1529_v46 = vsel %vm1497_vm15, 1, %v2917_v0  ;;  %v2555_v48 = vld [vmem:[%s5409_s1 + $0x10] sm:$0xff]  ;;  %v1522_v49 = vsel %vm1490_vm2, 1, %v2917_v0  ;;  %v3133_v52 = vld [vmem:[%s5408_s2 + $0x80] sm:$0xff] }
   0xd   :  { %1553 = vperm.xlu1 %2586, %v1512_v15   ;;  %364 = vmatpush.bf16.xpose.msra.mxu1 %v2567_v16  ;;  %v3116_v45 = vsel %vm1498_vm1, 1, %v2917_v0  ;;  %v1521_v47 = vsel %vm1489_vm0, 1, %v2917_v0  ;;  %v2563_v50 = vld [vmem:[%s5409_s1 + $0x50] sm:$0xff]  ;;  %v3138_v53 = vld [vmem:[%s5408_s2 + $0x88] sm:$0xff]  ;;  %vm1500_vm3 = vcmp.gt.f32.partialorder %v476_v51, 0.0  ;;  %vm1492_vm4 = vcmp.gt.f32.partialorder %v3133_v52, 0.0 }
   0xe   :  { %2578 = vmatpush.bf16.xpose.msra.mxu3 %v2567_v16  ;;  %vm1493_vm5 = vcmp.gt.f32.partialorder %v3138_v53, 0.0  ;;  %v1532_v54 = vsel %vm1500_vm3, 1, %v2917_v0  ;;  %v1524_v55 = vsel %vm1492_vm4, 1, %v2917_v0  ;;  %v2554_v56 = vld [vmem:[%s5409_s1 + $0x8] sm:$0xff]  ;;  %v479_v59 = vld [vmem:[%s5408_s2 + $0xd8] sm:$0xff]  ;;  %v3162_v61 = vld [vmem:[%s5408_s2 + $0xa0] sm:$0xff] }
   0xf   :  { %v1525_v57 = vsel %vm1493_vm5, 1, %v2917_v0  ;;  %v2562_v58 = vld [vmem:[%s5409_s1 + $0x48] sm:$0xff]  ;;  %v3157_v60 = vld [vmem:[%s5408_s2 + $0x98] sm:$0xff]  ;;  %vm1503_vm6 = vcmp.gt.f32.partialorder %v479_v59, 0.0  ;;  %vm1496_vm8 = vcmp.gt.f32.partialorder %v3162_v61, 0.0  ;;  %v2553_v4 = vld [vmem:[%s5409_s1] sm:$0xff] }
  0x10   :  { %vm1495_vm7 = vcmp.gt.f32.partialorder %v3157_v60, 0.0  ;;  %v1535_v62 = vsel %vm1503_vm6, 1, %v2917_v0  ;;  %v1528_v5 = vsel %vm1496_vm8, 1, %v2917_v0  ;;  %v2561_v6 = vld [vmem:[%s5409_s1 + $0x40] sm:$0xff]  ;;  %v482_v7 = vld [vmem:[%s5408_s2 + $0xf0] sm:$0xff]  ;;  %v3181_v8 = vld [vmem:[%s5408_s2 + $0xb8] sm:$0xff] }
  0x11   :  { %v1527_v63 = vsel %vm1495_vm7, 1, %v2917_v0  ;;  %vm1506_vm9 = vcmp.gt.f32.partialorder %v482_v7, 0.0  ;;  %v2537_v12 = vld [vmem:[%s5410_s0] sm:$0xff]  ;;  %vm1499_vm10 = vcmp.gt.f32.partialorder %v3181_v8, 0.0  ;;  %v477_v16 = vld [vmem:[%s5408_s2 + $0xc8] sm:$0xff] }
  0x12   :  { %v2545_v13 = vld [vmem:[%s5410_s0 + $0x40] sm:$0xff]  ;;  %v1538_v14 = vsel %vm1506_vm9, 1, %v2917_v0  ;;  %v1531_v15 = vsel %vm1499_vm10, 1, %v2917_v0  ;;  %vm1501_vm11 = vcmp.gt.f32.partialorder %v477_v16, 0.0 }
  0x13   :  { %276 = vmatpush.bf16.xpose.msra.mxu0 %v2558_v22  ;;  %2571 = vmatpush.bf16.xpose.msra.mxu2 %v2558_v22 }
  0x14   :  { %1577 = vperm.xlu0 %2588, %v1520_v20   ;;  %1556 = vperm.xlu2 %2587, %v1513_v21   ;;  %v478_v20 = vld [vmem:[%s5408_s2 + $0xd0] sm:$0xff]  ;;  %v1533_v21 = vsel %vm1501_vm11, 1, %v2917_v0 }
  0x15   :  { %1559 = vperm.xlu1 %2586, %v1514_v23   ;;  %365 = vmatpush.bf16.xpose.msra.mxu1 %v2566_v24  ;;  %vm1502_vm12 = vcmp.gt.f32.partialorder %v478_v20, 0.0  ;;  %v480_v23 = vld [vmem:[%s5408_s2 + $0xe0] sm:$0xff] }
  0x16   :  { %2579 = vmatpush.bf16.xpose.msra.mxu3 %v2566_v24  ;;  %v1534_v22 = vsel %vm1502_vm12, 1, %v2917_v0  ;;  %v481_v24 = vld [vmem:[%s5408_s2 + $0xe8] sm:$0xff]  ;;  %vm1504_vm13 = vcmp.gt.f32.partialorder %v480_v23, 0.0 }
  0x17   :  { %vm1505_vm14 = vcmp.gt.f32.partialorder %v481_v24, 0.0 }
  0x1b   :  { %277 = vmatpush.bf16.xpose.msra.mxu0 %v2557_v30  ;;  %2572 = vmatpush.bf16.xpose.msra.mxu2 %v2557_v30  ;;  %v1537_v30 = vsel %vm1505_vm14, 1, %v2917_v0 }
  0x1c   :  { %1586 = vperm.xlu0 %2588, %v1523_v28   ;;  %1562 = vperm.xlu2 %2587, %v1515_v29   ;;  %v2538_v28 = vld [vmem:[%s5410_s0 + $0x8] sm:$0xff]  ;;  %v1536_v29 = vsel %vm1504_vm13, 1, %v2917_v0 }
  0x1d   :  { %1565 = vperm.xlu1 %2586, %v1516_v31   ;;  %366 = vmatpush.bf16.xpose.msra.mxu1 %v2565_v32  ;;  %v483_v31 = vld [vmem:[%s5408_s2 + $0xf8] sm:$0xff] }
  0x1e   :  { %2580 = vmatpush.bf16.xpose.msra.mxu3 %v2565_v32  ;;  %vm1507_vm15 = vcmp.gt.f32.partialorder %v483_v31, 0.0 }
  0x1f   :  { %v1539_v32 = vsel %vm1507_vm15, 1, %v2917_v0  ;;  %v2540_v0 = vld [vmem:[%s5410_s0 + $0x18] sm:$0xff] }
  0x23   :  { %278 = vmatpush.bf16.xpose.msra.mxu0 %v2556_v38  ;;  %2573 = vmatpush.bf16.xpose.msra.mxu2 %v2556_v38 }
  0x24   :  { %1595 = vperm.xlu0 %2588, %v1526_v36   ;;  %1571 = vperm.xlu2 %2587, %v1518_v37   ;;  %v2547_v36 = vld [vmem:[%s5410_s0 + $0x50] sm:$0xff] }
  0x25   :  { %1574 = vperm.xlu1 %2586, %v1519_v39   ;;  %367 = vmatpush.bf16.xpose.msra.mxu1 %v2564_v40 }
  0x26   :  { %2581 = vmatpush.bf16.xpose.msra.mxu3 %v2564_v40 }
  0x2b   :  { %279 = vmatpush.bf16.xpose.msra.mxu0 %v2555_v48  ;;  %2574 = vmatpush.bf16.xpose.msra.mxu2 %v2555_v48 }
  0x2c   :  { %1604 = vperm.xlu0 %2588, %v1529_v46   ;;  %1580 = vperm.xlu2 %2587, %v1521_v47  }
  0x2d   :  { %1583 = vperm.xlu1 %2586, %v1522_v49   ;;  %368 = vmatpush.bf16.xpose.msra.mxu1 %v2563_v50 }
  0x2e   :  { %2582 = vmatpush.bf16.xpose.msra.mxu3 %v2563_v50 }
  0x33   :  { %280 = vmatpush.bf16.xpose.msra.mxu0 %v2554_v56  ;;  %2575 = vmatpush.bf16.xpose.msra.mxu2 %v2554_v56 }
  0x34   :  { %1613 = vperm.xlu0 %2588, %v1532_v54   ;;  %1589 = vperm.xlu2 %2587, %v1524_v55  }
  0x35   :  { %1592 = vperm.xlu1 %2586, %v1525_v57   ;;  %369 = vmatpush.bf16.xpose.msra.mxu1 %v2562_v58 }
  0x36   :  { %2583 = vmatpush.bf16.xpose.msra.mxu3 %v2562_v58 }
  0x3b   :  { %281 = vmatpush.bf16.xpose.msra.mxu0 %v2553_v4  ;;  %2576 = vmatpush.bf16.xpose.msra.mxu2 %v2553_v4 }
  0x3c   :  { %1622 = vperm.xlu0 %2588, %v1535_v62   ;;  %1598 = vperm.xlu2 %2587, %v1527_v63  }
  0x3d   :  { %1601 = vperm.xlu1 %2586, %v1528_v5   ;;  %370 = vmatpush.bf16.xpose.msra.mxu1 %v2561_v6 }
  0x3e   :  { %2584 = vmatpush.bf16.xpose.msra.mxu3 %v2561_v6 }
  0x42   :  { %282 = vmatmul.bf16.vlgmr.msra.gmra.mxu0 %v2537_v12  ;;  %322 = vmatmul.bf16.vlgmr.msra.gmra.mxu2 %v2545_v13 }
  0x44   :  { %1631 = vperm.xlu0 %2588, %v1538_v14   ;;  %371 = vmatmul.bf16.vlgmr.msra.gmra.mxu1 %v2537_v12 }
  0x45   :  { %411 = vmatmul.bf16.vlgmr.msra.gmra.mxu3 %v2545_v13  ;;  %1607 = vperm.xlu2 %2587, %v3116_v45  }
  0x46   :  { %1610 = vperm.xlu1 %2586, %v1531_v15  }
  0x4c   :  { %2096 = vperm.xlu0 %2588, %v2963_v2   ;;  %v2546_v2 = vld [vmem:[%s5410_s0 + $0x48] sm:$0xff] }
  0x4d   :  { %1616 = vperm.xlu2 %2587, %v1533_v21  }
  0x4e   :  { %1619 = vperm.xlu1 %2586, %v1534_v22  }
  0x52   :  { %287 = vmatmul.bf16.gmra.mxu0 %v2538_v28  ;;  %327 = vmatmul.bf16.gmra.mxu2 %v2546_v2 }
  0x54   :  { %2111 = vperm.xlu0 %2588, %v2996_v11   ;;  %376 = vmatmul.bf16.gmra.mxu1 %v2538_v28  ;;  %v2539_v11 = vld [vmem:[%s5410_s0 + $0x10] sm:$0xff] }
  0x55   :  { %416 = vmatmul.bf16.gmra.mxu3 %v2546_v2  ;;  %1625 = vperm.xlu2 %2587, %v1536_v29  }
  0x56   :  { %1628 = vperm.xlu1 %2586, %v1537_v30  }
  0x5c   :  { %2126 = vperm.xlu0 %2588, %v3045_v26  }
  0x5d   :  { %1634 = vperm.xlu2 %2587, %v1539_v32  }
  0x5e   :  { %2091 = vperm.xlu1 %2586, %v2968_v3   ;;  %v2548_v3 = vld [vmem:[%s5410_s0 + $0x58] sm:$0xff]  ;;  %v3291_v39 = vpop.permute.xlu2 %1544 }
  0x5f   :  { %vm5469_vm10 = vcmp.eq.s32.totalorder %v3291_v39, 1 }
  0x62   :  { %292 = vmatmul.bf16.gmra.mxu0 %v2539_v11  ;;  %332 = vmatmul.bf16.gmra.mxu2 %v2547_v36 }
  0x64   :  { %2141 = vperm.xlu0 %2588, %v3072_v34   ;;  %381 = vmatmul.bf16.gmra.mxu1 %v2539_v11  ;;  %v2544_v34 = vld [vmem:[%s5410_s0 + $0x38] sm:$0xff] }
  0x65   :  { %421 = vmatmul.bf16.gmra.mxu3 %v2547_v36  ;;  %2101 = vperm.xlu2 %2587, %v2958_v1   ;;  %v2541_v1 = vld [vmem:[%s5410_s0 + $0x20] sm:$0xff] }
  0x66   :  { %2106 = vperm.xlu1 %2586, %v2991_v10   ;;  %v2549_v10 = vld [vmem:[%s5410_s0 + $0x60] sm:$0xff] }
  0x6c   :  { %2156 = vperm.xlu0 %2588, %v3099_v42  }
  0x6d   :  { %2116 = vperm.xlu2 %2587, %v3018_v18  }
  0x6e   :  { %2121 = vperm.xlu1 %2586, %v3023_v19   ;;  %v2543_v19 = vld [vmem:[%s5410_s0 + $0x30] sm:$0xff] }
  0x72   :  { %297 = vmatmul.bf16.gmra.mxu0 %v2540_v0  ;;  %337 = vmatmul.bf16.gmra.mxu2 %v2548_v3 }
  0x74   :  { %2171 = vperm.xlu0 %2588, %v3133_v52   ;;  %386 = vmatmul.bf16.gmra.mxu1 %v2540_v0 }
  0x75   :  { %426 = vmatmul.bf16.gmra.mxu3 %v2548_v3  ;;  %2131 = vperm.xlu2 %2587, %v3050_v27  }
  0x76   :  { %2136 = vperm.xlu1 %2586, %v2986_v9   ;;  %v2542_v9 = vld [vmem:[%s5410_s0 + $0x28] sm:$0xff]  ;;  %v3277_v27 = vpop.permute.xlu0 %1547 }
  0x77   :  { %v3266_v18 = vpop.permute.xlu1 %1541  ;;  %vm1638_vm8 = vcmp.eq.s32.totalorder %v3277_v27, 1 }
  0x78   :  { %vm1636_vm9 = vcmp.eq.s32.totalorder %v3266_v18, 1 }
  0x7c   :  { %2186 = vperm.xlu0 %2588, %v3157_v60  }
  0x7d   :  { %2146 = vperm.xlu2 %2587, %v3077_v35   ;;  %v2552_v35 = vld [vmem:[%s5410_s0 + $0x78] sm:$0xff] }
  0x7e   :  { %2151 = vperm.xlu1 %2586, %v3013_v17   ;;  %v2550_v17 = vld [vmem:[%s5410_s0 + $0x68] sm:$0xff]  ;;  %v3287_v37 = vpop.permute.xlu0 %1568 }
  0x7f   :  { %v3275_v26 = vpop.permute.xlu1 %1553 }
  0x80   :  { %vm1640_vm12 = vcmp.eq.s32.totalorder %v3275_v26, 1 }
  0x82   :  { %302 = vmatmul.bf16.gmra.mxu0 %v2541_v1  ;;  %342 = vmatmul.bf16.gmra.mxu2 %v2549_v10 }
  0x84   :  { %2201 = vperm.xlu0 %2588, %v3109_v44   ;;  %391 = vmatmul.bf16.gmra.mxu1 %v2541_v1  ;;  %v3301_v44 = vpop.permute.xlu2 %1550 }
  0x85   :  { %431 = vmatmul.bf16.gmra.mxu3 %v2549_v10  ;;  %2161 = vperm.xlu2 %2587, %v3104_v43   ;;  %vm5463_vm7 = vcmp.eq.s32.totalorder %v3301_v44, 1 }
  0x86   :  { %2166 = vperm.xlu1 %2586, %v3040_v25   ;;  %v2551_v25 = vld [vmem:[%s5410_s0 + $0x70] sm:$0xff]  ;;  %v3293_v40 = vpop.permute.xlu0 %1577 }
  0x8c   :  { %v3321_v54 = vpop.permute.xlu2 %1556 }
  0x8d   :  { %2176 = vperm.xlu2 %2587, %v3138_v53  }
  0x8e   :  { %2181 = vperm.xlu1 %2586, %v3067_v33   ;;  %v3279_v33 = vpop.permute.xlu1 %1559  ;;  %v3305_v46 = vpop.permute.xlu0 %1586 }
  0x8f   :  { %5572 = vst [vmem:[#allocation3_spill] sm:$0xff] %v3305_v46  ;;  %vm1642_vm13 = vcmp.eq.s32.totalorder %v3279_v33, 1 }
  0x92   :  { %307 = vmatmul.bf16.gmra.mxu0 %v2542_v9  ;;  %347 = vmatmul.bf16.gmra.mxu2 %v2550_v17 }
  0x94   :  { %396 = vmatmul.bf16.gmra.mxu1 %v2542_v9  ;;  %v3339_v63 = vpop.permute.xlu2 %1562 }
  0x95   :  { %436 = vmatmul.bf16.gmra.mxu3 %v2550_v17  ;;  %2191 = vperm.xlu2 %2587, %v3162_v61  }
  0x96   :  { %2196 = vperm.xlu1 %2586, %v3094_v41   ;;  %v3289_v38 = vpop.permute.xlu1 %1565  ;;  %v3325_v56 = vpop.permute.xlu0 %1595 }
  0x97   :  { %vm1654_vm2 = vcmp.eq.s32.totalorder %v3325_v56, 1 }
  0x9c   :  { %v3359_v16 = vpop.permute.xlu2 %1571 }
  0x9d   :  { %2206 = vperm.xlu2 %2587, %v3181_v8   ;;  %vm1646_vm11 = vcmp.eq.s32.totalorder %v3359_v16, 1 }
  0x9e   :  { %v3295_v41 = vpop.permute.xlu1 %1574  ;;  %v3351_v12 = vpop.permute.xlu0 %1604 }
  0x9f   :  { %vm5441_vm5 = vcmp.eq.s32.totalorder %v3351_v12, 1 }
  0xa2   :  { %312 = vmatmul.bf16.gmra.mxu0 %v2543_v19  ;;  %352 = vmatmul.bf16.gmra.mxu2 %v2551_v25 }
  0xa4   :  { %401 = vmatmul.bf16.gmra.mxu1 %v2543_v19  ;;  %v3383_v11 = vpop.permute.xlu2 %1580 }
  0xa5   :  { %441 = vmatmul.bf16.gmra.mxu3 %v2551_v25 }
  0xa6   :  { %v3317_v52 = vpop.permute.xlu1 %1583  ;;  %v3371_v28 = vpop.permute.xlu0 %1613 }
  0xa7   :  { %5577 = vst [vmem:[#allocation8_spill] sm:$0xff] %v3317_v52  ;;  %vm1660_vm15 = vcmp.eq.s32.totalorder %v3371_v28, 1 }
  0xae   :  { %v3337_v62 = vpop.permute.xlu1 %1592  ;;  %v3387_v0 = vpop.permute.xlu0 %1622 }
  0xaf   :  { %vm1653_vm0 = vcmp.eq.s32.totalorder %v3337_v62, 1 }
  0xb2   :  { %317 = vmatmul.bf16.gmra.mxu0 %v2544_v34  ;;  %357 = vmatmul.bf16.gmra.mxu2 %v2552_v35 }
  0xb4   :  { %406 = vmatmul.bf16.gmra.mxu1 %v2544_v34  ;;  %v3403_v34 = vpop.permute.xlu2 %1589 }
  0xb5   :  { %446 = vmatmul.bf16.gmra.mxu3 %v2552_v35  ;;  %vm1652_vm1 = vcmp.eq.s32.totalorder %v3403_v34, 1 }
  0xb6   :  { %v3355_v14 = vpop.permute.xlu1 %1601 }
  0xb7   :  { %vm1656_vm4 = vcmp.eq.s32.totalorder %v3355_v14, 1 }
  0xbe   :  { %v3375_v29 = vpop.permute.xlu1 %1610 }
  0xbf   :  { %v3297_v42 = vpop.f32.mrf.mxu0  ;;  %vm1659_vm14 = vcmp.eq.s32.totalorder %v3375_v29, 1 }
  0xc0   :  { %5571 = vst [vmem:[#allocation2_spill] sm:$0xff] %v3297_v42 }
  0xc1   :  { %v3299_v43 = vpop.f32.mrf.mxu1 }
  0xc2   :  { %v484_v45 = vmax.f32 %v3297_v42, %v3299_v43  ;;  %v3728_v29 = vsel %vm1636_vm9, %v3299_v43, -1e+30 }
  0xc4   :  { %485 = vmax.xlane.f32.xlu0 %v484_v45 }
  0xc5   :  { %v3307_v47 = vpop.f32.mrf.mxu2 }
  0xc6   :  { %5573 = vst [vmem:[#allocation4_spill] sm:$0xff] %v3307_v47  ;;  %v3399_v19 = vpop.permute.xlu1 %1619 }
  0xc7   :  { %v3311_v49 = vpop.f32.mrf.mxu0 }
  0xc8   :  { %v3309_v48 = vpop.f32.mrf.mxu3  ;;  %5575 = vst [vmem:[#allocation6_spill] sm:$0xff] %v3311_v49 }
  0xc9   :  { %5574 = vst [vmem:[#allocation5_spill] sm:$0xff] %v3309_v48  ;;  %v3313_v50 = vpop.f32.mrf.mxu1  ;;  %v532_v51 = vmax.f32 %v3307_v47, %v3309_v48 }
  0xca   :  { %5576 = vst [vmem:[#allocation7_spill] sm:$0xff] %v3313_v50  ;;  %v487_v53 = vmax.f32 %v3311_v49, %v3313_v50 }
  0xcb   :  { %533 = vmax.xlane.f32.xlu1 %v532_v51  ;;  %v3409_v51 = vpop.permute.xlu0 %1631 }
  0xcc   :  { %488 = vmax.xlane.f32.xlu0 %v487_v53  ;;  %5599 = vst [vmem:[#allocation30_spill] sm:$0xff] %v3409_v51 }
  0xcd   :  { %v3323_v55 = vpop.f32.mrf.mxu2 }
  0xce   :  { %5578 = vst [vmem:[#allocation9_spill] sm:$0xff] %v3323_v55 }
  0xcf   :  { %v3329_v58 = vpop.f32.mrf.mxu0 }
  0xd0   :  { %v3327_v57 = vpop.f32.mrf.mxu3  ;;  %5580 = vst [vmem:[#allocation11_spill] sm:$0xff] %v3329_v58 }
  0xd1   :  { %5579 = vst [vmem:[#allocation10_spill] sm:$0xff] %v3327_v57  ;;  %v3331_v59 = vpop.f32.mrf.mxu1  ;;  %v535_v60 = vmax.f32 %v3323_v55, %v3327_v57 }
  0xd2   :  { %5581 = vst [vmem:[#allocation12_spill] sm:$0xff] %v3331_v59  ;;  %v490_v61 = vmax.f32 %v3329_v58, %v3331_v59 }
  0xd3   :  { %536 = vmax.xlane.f32.xlu2 %v535_v60 }
  0xd4   :  { %491 = vmax.xlane.f32.xlu1 %v490_v61 }
  0xd5   :  { %v3341_v4 = vpop.f32.mrf.mxu2 }
  0xd6   :  { %5582 = vst [vmem:[#allocation13_spill] sm:$0xff] %v3341_v4 }
  0xd7   :  { %v3345_v6 = vpop.f32.mrf.mxu0 }
  0xd8   :  { %v3343_v5 = vpop.f32.mrf.mxu3  ;;  %5584 = vst [vmem:[#allocation15_spill] sm:$0xff] %v3345_v6 }
  0xd9   :  { %5583 = vst [vmem:[#allocation14_spill] sm:$0xff] %v3343_v5  ;;  %v3347_v7 = vpop.f32.mrf.mxu1  ;;  %v538_v8 = vmax.f32 %v3341_v4, %v3343_v5  ;;  %v3580_v34 = vsel %vm1654_vm2, %v3343_v5, -1e+30 }
  0xda   :  { %5585 = vst [vmem:[#allocation16_spill] sm:$0xff] %v3347_v7  ;;  %v493_v13 = vmax.f32 %v3345_v6, %v3347_v7 }
  0xdb   :  { %539 = vmax.xlane.f32.xlu0 %v538_v8  ;;  %5633 = vst [vmem:[#allocation64_spill] sm:$0xff] %v3580_v34 }
  0xdc   :  { %494 = vmax.xlane.f32.xlu1 %v493_v13  ;;  %v3419_v13 = vpop.permute.xlu1 %1628 }
  0xdd   :  { %v3357_v15 = vpop.f32.mrf.mxu2  ;;  %5603 = vst [vmem:[#allocation34_spill] sm:$0xff] %v3419_v13 }
  0xde   :  { %5586 = vst [vmem:[#allocation17_spill] sm:$0xff] %v3357_v15 }
  0xdf   :  { %v3363_v21 = vpop.f32.mrf.mxu0 }
  0xe0   :  { %v3361_v20 = vpop.f32.mrf.mxu3  ;;  %5588 = vst [vmem:[#allocation19_spill] sm:$0xff] %v3363_v21 }
  0xe1   :  { %5587 = vst [vmem:[#allocation18_spill] sm:$0xff] %v3361_v20  ;;  %v3365_v22 = vpop.f32.mrf.mxu1  ;;  %v541_v23 = vmax.f32 %v3357_v15, %v3361_v20 }
  0xe2   :  { %5589 = vst [vmem:[#allocation20_spill] sm:$0xff] %v3365_v22  ;;  %v496_v24 = vmax.f32 %v3363_v21, %v3365_v22 }
  0xe4   :  { %542 = vmax.xlane.f32.xlu1 %v541_v23  ;;  %497 = vmax.xlane.f32.xlu2 %v496_v24  ;;  %v3421_v23 = vpop.permute.xlu2 %1598 }
  0xe5   :  { %v3373_v2 = vpop.f32.mrf.mxu2  ;;  %vm1655_vm3 = vcmp.eq.s32.totalorder %v3421_v23, 1  ;;  %v3640_v23 = vsel %vm5469_vm10, %v3311_v49, -1e+30 }
  0xe6   :  { %5590 = vst [vmem:[#allocation21_spill] sm:$0xff] %v3373_v2  ;;  %v3608_v5 = vsel %vm1655_vm3, %v3361_v20, -1e+30 }
  0xe7   :  { %v3379_v31 = vpop.f32.mrf.mxu0  ;;  %5637 = vst [vmem:[#allocation68_spill] sm:$0xff] %v3608_v5 }
  0xe8   :  { %v3377_v30 = vpop.f32.mrf.mxu3  ;;  %5592 = vst [vmem:[#allocation23_spill] sm:$0xff] %v3379_v31 }
  0xe9   :  { %5591 = vst [vmem:[#allocation22_spill] sm:$0xff] %v3377_v30  ;;  %v3381_v32 = vpop.f32.mrf.mxu1  ;;  %v544_v36 = vmax.f32 %v3373_v2, %v3377_v30 }
  0xea   :  { %5593 = vst [vmem:[#allocation24_spill] sm:$0xff] %v3381_v32  ;;  %v499_v25 = vmax.f32 %v3379_v31, %v3381_v32 }
  0xec   :  { %545 = vmax.xlane.f32.xlu2 %v544_v36  ;;  %v3443_v52 = vpop.permute.xlu2 %1607 }
  0xed   :  { %v3389_v3 = vpop.f32.mrf.mxu2  ;;  %vm5443_vm6 = vcmp.eq.s32.totalorder %v3443_v52, 1  ;;  %vm5643_vm10 = vcmp.eq.s32.totalorder %v3443_v52, 1 }
  0xee   :  { %5594 = vst [vmem:[#allocation25_spill] sm:$0xff] %v3389_v3 }
  0xef   :  { %v3393_v10 = vpop.f32.mrf.mxu0 }
  0xf0   :  { %v3391_v1 = vpop.f32.mrf.mxu3  ;;  %5596 = vst [vmem:[#allocation27_spill] sm:$0xff] %v3393_v10  ;;  %v3597_v56 = vsel %vm1642_vm13, %v3393_v10, -1e+30 }
  0xf1   :  { %5595 = vst [vmem:[#allocation26_spill] sm:$0xff] %v3391_v1  ;;  %v3395_v9 = vpop.f32.mrf.mxu1  ;;  %v547_v17 = vmax.f32 %v3389_v3, %v3391_v1 }
  0xf2   :  { %5597 = vst [vmem:[#allocation28_spill] sm:$0xff] %v3395_v9  ;;  %v502_v45 = vmax.f32 %v3393_v10, %v3395_v9 }
  0xf3   :  { %548 = vmax.xlane.f32.xlu0 %v547_v17 }
  0xf4   :  { %500 = vmax.xlane.f32.xlu2 %v499_v25 }
  0xf5   :  { %v3405_v35 = vpop.f32.mrf.mxu2 }
  0xf6   :  { %5598 = vst [vmem:[#allocation29_spill] sm:$0xff] %v3405_v35 }
  0xf7   :  { %v3413_v60 = vpop.f32.mrf.mxu0 }
  0xf8   :  { %v3411_v53 = vpop.f32.mrf.mxu3  ;;  %5601 = vst [vmem:[#allocation32_spill] sm:$0xff] %v3413_v60 }
  0xf9   :  { %5600 = vst [vmem:[#allocation31_spill] sm:$0xff] %v3411_v53  ;;  %v3415_v61 = vpop.f32.mrf.mxu1  ;;  %v550_v8 = vmax.f32 %v3405_v35, %v3411_v53  ;;  %v5651_v26 = vld [vmem:[#allocation28_spill] sm:$0xff] }
  0xfa   :  { %5602 = vst [vmem:[#allocation33_spill] sm:$0xff] %v3415_v61  ;;  %v505_v51 = vmax.f32 %v3413_v60, %v3415_v61 }
  0xfb   :  { %551 = vmax.xlane.f32.xlu1 %v550_v8  ;;  %503 = vmax.xlane.f32.xlu0 %v502_v45  ;;  %v3435_v8 = vpop.permute.xlu0 %2096  ;;  %v3437_v45 = vpop.permute.xlu1 %2091 }
  0xfc   :  { %5608 = vst [vmem:[#allocation39_spill] sm:$0xff] %v3435_v8 }
  0xfd   :  { %v3423_v24 = vpop.f32.mrf.mxu2  ;;  %5609 = vst [vmem:[#allocation40_spill] sm:$0xff] %v3437_v45  ;;  %v3466_v45 = vsel %vm1652_vm1, %v3307_v47, -1e+30 }
  0xfe   :  { %5604 = vst [vmem:[#allocation35_spill] sm:$0xff] %v3423_v24 }
  0xff   :  { %v3427_v17 = vpop.f32.mrf.mxu0  ;;  %5616 = vst [vmem:[#allocation47_spill] sm:$0xff] %v3466_v45 }
 0x100   :  { %v3425_v36 = vpop.f32.mrf.mxu3  ;;  %5606 = vst [vmem:[#allocation37_spill] sm:$0xff] %v3427_v17 }
 0x101   :  { %5605 = vst [vmem:[#allocation36_spill] sm:$0xff] %v3425_v36  ;;  %v3429_v25 = vpop.f32.mrf.mxu1  ;;  %v553_v46 = vmax.f32 %v3423_v24, %v3425_v36 }
 0x102   :  { %5607 = vst [vmem:[#allocation38_spill] sm:$0xff] %v3429_v25  ;;  %v508_v13 = vmax.f32 %v3427_v17, %v3429_v25  ;;  %v3471_v25 = vsel %vm1654_vm2, %v3341_v4, -1e+30  ;;  %v3490_v4 = vsel %vm1656_vm4, %v3373_v2, -1e+30  ;;  %vm1662_vm2 = vcmp.eq.s32.totalorder %v3399_v19, 1 }
 0x103   :  { %554 = vmax.xlane.f32.xlu2 %v553_v46  ;;  %506 = vmax.xlane.f32.xlu1 %v505_v51  ;;  %v3457_v51 = vsel %vm1653_vm0, %v3323_v55, -1e+30  ;;  %v3461_v8 = vpop.permute.xlu0 %2111  ;;  %5617 = vst [vmem:[#allocation48_spill] sm:$0xff] %v3471_v25  ;;  %v3485_v47 = vpop.permute.xlu1 %2106  ;;  %v3507_v2 = vsel %vm5441_vm5, %v3389_v3, -1e+30 }
 0x104   :  { %5614 = vst [vmem:[#allocation45_spill] sm:$0xff] %v3457_v51  ;;  %v1746_v55 = vmax.f32 %v3457_v51, %v3466_v45 }
 0x105   :  { %v3439_v32 = vpop.f32.mrf.mxu2  ;;  %5615 = vst [vmem:[#allocation46_spill] sm:$0xff] %v3461_v8 }
 0x106   :  { %5610 = vst [vmem:[#allocation41_spill] sm:$0xff] %v3439_v32  ;;  %v3570_v62 = vsel %vm1660_vm15, %v3439_v32, -1e+30 }
 0x107   :  { %v3448_v7 = vpop.f32.mrf.mxu0  ;;  %5620 = vst [vmem:[#allocation51_spill] sm:$0xff] %v3485_v47 }
 0x108   :  { %v3445_v50 = vpop.f32.mrf.mxu3  ;;  %5612 = vst [vmem:[#allocation43_spill] sm:$0xff] %v3448_v7 }
 0x109   :  { %5611 = vst [vmem:[#allocation42_spill] sm:$0xff] %v3445_v50  ;;  %v3450_v61 = vpop.f32.mrf.mxu1  ;;  %v556_v46 = vmax.f32 %v3439_v32, %v3445_v50 }
 0x10a   :  { %5613 = vst [vmem:[#allocation44_spill] sm:$0xff] %v3450_v61  ;;  %v511_v47 = vmax.f32 %v3448_v7, %v3450_v61 }
 0x10b   :  { %557 = vmax.xlane.f32.xlu0 %v556_v46  ;;  %509 = vmax.xlane.f32.xlu2 %v508_v13  ;;  %v3479_v13 = vsel %vm1655_vm3, %v3357_v15, -1e+30  ;;  %v1748_v46 = vmax.f32 %v1746_v55, %v3471_v25  ;;  %5621 = vst [vmem:[#allocation52_spill] sm:$0xff] %v3490_v4  ;;  %v3510_v25 = vpop.permute.xlu2 %1616  ;;  %vm1648_vm3 = vcmp.eq.s32.totalorder %v3293_v40, 1  ;;  %v5668_v40 = vld [vmem:[#allocation34_spill] sm:$0xff] }
 0x10c   :  { %5618 = vst [vmem:[#allocation49_spill] sm:$0xff] %v3479_v13  ;;  %vm1661_vm5 = vcmp.eq.s32.totalorder %v3510_v25, 1 }
 0x10d   :  { %v3483_v8 = vpop.f32.mrf.mxu2  ;;  %v1750_v15 = vmax.f32 %v1748_v46, %v3479_v13  ;;  %5625 = vst [vmem:[#allocation56_spill] sm:$0xff] %v3507_v2  ;;  %v3519_v13 = vsel %vm5443_vm6, %v3405_v35, -1e+30  ;;  %v3539_v35 = vsel %vm1659_vm14, %v3423_v24, -1e+30  ;;  %vm1641_vm6 = vcmp.eq.s32.totalorder %v3321_v54, 1 }
 0x10e   :  { %5619 = vst [vmem:[#allocation50_spill] sm:$0xff] %v3483_v8 }
 0x10f   :  { %v3496_v51 = vpop.f32.mrf.mxu0  ;;  %v1752_v46 = vmax.f32 %v1750_v15, %v3490_v4  ;;  %5626 = vst [vmem:[#allocation57_spill] sm:$0xff] %v3519_v13  ;;  %v3529_v15 = vpop.permute.xlu0 %2126  ;;  %v3565_v4 = vsel %vm1640_vm12, %v3363_v21, -1e+30 }
 0x110   :  { %v3492_v9 = vpop.f32.mrf.mxu3  ;;  %5623 = vst [vmem:[#allocation54_spill] sm:$0xff] %v3496_v51 }
 0x111   :  { %5622 = vst [vmem:[#allocation53_spill] sm:$0xff] %v3492_v9  ;;  %v3498_v45 = vpop.f32.mrf.mxu1  ;;  %v559_v55 = vmax.f32 %v3483_v8, %v3492_v9 }
 0x112   :  { %5624 = vst [vmem:[#allocation55_spill] sm:$0xff] %v3498_v45  ;;  %v514_v24 = vmax.f32 %v3496_v51, %v3498_v45 }
 0x113   :  { %560 = vmax.xlane.f32.xlu1 %v559_v55  ;;  %512 = vmax.xlane.f32.xlu0 %v511_v47  ;;  %v1754_v47 = vmax.f32 %v1752_v46, %v3507_v2  ;;  %5627 = vst [vmem:[#allocation58_spill] sm:$0xff] %v3529_v15  ;;  %v3534_v55 = vsel %vm1638_vm8, %v3329_v58, -1e+30  ;;  %v3545_v46 = vsel %vm1636_vm9, %v3297_v42, -1e+30  ;;  %v1626_v49 = vpop.permute.xlu2 %1625 }
 0x114   :  { %5628 = vst [vmem:[#allocation59_spill] sm:$0xff] %v3534_v55  ;;  %v3550_v15 = vsel %vm1653_vm0, %v3327_v57, -1e+30  ;;  %v3560_v2 = vsel %vm1652_vm1, %v3309_v48, -1e+30  ;;  %vm5479_vm0 = vcmp.eq.s32.totalorder %v3339_v63, 1  ;;  %v1732_v57 = vmax.f32 %v3545_v46, %v3534_v55  ;;  %v3592_v55 = vpop.permute.xlu1 %2121 }
 0x115   :  { %5629 = vst [vmem:[#allocation60_spill] sm:$0xff] %v3550_v15  ;;  %v1756_v3 = vmax.f32 %v1754_v47, %v3519_v13  ;;  %v3553_v58 = vpop.f32.mrf.mxu2  ;;  %vm1644_vm1 = vcmp.eq.s32.totalorder %v3289_v38, 1  ;;  %v1783_v42 = vmax.f32 %v3550_v15, %v3560_v2 }
 0x116   :  { %5630 = vst [vmem:[#allocation61_spill] sm:$0xff] %v3553_v58  ;;  %v1734_v15 = vmax.f32 %v1732_v57, %v3565_v4  ;;  %v3626_v57 = vsel %vm1662_vm2, %v3553_v58, -1e+30 }
 0x117   :  { %5631 = vst [vmem:[#allocation62_spill] sm:$0xff] %v3560_v2  ;;  %v1758_v21 = vmax.f32 %v1756_v3, %v3539_v35  ;;  %v3583_v13 = vpop.f32.mrf.mxu0  ;;  %v3602_v3 = vsel %vm1661_vm5, %v3483_v8, -1e+30  ;;  %v1785_v10 = vmax.f32 %v1783_v42, %v3580_v34  ;;  %v3616_v8 = vsel %vm5463_vm7, %v3345_v6, -1e+30 }
 0x118   :  { %v3572_v47 = vpop.f32.mrf.mxu3  ;;  %5634 = vst [vmem:[#allocation65_spill] sm:$0xff] %v3583_v13  ;;  %v3621_v2 = vsel %vm1644_vm1, %v3427_v17, -1e+30  ;;  %v3632_v42 = vsel %vm1656_vm4, %v3377_v30, -1e+30  ;;  %vm1663_vm7 = vcmp.eq.s32.totalorder %v3387_v0, 1  ;;  %v1733_v14 = vmax.f32 %v3640_v23, %v3616_v8 }
 0x119   :  { %5632 = vst [vmem:[#allocation63_spill] sm:$0xff] %v3572_v47  ;;  %v3585_v48 = vpop.f32.mrf.mxu1  ;;  %v562_v32 = vmax.f32 %v3553_v58, %v3572_v47  ;;  %v3646_v58 = vsel %vm1646_vm11, %v3496_v51, -1e+30  ;;  %vm5639_vm4 = vcmp.eq.s32.totalorder %v3351_v12, 1  ;;  %v3665_v51 = vsel %vm1641_vm6, %v3379_v31, -1e+30 }
 0x11a   :  { %5635 = vst [vmem:[#allocation66_spill] sm:$0xff] %v3585_v48  ;;  %v3670_v12 = vsel %vm5643_vm10, %v3411_v53, -1e+30  ;;  %v517_v53 = vmax.f32 %v3583_v13, %v3585_v48  ;;  %vm1645_vm10 = vcmp.eq.s32.totalorder %v3287_v37, 1 }
 0x11b   :  { %5636 = vst [vmem:[#allocation67_spill] sm:$0xff] %v3592_v55  ;;  %v1760_v55 = vmax.f32 %v1758_v21, %v3570_v62  ;;  %563 = vmax.xlane.f32.xlu2 %v562_v32  ;;  %515 = vmax.xlane.f32.xlu1 %v514_v24  ;;  %v1736_v21 = vmax.f32 %v1734_v15, %v3597_v56  ;;  %v3653_v15 = vsel %vm5639_vm4, %v3391_v1, -1e+30  ;;  %vm1649_vm4 = vcmp.eq.s32.totalorder %v3383_v11, 1 }
 0x11c   :  { %5638 = vst [vmem:[#allocation69_spill] sm:$0xff] %v3632_v42  ;;  %v1787_v24 = vmax.f32 %v1785_v10, %v3608_v5  ;;  %v3659_v10 = vpop.permute.xlu0 %2141 }
 0x11d   :  { %v1747_v32 = vmax.f32 %v3602_v3, %v1760_v55  ;;  %5640 = vst [vmem:[#allocation70_spill] sm:$0xff] %v3653_v15  ;;  %v1738_v55 = vmax.f32 %v1736_v21, %v3621_v2  ;;  %v3657_v30 = vpop.f32.mrf.mxu2 }
 0x11e   :  { %5641 = vst [vmem:[#allocation71_spill] sm:$0xff] %v3657_v30  ;;  %v1789_v20 = vmax.f32 %v1787_v24, %v3632_v42  ;;  %v3675_v21 = vsel %vm1663_vm7, %v3657_v30, -1e+30  ;;  %v1735_v42 = vmax.f32 %v1733_v14, %v3665_v51  ;;  %v3723_v14 = vsel %vm1645_vm10, %v3448_v7, -1e+30 }
 0x11f   :  { %v1749_v17 = vmax.f32 %v1747_v32, %v3626_v57  ;;  %5642 = vst [vmem:[#allocation72_spill] sm:$0xff] %v3659_v10  ;;  %v1740_v10 = vmax.f32 %v1738_v55, %v3646_v58  ;;  %v3681_v1 = vpop.f32.mrf.mxu0  ;;  %v3694_v55 = vsel %vm5479_vm0, %v3413_v60, -1e+30  ;;  %vm1647_vm0 = vcmp.eq.s32.totalorder %v3295_v41, 1 }
 0x120   :  { %5644 = vst [vmem:[#allocation73_spill] sm:$0xff] %v3670_v12  ;;  %v3677_v32 = vpop.f32.mrf.mxu3  ;;  %v1791_v6 = vmax.f32 %v1789_v20, %v3653_v15  ;;  %v3710_v20 = vsel %vm1659_vm14, %v3425_v36, -1e+30  ;;  %v3717_v15 = vpop.permute.xlu1 %2136  ;;  %v3758_v7 = vsel %vm1661_vm5, %v3492_v9, -1e+30  ;;  %v5654_v36 = vld [vmem:[#allocation38_spill] sm:$0xff] }
 0x121   :  { %5645 = vst [vmem:[#allocation74_spill] sm:$0xff] %v3677_v32  ;;  %v1751_v24 = vmax.f32 %v1749_v17, %v3675_v21  ;;  %v3683_v31 = vpop.f32.mrf.mxu1  ;;  %v565_v52 = vmax.f32 %v3657_v30, %v3677_v32  ;;  %v3699_v17 = vsel %vm1648_vm3, %v3681_v1, -1e+30  ;;  %v3704_v30 = vsel %vm1638_vm8, %v3331_v59, -1e+30 }
 0x122   :  { %5646 = vst [vmem:[#allocation75_spill] sm:$0xff] %v3681_v1  ;;  %v3713_v60 = vmax.f32 %v1740_v10, %v3699_v17  ;;  %v1793_v27 = vmax.f32 %v1791_v6, %v3670_v12  ;;  %v1737_v10 = vmax.f32 %v1735_v42, %v3694_v55  ;;  %v3739_v6 = vsel %vm1660_vm15, %v3445_v50, -1e+30 }
 0x123   :  { %5647 = vst [vmem:[#allocation76_spill] sm:$0xff] %v3683_v31  ;;  %566 = vmax.xlane.f32.xlu0 %v565_v52  ;;  %518 = vmax.xlane.f32.xlu2 %v517_v53  ;;  %v3733_v53 = vsel %vm1640_vm12, %v3365_v22, -1e+30  ;;  %vm1664_vm8 = vcmp.eq.s32.totalorder %v1626_v49, 1  ;;  %v1769_v52 = vmax.f32 %v3728_v29, %v3704_v30  ;;  %v3752_v42 = vsel %vm1642_vm13, %v5651_v26, -1e+30 }
 0x124   :  { %5648 = vst [vmem:[#allocation77_spill] sm:$0xff] %v3710_v20  ;;  %v1795_v18 = vmax.f32 %v1793_v27, %v3710_v20  ;;  %v1739_v28 = vmax.f32 %v1737_v10, %v3723_v14  ;;  %v520_v27 = vmax.f32 %v3681_v1, %v3683_v31  ;;  %v3768_v33 = vsel %vm1644_vm1, %v5654_v36, -1e+30  ;;  %v3790_v22 = vpop.permute.xlu0 %2156 }
 0x125   :  { %5649 = vst [vmem:[#allocation78_spill] sm:$0xff] %v3717_v15  ;;  %v3747_v15 = vsel %vm1647_vm0, %v3583_v13, -1e+30  ;;  %v3760_v50 = vpop.f32.mrf.mxu2  ;;  %v1771_v13 = vmax.f32 %v1769_v52, %v3733_v53  ;;  %v3780_v9 = vsel %vm1662_vm2, %v3572_v47, -1e+30  ;;  %vm5662_vm5 = vcmp.eq.s32.totalorder %v3301_v44, 1 }
 0x126   :  { %5650 = vst [vmem:[#allocation79_spill] sm:$0xff] %v3739_v6  ;;  %v1797_v26 = vmax.f32 %v1795_v18, %v3739_v6  ;;  %v3773_v10 = vsel %vm1664_vm8, %v3760_v50, -1e+30  ;;  %v1741_v52 = vmax.f32 %v1739_v28, %v3747_v15  ;;  %v3807_v28 = vsel %vm1663_vm7, %v3677_v32, -1e+30  ;;  %v5667_v32 = vld [vmem:[#allocation8_spill] sm:$0xff] }
 0x127   :  { %5652 = vst [vmem:[#allocation80_spill] sm:$0xff] %v3758_v7  ;;  %v1753_v1 = vmax.f32 %v1751_v24, %v3773_v10  ;;  %v3784_v38 = vpop.f32.mrf.mxu0  ;;  %v1773_v59 = vmax.f32 %v1771_v13, %v3752_v42  ;;  %v3802_v24 = vsel %vm1646_vm11, %v3498_v45, -1e+30  ;;  %v5661_v13 = vld [vmem:[#allocation16_spill] sm:$0xff]  ;;  %v3819_v45 = vpop.permute.xlu2 %1634  ;;  %v3824_v0 = vsel %vm1648_vm3, %v3683_v31, -1e+30 }
 0x128   :  { %5653 = vst [vmem:[#allocation81_spill] sm:$0xff] %v3760_v50  ;;  %v3775_v25 = vpop.f32.mrf.mxu3  ;;  %v1784_v6 = vmax.f32 %v3758_v7, %v1797_v26  ;;  %v3797_v19 = vsel %vm1649_vm4, %v3784_v38, -1e+30  ;;  %v3815_v26 = vsel %vm5662_vm5, %v5661_v13, -1e+30  ;;  %vm5665_vm7 = vcmp.eq.s32.totalorder %v3291_v39, 1 }
 0x129   :  { %5655 = vst [vmem:[#allocation82_spill] sm:$0xff] %v3775_v25  ;;  %v3786_v36 = vpop.f32.mrf.mxu1  ;;  %v568_v18 = vmax.f32 %v3760_v50, %v3775_v25  ;;  %v1775_v50 = vmax.f32 %v1773_v59, %v3768_v33  ;;  %vm1650_vm9 = vcmp.eq.s32.totalorder %v5667_v32, 1  ;;  %vm1665_vm11 = vcmp.eq.s32.totalorder %v5668_v40, 1  ;;  %v5669_v31 = vld [vmem:[#allocation24_spill] sm:$0xff]  ;;  %v5671_v47 = vld [vmem:[#allocation33_spill] sm:$0xff]  ;;  %v5693_v7 = vld [vmem:[#allocation2_spill] sm:$0xff] }
 0x12a   :  { %5656 = vst [vmem:[#allocation83_spill] sm:$0xff] %v3780_v9  ;;  %v1786_v16 = vmax.f32 %v1784_v6, %v3780_v9  ;;  %vm5672_vm12 = vcmp.eq.s32.totalorder %v3339_v63, 1  ;;  %v3900_v9 = vsel %vm1647_vm0, %v3585_v48, -1e+30  ;;  %vm1667_vm14 = vcmp.eq.s32.totalorder %v3819_v45, 1 }
 0x12b   :  { %5657 = vst [vmem:[#allocation84_spill] sm:$0xff] %v3784_v38  ;;  %569 = vmax.xlane.f32.xlu1 %v568_v18  ;;  %521 = vmax.xlane.f32.xlu0 %v520_v27  ;;  %v5664_v27 = vld [vmem:[#allocation7_spill] sm:$0xff]  ;;  %v3835_v18 = vpop.permute.xlu1 %2151  ;;  %v1777_v59 = vmax.f32 %v1775_v50, %v3802_v24  ;;  %v3853_v50 = vsel %vm5672_vm12, %v5671_v47, -1e+30  ;;  %vm1809_vm15 = vcmask 1040384  }
 0x12c   :  { %5658 = vst [vmem:[#allocation85_spill] sm:$0xff] %v3786_v36  ;;  %v3833_v44 = vsel %vm5665_vm7, %v5664_v27, -1e+30  ;;  %v1788_v6 = vmax.f32 %v1786_v16, %v3807_v28 }
 0x12d   :  { %5659 = vst [vmem:[#allocation86_spill] sm:$0xff] %v3790_v22  ;;  %v3810_v22 = vmax.f32 %v1741_v52, %v3797_v19  ;;  %v3828_v52 = vsel %vm1664_vm8, %v3775_v25, -1e+30  ;;  %v1770_v49 = vmax.f32 %v3833_v44, %v3815_v26  ;;  %v3846_v25 = vsel %vm1641_vm6, %v5669_v31, -1e+30  ;;  %v3848_v39 = vpop.f32.mrf.mxu2 }
 0x12e   :  { %5660 = vst [vmem:[#allocation87_spill] sm:$0xff] %v3807_v28  ;;  %v1779_v16 = vmax.f32 %v1777_v59, %v3824_v0  ;;  %v3858_v40 = vsel %vm1665_vm11, %v3848_v39, -1e+30  ;;  %v523_v59 = vmax.f32 %v3784_v38, %v3786_v36 }
 0x12f   :  { %5663 = vst [vmem:[#allocation88_spill] sm:$0xff] %v3828_v52  ;;  %v1755_v54 = vmax.f32 %v1753_v1, %v3858_v40  ;;  %v3866_v27 = vpop.f32.mrf.mxu0 }
 0x130   :  { %5666 = vst [vmem:[#allocation89_spill] sm:$0xff] %v3835_v18  ;;  %v1790_v18 = vmax.f32 %v1788_v6, %v3828_v52  ;;  %v3860_v13 = vpop.f32.mrf.mxu3  ;;  %v1772_v6 = vmax.f32 %v1770_v49, %v3846_v25  ;;  %v3878_v47 = vsel %vm1650_vm9, %v3866_v27, -1e+30  ;;  %v3888_v52 = vsel %vm1645_vm10, %v3450_v61, -1e+30 }
 0x131   :  { %5670 = vst [vmem:[#allocation8_spill] sm:$0xff] %v3848_v39  ;;  %v3864_v31 = vsel %vm1665_vm11, %v3860_v13, -1e+30  ;;  %v3868_v28 = vpop.f32.mrf.mxu1  ;;  %v571_v63 = vmax.f32 %v3848_v39, %v3860_v13  ;;  %v1744_v49 = vmax.f32 %v3713_v60, %v3878_v47  ;;  %v3894_v39 = vpop.permute.xlu0 %2171 }
 0x132   :  { %5673 = vst [vmem:[#allocation34_spill] sm:$0xff] %v3860_v13  ;;  %v3883_v1 = vsel %vm1650_vm9, %v3868_v28, -1e+30  ;;  %v1792_v13 = vmax.f32 %v1790_v18, %v3864_v31  ;;  %v1774_v32 = vmax.f32 %v1772_v6, %v3853_v50  ;;  %v3904_v60 = vpop.permute.xlu2 %2101  ;;  %v526_v41 = vmax.f32 %v3866_v27, %v3868_v28 }
 0x133   :  { %5674 = vst [vmem:[#allocation90_spill] sm:$0xff] %v3864_v31  ;;  %v1781_v38 = vmax.f32 %v1779_v16, %v3883_v1  ;;  %572 = vmax.xlane.f32.xlu2 %v571_v63  ;;  %524 = vmax.xlane.f32.xlu1 %v523_v59  ;;  %v1757_v37 = vmax.f32 %v1755_v54, %v1744_v49  ;;  %v5678_v31 = vld [vmem:[#allocation30_spill] sm:$0xff]  ;;  %v3909_v16 = vsel %vm1649_vm4, %v3786_v36, -1e+30  ;;  %v3915_v59 = vpop.permute.xlu1 %2166  ;;  %v5683_v54 = vld [vmem:[#allocation3_spill] sm:$0xff] }
 0x134   :  { %5675 = vst [vmem:[#allocation91_spill] sm:$0xff] %v3866_v27  ;;  %v1776_v18 = vmax.f32 %v1774_v32, %v3888_v52  ;;  %vm1666_vm6 = vcmp.eq.s32.totalorder %v5678_v31, 1  ;;  %vm1651_vm13 = vcmp.eq.s32.totalorder %v5683_v54, 1 }
 0x135   :  { %5676 = vst [vmem:[#allocation92_spill] sm:$0xff] %v3868_v28  ;;  %v1794_v61 = vmax.f32 %v1792_v13, %v1781_v38  ;;  %v3911_v63 = vpop.f32.mrf.mxu2 }
 0x136   :  { %5677 = vst [vmem:[#allocation93_spill] sm:$0xff] %v3894_v39  ;;  %v1778_v38 = vmax.f32 %v1776_v18, %v3900_v9  ;;  %v3919_v13 = vsel %vm1666_vm6, %v3911_v63, -1e+30 }
 0x137   :  { %5679 = vst [vmem:[#allocation30_spill] sm:$0xff] %v3904_v60  ;;  %v1759_v11 = vmax.f32 %v1757_v37, %v3919_v13  ;;  %v3928_v49 = vpop.f32.mrf.mxu0 }
 0x138   :  { %5680 = vst [vmem:[#allocation94_spill] sm:$0xff] %v3911_v63  ;;  %v3921_v31 = vpop.f32.mrf.mxu3  ;;  %v1780_v18 = vmax.f32 %v1778_v38, %v3909_v16  ;;  %v3937_v60 = vsel %vm1651_vm13, %v3928_v49, -1e+30 }
 0x139   :  { %5681 = vst [vmem:[#allocation95_spill] sm:$0xff] %v3915_v59  ;;  %v3926_v6 = vsel %vm1666_vm6, %v3921_v31, -1e+30  ;;  %v3930_v32 = vpop.f32.mrf.mxu1  ;;  %v574_v59 = vmax.f32 %v3911_v63, %v3921_v31  ;;  %v1745_v37 = vmax.f32 %v3810_v22, %v3937_v60  ;;  %v3945_v36 = vpop.permute.xlu0 %2186 }
 0x13a   :  { %5682 = vst [vmem:[#allocation96_spill] sm:$0xff] %v3921_v31  ;;  %v1796_v39 = vmax.f32 %v1794_v61, %v3926_v6  ;;  %v3942_v54 = vsel %vm1651_vm13, %v3930_v32, -1e+30  ;;  %v3954_v63 = vpop.permute.xlu2 %2116 }
 0x13b   :  { %5684 = vst [vmem:[#allocation3_spill] sm:$0xff] %v3926_v6  ;;  %575 = vmax.xlane.f32.xlu0 %v574_v59  ;;  %527 = vmax.xlane.f32.xlu2 %v526_v41  ;;  %v1782_v28 = vmax.f32 %v1780_v18, %v3942_v54  ;;  %v1761_v27 = vmax.f32 %v1759_v11, %v1745_v37  ;;  %v3956_v48 = vpop.permute.xlu1 %2181 }
 0x13c   :  { %5685 = vst [vmem:[#allocation97_spill] sm:$0xff] %v3942_v54  ;;  %v5697_v54 = vld [vmem:[#allocation5_spill] sm:$0xff] }
 0x13d   :  { %5686 = vst [vmem:[#allocation98_spill] sm:$0xff] %v3945_v36  ;;  %v1798_v31 = vmax.f32 %v1796_v39, %v1782_v28  ;;  %v3948_v61 = vpop.f32.mrf.mxu2 }
 0x13e   :  { %v3951_v38 = vsel %vm1667_vm14, %v3948_v61, -1e+30  ;;  %5687 = vst [vmem:[#allocation99_spill] sm:$0xff] %v3954_v63 }
 0x13f   :  { %v1762_v22 = vmax.f32 %v3951_v38, %v1761_v27  ;;  %5688 = vst [vmem:[#allocation100_spill] sm:$0xff] %v3956_v48 }
 0x140   :  { %v3958_v59 = vpop.f32.mrf.mxu3 }
 0x141   :  { %v1763_v41 = vrot.slane %v1762_v22, 4  ;;  %v3961_v18 = vsel %vm1667_vm14, %v3958_v59, -1e+30  ;;  %v3964_v39 = vpop.permute.xlu0 %2201 }
 0x142   :  { %5689 = vst [vmem:[#allocation101_spill] sm:$0xff] %v3961_v18  ;;  %v1799_v45 = vmax.f32 %v3961_v18, %v1798_v31  ;;  %v3966_v6 = vpop.permute.xlu2 %2131 }
 0x143   :  { %v1764_v11 = vmax.f32 %v1762_v22, %v1763_v41  ;;  %5690 = vst [vmem:[#allocation102_spill] sm:$0xff] %v3964_v39  ;;  %v3968_v27 = vpop.permute.xlu1 %2196  ;;  %v5694_v39 = vld [vmem:[#allocation59_spill] sm:$0xff] }
 0x144   :  { %5691 = vst [vmem:[#allocation103_spill] sm:$0xff] %v3966_v6  ;;  %v1800_v5 = vrot.slane %v1799_v45, 4 }
 0x145   :  { %v1765_v28 = vrot.slane %v1764_v11, 2  ;;  %5692 = vst [vmem:[#allocation104_spill] sm:$0xff] %v3968_v27  ;;  %v5696_v27 = vld [vmem:[#allocation4_spill] sm:$0xff] }
 0x147   :  { %v1766_v37 = vmax.f32 %v1764_v11, %v1765_v28 }
 0x149   :  { %v1767_v36 = vrot.slane %v1766_v37, 1  ;;  %v486_v48 = vpop.xlane.xlu0 %485 }
 0x14a   :  { %v580_v20 = vsub.f32 %v5693_v7, %v486_v48  ;;  %v581_v28 = vsub.f32 %v3299_v43, %v486_v48  ;;  %v3980_v6 = vpop.permute.xlu2 %2146 }
 0x14b   :  { %v3970_v63 = vmax.f32 %v1766_v37, %v1767_v36  ;;  %v534_v41 = vpop.xlane.xlu1 %533  ;;  %5695 = vst [vmem:[#allocation2_spill] sm:$0xff] %v3980_v6 }
 0x14c   :  { %v644_v37 = vmul.f32 1.442695, %v580_v20  ;;  %v612_v7 = vsub.f32 %v5696_v27, %v534_v41  ;;  %v646_v34 = vmul.f32 1.442695, %v581_v28 }
 0x14d   :  { %v1817_v22 = vsub.f32 %v3545_v46, %v3970_v63  ;;  %v1819_v31 = vsub.f32 %v3640_v23, %v3970_v63  ;;  %v1821_v11 = vsub.f32 %v5694_v39, %v3970_v63  ;;  %v1823_v36 = vsub.f32 %v3616_v8, %v3970_v63 }
 0x14e   :  { %v1825_v46 = vsub.f32 %v3565_v4, %v3970_v63  ;;  %v613_v39 = vsub.f32 %v5697_v54, %v534_v41  ;;  %v1827_v43 = vsub.f32 %v3665_v51, %v3970_v63  ;;  %v708_v8 = vmul.f32 1.442695, %v612_v7 }
 0x14f   :  { %v1881_v18 = vmul.f32 1.442695, %v1817_v22  ;;  %v1885_v12 = vmul.f32 1.442695, %v1819_v31  ;;  %v1889_v23 = vmul.f32 1.442695, %v1821_v11  ;;  %v1829_v20 = vsub.f32 %v3597_v56, %v3970_v63 }
 0x150   :  { %v1893_v48 = vmul.f32 1.442695, %v1823_v36  ;;  %v1831_v27 = vsub.f32 %v3694_v55, %v3970_v63  ;;  %v1897_v4 = vmul.f32 1.442695, %v1825_v46  ;;  %v1801_v22 = vmax.f32 %v1799_v45, %v1800_v5 }
 0x151   :  { %2589 = vpow2.f32 %v1881_v18  ;;  %v710_v31 = vmul.f32 1.442695, %v613_v39  ;;  %v1833_v54 = vsub.f32 %v3621_v2, %v3970_v63  ;;  %v1835_v51 = vsub.f32 %v3723_v14, %v3970_v63 }
 0x152   :  { %2591 = vpow2.f32 %v1885_v12  ;;  %v1901_v12 = vmul.f32 1.442695, %v1827_v43  ;;  %v1837_v56 = vsub.f32 %v3646_v58, %v3970_v63  ;;  %v1905_v41 = vmul.f32 1.442695, %v1829_v20  ;;  %v4000_v11 = vpop.permute.xlu2 %2161 }
 0x153   :  { %2593 = vpow2.f32 %v644_v37  ;;  %5698 = vst [vmem:[#allocation59_spill] sm:$0xff] %v4000_v11  ;;  %v1839_v5 = vsub.f32 %v3747_v15, %v3970_v63  ;;  %v1802_v2 = vrot.slane %v1801_v22, 2  ;;  %v1841_v14 = vsub.f32 %v3699_v17, %v3970_v63 }
 0x154   :  { %2595 = vpow2.f32 %v1889_v23  ;;  %v1913_v28 = vmul.f32 1.442695, %v1833_v54  ;;  %v1843_v58 = vsub.f32 %v3797_v19, %v3970_v63  ;;  %v1917_v7 = vmul.f32 1.442695, %v1835_v51  ;;  %v5699_v19 = vld [vmem:[#allocation47_spill] sm:$0xff] }
 0x155   :  { %2597 = vpow2.f32 %v646_v34  ;;  %v1909_v34 = vmul.f32 1.442695, %v1831_v27  ;;  %v1845_v15 = vsub.f32 %v3878_v47, %v3970_v63  ;;  %v1921_v23 = vmul.f32 1.442695, %v1837_v56  ;;  %v5700_v47 = vld [vmem:[#allocation45_spill] sm:$0xff] }
 0x156   :  { %2599 = vpow2.f32 %v1893_v48  ;;  %v1847_v17 = vsub.f32 %v3937_v60, %v3970_v63  ;;  %v1925_v48 = vmul.f32 1.442695, %v1839_v5  ;;  %v1849_v27 = vsub.f32 %v5699_v19, %v3970_v63  ;;  %v5701_v60 = vld [vmem:[#allocation48_spill] sm:$0xff]  ;;  %v5702_v5 = vld [vmem:[#allocation49_spill] sm:$0xff] }
 0x157   :  { %v2590_v18 = vpop.eup %2589  ;;  %2601 = vpow2.f32 %v708_v8  ;;  %v1803_v8 = vmax.f32 %v1801_v22, %v1802_v2  ;;  %v1851_v51 = vsub.f32 %v5700_v47, %v3970_v63  ;;  %v1853_v56 = vsub.f32 %v5701_v60, %v3970_v63  ;;  %v5703_v2 = vld [vmem:[#allocation52_spill] sm:$0xff] }
 0x158   :  { %v2592_v55 = vpop.eup %2591  ;;  %2603 = vpow2.f32 %v1897_v4  ;;  %v1929_v4 = vmul.f32 1.442695, %v1841_v14  ;;  %v1937_v22 = vmul.f32 1.442695, %v1845_v15  ;;  %v1857_v14 = vsub.f32 %v5703_v2, %v3970_v63  ;;  %v5704_v15 = vld [vmem:[#allocation56_spill] sm:$0xff] }
 0x159   :  { %v4004_v45 = vpop.eup %2593  ;;  %2605 = vpow2.f32 %v710_v31  ;;  %v2009_v36 = vadd.f32 %v2592_v55, %v2590_v18  ;;  %v1949_v19 = vmul.f32 1.442695, %v1851_v51 }
 0x15a   :  { %v2596_v37 = vpop.eup %2595  ;;  %2607 = vpow2.f32 %v1901_v12  ;;  %v1933_v12 = vmul.f32 1.442695, %v1843_v58 }
 0x15b   :  { %v4010_v46 = vpop.eup %2597  ;;  %2609 = vpow2.f32 %v1905_v41  ;;  %v2010_v39 = vadd.f32 %v2596_v37, %v2009_v36  ;;  %v1945_v37 = vmul.f32 1.442695, %v1849_v27  ;;  %v1863_v27 = vsub.f32 %v3539_v35, %v3970_v63 }
 0x15c   :  { %v2600_v43 = vpop.eup %2599  ;;  %2611 = vpow2.f32 %v1909_v34  ;;  %v1855_v34 = vsub.f32 %v5702_v5, %v3970_v63  ;;  %v1869_v35 = vsub.f32 %v3626_v57, %v3970_v63 }
 0x15d   :  { %v4016_v20 = vpop.eup %2601  ;;  %2613 = vpow2.f32 %v1913_v28  ;;  %v2011_v31 = vadd.f32 %v2600_v43, %v2010_v39  ;;  %v1941_v28 = vmul.f32 1.442695, %v1847_v17  ;;  %v4030_v43 = vpop.permute.xlu2 %2176 }
 0x15e   :  { %v2604_v54 = vpop.eup %2603  ;;  %2615 = vpow2.f32 %v1917_v7  ;;  %v1804_v7 = vrot.slane %v1803_v8, 1 }
 0x15f   :  { %v4022_v18 = vpop.eup %2605  ;;  %2617 = vpow2.f32 %v1921_v23  ;;  %v2012_v41 = vadd.f32 %v2604_v54, %v2011_v31  ;;  %v1859_v23 = vsub.f32 %v5704_v15, %v3970_v63  ;;  %v5705_v54 = vld [vmem:[#allocation57_spill] sm:$0xff] }
 0x160   :  { %v2608_v55 = vpop.eup %2607  ;;  %2619 = vpow2.f32 %v1925_v48  ;;  %v1861_v47 = vsub.f32 %v5705_v54, %v3970_v63  ;;  %v1953_v48 = vmul.f32 1.442695, %v1853_v56  ;;  %v4040_v5 = vmax.f32 %v1803_v8, %v1804_v7 }
 0x161   :  { %v2610_v36 = vpop.eup %2609  ;;  %2621 = vpow2.f32 %v1929_v4  ;;  %v2013_v58 = vadd.f32 %v2608_v55, %v2012_v41  ;;  %v1865_v4 = vsub.f32 %v3570_v62, %v3970_v63  ;;  %v1957_v41 = vmul.f32 1.442695, %v1855_v34 }
 0x162   :  { %v2612_v39 = vpop.eup %2611  ;;  %2623 = vpow2.f32 %v1933_v12  ;;  %v1961_v12 = vmul.f32 1.442695, %v1857_v14  ;;  %v1867_v56 = vsub.f32 %v3602_v3, %v3970_v63  ;;  %v1969_v62 = vmul.f32 1.442695, %v1861_v47 }
 0x163   :  { %v2614_v31 = vpop.eup %2613  ;;  %2625 = vpow2.f32 %v1937_v22  ;;  %v2014_v17 = vadd.f32 %v2610_v36, %v2013_v58  ;;  %v1965_v22 = vmul.f32 1.442695, %v1859_v23  ;;  %v1871_v14 = vsub.f32 %v3675_v21, %v3970_v63 }
 0x164   :  { %v2616_v60 = vpop.eup %2615  ;;  %2627 = vpow2.f32 %v1941_v28  ;;  %v1973_v8 = vmul.f32 1.442695, %v1863_v27  ;;  %v1977_v58 = vmul.f32 1.442695, %v1865_v4  ;;  %v1818_v3 = vsub.f32 %v3728_v29, %v4040_v5 }
 0x165   :  { %v2618_v55 = vpop.eup %2617  ;;  %2629 = vpow2.f32 %v1945_v37  ;;  %v2015_v51 = vadd.f32 %v2612_v39, %v2014_v17  ;;  %v1981_v15 = vmul.f32 1.442695, %v1867_v56  ;;  %v1820_v57 = vsub.f32 %v3833_v44, %v4040_v5  ;;  %v4056_v47 = vpop.permute.xlu2 %2191 }
 0x166   :  { %v2620_v2 = vpop.eup %2619  ;;  %2631 = vpow2.f32 %v1949_v19  ;;  %v1873_v19 = vsub.f32 %v3773_v10, %v3970_v63  ;;  %v1985_v21 = vmul.f32 1.442695, %v1869_v35  ;;  %5706 = vst [vmem:[#allocation4_spill] sm:$0xff] %v4056_v47  ;;  %v1875_v29 = vsub.f32 %v3858_v40, %v3970_v63 }
 0x167   :  { %v2622_v36 = vpop.eup %2621  ;;  %2633 = vpow2.f32 %v1953_v48  ;;  %v2016_v28 = vadd.f32 %v2614_v31, %v2015_v51  ;;  %v1989_v48 = vmul.f32 1.442695, %v1871_v14  ;;  %v1822_v17 = vsub.f32 %v3704_v30, %v4040_v5 }
 0x168   :  { %v2624_v34 = vpop.eup %2623  ;;  %2635 = vpow2.f32 %v1957_v41  ;;  %v1877_v10 = vsub.f32 %v3919_v13, %v3970_v63  ;;  %v1883_v27 = vmul.f32 1.442695, %v1818_v3  ;;  %v1879_v41 = vsub.f32 %v3951_v38, %v3970_v63 }
 0x169   :  { %v2626_v37 = vpop.eup %2625  ;;  %2637 = vpow2.f32 %v1961_v12  ;;  %v2017_v7 = vadd.f32 %v2616_v60, %v2016_v28  ;;  %v1824_v40 = vsub.f32 %v3815_v26, %v4040_v5  ;;  %v1993_v30 = vmul.f32 1.442695, %v1873_v19 }
 0x16a   :  { %v2628_v39 = vpop.eup %2627  ;;  %2639 = vpow2.f32 %v1965_v22  ;;  %v1826_v13 = vsub.f32 %v3733_v53, %v4040_v5  ;;  %v1997_v38 = vmul.f32 1.442695, %v1875_v29  ;;  %v2001_v35 = vmul.f32 1.442695, %v1877_v10 }
 0x16b   :  { %v2630_v23 = vpop.eup %2629  ;;  %2641 = vpow2.f32 %v1969_v62  ;;  %v2018_v31 = vadd.f32 %v2618_v55, %v2017_v7  ;;  %v1887_v55 = vmul.f32 1.442695, %v1820_v57  ;;  %v2005_v28 = vmul.f32 1.442695, %v1879_v41 }
 0x16c   :  { %v4054_v54 = vpop.eup %2631  ;;  %2643 = vpow2.f32 %v1973_v8  ;;  %v1828_v14 = vsub.f32 %v3846_v25, %v4040_v5  ;;  %v1830_v53 = vsub.f32 %v3752_v42, %v4040_v5  ;;  %v1832_v7 = vsub.f32 %v3853_v50, %v4040_v5 }
 0x16d   :  { %v4062_v44 = vpop.eup %2633  ;;  %2645 = vpow2.f32 %v1977_v58  ;;  %v2019_v60 = vadd.f32 %v2620_v2, %v2018_v31  ;;  %v1891_v2 = vmul.f32 1.442695, %v1822_v17  ;;  %v1834_v3 = vsub.f32 %v3768_v33, %v4040_v5 }
 0x16e   :  { %v4066_v4 = vpop.eup %2635  ;;  %2647 = vpow2.f32 %v1981_v15  ;;  %v1836_v25 = vsub.f32 %v3888_v52, %v4040_v5  ;;  %v1899_v15 = vmul.f32 1.442695, %v1826_v13  ;;  %v1838_v42 = vsub.f32 %v3802_v24, %v4040_v5 }
 0x16f   :  { %v4072_v12 = vpop.eup %2637  ;;  %2649 = vpow2.f32 %v1985_v21  ;;  %v2020_v51 = vadd.f32 %v2622_v36, %v2019_v60  ;;  %v1895_v36 = vmul.f32 1.442695, %v1824_v40  ;;  %v1840_v50 = vsub.f32 %v3900_v9, %v4040_v5  ;;  %v4104_v21 = vpop.permute.xlu2 %2206 }
 0x170   :  { %v4074_v56 = vpop.eup %2639  ;;  %2651 = vpow2.f32 %v1989_v48  ;;  %5707 = vst [vmem:[#allocation5_spill] sm:$0xff] %v4104_v21  ;;  %v1842_v33 = vsub.f32 %v3824_v0, %v4040_v5  ;;  %v1844_v52 = vsub.f32 %v3909_v16, %v4040_v5  ;;  %v1903_v31 = vmul.f32 1.442695, %v1828_v14 }
 0x171   :  { %v4078_v22 = vpop.eup %2641  ;;  %v2021_v62 = vadd.f32 %v2624_v34, %v2020_v51  ;;  %2653 = vpow2.f32 %v1883_v27  ;;  %v1846_v24 = vsub.f32 %v3883_v1, %v4040_v5  ;;  %v1907_v48 = vmul.f32 1.442695, %v1830_v53  ;;  %v5708_v1 = vld [vmem:[#allocation97_spill] sm:$0xff] }
 0x172   :  { %v4080_v26 = vpop.eup %2643  ;;  %2655 = vpow2.f32 %v1887_v55  ;;  %v1911_v17 = vmul.f32 1.442695, %v1832_v7  ;;  %v577_v10 = vmax.f32 %v3948_v61, %v3958_v59  ;;  %v529_v0 = vmax.f32 %v3928_v49, %v3930_v32 }
 0x173   :  { %v4084_v8 = vpop.eup %2645  ;;  %2657 = vpow2.f32 %v1993_v30  ;;  %v2022_v58 = vadd.f32 %v2626_v37, %v2021_v62  ;;  %v1915_v27 = vmul.f32 1.442695, %v1834_v3  ;;  %v1848_v40 = vsub.f32 %v5708_v1, %v4040_v5 }
 0x174   :  { %v4090_v34 = vpop.eup %2647  ;;  %2659 = vpow2.f32 %v1891_v2  ;;  %v1919_v55 = vmul.f32 1.442695, %v1836_v25  ;;  %578 = vmax.xlane.f32.xlu1 %v577_v10  ;;  %530 = vmax.xlane.f32.xlu0 %v529_v0  ;;  %v772_v30 = vadd.f32 %v4010_v46, %v4004_v45  ;;  %v1923_v2 = vmul.f32 1.442695, %v1838_v42  ;;  %v5713_v10 = vld [vmem:[#allocation69_spill] sm:$0xff] }
 0x175   :  { %v4096_v57 = vpop.eup %2649  ;;  %2661 = vpow2.f32 %v1997_v38  ;;  %v2023_v37 = vadd.f32 %v2628_v39, %v2022_v58  ;;  %v4130_v58 = vpop.xlane.xlu1 %491  ;;  %v1935_v42 = vmul.f32 1.442695, %v1844_v52  ;;  %v1858_v0 = vsub.f32 %v5713_v10, %v4040_v5 }
 0x176   :  { %v4102_v19 = vpop.eup %2651  ;;  %2663 = vpow2.f32 %v1895_v36  ;;  %v1927_v36 = vmul.f32 1.442695, %v1840_v50  ;;  %773 = vadd.xlane.f32.xlu2 %v772_v30  ;;  %v820_v50 = vadd.f32 %v4022_v18, %v4016_v20  ;;  %v1943_v52 = vmul.f32 1.442695, %v1848_v40 }
 0x177   :  { %v2654_v29 = vpop.eup %2653  ;;  %2665 = vpow2.f32 %v2001_v35  ;;  %v2024_v39 = vadd.f32 %v2630_v23, %v2023_v37  ;;  %v5709_v35 = vld [vmem:[#allocation62_spill] sm:$0xff] }
 0x178   :  { %v2656_v9 = vpop.eup %2655  ;;  %2667 = vpow2.f32 %v1899_v15  ;;  %v1850_v62 = vsub.f32 %v5709_v35, %v4040_v5  ;;  %v5711_v15 = vld [vmem:[#allocation64_spill] sm:$0xff] }
 0x179   :  { %v4116_v60 = vpop.eup %2657  ;;  %2669 = vpow2.f32 %v2005_v28  ;;  %v2025_v16 = vadd.f32 %v4054_v54, %v2024_v39  ;;  %v2046_v23 = vadd.f32 %v2656_v9, %v2654_v29  ;;  %v5710_v28 = vld [vmem:[#allocation60_spill] sm:$0xff]  ;;  %v1854_v37 = vsub.f32 %v5711_v15, %v4040_v5 }
 0x17a   :  { %v2660_v41 = vpop.eup %2659  ;;  %2671 = vpow2.f32 %v1903_v31  ;;  %v1852_v14 = vsub.f32 %v5710_v28, %v4040_v5  ;;  %v4137_v31 = vpop.xlane.xlu2 %536  ;;  %v5712_v9 = vld [vmem:[#allocation68_spill] sm:$0xff] }
 0x17b   :  { %v4123_v51 = vpop.eup %2661  ;;  %v2026_v13 = vadd.f32 %v4062_v44, %v2025_v16  ;;  %2673 = vpow2.f32 %v1907_v48  ;;  %v2047_v54 = vadd.f32 %v2660_v41, %v2046_v23  ;;  %v1931_v44 = vmul.f32 1.442695, %v1842_v33 }
 0x17c   :  { %v2664_v38 = vpop.eup %2663  ;;  %2675 = vpow2.f32 %v1911_v17  ;;  %v1856_v17 = vsub.f32 %v5712_v9, %v4040_v5  ;;  %v1947_v23 = vmul.f32 1.442695, %v1850_v62  ;;  %821 = vadd.xlane.f32.xlu0 %v820_v50  ;;  %v1955_v40 = vmul.f32 1.442695, %v1854_v37  ;;  %v5716_v62 = vld [vmem:[#allocation77_spill] sm:$0xff]  ;;  %v5718_v37 = vld [vmem:[#allocation80_spill] sm:$0xff] }
 0x17d   :  { %v4132_v53 = vpop.eup %2665  ;;  %v2027_v7 = vadd.f32 %v4066_v4, %v2026_v13  ;;  %2677 = vpow2.f32 %v1915_v27  ;;  %v2048_v3 = vadd.f32 %v2664_v38, %v2047_v54  ;;  %v1939_v4 = vmul.f32 1.442695, %v1846_v24  ;;  %v5719_v50 = vld [vmem:[#allocation83_spill] sm:$0xff] }
 0x17e   :  { %v2668_v25 = vpop.eup %2667  ;;  %2679 = vpow2.f32 %v1919_v55  ;;  %v5715_v55 = vld [vmem:[#allocation73_spill] sm:$0xff]  ;;  %v1951_v13 = vmul.f32 1.442695, %v1852_v14  ;;  %v1864_v28 = vsub.f32 %v5716_v62, %v4040_v5 }
 0x17f   :  { %v4141_v29 = vpop.eup %2669  ;;  %v2028_v39 = vadd.f32 %v4072_v12, %v2027_v7  ;;  %2681 = vpow2.f32 %v1923_v2  ;;  %v2049_v48 = vadd.f32 %v2668_v25, %v2048_v3  ;;  %v5714_v12 = vld [vmem:[#allocation70_spill] sm:$0xff]  ;;  %v1862_v30 = vsub.f32 %v5715_v55, %v4040_v5 }
 0x180   :  { %v2672_v33 = vpop.eup %2671  ;;  %2683 = vpow2.f32 %v1927_v36  ;;  %v1860_v24 = vsub.f32 %v5714_v12, %v4040_v5  ;;  %v5717_v36 = vld [vmem:[#allocation79_spill] sm:$0xff]  ;;  %v1963_v25 = vmul.f32 1.442695, %v1858_v0 }
 0x181   :  { %v2674_v16 = vpop.eup %2673  ;;  %v2029_v27 = vadd.f32 %v4074_v56, %v2028_v39  ;;  %2685 = vpow2.f32 %v1931_v44  ;;  %v2050_v41 = vadd.f32 %v2672_v33, %v2049_v48  ;;  %v489_v56 = vpop.xlane.xlu0 %488  ;;  %v1866_v7 = vsub.f32 %v5717_v36, %v4040_v5 }
 0x182   :  { %v2676_v1 = vpop.eup %2675  ;;  %2687 = vpow2.f32 %v1935_v42  ;;  %v1959_v44 = vmul.f32 1.442695, %v1856_v17  ;;  %v1868_v42 = vsub.f32 %v5718_v37, %v4040_v5  ;;  %v1870_v39 = vsub.f32 %v5719_v50, %v4040_v5  ;;  %v4163_v48 = vpop.xlane.xlu1 %494 }
 0x183   :  { %v2678_v2 = vpop.eup %2677  ;;  %v2030_v54 = vadd.f32 %v4078_v22, %v2029_v27  ;;  %2689 = vpow2.f32 %v1939_v4  ;;  %v2051_v38 = vadd.f32 %v2674_v16, %v2050_v41  ;;  %v1967_v4 = vmul.f32 1.442695, %v1860_v24  ;;  %v4165_v33 = vpop.xlane.xlu2 %497 }
 0x184   :  { %v2680_v35 = vpop.eup %2679  ;;  %2691 = vpow2.f32 %v1943_v52  ;;  %v5720_v52 = vld [vmem:[#allocation87_spill] sm:$0xff]  ;;  %v1975_v27 = vmul.f32 1.442695, %v1864_v28  ;;  %v1979_v24 = vmul.f32 1.442695, %v1866_v7  ;;  %v5723_v28 = vld [vmem:[#allocation9_spill] sm:$0xff] }
 0x185   :  { %v2682_v3 = vpop.eup %2681  ;;  %v2031_v14 = vadd.f32 %v4080_v26, %v2030_v54  ;;  %2693 = vpow2.f32 %v1947_v23  ;;  %v2052_v15 = vadd.f32 %v2676_v1, %v2051_v38  ;;  %v1971_v26 = vmul.f32 1.442695, %v1862_v30  ;;  %v5721_v23 = vld [vmem:[#allocation6_spill] sm:$0xff]  ;;  %v5722_v30 = vld [vmem:[#allocation7_spill] sm:$0xff] }
 0x186   :  { %v2684_v22 = vpop.eup %2683  ;;  %2695 = vpow2.f32 %v1951_v13  ;;  %v1872_v16 = vsub.f32 %v5720_v52, %v4040_v5  ;;  %v582_v41 = vsub.f32 %v5721_v23, %v489_v56  ;;  %v1987_v54 = vmul.f32 1.442695, %v1870_v39  ;;  %v5726_v39 = vld [vmem:[#allocation11_spill] sm:$0xff]  ;;  %v5728_v23 = vld [vmem:[#allocation14_spill] sm:$0xff] }
 0x187   :  { %v2686_v9 = vpop.eup %2685  ;;  %v2032_v17 = vadd.f32 %v4084_v8, %v2031_v14  ;;  %2697 = vpow2.f32 %v1955_v40  ;;  %v2053_v10 = vadd.f32 %v2678_v2, %v2052_v15  ;;  %v1983_v8 = vmul.f32 1.442695, %v1868_v42 }
 0x188   :  { %v2688_v0 = vpop.eup %2687  ;;  %2699 = vpow2.f32 %v1959_v44  ;;  %v583_v2 = vsub.f32 %v5722_v30, %v489_v56  ;;  %v614_v36 = vsub.f32 %v5723_v28, %v4137_v31  ;;  %v1991_v14 = vmul.f32 1.442695, %v1872_v16 }
 0x189   :  { %v2690_v1 = vpop.eup %2689  ;;  %v2033_v12 = vadd.f32 %v4090_v34, %v2032_v17  ;;  %2701 = vpow2.f32 %v1963_v25  ;;  %v2054_v55 = vadd.f32 %v2680_v35, %v2053_v10  ;;  %v540_v44 = vpop.xlane.xlu0 %539  ;;  %v5724_v35 = vld [vmem:[#allocation88_spill] sm:$0xff]  ;;  %v5725_v25 = vld [vmem:[#allocation10_spill] sm:$0xff]  ;;  %v648_v37 = vmul.f32 1.442695, %v582_v41  ;;  %v5727_v17 = vld [vmem:[#allocation13_spill] sm:$0xff] }
 0x18a   :  { %v2692_v13 = vpop.eup %2691  ;;  %2703 = vpow2.f32 %v1967_v4  ;;  %v1874_v7 = vsub.f32 %v5724_v35, %v4040_v5  ;;  %v615_v56 = vsub.f32 %v5725_v25, %v4137_v31  ;;  %v650_v50 = vmul.f32 1.442695, %v583_v2  ;;  %v5732_v25 = vld [vmem:[#allocation16_spill] sm:$0xff] }
 0x18b   :  { %v4173_v40 = vpop.eup %2693  ;;  %v2034_v38 = vadd.f32 %v4096_v57, %v2033_v12  ;;  %2705 = vpow2.f32 %v1971_v26  ;;  %v2055_v62 = vadd.f32 %v2682_v3, %v2054_v55  ;;  %v584_v4 = vsub.f32 %v5726_v39, %v4130_v58  ;;  %v543_v12 = vpop.xlane.xlu1 %542 }
 0x18c   :  { %v4178_v34 = vpop.eup %2695  ;;  %2707 = vpow2.f32 %v1975_v27  ;;  %v616_v26 = vsub.f32 %v5727_v17, %v540_v44  ;;  %v712_v16 = vmul.f32 1.442695, %v614_v36  ;;  %v714_v27 = vmul.f32 1.442695, %v615_v56  ;;  %v5734_v17 = vld [vmem:[#allocation19_spill] sm:$0xff] }
 0x18d   :  { %v4184_v15 = vpop.eup %2697  ;;  %v2035_v57 = vadd.f32 %v4102_v19, %v2034_v38  ;;  %2709 = vpow2.f32 %v1979_v24  ;;  %v2056_v3 = vadd.f32 %v2684_v22, %v2055_v62  ;;  %v1995_v22 = vmul.f32 1.442695, %v1874_v7  ;;  %v546_v24 = vpop.xlane.xlu2 %545  ;;  %v5730_v62 = vld [vmem:[#allocation15_spill] sm:$0xff] }
 0x18e   :  { %v4187_v42 = vpop.eup %2699  ;;  %2711 = vpow2.f32 %v1983_v8  ;;  %v617_v41 = vsub.f32 %v5728_v23, %v540_v44  ;;  %v652_v2 = vmul.f32 1.442695, %v584_v4  ;;  %v716_v38 = vmul.f32 1.442695, %v616_v26  ;;  %v5736_v23 = vld [vmem:[#allocation22_spill] sm:$0xff] }
 0x18f   :  { %v4192_v10 = vpop.eup %2701  ;;  %v2036_v31 = vadd.f32 %v4116_v60, %v2035_v57  ;;  %2713 = vpow2.f32 %v1987_v54  ;;  %v2057_v52 = vadd.f32 %v2686_v9, %v2056_v3  ;;  %v5729_v60 = vld [vmem:[#allocation12_spill] sm:$0xff]  ;;  %v586_v28 = vsub.f32 %v5730_v62, %v4163_v48  ;;  %v5733_v57 = vld [vmem:[#allocation18_spill] sm:$0xff] }
 0x190   :  { %v4195_v19 = vpop.eup %2703  ;;  %2715 = vpow2.f32 %v1991_v14  ;;  %v585_v54 = vsub.f32 %v5729_v60, %v4130_v58  ;;  %v718_v58 = vmul.f32 1.442695, %v617_v41  ;;  %v587_v56 = vsub.f32 %v5732_v25, %v4163_v48 }
 0x191   :  { %v4198_v55 = vpop.eup %2705  ;;  %v2037_v8 = vadd.f32 %v4123_v51, %v2036_v31  ;;  %v2058_v30 = vadd.f32 %v2688_v0, %v2057_v52  ;;  %2717 = vpow2.f32 %v648_v37  ;;  %v5731_v51 = vld [vmem:[#allocation17_spill] sm:$0xff]  ;;  %v4211_v7 = vpop.xlane.xlu0 %548  ;;  %v619_v3 = vsub.f32 %v5733_v57, %v543_v12 }
 0x192   :  { %v4203_v9 = vpop.eup %2707  ;;  %2719 = vpow2.f32 %v650_v50  ;;  %v618_v0 = vsub.f32 %v5731_v51, %v543_v12  ;;  %v656_v4 = vmul.f32 1.442695, %v586_v28  ;;  %v588_v26 = vsub.f32 %v5734_v17, %v4165_v33 }
 0x193   :  { %v4207_v36 = vpop.eup %2709  ;;  %v2038_v44 = vadd.f32 %v4132_v53, %v2037_v8  ;;  %v2059_v35 = vadd.f32 %v2690_v1, %v2058_v30  ;;  %2721 = vpow2.f32 %v712_v16  ;;  %v654_v1 = vmul.f32 1.442695, %v585_v54  ;;  %v5735_v16 = vld [vmem:[#allocation21_spill] sm:$0xff] }
 0x194   :  { %v4213_v14 = vpop.eup %2711  ;;  %2723 = vpow2.f32 %v714_v27  ;;  %v720_v52 = vmul.f32 1.442695, %v618_v0  ;;  %v620_v27 = vsub.f32 %v5735_v16, %v546_v24  ;;  %v621_v41 = vsub.f32 %v5736_v23, %v546_v24  ;;  %v5739_v24 = vld [vmem:[#allocation25_spill] sm:$0xff]  ;;  %v552_v0 = vpop.xlane.xlu1 %551  ;;  %v5742_v16 = vld [vmem:[#allocation24_spill] sm:$0xff] }
 0x195   :  { %v4218_v37 = vpop.eup %2713  ;;  %v4221_v50 = vadd.f32 %v4141_v29, %v2038_v44  ;;  %2725 = vpow2.f32 %v1995_v22  ;;  %v2060_v53 = vadd.f32 %v2692_v13, %v2059_v35  ;;  %v658_v13 = vmul.f32 1.442695, %v587_v56  ;;  %v501_v44 = vpop.xlane.xlu2 %500  ;;  %v5740_v56 = vld [vmem:[#allocation26_spill] sm:$0xff] }
 0x196   :  { %v4223_v39 = vpop.eup %2715  ;;  %2727 = vpow2.f32 %v652_v2  ;;  %v722_v22 = vmul.f32 1.442695, %v619_v3  ;;  %v5738_v2 = vld [vmem:[#allocation90_spill] sm:$0xff]  ;;  %v660_v62 = vmul.f32 1.442695, %v588_v26  ;;  %v622_v28 = vsub.f32 %v5739_v24, %v4211_v7 }
 0x197   :  { %v4227_v31 = vpop.eup %2717  ;;  %v2061_v48 = vadd.f32 %v4173_v40, %v2060_v53  ;;  %2729 = vpow2.f32 %v716_v38  ;;  %v5737_v40 = vld [vmem:[#allocation20_spill] sm:$0xff]  ;;  %v1876_v38 = vsub.f32 %v5738_v2, %v4040_v5  ;;  %v726_v25 = vmul.f32 1.442695, %v621_v41 }
 0x198   :  { %v4231_v29 = vpop.eup %2719  ;;  %2731 = vpow2.f32 %v718_v58  ;;  %v589_v60 = vsub.f32 %v5737_v40, %v4165_v33  ;;  %v724_v33 = vmul.f32 1.442695, %v620_v27  ;;  %v623_v57 = vsub.f32 %v5740_v56, %v4211_v7 }
 0x199   :  { %v4234_v12 = vpop.eup %2721  ;;  %v2062_v8 = vadd.f32 %v4178_v34, %v2061_v48  ;;  %2733 = vpow2.f32 %v654_v1  ;;  %v775_v30 = vadd.f32 %v4231_v29, %v4227_v31  ;;  %v4256_v3 = vpop.xlane.xlu0 %503  ;;  %v1999_v48 = vmul.f32 1.442695, %v1876_v38 }
 0x19a   :  { %v4241_v54 = vpop.eup %2723  ;;  %2735 = vpow2.f32 %v656_v4  ;;  %v662_v1 = vmul.f32 1.442695, %v589_v60  ;;  %v5741_v4 = vld [vmem:[#allocation23_spill] sm:$0xff]  ;;  %v591_v27 = vsub.f32 %v5742_v16, %v501_v44  ;;  %v730_v40 = vmul.f32 1.442695, %v623_v57 }
 0x19b   :  { %v4247_v35 = vpop.eup %2725  ;;  %v2063_v34 = vadd.f32 %v4184_v15, %v2062_v8  ;;  %v823_v51 = vadd.f32 %v4241_v54, %v4234_v12  ;;  %776 = vadd.xlane.f32.xlu0 %v775_v30  ;;  %2737 = vpow2.f32 %v720_v52  ;;  %v590_v17 = vsub.f32 %v5741_v4, %v501_v44  ;;  %v5744_v8 = vld [vmem:[#allocation3_spill] sm:$0xff] }
 0x19c   :  { %v4252_v58 = vpop.eup %2727  ;;  %2739 = vpow2.f32 %v722_v22  ;;  %v728_v52 = vmul.f32 1.442695, %v622_v28  ;;  %v1878_v30 = vsub.f32 %v5744_v8, %v4040_v5  ;;  %v5745_v60 = vld [vmem:[#allocation31_spill] sm:$0xff] }
 0x19d   :  { %v4258_v53 = vpop.eup %2729  ;;  %v2064_v15 = vadd.f32 %v4187_v42, %v2063_v34  ;;  %2741 = vpow2.f32 %v658_v13  ;;  %824 = vadd.xlane.f32.xlu1 %v823_v51  ;;  %v5743_v42 = vld [vmem:[#allocation29_spill] sm:$0xff]  ;;  %v625_v2 = vsub.f32 %v5745_v60, %v552_v0  ;;  %v664_v28 = vmul.f32 1.442695, %v590_v17  ;;  %v5750_v60 = vld [vmem:[#allocation36_spill] sm:$0xff] }
 0x19e   :  { %v4262_v26 = vpop.eup %2731  ;;  %2743 = vpow2.f32 %v660_v62  ;;  %v624_v13 = vsub.f32 %v5743_v42, %v552_v0  ;;  %v5746_v62 = vld [vmem:[#allocation101_spill] sm:$0xff]  ;;  %v666_v51 = vmul.f32 1.442695, %v591_v27 }
 0x19f   :  { %v4265_v22 = vpop.eup %2733  ;;  %v2065_v7 = vadd.f32 %v4192_v10, %v2064_v15  ;;  %v826_v23 = vadd.f32 %v4262_v26, %v4258_v53  ;;  %2745 = vpow2.f32 %v724_v33  ;;  %v1880_v10 = vsub.f32 %v5746_v62, %v4040_v5  ;;  %v5747_v33 = vld [vmem:[#allocation27_spill] sm:$0xff]  ;;  %v555_v15 = vpop.xlane.xlu2 %554 }
 0x1a0   :  { %v4271_v41 = vpop.eup %2735  ;;  %2747 = vpow2.f32 %v726_v25  ;;  %v778_v34 = vadd.f32 %v4265_v22, %v4252_v58  ;;  %v592_v0 = vsub.f32 %v5747_v33, %v4256_v3  ;;  %v732_v57 = vmul.f32 1.442695, %v624_v13  ;;  %v5752_v33 = vld [vmem:[#allocation33_spill] sm:$0xff] }
 0x1a1   :  { %v4276_v38 = vpop.eup %2737  ;;  %v2066_v24 = vadd.f32 %v4195_v19, %v2065_v7  ;;  %2749 = vpow2.f32 %v662_v1  ;;  %827 = vadd.xlane.f32.xlu2 %v826_v23  ;;  %v507_v1 = vpop.xlane.xlu1 %506  ;;  %v734_v17 = vmul.f32 1.442695, %v625_v2  ;;  %v2003_v23 = vmul.f32 1.442695, %v1878_v30 }
 0x1a2   :  { %v4281_v44 = vpop.eup %2739  ;;  %2751 = vpow2.f32 %v1999_v48  ;;  %v5748_v48 = vld [vmem:[#allocation28_spill] sm:$0xff]  ;;  %v558_v27 = vpop.xlane.xlu0 %557  ;;  %v2007_v8 = vmul.f32 1.442695, %v1880_v10  ;;  %v627_v2 = vsub.f32 %v5750_v60, %v555_v15  ;;  %v5754_v60 = vld [vmem:[#allocation42_spill] sm:$0xff] }
 0x1a3   :  { %v4287_v25 = vpop.eup %2741  ;;  %v2067_v56 = vadd.f32 %v4198_v55, %v2066_v24  ;;  %2753 = vpow2.f32 %v728_v52  ;;  %v829_v19 = vadd.f32 %v4281_v44, %v4276_v38  ;;  %v593_v16 = vsub.f32 %v5748_v48, %v4256_v3  ;;  %v5749_v52 = vld [vmem:[#allocation35_spill] sm:$0xff] }
 0x1a4   :  { %v4292_v4 = vpop.eup %2743  ;;  %2755 = vpow2.f32 %v730_v40  ;;  %v626_v42 = vsub.f32 %v5749_v52, %v555_v15  ;;  %v668_v40 = vmul.f32 1.442695, %v592_v0  ;;  %v781_v30 = vadd.f32 %v4287_v25, %v4271_v41 }
 0x1a5   :  { %v4296_v7 = vpop.eup %2745  ;;  %v2068_v55 = vadd.f32 %v4203_v9, %v2067_v56  ;;  %779 = vadd.xlane.f32.xlu1 %v778_v34  ;;  %830 = vadd.xlane.f32.xlu0 %v829_v19  ;;  %2757 = vpow2.f32 %v664_v28  ;;  %v5751_v9 = vld [vmem:[#allocation32_spill] sm:$0xff]  ;;  %v670_v34 = vmul.f32 1.442695, %v593_v16  ;;  %v595_v56 = vsub.f32 %v5752_v33, %v507_v1  ;;  %v5753_v16 = vld [vmem:[#allocation41_spill] sm:$0xff] }
 0x1a6   :  { %v4300_v13 = vpop.eup %2747  ;;  %2759 = vpow2.f32 %v666_v51  ;;  %v594_v24 = vsub.f32 %v5751_v9, %v507_v1  ;;  %v736_v0 = vmul.f32 1.442695, %v626_v42  ;;  %v738_v15 = vmul.f32 1.442695, %v627_v2 }
 0x1a7   :  { %v4303_v62 = vpop.eup %2749  ;;  %v2069_v3 = vadd.f32 %v4207_v36, %v2068_v55  ;;  %2761 = vpow2.f32 %v732_v57  ;;  %v832_v36 = vadd.f32 %v4300_v13, %v4296_v7  ;;  %v674_v42 = vmul.f32 1.442695, %v595_v56 }
 0x1a8   :  { %v2752_v28 = vpop.eup %2751  ;;  %2763 = vpow2.f32 %v734_v17  ;;  %v784_v57 = vadd.f32 %v4303_v62, %v4292_v4  ;;  %v672_v48 = vmul.f32 1.442695, %v594_v24  ;;  %v5758_v24 = vld [vmem:[#allocation38_spill] sm:$0xff] }
 0x1a9   :  { %v4310_v10 = vpop.eup %2753  ;;  %2765 = vpow2.f32 %v2003_v23  ;;  %v2070_v51 = vadd.f32 %v4213_v14, %v2069_v3  ;;  %782 = vadd.xlane.f32.xlu2 %v781_v30  ;;  %v628_v14 = vsub.f32 %v5753_v16, %v558_v27  ;;  %v510_v23 = vpop.xlane.xlu2 %509  ;;  %v5760_v16 = vld [vmem:[#allocation53_spill] sm:$0xff] }
 0x1aa   :  { %v4315_v19 = vpop.eup %2755  ;;  %2767 = vpow2.f32 %v2007_v8  ;;  %v561_v55 = vpop.xlane.xlu1 %560  ;;  %v629_v8 = vsub.f32 %v5754_v60, %v558_v27 }
 0x1ab   :  { %v4319_v17 = vpop.eup %2757  ;;  %v2071_v1 = vadd.f32 %v4218_v37, %v2070_v51  ;;  %2769 = vpow2.f32 %v668_v40  ;;  %v835_v37 = vadd.f32 %v4315_v19, %v4310_v10  ;;  %v5756_v40 = vld [vmem:[#allocation37_spill] sm:$0xff]  ;;  %v513_v33 = vpop.xlane.xlu0 %512  ;;  %v740_v51 = vmul.f32 1.442695, %v628_v14 }
 0x1ac   :  { %v4323_v52 = vpop.eup %2759  ;;  %2771 = vpow2.f32 %v670_v34  ;;  %v596_v30 = vsub.f32 %v5756_v40, %v510_v23  ;;  %v597_v34 = vsub.f32 %v5758_v24, %v510_v23 }
 0x1ad   :  { %v4326_v3 = vpop.eup %2761  ;;  %v2072_v2 = vadd.f32 %v4223_v39, %v2071_v1  ;;  %833 = vadd.xlane.f32.xlu1 %v832_v36  ;;  %785 = vadd.xlane.f32.xlu0 %v784_v57  ;;  %2773 = vpow2.f32 %v736_v0  ;;  %v5759_v39 = vld [vmem:[#allocation50_spill] sm:$0xff]  ;;  %v742_v1 = vmul.f32 1.442695, %v629_v8  ;;  %v631_v0 = vsub.f32 %v5760_v16, %v561_v55  ;;  %v5764_v16 = vld [vmem:[#allocation44_spill] sm:$0xff] }
 0x1ae   :  { %5755 = vst [vmem:[#allocation47_spill] sm:$0xff] %v4326_v3  ;;  %v4332_v9 = vpop.eup %2763  ;;  %2775 = vpow2.f32 %v738_v15  ;;  %v630_v36 = vsub.f32 %v5759_v39, %v561_v55  ;;  %v787_v15 = vadd.f32 %v4323_v52, %v4319_v17  ;;  %v678_v14 = vmul.f32 1.442695, %v597_v34  ;;  %v5762_v55 = vld [vmem:[#allocation43_spill] sm:$0xff] }
 0x1af   :  { %5757 = vst [vmem:[#allocation45_spill] sm:$0xff] %v4332_v9  ;;  %v2766_v56 = vpop.eup %2765  ;;  %v2073_v27 = vadd.f32 %v4247_v35, %v2072_v2  ;;  %2777 = vpow2.f32 %v672_v48  ;;  %v838_v23 = vadd.f32 %v4332_v9, %v4326_v3  ;;  %v676_v35 = vmul.f32 1.442695, %v596_v30 }
 0x1b0   :  { %v2768_v57 = vpop.eup %2767  ;;  %2779 = vpow2.f32 %v674_v42  ;;  %v744_v8 = vmul.f32 1.442695, %v630_v36  ;;  %v598_v24 = vsub.f32 %v5762_v55, %v513_v33  ;;  %v599_v21 = vsub.f32 %v5764_v16, %v513_v33  ;;  %v5767_v55 = vld [vmem:[#allocation54_spill] sm:$0xff] }
 0x1b1   :  { %v4338_v60 = vpop.eup %2769  ;;  %v2074_v40 = vadd.f32 %v2752_v28, %v2073_v27  ;;  %836 = vadd.xlane.f32.xlu2 %v835_v37  ;;  %2781 = vpow2.f32 %v740_v51  ;;  %v564_v39 = vpop.xlane.xlu2 %563  ;;  %v746_v27 = vmul.f32 1.442695, %v631_v0 }
 0x1b2   :  { %v4344_v48 = vpop.eup %2771  ;;  %v516_v28 = vpop.xlane.xlu1 %515  ;;  %2783 = vpow2.f32 %v742_v1  ;;  %v680_v33 = vmul.f32 1.442695, %v598_v24 }
 0x1b3   :  { %v4346_v2 = vpop.eup %2773  ;;  %v2075_v42 = vadd.f32 %v2766_v56, %v2074_v40  ;;  %v790_v34 = vadd.f32 %v4344_v48, %v4338_v60  ;;  %2785 = vpow2.f32 %v676_v35  ;;  %v5765_v56 = vld [vmem:[#allocation61_spill] sm:$0xff]  ;;  %v5766_v40 = vld [vmem:[#allocation63_spill] sm:$0xff]  ;;  %v567_v0 = vpop.xlane.xlu0 %566  ;;  %v600_v16 = vsub.f32 %v5767_v55, %v516_v28 }
 0x1b4   :  { %5761 = vst [vmem:[#allocation48_spill] sm:$0xff] %v4346_v2  ;;  %v4349_v37 = vpop.eup %2775  ;;  %v632_v51 = vsub.f32 %v5765_v56, %v564_v39  ;;  %2787 = vpow2.f32 %v678_v14  ;;  %v633_v1 = vsub.f32 %v5766_v40, %v564_v39 }
 0x1b5   :  { %5763 = vst [vmem:[#allocation49_spill] sm:$0xff] %v4349_v37  ;;  %v4352_v9 = vpop.eup %2777  ;;  %v4354_v30 = vadd.f32 %v2768_v57, %v2075_v42  ;;  %788 = vadd.xlane.f32.xlu1 %v787_v15  ;;  %839 = vadd.xlane.f32.xlu0 %v838_v23  ;;  %2789 = vpow2.f32 %v744_v8  ;;  %v682_v57 = vmul.f32 1.442695, %v599_v21  ;;  %v5768_v15 = vld [vmem:[#allocation55_spill] sm:$0xff]  ;;  %v841_v23 = vadd.f32 %v4349_v37, %v4346_v2 }
 0x1b6   :  { %v4359_v36 = vpop.eup %2779  ;;  %2791 = vpow2.f32 %v746_v27  ;;  %v601_v42 = vsub.f32 %v5768_v15, %v516_v28  ;;  %v748_v14 = vmul.f32 1.442695, %v632_v51  ;;  %v750_v8 = vmul.f32 1.442695, %v633_v1  ;;  %v5771_v21 = vld [vmem:[#allocation71_spill] sm:$0xff]  ;;  %v5773_v15 = vld [vmem:[#allocation74_spill] sm:$0xff] }
 0x1b7   :  { %v4364_v47 = vpop.eup %2781  ;;  %v793_v35 = vadd.f32 %v4359_v36, %v4352_v9  ;;  %2793 = vpow2.f32 %v680_v33  ;;  %v684_v27 = vmul.f32 1.442695, %v600_v16  ;;  %v634_v56 = vsub.f32 %v5771_v21, %v567_v0  ;;  %v5775_v1 = vld [vmem:[#allocation65_spill] sm:$0xff]  ;;  %v5777_v21 = vld [vmem:[#allocation66_spill] sm:$0xff] }
 0x1b8   :  { %5769 = vst [vmem:[#allocation52_spill] sm:$0xff] %v4364_v47  ;;  %v4370_v39 = vpop.eup %2783  ;;  %2795 = vpow2.f32 %v682_v57  ;;  %v635_v3 = vsub.f32 %v5773_v15, %v567_v0  ;;  %v5779_v15 = vld [vmem:[#allocation82_spill] sm:$0xff] }
 0x1b9   :  { %791 = vadd.xlane.f32.xlu2 %v790_v34  ;;  %5770 = vst [vmem:[#allocation56_spill] sm:$0xff] %v4370_v39  ;;  %v4372_v24 = vpop.eup %2785  ;;  %v519_v28 = vpop.xlane.xlu2 %518  ;;  %v686_v34 = vmul.f32 1.442695, %v601_v42  ;;  %v844_v51 = vadd.f32 %v4370_v39, %v4364_v47  ;;  %2797 = vpow2.f32 %v748_v14  ;;  %v752_v57 = vmul.f32 1.442695, %v634_v56  ;;  %v5778_v42 = vld [vmem:[#allocation81_spill] sm:$0xff] }
 0x1ba   :  { %v570_v40 = vpop.xlane.xlu1 %569  ;;  %v4375_v55 = vpop.eup %2787  ;;  %v602_v33 = vsub.f32 %v5775_v1, %v519_v28  ;;  %2799 = vpow2.f32 %v750_v8  ;;  %v603_v2 = vsub.f32 %v5777_v21, %v519_v28  ;;  %v754_v0 = vmul.f32 1.442695, %v635_v3  ;;  %v5784_v39 = vld [vmem:[#allocation76_spill] sm:$0xff] }
 0x1bb   :  { %5772 = vst [vmem:[#allocation57_spill] sm:$0xff] %v4375_v55  ;;  %v4378_v37 = vpop.eup %2789  ;;  %2801 = vpow2.f32 %v684_v27  ;;  %v636_v11 = vsub.f32 %v5778_v42, %v570_v40  ;;  %v796_v14 = vadd.f32 %v4375_v55, %v4372_v24 }
 0x1bc   :  { %5774 = vst [vmem:[#allocation97_spill] sm:$0xff] %v4378_v37  ;;  %v4383_v16 = vpop.eup %2791  ;;  %2803 = vpow2.f32 %v686_v34  ;;  %v688_v1 = vmul.f32 1.442695, %v602_v33  ;;  %v690_v27 = vmul.f32 1.442695, %v603_v2  ;;  %v5782_v34 = vld [vmem:[#allocation75_spill] sm:$0xff] }
 0x1bd   :  { %842 = vadd.xlane.f32.xlu1 %v841_v23  ;;  %794 = vadd.xlane.f32.xlu0 %v793_v35  ;;  %5776 = vst [vmem:[#allocation62_spill] sm:$0xff] %v4383_v16  ;;  %v637_v23 = vsub.f32 %v5779_v15, %v570_v40  ;;  %v522_v35 = vpop.xlane.xlu0 %521  ;;  %v4388_v6 = vpop.eup %2793  ;;  %v847_v8 = vadd.f32 %v4383_v16, %v4378_v37  ;;  %2805 = vpow2.f32 %v752_v57  ;;  %v756_v3 = vmul.f32 1.442695, %v636_v11  ;;  %v5785_v33 = vld [vmem:[#allocation8_spill] sm:$0xff]  ;;  %v5788_v37 = vld [vmem:[#allocation85_spill] sm:$0xff] }
 0x1be   :  { %v4394_v28 = vpop.eup %2795  ;;  %v604_v40 = vsub.f32 %v5782_v34, %v522_v35  ;;  %2807 = vpow2.f32 %v754_v0  ;;  %v5786_v34 = vld [vmem:[#allocation34_spill] sm:$0xff] }
 0x1bf   :  { %5780 = vst [vmem:[#allocation60_spill] sm:$0xff] %v4394_v28  ;;  %v4396_v56 = vpop.eup %2797  ;;  %v758_v15 = vmul.f32 1.442695, %v637_v23  ;;  %v799_v2 = vadd.f32 %v4394_v28, %v4388_v6  ;;  %2809 = vpow2.f32 %v688_v1  ;;  %v5787_v23 = vld [vmem:[#allocation84_spill] sm:$0xff] }
 0x1c0   :  { %5781 = vst [vmem:[#allocation64_spill] sm:$0xff] %v4396_v56  ;;  %v4399_v42 = vpop.eup %2799  ;;  %2811 = vpow2.f32 %v690_v27 }
 0x1c1   :  { %845 = vadd.xlane.f32.xlu2 %v844_v51  ;;  %v573_v21 = vpop.xlane.xlu2 %572  ;;  %5783 = vst [vmem:[#allocation68_spill] sm:$0xff] %v4399_v42  ;;  %v605_v51 = vsub.f32 %v5784_v39, %v522_v35  ;;  %v4402_v55 = vpop.eup %2801  ;;  %v850_v0 = vadd.f32 %v4399_v42, %v4396_v56  ;;  %2813 = vpow2.f32 %v756_v3  ;;  %v692_v39 = vmul.f32 1.442695, %v604_v40 }
 0x1c2   :  { %v525_v47 = vpop.xlane.xlu1 %524  ;;  %v638_v11 = vsub.f32 %v5785_v33, %v573_v21  ;;  %v4407_v57 = vpop.eup %2803  ;;  %v639_v16 = vsub.f32 %v5786_v34, %v573_v21  ;;  %2815 = vpow2.f32 %v758_v15  ;;  %v1812_v33 = vlaneseq }
 0x1c3   :  { %v606_v35 = vsub.f32 %v5787_v23, %v525_v47  ;;  %v607_v28 = vsub.f32 %v5788_v37, %v525_v47  ;;  %v4415_v1 = vpop.eup %2805  ;;  %v802_v27 = vadd.f32 %v4407_v57, %v4402_v55  ;;  %2817 = vpow2.f32 %v692_v39 }
 0x1c4   :  { %5789 = vst [vmem:[#allocation69_spill] sm:$0xff] %v4415_v1  ;;  %v760_v21 = vmul.f32 1.442695, %v638_v11  ;;  %v4419_v34 = vpop.eup %2807  ;;  %v762_v3 = vmul.f32 1.442695, %v639_v16  ;;  %vm4425_vm0 = vcmp.lt.s32.totalorder %v1812_v33, 256 }
 0x1c5   :  { %797 = vadd.xlane.f32.xlu1 %v796_v14  ;;  %848 = vadd.xlane.f32.xlu0 %v847_v8  ;;  %v694_v14 = vmul.f32 1.442695, %v605_v51  ;;  %v1808_v8 = vrot.slane %v4040_v5, 7  ;;  %5790 = vst [vmem:[#allocation70_spill] sm:$0xff] %v4419_v34  ;;  %v4423_v15 = vpop.eup %2809  ;;  %v696_v47 = vmul.f32 1.442695, %v606_v35  ;;  %v576_v11 = vpop.xlane.xlu0 %575 }
 0x1c6   :  { %v5791_v5 = vmov 0  ;;  %v4429_v37 = vpop.eup %2811  ;;  %v698_v51 = vmul.f32 1.442695, %v607_v28  ;;  %v5797_v35 = vld [vmem:[#allocation94_spill] sm:$0xff] }
 0x1c7   :  { %v1810_v40 = vsel %vm1809_vm15, %v3970_v63, %v1808_v8  ;;  %v5792_v5 = vsel %vm4425_vm0, 4294967295, %v5791_v5  ;;  %2819 = vpow2.f32 %v694_v14  ;;  %v4436_v16 = vpop.eup %2813  ;;  %v853_v63 = vadd.f32 %v4419_v34, %v4415_v1 }
 0x1c8   :  { %5793 = vst [vmem:[#allocation73_spill] sm:$0xff] %v5792_v5  ;;  %2821 = vpow2.f32 %v760_v21  ;;  %v805_v23 = vadd.f32 %v4429_v37, %v4423_v15  ;;  %v640_v14 = vsub.f32 %v5797_v35, %v576_v11 }
 0x1c9   :  { %800 = vadd.xlane.f32.xlu2 %v799_v2  ;;  %1816 = vst.msk [vmem:[%s5411_s4] sm:$0x3] %vm4425_vm0, %v1810_v40  ;;  %v4440_v2 = vpop.eup %2815  ;;  %2823 = vpow2.f32 %v762_v3  ;;  %v528_v28 = vpop.xlane.xlu2 %527  ;;  %v5801_v3 = vld [vmem:[#allocation91_spill] sm:$0xff] }
 0x1ca   :  { %5794 = vst [vmem:[#allocation77_spill] sm:$0xff] %v4436_v16  ;;  %2825 = vpow2.f32 %v696_v47  ;;  %v4442_v39 = vpop.eup %2817  ;;  %v608_v40 = vsub.f32 %v5801_v3, %v528_v28  ;;  %v764_v35 = vmul.f32 1.442695, %v640_v14 }
 0x1cb   :  { %5795 = vst [vmem:[#allocation79_spill] sm:$0xff] %v4440_v2  ;;  %2827 = vpow2.f32 %v698_v51  ;;  %v5803_v51 = vld [vmem:[#allocation92_spill] sm:$0xff] }
 0x1cc   :  { %5796 = vst [vmem:[#allocation80_spill] sm:$0xff] %v4442_v39  ;;  %v609_v5 = vsub.f32 %v5803_v51, %v528_v28  ;;  %2829 = vpow2.f32 %v764_v35 }
 0x1cd   :  { %851 = vadd.xlane.f32.xlu1 %v850_v0  ;;  %803 = vadd.xlane.f32.xlu0 %v802_v27  ;;  %v856_v0 = vadd.f32 %v4440_v2, %v4436_v16  ;;  %v4449_v8 = vpop.eup %2819  ;;  %v5799_v27 = vld [vmem:[#allocation96_spill] sm:$0xff] }
 0x1ce   :  { %5798 = vst [vmem:[#allocation83_spill] sm:$0xff] %v4449_v8  ;;  %v641_v21 = vsub.f32 %v5799_v27, %v576_v11  ;;  %v4452_v33 = vpop.eup %2821  ;;  %v700_v11 = vmul.f32 1.442695, %v608_v40  ;;  %v702_v27 = vmul.f32 1.442695, %v609_v5 }
 0x1cf   :  { %5800 = vst [vmem:[#allocation87_spill] sm:$0xff] %v4452_v33  ;;  %v4455_v47 = vpop.eup %2823 }
 0x1d0   :  { %5802 = vst [vmem:[#allocation6_spill] sm:$0xff] %v4455_v47  ;;  %v4458_v34 = vpop.eup %2825  ;;  %v766_v2 = vmul.f32 1.442695, %v641_v21  ;;  %v859_v3 = vadd.f32 %v4455_v47, %v4452_v33 }
 0x1d1   :  { %854 = vadd.xlane.f32.xlu2 %v853_v63  ;;  %5804 = vst [vmem:[#allocation7_spill] sm:$0xff] %v4458_v34  ;;  %v808_v63 = vadd.f32 %v4449_v8, %v4442_v39  ;;  %v4462_v1 = vpop.eup %2827  ;;  %v2915_v8 = vld [vmem:[%s5408_s2 + $0xe8] sm:$0xff] }
 0x1d2   :  { %5805 = vst [vmem:[#allocation9_spill] sm:$0xff] %v4462_v1  ;;  %v811_v28 = vadd.f32 %v4462_v1, %v4458_v34  ;;  %2831 = vpow2.f32 %v766_v2 }
 0x1d3   :  { %2833 = vpow2.f32 %v700_v11 }
 0x1d4   :  { %2835 = vpow2.f32 %v702_v27 }
 0x1d5   :  { %806 = vadd.xlane.f32.xlu1 %v805_v23  ;;  %857 = vadd.xlane.f32.xlu0 %v856_v0  ;;  %v4468_v23 = vpop.eup %2829 }
 0x1d6   :  { %5806 = vst [vmem:[#allocation88_spill] sm:$0xff] %v4468_v23 }
 0x1d8   :  { %v4470_v0 = vpop.eup %2831 }
 0x1d9   :  { %809 = vadd.xlane.f32.xlu2 %v808_v63  ;;  %5807 = vst [vmem:[#allocation10_spill] sm:$0xff] %v4470_v0  ;;  %v4472_v14 = vpop.eup %2833  ;;  %v862_v21 = vadd.f32 %v4470_v0, %v4468_v23 }
 0x1da   :  { %5808 = vst [vmem:[#allocation11_spill] sm:$0xff] %v4472_v14  ;;  %v4474_v5 = vpop.eup %2835 }
 0x1db   :  { %5809 = vst [vmem:[#allocation13_spill] sm:$0xff] %v4474_v5  ;;  %v814_v40 = vadd.f32 %v4474_v5, %v4472_v14 }
 0x1dd   :  { %860 = vadd.xlane.f32.xlu1 %v859_v3  ;;  %812 = vadd.xlane.f32.xlu0 %v811_v28  ;;  %v2909_v3 = vld [vmem:[%s5408_s2 + $0xc8] sm:$0xff] }
 0x1e1   :  { %863 = vadd.xlane.f32.xlu2 %v862_v21 }
 0x1e5   :  { %815 = vadd.xlane.f32.xlu1 %v814_v40 }
 0x1e7   :  { %v531_v2 = vpop.xlane.xlu0 %530  ;;  %v579_v5 = vpop.xlane.xlu1 %578 }
 0x1e8   :  { %v610_v51 = vsub.f32 %v3928_v49, %v531_v2  ;;  %v611_v63 = vsub.f32 %v3930_v32, %v531_v2  ;;  %v2910_v49 = vld [vmem:[%s5408_s2 + $0xe0] sm:$0xff] }
 0x1e9   :  { %v774_v35 = vpop.xlane.xlu2 %773 }
 0x1ea   :  { %v704_v11 = vmul.f32 1.442695, %v610_v51  ;;  %2837 = vrcp.f32 %v774_v35  ;;  %v706_v27 = vmul.f32 1.442695, %v611_v63  ;;  %v879_v2 = vand.u32 2147483648, %v774_v35 }
 0x1eb   :  { %vm873_vm2 = vweird.f32 %v774_v35 }
 0x1ec   :  { %2839 = vpow2.f32 %v704_v11  ;;  %v880_v47 = vor.u32 1.1754944e-38, %v879_v2 }
 0x1ed   :  { %2841 = vpow2.f32 %v706_v27 }
 0x1ef   :  { %v822_v28 = vpop.xlane.xlu0 %821 }
 0x1f0   :  { %v2838_v0 = vpop.eup %2837  ;;  %2843 = vrcp.f32 %v822_v28  ;;  %v1117_v42 = vand.u32 2147483647, %v822_v28  ;;  %v1119_v56 = vand.u32 2147483648, %v822_v28  ;;  %vm1113_vm8 = vweird.f32 %v822_v28 }
 0x1f1   :  { %2216 = vperm.xlu0 %2588, %v2909_v3   ;;  %v869_v21 = vmul.f32 %v2838_v0, %v774_v35  ;;  %vm874_vm1 = vweird.f32 %v2838_v0  ;;  %v877_v3 = vand.u32 2147483647, %v774_v35 }
 0x1f2   :  { %v4488_v32 = vpop.eup %2839  ;;  %vm875_vm3 = vmor %vm873_vm2, %vm874_vm1  ;;  %vm1118_vm7 = vcmp.eq.f32.partialorder %v1117_v42, 8.507059e+37 }
 0x1f3   :  { %v870_v40 = vsub.f32 1.0, %v869_v21  ;;  %5810 = vst [vmem:[#allocation14_spill] sm:$0xff] %v4488_v32  ;;  %v4490_v51 = vpop.eup %2841  ;;  %vm878_vm10 = vcmp.eq.f32.partialorder %v877_v3, 8.507059e+37  ;;  %v2913_v3 = vld [vmem:[%s5408_s2 + $0xf0] sm:$0xff] }
 0x1f4   :  { %5811 = vst [vmem:[#allocation12_spill] sm:$0xff] %v4490_v51  ;;  %v817_v27 = vadd.f32 %v4490_v51, %v4488_v32 }
 0x1f5   :  { %v871_v63 = vmul.f32 %v2838_v0, %v870_v40  ;;  %v2911_v40 = vld [vmem:[%s5408_s2 + $0xc0] sm:$0xff] }
 0x1f6   :  { %v2844_v11 = vpop.eup %2843  ;;  %818 = vadd.xlane.f32.xlu2 %v817_v27 }
 0x1f7   :  { %v872_v23 = vadd.f32 %v2838_v0, %v871_v63  ;;  %v1109_v21 = vmul.f32 %v2844_v11, %v822_v28  ;;  %vm1114_vm4 = vweird.f32 %v2844_v11 }
 0x1f8   :  { %vm1115_vm5 = vmor %vm1113_vm8, %vm1114_vm4 }
 0x1f9   :  { %2231 = vperm.xlu0 %2588, %v2910_v49   ;;  %v876_v33 = vsel %vm875_vm3, %v2838_v0, %v872_v23  ;;  %v1110_v49 = vsub.f32 1.0, %v1109_v21  ;;  %v642_v23 = vsub.f32 %v3948_v61, %v579_v5  ;;  %v2912_v61 = vld [vmem:[%s5408_s2 + $0xd8] sm:$0xff] }
 0x1fa   :  { %v881_v16 = vsel %vm878_vm10, %v880_v47, %v876_v33  ;;  %v1120_v33 = vor.u32 1.1754944e-38, %v1119_v56  ;;  %v643_v47 = vsub.f32 %v3958_v59, %v579_v5  ;;  %v2077_v5 = vrot.slane %v4354_v30, 4 }
 0x1fb   :  { %v1348_v51 = vmul.f32 %v4004_v45, %v881_v16  ;;  %v1349_v35 = vmul.f32 %v4010_v46, %v881_v16  ;;  %v1111_v63 = vmul.f32 %v2844_v11, %v1110_v49  ;;  %v768_v28 = vmul.f32 1.442695, %v642_v23  ;;  %v5814_v23 = vld [vmem:[#allocation40_spill] sm:$0xff] }
 0x1fc   :  { %v770_v59 = vmul.f32 1.442695, %v643_v47 }
 0x1fd   :  { %v1412_v2 = vpack.c.bf16 %v1349_v35, %v1348_v51  ;;  %v1112_v27 = vadd.f32 %v2844_v11, %v1111_v63  ;;  %2845 = vpow2.f32 %v768_v28 }
 0x1fe   :  { %2211 = vperm.xlu1 %2586, %v2911_v40   ;;  %2847 = vpow2.f32 %v770_v59 }
 0x1ff   :  { %1444 = vst [vmem:[%s5412_s3] sm:$0xff] %v1412_v2  ;;  %v1116_v0 = vsel %vm1115_vm5, %v2844_v11, %v1112_v27  ;;  %v2040_v11 = vrot.slane %v4221_v50, 4 }
 0x200   :  { %v1121_v45 = vsel %vm1118_vm7, %v1120_v33, %v1116_v0  ;;  %v4537_v33 = vmul.f32 %v5814_v23, %v1348_v51  ;;  %v2914_v0 = vld [vmem:[%s5408_s2 + $0xd0] sm:$0xff] }
 0x201   :  { %v4505_v46 = vmul.f32 %v4016_v20, %v1121_v45  ;;  %v4508_v16 = vmul.f32 %v4022_v18, %v1121_v45  ;;  %v2078_v20 = vadd.f32 %v2077_v5, %v4354_v30  ;;  %v4531_v30 = vadd.f32 %v2040_v11, %v4221_v50 }
 0x202   :  { %v4547_v5 = vmul.f32 %v5814_v23, %v1349_v35  ;;  %v5823_v23 = vld [vmem:[#allocation39_spill] sm:$0xff] }
 0x203   :  { %v1428_v56 = vpack.c.bf16 %v4508_v16, %v4505_v46  ;;  %v4524_v21 = vpop.eup %2845  ;;  %v2079_v49 = vrot.slane %v2078_v20, 2 }
 0x204   :  { %5812 = vst [vmem:[#allocation15_spill] sm:$0xff] %v4524_v21  ;;  %v4526_v40 = vpop.eup %2847 }
 0x205   :  { %1460 = vst [vmem:[%s5412_s3 + $0x80] sm:$0xff] %v1428_v56  ;;  %v4534_v27 = vadd.f32 %v2079_v49, %v2078_v20  ;;  %v4544_v45 = vadd.f32 %v4526_v40, %v4524_v21 }
 0x206   :  { %2226 = vperm.xlu1 %2586, %v2912_v61   ;;  %5813 = vst [vmem:[#allocation17_spill] sm:$0xff] %v4526_v40 }
 0x20e   :  { %v777_v18 = vpop.xlane.xlu0 %776  ;;  %2241 = vperm.xlu1 %2586, %v2913_v3   ;;  %2221 = vperm.xlu2 %2587, %v2914_v0  }
 0x20f   :  { %2849 = vrcp.f32 %v777_v18  ;;  %v892_v59 = vand.u32 2147483647, %v777_v18  ;;  %v894_v56 = vand.u32 2147483648, %v777_v18  ;;  %vm888_vm9 = vweird.f32 %v777_v18 }
 0x210   :  { %v825_v42 = vpop.xlane.xlu1 %824 }
 0x211   :  { %2851 = vrcp.f32 %v825_v42  ;;  %v1132_v50 = vand.u32 2147483647, %v825_v42  ;;  %v1134_v61 = vand.u32 2147483648, %v825_v42  ;;  %vm1128_vm11 = vweird.f32 %v825_v42 }
 0x212   :  { %vm4563_vm13 = vcmp.eq.f32.partialorder %v892_v59, 8.507059e+37  ;;  %v895_v14 = vor.u32 1.1754944e-38, %v894_v56 }
 0x213   :  { %vm4559_vm6 = vcmp.eq.f32.partialorder %v1132_v50, 8.507059e+37 }
 0x214   :  { %v4528_v63 = vpop.xlane.xlu2 %827 }
 0x215   :  { %v2850_v2 = vpop.eup %2849  ;;  %2853 = vrcp.f32 %v4528_v63  ;;  %v1147_v49 = vand.u32 2147483647, %v4528_v63  ;;  %v1149_v0 = vand.u32 2147483648, %v4528_v63  ;;  %vm1143_vm2 = vweird.f32 %v4528_v63 }
 0x216   :  { %v884_v47 = vmul.f32 %v2850_v2, %v777_v18  ;;  %vm889_vm12 = vweird.f32 %v2850_v2  ;;  %2236 = vperm.xlu2 %2587, %v2915_v8  }
 0x217   :  { %v2852_v28 = vpop.eup %2851  ;;  %vm890_vm1 = vmor %vm888_vm9, %vm889_vm12  ;;  %vm4574_vm3 = vcmp.eq.f32.partialorder %v1147_v49, 8.507059e+37  ;;  %v1150_v56 = vor.u32 1.1754944e-38, %v1149_v0 }
 0x218   :  { %v1124_v51 = vmul.f32 %v2852_v28, %v825_v42  ;;  %v885_v20 = vsub.f32 1.0, %v884_v47  ;;  %v4549_v3 = vpop.xlane.xlu1 %779  ;;  %v4551_v11 = vpop.xlane.xlu0 %830  ;;  %v1135_v47 = vor.u32 1.1754944e-38, %v1134_v61  ;;  %vm1129_vm14 = vweird.f32 %v2852_v28 }
 0x219   :  { %2855 = vrcp.f32 %v4549_v3  ;;  %v907_v50 = vand.u32 2147483647, %v4549_v3  ;;  %vm1130_vm10 = vmor %vm1128_vm11, %vm1129_vm14  ;;  %vm903_vm4 = vweird.f32 %v4549_v3  ;;  %v909_v39 = vand.u32 2147483648, %v4549_v3 }
 0x21a   :  { %v1125_v40 = vsub.f32 1.0, %v1124_v51  ;;  %v886_v21 = vmul.f32 %v2850_v2, %v885_v20  ;;  %2857 = vrcp.f32 %v4551_v11  ;;  %vm1158_vm8 = vweird.f32 %v4551_v11 }
 0x21b   :  { %v4557_v35 = vpop.eup %2853  ;;  %vm4597_vm5 = vcmp.eq.f32.partialorder %v907_v50, 8.507059e+37 }
 0x21c   :  { %v1126_v1 = vmul.f32 %v2852_v28, %v1125_v40  ;;  %v887_v34 = vadd.f32 %v2850_v2, %v886_v21  ;;  %v1139_v51 = vmul.f32 %v4557_v35, %v4528_v63  ;;  %v4569_v20 = vpop.xlane.xlu2 %782  ;;  %vm1144_vm7 = vweird.f32 %v4557_v35 }
 0x21d   :  { %2859 = vrcp.f32 %v4569_v20  ;;  %vm1145_vm11 = vmor %vm1143_vm2, %vm1144_vm7  ;;  %v924_v61 = vand.u32 2147483648, %v4569_v20  ;;  %vm918_vm2 = vweird.f32 %v4569_v20 }
 0x21e   :  { %v1127_v40 = vadd.f32 %v2852_v28, %v1126_v1  ;;  %v891_v59 = vsel %vm890_vm1, %v2850_v2, %v887_v34  ;;  %v1140_v21 = vsub.f32 1.0, %v1139_v51  ;;  %v1162_v1 = vand.u32 2147483647, %v4551_v11 }
 0x21f   :  { %v2856_v18 = vpop.eup %2855  ;;  %v896_v49 = vsel %vm4563_vm13, %v895_v14, %v891_v59 }
 0x220   :  { %v4589_v34 = vpop.eup %2857  ;;  %v1131_v2 = vsel %vm1130_vm10, %v2852_v28, %v1127_v40  ;;  %v1350_v0 = vmul.f32 %v4227_v31, %v896_v49  ;;  %v1351_v8 = vmul.f32 %v4231_v29, %v896_v49  ;;  %v899_v51 = vmul.f32 %v2856_v18, %v4549_v3 }
 0x221   :  { %v1136_v14 = vsel %vm4559_vm6, %v1135_v47, %v1131_v2  ;;  %v1141_v42 = vmul.f32 %v4557_v35, %v1140_v21  ;;  %v1154_v31 = vmul.f32 %v4589_v34, %v4551_v11  ;;  %vm904_vm9 = vweird.f32 %v2856_v18 }
 0x222   :  { %v4606_v29 = vmul.f32 %v4234_v12, %v1136_v14  ;;  %v4609_v28 = vmul.f32 %v4241_v54, %v1136_v14  ;;  %v1413_v40 = vpack.c.bf16 %v1351_v8, %v1350_v0  ;;  %v2251_v47 = vmul.f32 %v5823_v23, %v1350_v0  ;;  %vm905_vm6 = vmor %vm903_vm4, %vm904_vm9 }
 0x223   :  { %v4612_v50 = vpop.eup %2859  ;;  %v2252_v59 = vmul.f32 %v5823_v23, %v1351_v8  ;;  %v900_v49 = vsub.f32 1.0, %v899_v51  ;;  %v1142_v21 = vadd.f32 %v4557_v35, %v1141_v42  ;;  %v1155_v2 = vsub.f32 1.0, %v1154_v31  ;;  %866 = vadd.xlane.f32.xlu0 %v4544_v45  ;;  %v4632_v42 = vpop.xlane.xlu1 %833 }
 0x224   :  { %v1429_v12 = vpack.c.bf16 %v4609_v28, %v4606_v29  ;;  %1445 = vst [vmem:[%s5412_s3 + $0x8] sm:$0xff] %v1413_v40  ;;  %v2313_v54 = vadd.f32 %v2251_v47, %v4537_v33  ;;  %v1164_v0 = vand.u32 2147483648, %v4551_v11  ;;  %v914_v14 = vmul.f32 %v4612_v50, %v4569_v20 }
 0x225   :  { %v2350_v8 = vadd.f32 %v2252_v59, %v4547_v5  ;;  %v901_v45 = vmul.f32 %v2856_v18, %v900_v49  ;;  %v1146_v51 = vsel %vm1145_vm11, %v4557_v35, %v1142_v21  ;;  %v910_v33 = vor.u32 1.1754944e-38, %v909_v39  ;;  %v4658_v59 = vpop.xlane.xlu0 %785 }
 0x226   :  { %1461 = vst [vmem:[%s5412_s3 + $0x88] sm:$0xff] %v1429_v12  ;;  %v1151_v63 = vsel %vm4574_vm3, %v1150_v56, %v1146_v51  ;;  %v1156_v31 = vmul.f32 %v4589_v34, %v1155_v2  ;;  %vm1159_vm12 = vweird.f32 %v4589_v34  ;;  %v915_v23 = vsub.f32 1.0, %v914_v14 }
 0x227   :  { %v902_v5 = vadd.f32 %v2856_v18, %v901_v45  ;;  %v4642_v35 = vmul.f32 %v4258_v53, %v1151_v63  ;;  %v4645_v40 = vmul.f32 %v4262_v26, %v1151_v63  ;;  %v922_v39 = vand.u32 2147483647, %v4569_v20  ;;  %vm1160_vm13 = vmor %vm1158_vm8, %vm1159_vm12 }
 0x228   :  { %v1157_v56 = vadd.f32 %v4589_v34, %v1156_v31  ;;  %2861 = vrcp.f32 %v4632_v42  ;;  %vm1163_vm14 = vcmp.eq.f32.partialorder %v1162_v1, 8.507059e+37  ;;  %v1165_v26 = vor.u32 1.1754944e-38, %v1164_v0  ;;  %v5824_v0 = vld [vmem:[#allocation30_spill] sm:$0xff] }
 0x229   :  { %v906_v47 = vsel %vm905_vm6, %v2856_v18, %v902_v5  ;;  %v1430_v53 = vpack.c.bf16 %v4645_v40, %v4642_v35  ;;  %v916_v49 = vmul.f32 %v4612_v50, %v915_v23  ;;  %vm919_vm1 = vweird.f32 %v4612_v50  ;;  %v4665_v18 = vpop.xlane.xlu2 %836 }
 0x22a   :  { %v911_v3 = vsel %vm4597_vm5, %v910_v33, %v906_v47  ;;  %v1161_v21 = vsel %vm1160_vm13, %v4589_v34, %v1157_v56  ;;  %2863 = vrcp.f32 %v4658_v59  ;;  %vm920_vm3 = vmor %vm918_vm2, %vm919_vm1  ;;  %v925_v20 = vor.u32 1.1754944e-38, %v924_v61  ;;  %v5825_v47 = vld [vmem:[#allocation51_spill] sm:$0xff] }
 0x22b   :  { %v1352_v2 = vmul.f32 %v4252_v58, %v911_v3  ;;  %v1353_v11 = vmul.f32 %v4265_v22, %v911_v3  ;;  %1462 = vst [vmem:[%s5412_s3 + $0x90] sm:$0xff] %v1430_v53  ;;  %v1166_v1 = vsel %vm1163_vm14, %v1165_v26, %v1161_v21  ;;  %v917_v32 = vadd.f32 %v4612_v50, %v916_v49 }
 0x22c   :  { %v4675_v12 = vmul.f32 %v4276_v38, %v1166_v1  ;;  %v4678_v34 = vmul.f32 %v4281_v44, %v1166_v1  ;;  %vm923_vm10 = vcmp.eq.f32.partialorder %v922_v39, 8.507059e+37  ;;  %v2042_v5 = vrot.slane %v4531_v30, 2 }
 0x22d   :  { %v1414_v58 = vpack.c.bf16 %v1353_v11, %v1352_v2  ;;  %v2253_v22 = vmul.f32 %v5824_v0, %v1352_v2  ;;  %v2254_v45 = vmul.f32 %v5824_v0, %v1353_v11  ;;  %v921_v14 = vsel %vm920_vm3, %v4612_v50, %v917_v32 }
 0x22e   :  { %v2862_v51 = vpop.eup %2861  ;;  %v1431_v38 = vpack.c.bf16 %v4678_v34, %v4675_v12  ;;  %v926_v63 = vsel %vm923_vm10, %v925_v20, %v921_v14  ;;  %v2081_v23 = vrot.slane %v4534_v27, 1  ;;  %v1177_v56 = vand.u32 2147483647, %v4632_v42 }
 0x22f   :  { %1446 = vst [vmem:[%s5412_s3 + $0x10] sm:$0xff] %v1414_v58  ;;  %v2314_v44 = vadd.f32 %v2313_v54, %v2253_v22  ;;  %v2351_v33 = vadd.f32 %v2350_v8, %v2254_v45  ;;  %v1169_v31 = vmul.f32 %v2862_v51, %v4632_v42  ;;  %v1354_v61 = vmul.f32 %v4271_v41, %v926_v63  ;;  %v4704_v41 = vpop.xlane.xlu1 %788 }
 0x230   :  { %v1355_v50 = vmul.f32 %v4287_v25, %v926_v63  ;;  %1463 = vst [vmem:[%s5412_s3 + $0x98] sm:$0xff] %v1431_v38  ;;  %2865 = vrcp.f32 %v4665_v18  ;;  %v2864_v54 = vpop.eup %2863  ;;  %v1179_v3 = vand.u32 2147483648, %v4632_v42  ;;  %vm1174_vm4 = vweird.f32 %v2862_v51  ;;  %v4727_v38 = vpop.xlane.xlu0 %839 }
 0x231   :  { %v1170_v39 = vsub.f32 1.0, %v1169_v31  ;;  %v2255_v53 = vmul.f32 %v5825_v47, %v1354_v61  ;;  %v929_v49 = vmul.f32 %v2864_v54, %v4658_v59  ;;  %v4708_v21 = vadd.f32 %v2042_v5, %v4531_v30  ;;  %v4720_v32 = vpop.xlane.xlu2 %791 }
 0x232   :  { %v1415_v8 = vpack.c.bf16 %v1355_v50, %v1354_v61  ;;  %v2256_v26 = vmul.f32 %v5825_v47, %v1355_v50  ;;  %v4711_v2 = vadd.f32 %v2081_v23, %v4534_v27  ;;  %vm1173_vm8 = vweird.f32 %v4632_v42  ;;  %v2916_v42 = vld [vmem:[%s5408_s2 + $0xf8] sm:$0xff] }
 0x233   :  { %v1171_v25 = vmul.f32 %v2862_v51, %v1170_v39  ;;  %5826 = vst [vmem:[#allocation16_spill] sm:$0xff] %v4708_v21  ;;  %v4716_v11 = vadd.f32 %v2314_v44, %v2255_v53  ;;  %v930_v0 = vsub.f32 1.0, %v929_v49  ;;  %2867 = vrcp.f32 %v4704_v41  ;;  %vm1175_vm5 = vmor %vm1173_vm8, %vm1174_vm4 }
 0x234   :  { %5827 = vst [vmem:[#allocation18_spill] sm:$0xff] %v4711_v2  ;;  %v4718_v1 = vadd.f32 %v2351_v33, %v2256_v26  ;;  %vm1178_vm7 = vcmp.eq.f32.partialorder %v1177_v56, 8.507059e+37  ;;  %v1180_v30 = vor.u32 1.1754944e-38, %v1179_v3  ;;  %v937_v27 = vand.u32 2147483647, %v4658_v59 }
 0x235   :  { %1447 = vst [vmem:[%s5412_s3 + $0x18] sm:$0xff] %v1415_v8  ;;  %v1172_v58 = vadd.f32 %v2862_v51, %v1171_v25  ;;  %v939_v22 = vand.u32 2147483648, %v4658_v59  ;;  %v931_v14 = vmul.f32 %v2864_v54, %v930_v0  ;;  %vm934_vm9 = vweird.f32 %v2864_v54 }
 0x236   :  { %v2866_v45 = vpop.eup %2865  ;;  %2869 = vrcp.f32 %v4720_v32  ;;  %vm933_vm11 = vweird.f32 %v4658_v59  ;;  %v1192_v23 = vand.u32 2147483647, %v4665_v18  ;;  %vm938_vm6 = vcmp.eq.f32.partialorder %v937_v27, 8.507059e+37 }
 0x237   :  { %v1176_v20 = vsel %vm1175_vm5, %v2862_v51, %v1172_v58  ;;  %2246 = vperm.xlu0 %2588, %v2916_v42   ;;  %v1184_v63 = vmul.f32 %v2866_v45, %v4665_v18  ;;  %v932_v5 = vadd.f32 %v2864_v54, %v931_v14  ;;  %vm935_vm12 = vmor %vm933_vm11, %vm934_vm9  ;;  %v940_v50 = vor.u32 1.1754944e-38, %v939_v22 }
 0x238   :  { %v1181_v33 = vsel %vm1178_vm7, %v1180_v30, %v1176_v20  ;;  %2871 = vrcp.f32 %v4727_v38  ;;  %vm1189_vm13 = vweird.f32 %v2866_v45  ;;  %vm1188_vm14 = vweird.f32 %v4665_v18  ;;  %v4760_v30 = vpop.xlane.xlu1 %842 }
 0x239   :  { %v4736_v51 = vmul.f32 %v4296_v7, %v1181_v33  ;;  %v4739_v31 = vmul.f32 %v4300_v13, %v1181_v33  ;;  %v1185_v39 = vsub.f32 1.0, %v1184_v63  ;;  %v2868_v56 = vpop.eup %2867  ;;  %v936_v8 = vsel %vm935_vm12, %v2864_v54, %v932_v5  ;;  %vm1190_vm3 = vmor %vm1188_vm14, %vm1189_vm13 }
 0x23a   :  { %v1194_v7 = vand.u32 2147483648, %v4665_v18  ;;  %v941_v13 = vsel %vm938_vm6, %v940_v50, %v936_v8  ;;  %v944_v53 = vmul.f32 %v2868_v56, %v4704_v41  ;;  %vm4754_vm1 = vcmp.eq.f32.partialorder %v1192_v23, 8.507059e+37  ;;  %v4773_v23 = vpop.xlane.xlu0 %794 }
 0x23b   :  { %v1432_v59 = vpack.c.bf16 %v4739_v31, %v4736_v51  ;;  %v1186_v47 = vmul.f32 %v2866_v45, %v1185_v39  ;;  %v1356_v3 = vmul.f32 %v4292_v4, %v941_v13  ;;  %v1357_v25 = vmul.f32 %v4303_v62, %v941_v13 }
 0x23c   :  { %v2870_v26 = vpop.eup %2869  ;;  %v945_v58 = vsub.f32 1.0, %v944_v53  ;;  %vm948_vm2 = vweird.f32 %v4704_v41  ;;  %v1195_v22 = vor.u32 1.1754944e-38, %v1194_v7  ;;  %v952_v4 = vand.u32 2147483647, %v4704_v41 }
 0x23d   :  { %1464 = vst [vmem:[%s5412_s3 + $0xa0] sm:$0xff] %v1432_v59  ;;  %v1187_v49 = vadd.f32 %v2866_v45, %v1186_v47  ;;  %v959_v0 = vmul.f32 %v2870_v26, %v4720_v32  ;;  %v1416_v27 = vpack.c.bf16 %v1357_v25, %v1356_v3  ;;  %v954_v62 = vand.u32 2147483648, %v4704_v41 }
 0x23e   :  { %v946_v20 = vmul.f32 %v2868_v56, %v945_v58  ;;  %vm949_vm10 = vweird.f32 %v2868_v56  ;;  %v4764_v42 = vpop.eup %2871  ;;  %vm964_vm4 = vweird.f32 %v2870_v26  ;;  %v967_v63 = vand.u32 2147483647, %v4720_v32 }
 0x23f   :  { %v1191_v18 = vsel %vm1190_vm3, %v2866_v45, %v1187_v49  ;;  %v960_v14 = vsub.f32 1.0, %v959_v0  ;;  %1448 = vst [vmem:[%s5412_s3 + $0x20] sm:$0xff] %v1416_v27  ;;  %v969_v5 = vand.u32 2147483648, %v4720_v32  ;;  %vm950_vm8 = vmor %vm948_vm2, %vm949_vm10  ;;  %vm953_vm5 = vcmp.eq.f32.partialorder %v952_v4, 8.507059e+37 }
 0x240   :  { %v1196_v33 = vsel %vm4754_vm1, %v1195_v22, %v1191_v18  ;;  %v947_v39 = vadd.f32 %v2868_v56, %v946_v20  ;;  %v955_v8 = vor.u32 1.1754944e-38, %v954_v62  ;;  %v1199_v7 = vmul.f32 %v4764_v42, %v4727_v38  ;;  %v5833_v22 = vld [vmem:[#allocation46_spill] sm:$0xff] }
 0x241   :  { %v4776_v45 = vmul.f32 %v4310_v10, %v1196_v33  ;;  %v4779_v50 = vmul.f32 %v4315_v19, %v1196_v33  ;;  %v961_v59 = vmul.f32 %v2870_v26, %v960_v14  ;;  %2873 = vrcp.f32 %v4760_v30  ;;  %v4789_v19 = vpop.xlane.xlu2 %845 }
 0x242   :  { %v951_v10 = vsel %vm950_vm8, %v2868_v56, %v947_v39  ;;  %vm963_vm7 = vweird.f32 %v4720_v32  ;;  %vm968_vm11 = vcmp.eq.f32.partialorder %v967_v63, 8.507059e+37  ;;  %v970_v41 = vor.u32 1.1754944e-38, %v969_v5  ;;  %v5832_v32 = vld [vmem:[#allocation93_spill] sm:$0xff]  ;;  %v5834_v63 = vld [vmem:[#allocation100_spill] sm:$0xff]  ;;  %v5835_v39 = vld [vmem:[#allocation98_spill] sm:$0xff] }
 0x243   :  { %5830 = vst [vmem:[#allocation19_spill] sm:$0xff] %v4776_v45  ;;  %v1433_v13 = vpack.c.bf16 %v4779_v50, %v4776_v45  ;;  %v962_v47 = vadd.f32 %v2870_v26, %v961_v59  ;;  %v956_v53 = vsel %vm953_vm5, %v955_v8, %v951_v10  ;;  %vm965_vm9 = vmor %vm963_vm7, %vm964_vm4  ;;  %v1200_v54 = vsub.f32 1.0, %v1199_v7 }
 0x244   :  { %5831 = vst [vmem:[#allocation21_spill] sm:$0xff] %v4779_v50  ;;  %v1358_v49 = vmul.f32 %v4319_v17, %v956_v53  ;;  %v1359_v58 = vmul.f32 %v4323_v52, %v956_v53  ;;  %2875 = vrcp.f32 %v4773_v23  ;;  %v4800_v0 = vmul.f32 %v5832_v32, %v4505_v46 }
 0x245   :  { %1465 = vst [vmem:[%s5412_s3 + $0xa8] sm:$0xff] %v1433_v13  ;;  %v966_v56 = vsel %vm965_vm9, %v2870_v26, %v962_v47  ;;  %v4804_v27 = vmul.f32 %v5832_v32, %v4508_v16  ;;  %v2257_v4 = vmul.f32 %v5833_v22, %v1356_v3  ;;  %v2258_v18 = vmul.f32 %v5833_v22, %v1357_v25  ;;  %v4810_v26 = vpop.xlane.xlu1 %797  ;;  %v4821_v25 = vpop.xlane.xlu0 %848  ;;  %v5838_v13 = vld [vmem:[#allocation99_spill] sm:$0xff] }
 0x246   :  { %v971_v62 = vsel %vm968_vm11, %v970_v41, %v966_v56  ;;  %v1417_v20 = vpack.c.bf16 %v1359_v58, %v1358_v49  ;;  %v1201_v52 = vmul.f32 %v4764_v42, %v1200_v54  ;;  %v4816_v46 = vmul.f32 %v4030_v43, %v4606_v29  ;;  %v5841_v54 = vld [vmem:[#allocation67_spill] sm:$0xff] }
 0x247   :  { %v1360_v17 = vmul.f32 %v4338_v60, %v971_v62  ;;  %v4812_v14 = vpop.eup %2873  ;;  %v1361_v16 = vmul.f32 %v4344_v48, %v971_v62  ;;  %v1207_v3 = vand.u32 2147483647, %v4727_v38  ;;  %v1209_v33 = vand.u32 2147483648, %v4727_v38 }
 0x248   :  { %v4825_v60 = vmul.f32 %v4030_v43, %v4609_v28  ;;  %v4829_v5 = vmul.f32 %v5834_v63, %v4642_v35  ;;  %v4833_v29 = vmul.f32 %v5834_v63, %v4645_v40  ;;  %1449 = vst [vmem:[%s5412_s3 + $0x28] sm:$0xff] %v1417_v20  ;;  %v1214_v48 = vmul.f32 %v4812_v14, %v4760_v30 }
 0x249   :  { %v4842_v59 = vmul.f32 %v5835_v39, %v4675_v12  ;;  %v4846_v43 = vmul.f32 %v5835_v39, %v4678_v34  ;;  %v1418_v28 = vpack.c.bf16 %v1361_v16, %v1360_v17  ;;  %vm1203_vm12 = vweird.f32 %v4727_v38  ;;  %v4865_v41 = vpop.xlane.xlu2 %800 }
 0x24a   :  { %v2876_v35 = vpop.eup %2875  ;;  %v2316_v40 = vadd.f32 %v4716_v11, %v2257_v4  ;;  %v2353_v8 = vadd.f32 %v4718_v1, %v2258_v18  ;;  %v1202_v7 = vadd.f32 %v4764_v42, %v1201_v52  ;;  %vm1204_vm6 = vweird.f32 %v4764_v42 }
 0x24b   :  { %5836 = vst [vmem:[#allocation22_spill] sm:$0xff] %v4842_v59  ;;  %v2259_v10 = vmul.f32 %v5838_v13, %v1358_v49  ;;  %vm4857_vm13 = vcmp.eq.f32.partialorder %v1207_v3, 8.507059e+37  ;;  %v1210_v34 = vor.u32 1.1754944e-38, %v1209_v33  ;;  %v974_v47 = vmul.f32 %v2876_v35, %v4773_v23  ;;  %vm4870_vm14 = vmor %vm1203_vm12, %vm1204_vm6 }
 0x24c   :  { %5837 = vst [vmem:[#allocation20_spill] sm:$0xff] %v4846_v43  ;;  %v2260_v11 = vmul.f32 %v5838_v13, %v1359_v58  ;;  %v1215_v1 = vsub.f32 1.0, %v1214_v48  ;;  %v1224_v53 = vand.u32 2147483648, %v4760_v30  ;;  %2877 = vrcp.f32 %v4810_v26  ;;  %v5865_v43 = vld [vmem:[#allocation89_spill] sm:$0xff] }
 0x24d   :  { %1450 = vst [vmem:[%s5412_s3 + $0x30] sm:$0xff] %v1418_v28  ;;  %v2261_v49 = vmul.f32 %v5841_v54, %v1360_v17  ;;  %v975_v22 = vsub.f32 1.0, %v974_v47  ;;  %v982_v58 = vand.u32 2147483647, %v4773_v23  ;;  %v2262_v4 = vmul.f32 %v5841_v54, %v1361_v16  ;;  %v4882_v38 = vpop.xlane.xlu1 %851  ;;  %v4897_v48 = vpop.xlane.xlu0 %803 }
 0x24e   :  { %v1206_v62 = vsel %vm4870_vm14, %v4764_v42, %v1202_v7  ;;  %v984_v18 = vand.u32 2147483648, %v4773_v23  ;;  %2879 = vrcp.f32 %v4789_v19  ;;  %v2317_v20 = vadd.f32 %v2316_v40, %v2259_v10 }
 0x24f   :  { %vm1218_vm1 = vweird.f32 %v4760_v30  ;;  %v976_v17 = vmul.f32 %v2876_v35, %v975_v22  ;;  %vm979_vm2 = vweird.f32 %v2876_v35  ;;  %2881 = vrcp.f32 %v4865_v41 }
 0x250   :  { %v2354_v52 = vadd.f32 %v2353_v8, %v2260_v11  ;;  %v1216_v16 = vmul.f32 %v4812_v14, %v1215_v1  ;;  %v4887_v3 = vor.u32 1.1754944e-38, %v1224_v53  ;;  %vm978_vm3 = vweird.f32 %v4773_v23 }
 0x251   :  { %v4890_v42 = vadd.f32 %v2317_v20, %v2261_v49  ;;  %v4894_v33 = vsel %vm4857_vm13, %v1210_v34, %v1206_v62  ;;  %vm1219_vm10 = vweird.f32 %v4812_v14  ;;  %v977_v63 = vadd.f32 %v2876_v35, %v976_v17  ;;  %vm980_vm4 = vmor %vm978_vm3, %vm979_vm2  ;;  %v4919_v22 = vpop.xlane.xlu2 %854 }
 0x252   :  { %v2878_v39 = vpop.eup %2877  ;;  %v4899_v28 = vadd.f32 %v2354_v52, %v2262_v4  ;;  %vm983_vm8 = vcmp.eq.f32.partialorder %v982_v58, 8.507059e+37  ;;  %v985_v40 = vor.u32 1.1754944e-38, %v984_v18  ;;  %vm993_vm5 = vweird.f32 %v4810_v26  ;;  %vm4929_vm11 = vmor %vm1218_vm1, %vm1219_vm10 }
 0x253   :  { %v981_v23 = vsel %vm980_vm4, %v2876_v35, %v977_v63  ;;  %v989_v8 = vmul.f32 %v2878_v39, %v4810_v26  ;;  %v997_v7 = vand.u32 2147483647, %v4810_v26  ;;  %2883 = vrcp.f32 %v4821_v25 }
 0x254   :  { %v4905_v13 = vpop.eup %2879  ;;  %v4908_v10 = vadd.f32 %v4812_v14, %v1216_v16  ;;  %v986_v12 = vsel %vm983_vm8, %v985_v40, %v981_v23  ;;  %v999_v34 = vand.u32 2147483648, %v4810_v26  ;;  %2885 = vrcp.f32 %v4897_v48 }
 0x255   :  { %v2882_v47 = vpop.eup %2881  ;;  %v1362_v11 = vmul.f32 %v4352_v9, %v986_v12  ;;  %v1363_v35 = vmul.f32 %v4359_v36, %v986_v12  ;;  %v990_v1 = vsub.f32 1.0, %v989_v8  ;;  %v1012_v53 = vand.u32 2147483647, %v4865_v41  ;;  %v4936_v52 = vpop.xlane.xlu1 %806 }
 0x256   :  { %v1004_v54 = vmul.f32 %v2882_v47, %v4865_v41  ;;  %v1014_v49 = vand.u32 2147483648, %v4865_v41  ;;  %v1254_v56 = vand.u32 2147483648, %v4821_v25  ;;  %2887 = vrcp.f32 %v4882_v38 }
 0x257   :  { %v1419_v58 = vpack.c.bf16 %v1363_v35, %v1362_v11  ;;  %v991_v4 = vmul.f32 %v2878_v39, %v990_v1  ;;  %vm994_vm7 = vweird.f32 %v2878_v39  ;;  %vm4921_vm9 = vcmp.eq.f32.partialorder %v997_v7, 8.507059e+37 }
 0x258   :  { %v1000_v62 = vor.u32 1.1754944e-38, %v999_v34  ;;  %v1229_v18 = vmul.f32 %v4905_v13, %v4789_v19  ;;  %v1005_v17 = vsub.f32 1.0, %v1004_v54  ;;  %vm1008_vm12 = vweird.f32 %v4865_v41  ;;  %vm995_vm13 = vmor %vm993_vm5, %vm994_vm7 }
 0x259   :  { %v4938_v16 = vpop.eup %2883  ;;  %1451 = vst [vmem:[%s5412_s3 + $0x38] sm:$0xff] %v1419_v58  ;;  %v992_v40 = vadd.f32 %v2878_v39, %v991_v4  ;;  %vm4948_vm6 = vcmp.eq.f32.partialorder %v1012_v53, 8.507059e+37  ;;  %vm1009_vm14 = vweird.f32 %v2882_v47  ;;  %v1015_v12 = vor.u32 1.1754944e-38, %v1014_v49  ;;  %v5850_v4 = vld [vmem:[#allocation58_spill] sm:$0xff] }
 0x25a   :  { %v2886_v8 = vpop.eup %2885  ;;  %v1006_v7 = vmul.f32 %v2882_v47, %v1005_v17  ;;  %v4955_v34 = vor.u32 1.1754944e-38, %v1254_v56  ;;  %v1269_v54 = vand.u32 2147483648, %v4882_v38  ;;  %vm1023_vm1 = vweird.f32 %v4897_v48  ;;  %v5851_v56 = vld [vmem:[#allocation57_spill] sm:$0xff]  ;;  %vm1010_vm2 = vmor %vm1008_vm12, %vm1009_vm14 }
 0x25b   :  { %v996_v1 = vsel %vm995_vm13, %v2878_v39, %v992_v40  ;;  %v1019_v58 = vmul.f32 %v2886_v8, %v4897_v48  ;;  %v2263_v61 = vmul.f32 %v5850_v4, %v1362_v11  ;;  %v1230_v44 = vsub.f32 1.0, %v1229_v18  ;;  %v4979_v18 = vpop.xlane.xlu0 %857 }
 0x25c   :  { %v4960_v53 = vpop.eup %2887  ;;  %v1001_v26 = vsel %vm4921_vm9, %v1000_v62, %v996_v1  ;;  %v1007_v17 = vadd.f32 %v2882_v47, %v1006_v7  ;;  %v1244_v39 = vmul.f32 %v4938_v16, %v4821_v25  ;;  %v2264_v63 = vmul.f32 %v5850_v4, %v1363_v35  ;;  %v5852_v1 = vld [vmem:[#allocation60_spill] sm:$0xff] }
 0x25d   :  { %v1364_v49 = vmul.f32 %v4372_v24, %v1001_v26  ;;  %v1365_v20 = vmul.f32 %v5851_v56, %v1001_v26  ;;  %v1020_v40 = vsub.f32 1.0, %v1019_v58  ;;  %v1027_v11 = vand.u32 2147483647, %v4897_v48  ;;  %v4983_v58 = vpop.xlane.xlu2 %809  ;;  %v4985_v4 = vpop.xlane.xlu1 %860 }
 0x25e   :  { %v1011_v32 = vsel %vm1010_vm2, %v2882_v47, %v1007_v17  ;;  %2889 = vrcp.f32 %v4936_v52  ;;  %v1259_v62 = vmul.f32 %v4960_v53, %v4882_v38  ;;  %v1029_v41 = vand.u32 2147483648, %v4897_v48 }
 0x25f   :  { %v1420_v9 = vpack.c.bf16 %v1365_v20, %v1364_v49  ;;  %v1016_v24 = vsel %vm4948_vm6, %v1015_v12, %v1011_v32  ;;  %v1021_v47 = vmul.f32 %v2886_v8, %v1020_v40  ;;  %vm1024_vm3 = vweird.f32 %v2886_v8 }
 0x260   :  { %v1366_v7 = vmul.f32 %v4388_v6, %v1016_v24  ;;  %v1367_v35 = vmul.f32 %v5852_v1, %v1016_v24  ;;  %v2319_v23 = vadd.f32 %v4890_v42, %v2263_v61  ;;  %v4992_v32 = vmul.f32 %v4905_v13, %v1230_v44  ;;  %vm1025_vm4 = vmor %vm1023_vm1, %vm1024_vm3  ;;  %v5853_v44 = vld [vmem:[#allocation103_spill] sm:$0xff] }
 0x261   :  { %1452 = vst [vmem:[%s5412_s3 + $0x40] sm:$0xff] %v1420_v9  ;;  %v1245_v12 = vsub.f32 1.0, %v1244_v39  ;;  %v4994_v26 = vor.u32 1.1754944e-38, %v1269_v54  ;;  %v2356_v6 = vadd.f32 %v4899_v28, %v2264_v63  ;;  %v1022_v56 = vadd.f32 %v2886_v8, %v1021_v47 }
 0x262   :  { %v1421_v17 = vpack.c.bf16 %v1367_v35, %v1366_v7  ;;  %vm1028_vm10 = vcmp.eq.f32.partialorder %v1027_v11, 8.507059e+37  ;;  %v1260_v40 = vsub.f32 1.0, %v1259_v62  ;;  %v1030_v61 = vor.u32 1.1754944e-38, %v1029_v41  ;;  %v5854_v62 = vld [vmem:[#allocation78_spill] sm:$0xff] }
 0x263   :  { %v1042_v42 = vand.u32 2147483647, %v4936_v52  ;;  %2891 = vrcp.f32 %v4983_v58  ;;  %v2265_v24 = vmul.f32 %v5853_v44, %v1364_v49  ;;  %v2266_v54 = vmul.f32 %v5853_v44, %v1365_v20 }
 0x264   :  { %v2890_v9 = vpop.eup %2889  ;;  %1453 = vst [vmem:[%s5412_s3 + $0x48] sm:$0xff] %v1421_v17  ;;  %v1026_v28 = vsel %vm1025_vm4, %v2886_v8, %v1022_v56  ;;  %2893 = vrcp.f32 %v4919_v22  ;;  %v5008_v48 = vmul.f32 %v4938_v16, %v1245_v12  ;;  %v1044_v11 = vand.u32 2147483648, %v4936_v52 }
 0x265   :  { %v1031_v63 = vsel %vm1028_vm10, %v1030_v61, %v1026_v28  ;;  %v1034_v39 = vmul.f32 %v2890_v9, %v4936_v52  ;;  %v2267_v41 = vmul.f32 %v5854_v62, %v1366_v7  ;;  %v2268_v49 = vmul.f32 %v5854_v62, %v1367_v35  ;;  %v5857_v62 = vld [vmem:[#allocation72_spill] sm:$0xff] }
 0x266   :  { %v1368_v20 = vmul.f32 %v4402_v55, %v1031_v63  ;;  %v1369_v1 = vmul.f32 %v4407_v57, %v1031_v63  ;;  %v5017_v8 = vmul.f32 %v4960_v53, %v1260_v40  ;;  %vm1038_vm8 = vweird.f32 %v4936_v52  ;;  %v5026_v40 = vpop.xlane.xlu0 %812 }
 0x267   :  { %v1035_v47 = vsub.f32 1.0, %v1034_v39  ;;  %2895 = vrcp.f32 %v4979_v18  ;;  %v2320_v12 = vadd.f32 %v2319_v23, %v2265_v24  ;;  %v2357_v17 = vadd.f32 %v2356_v6, %v2266_v54  ;;  %v5037_v24 = vpop.xlane.xlu2 %863 }
 0x268   :  { %v1422_v56 = vpack.c.bf16 %v1369_v1, %v1368_v20  ;;  %vm5021_vm5 = vcmp.eq.f32.partialorder %v1042_v42, 8.507059e+37  ;;  %vm1039_vm7 = vweird.f32 %v2890_v9  ;;  %v1045_v55 = vor.u32 1.1754944e-38, %v1044_v11  ;;  %v5035_v42 = vpop.xlane.xlu1 %815 }
 0x269   :  { %v2892_v7 = vpop.eup %2891  ;;  %v1036_v35 = vmul.f32 %v2890_v9, %v1035_v47  ;;  %v2321_v28 = vadd.f32 %v2320_v12, %v2267_v41  ;;  %v2358_v63 = vadd.f32 %v2357_v17, %v2268_v49  ;;  %v1057_v6 = vand.u32 2147483647, %v4983_v58  ;;  %vm1040_vm9 = vmor %vm1038_vm8, %vm1039_vm7 }
 0x26a   :  { %v5028_v44 = vpop.eup %2893  ;;  %1454 = vst [vmem:[%s5412_s3 + $0x50] sm:$0xff] %v1422_v56  ;;  %v1049_v23 = vmul.f32 %v2892_v7, %v4983_v58  ;;  %v1059_v39 = vand.u32 2147483648, %v4983_v58  ;;  %v1299_v11 = vand.u32 2147483648, %v4979_v18  ;;  %2897 = vrcp.f32 %v4985_v4 }
 0x26b   :  { %v1037_v54 = vadd.f32 %v2890_v9, %v1036_v35  ;;  %v2269_v41 = vmul.f32 %v5857_v62, %v1368_v20  ;;  %v2270_v49 = vmul.f32 %v5857_v62, %v1369_v1  ;;  %2899 = vrcp.f32 %v5026_v40 }
 0x26c   :  { %v1050_v47 = vsub.f32 1.0, %v1049_v23  ;;  %v5052_v56 = vmul.f32 %v5028_v44, %v4919_v22  ;;  %vm1054_vm12 = vweird.f32 %v2892_v7  ;;  %2901 = vrcp.f32 %v5035_v42 }
 0x26d   :  { %v5048_v12 = vpop.eup %2895  ;;  %v1041_v17 = vsel %vm1040_vm9, %v2890_v9, %v1037_v54  ;;  %v1074_v35 = vand.u32 2147483648, %v5026_v40  ;;  %vm1053_vm6 = vweird.f32 %v4983_v58  ;;  %v1072_v54 = vand.u32 2147483647, %v5026_v40 }
 0x26e   :  { %v1046_v20 = vsel %vm5021_vm5, %v1045_v55, %v1041_v17  ;;  %v1051_v1 = vmul.f32 %v2892_v7, %v1050_v47  ;;  %v1289_v52 = vmul.f32 %v5048_v12, %v4979_v18  ;;  %vm5064_vm13 = vcmp.eq.f32.partialorder %v1057_v6, 8.507059e+37  ;;  %vm1055_vm14 = vmor %vm1053_vm6, %vm1054_vm12 }
 0x26f   :  { %v1370_v23 = vmul.f32 %v4423_v15, %v1046_v20  ;;  %v1371_v9 = vmul.f32 %v4429_v37, %v1046_v20  ;;  %v1060_v61 = vor.u32 1.1754944e-38, %v1059_v39  ;;  %v5068_v55 = vor.u32 1.1754944e-38, %v1299_v11 }
 0x270   :  { %v1052_v62 = vadd.f32 %v2892_v7, %v1051_v1  ;;  %v5070_v47 = vpop.eup %2897  ;;  %v2322_v17 = vadd.f32 %v2321_v28, %v2269_v41  ;;  %v2359_v2 = vadd.f32 %v2358_v63, %v2270_v49  ;;  %vm1248_vm1 = vweird.f32 %v4821_v25  ;;  %v5860_v28 = vld [vmem:[#allocation2_spill] sm:$0xff] }
 0x271   :  { %v1423_v21 = vpack.c.bf16 %v1371_v9, %v1370_v23  ;;  %v2900_v37 = vpop.eup %2899  ;;  %v1290_v6 = vsub.f32 1.0, %v1289_v52  ;;  %vm1068_vm2 = vweird.f32 %v5026_v40  ;;  %v1075_v20 = vor.u32 1.1754944e-38, %v1074_v35  ;;  %v5863_v52 = vld [vmem:[#allocation80_spill] sm:$0xff] }
 0x272   :  { %v1056_v58 = vsel %vm1055_vm14, %v2892_v7, %v1052_v62  ;;  %v2902_v39 = vpop.eup %2901  ;;  %v2271_v63 = vmul.f32 %v5860_v28, %v1370_v23  ;;  %v1064_v41 = vmul.f32 %v2900_v37, %v5026_v40  ;;  %vm5083_vm3 = vcmp.eq.f32.partialorder %v1072_v54, 8.507059e+37  ;;  %v5096_v23 = vpop.xlane.xlu2 %818 }
 0x273   :  { %1455 = vst [vmem:[%s5412_s3 + $0x58] sm:$0xff] %v1423_v21  ;;  %v1061_v11 = vsel %vm5064_vm13, %v1060_v61, %v1056_v58  ;;  %vm1083_vm10 = vweird.f32 %v5035_v42  ;;  %v1087_v7 = vand.u32 2147483647, %v5035_v42  ;;  %v2272_v1 = vmul.f32 %v5860_v28, %v1371_v9  ;;  %v5864_v21 = vld [vmem:[#allocation83_spill] sm:$0xff] }
 0x274   :  { %v1372_v35 = vmul.f32 %v5863_v52, %v1061_v11  ;;  %v1373_v62 = vmul.f32 %v5864_v21, %v1061_v11  ;;  %v5094_v57 = vmul.f32 %v5070_v47, %v4985_v4  ;;  %v1065_v54 = vsub.f32 1.0, %v1064_v41 }
 0x275   :  { %v1079_v61 = vmul.f32 %v2902_v39, %v5035_v42  ;;  %v1089_v58 = vand.u32 2147483648, %v5035_v42  ;;  %2903 = vrcp.f32 %v5037_v24  ;;  %v5103_v28 = vmul.f32 %v5048_v12, %v1290_v6 }
 0x276   :  { %v1424_v15 = vpack.c.bf16 %v1373_v62, %v1372_v35  ;;  %v2273_v9 = vmul.f32 %v5865_v43, %v1372_v35  ;;  %vm1069_vm4 = vweird.f32 %v2900_v37  ;;  %v2274_v11 = vmul.f32 %v5865_v43, %v1373_v62 }
 0x277   :  { %v1066_v52 = vmul.f32 %v2900_v37, %v1065_v54  ;;  %v1080_v21 = vsub.f32 1.0, %v1079_v61  ;;  %2905 = vrcp.f32 %v5096_v23  ;;  %v2323_v41 = vadd.f32 %v2322_v17, %v2271_v63  ;;  %vm1070_vm7 = vmor %vm1068_vm2, %vm1069_vm4 }
 0x278   :  { %v2360_v59 = vadd.f32 %v2359_v2, %v2272_v1  ;;  %1456 = vst [vmem:[%s5412_s3 + $0x60] sm:$0xff] %v1424_v15  ;;  %v1305_v50 = vsub.f32 1.0, %v5094_v57  ;;  %vm5111_vm8 = vcmp.eq.f32.partialorder %v1087_v7, 8.507059e+37  ;;  %vm1084_vm5 = vweird.f32 %v2902_v39  ;;  %v5896_v57 = vld [vmem:[#allocation47_spill] sm:$0xff] }
 0x279   :  { %v1067_v6 = vadd.f32 %v2900_v37, %v1066_v52  ;;  %v1081_v45 = vmul.f32 %v2902_v39, %v1080_v21  ;;  %v1090_v43 = vor.u32 1.1754944e-38, %v1089_v58  ;;  %v2324_v62 = vadd.f32 %v2323_v41, %v2273_v9  ;;  %vm1085_vm2 = vmor %vm1083_vm10, %vm1084_vm5  ;;  %v5872_v58 = vld [vmem:[#allocation9_spill] sm:$0xff] }
 0x27a   :  { %v1247_v2 = vadd.f32 %v4938_v16, %v5008_v48  ;;  %vm1249_vm9 = vweird.f32 %v4938_v16  ;;  %v1252_v17 = vand.u32 2147483647, %v4821_v25  ;;  %vm1263_vm12 = vweird.f32 %v4882_v38  ;;  %v5873_v21 = vld [vmem:[#allocation97_spill] sm:$0xff] }
 0x27b   :  { %v5122_v15 = vpop.eup %2903  ;;  %v2361_v63 = vadd.f32 %v2360_v59, %v2274_v11  ;;  %v1071_v7 = vsel %vm1070_vm7, %v2900_v37, %v1067_v6  ;;  %v1082_v1 = vadd.f32 %v2902_v39, %v1081_v45  ;;  %v1102_v54 = vand.u32 2147483647, %v5096_v23  ;;  %vm1250_vm6 = vmor %vm1248_vm1, %vm1249_vm9  ;;  %v5874_v6 = vld [vmem:[#allocation86_spill] sm:$0xff] }
 0x27c   :  { %v5868_v40 = vand.u32 2147483647, %v4760_v30  ;;  %vm1293_vm14 = vweird.f32 %v4979_v18  ;;  %v1076_v61 = vsel %vm5083_vm3, %v1075_v20, %v1071_v7  ;;  %v1104_v45 = vand.u32 2147483648, %v5096_v23  ;;  %v5871_v30 = vld [vmem:[#allocation7_spill] sm:$0xff] }
 0x27d   :  { %v1251_v25 = vsel %vm1250_vm6, %v4938_v16, %v1247_v2  ;;  %vm1253_vm1 = vcmp.eq.f32.partialorder %v1252_v17, 8.507059e+37  ;;  %v2906_v59 = vpop.eup %2905  ;;  %v1374_v37 = vmul.f32 %v5871_v30, %v1076_v61  ;;  %v1375_v9 = vmul.f32 %v5872_v58, %v1076_v61 }
 0x27e   :  { %vm5130_vm13 = vcmp.eq.f32.partialorder %v5868_v40, 8.507059e+37  ;;  %v1086_v11 = vsel %vm1085_vm2, %v2902_v39, %v1082_v1  ;;  %v1256_v52 = vsel %vm1253_vm1, %v4955_v34, %v1251_v25  ;;  %v5149_v42 = vmul.f32 %v5122_v15, %v5037_v24  ;;  %v5875_v39 = vld [vmem:[#allocation11_spill] sm:$0xff]  ;;  %v5876_v34 = vld [vmem:[#allocation13_spill] sm:$0xff] }
 0x27f   :  { %v1091_v20 = vsel %vm5111_vm8, %v1090_v43, %v1086_v11  ;;  %v1094_v49 = vmul.f32 %v2906_v59, %v5096_v23  ;;  %v5153_v16 = vmul.f32 %v5873_v21, %v1256_v52  ;;  %v1425_v41 = vpack.c.bf16 %v1375_v9, %v1374_v37  ;;  %v5877_v43 = vld [vmem:[#allocation62_spill] sm:$0xff]  ;;  %v5892_v21 = vld [vmem:[#allocation79_spill] sm:$0xff] }
 0x280   :  { %v2275_v2 = vmul.f32 %v5874_v6, %v1374_v37  ;;  %v2276_v17 = vmul.f32 %v5874_v6, %v1375_v9  ;;  %v1376_v7 = vmul.f32 %v5875_v39, %v1091_v20  ;;  %v1377_v1 = vmul.f32 %v5876_v34, %v1091_v20  ;;  %v5880_v20 = vld [vmem:[#allocation59_spill] sm:$0xff]  ;;  %v5208_v6 = vpop.permute.xlu0 %2216  ;;  %v5885_v39 = vld [vmem:[#allocation64_spill] sm:$0xff] }
 0x281   :  { %v1095_v35 = vsub.f32 1.0, %v1094_v49  ;;  %vm1099_vm3 = vweird.f32 %v2906_v59  ;;  %v5160_v40 = vmul.f32 %v5877_v43, %v1256_v52  ;;  %1457 = vst [vmem:[%s5412_s3 + $0x68] sm:$0xff] %v1425_v41  ;;  %vm1098_vm10 = vweird.f32 %v5096_v23 }
 0x282   :  { %vm5166_vm4 = vcmp.eq.f32.partialorder %v1102_v54, 8.507059e+37  ;;  %v1105_v25 = vor.u32 1.1754944e-38, %v1104_v45  ;;  %v1262_v30 = vadd.f32 %v4960_v53, %v5017_v8  ;;  %v2325_v37 = vadd.f32 %v2324_v62, %v2275_v2  ;;  %vm5175_vm8 = vmor %vm1098_vm10, %vm1099_vm3 }
 0x283   :  { %v1426_v58 = vpack.c.bf16 %v1377_v1, %v1376_v7  ;;  %v1096_v9 = vmul.f32 %v2906_v59, %v1095_v35  ;;  %v1437_v11 = vpack.c.bf16 %v5160_v40, %v5153_v16  ;;  %v2362_v52 = vadd.f32 %v2361_v63, %v2276_v17  ;;  %v5884_v17 = vld [vmem:[#allocation48_spill] sm:$0xff] }
 0x284   :  { %v2277_v49 = vmul.f32 %v5880_v20, %v1376_v7  ;;  %vm1264_vm5 = vweird.f32 %v4960_v53  ;;  %v1267_v23 = vand.u32 2147483647, %v4882_v38  ;;  %v2278_v8 = vmul.f32 %v5880_v20, %v1377_v1  ;;  %v5888_v7 = vld [vmem:[#allocation12_spill] sm:$0xff]  ;;  %v5889_v1 = vld [vmem:[#allocation49_spill] sm:$0xff] }
 0x285   :  { %1458 = vst [vmem:[%s5412_s3 + $0x70] sm:$0xff] %v1426_v58  ;;  %v1097_v62 = vadd.f32 %v2906_v59, %v1096_v9  ;;  %vm1265_vm7 = vmor %vm1263_vm12, %vm1264_vm5  ;;  %v1292_v63 = vadd.f32 %v5048_v12, %v5103_v28  ;;  %vm1294_vm9 = vweird.f32 %v5048_v12  ;;  %vm1233_vm6 = vweird.f32 %v4789_v19  ;;  %v5891_v9 = vld [vmem:[#allocation95_spill] sm:$0xff] }
 0x286   :  { %1469 = vst [vmem:[%s5412_s3 + $0xc8] sm:$0xff] %v1437_v11  ;;  %v1266_v54 = vsel %vm1265_vm7, %v4960_v53, %v1262_v30  ;;  %vm1268_vm2 = vcmp.eq.f32.partialorder %v1267_v23, 8.507059e+37  ;;  %vm1295_vm1 = vmor %vm1293_vm14, %vm1294_vm9  ;;  %v1297_v38 = vand.u32 2147483647, %v4979_v18  ;;  %v5883_v28 = vsel %vm4929_vm11, %v4812_v14, %v4908_v10  ;;  %v5886_v10 = vld [vmem:[#allocation68_spill] sm:$0xff] }
 0x287   :  { %v1226_v45 = vsel %vm5130_vm13, %v4887_v3, %v5883_v28  ;;  %v1101_v41 = vsel %vm5175_vm8, %v2906_v59, %v1097_v62  ;;  %v1271_v53 = vsel %vm1268_vm2, %v4994_v26, %v1266_v54  ;;  %v1296_v2 = vsel %vm1295_vm1, %v5048_v12, %v1292_v63  ;;  %v5887_v3 = vld [vmem:[#allocation14_spill] sm:$0xff] }
 0x288   :  { %v1394_v18 = vmul.f32 %v5884_v17, %v1226_v45  ;;  %v1106_v36 = vsel %vm5166_vm4, %v1105_v25, %v1101_v41  ;;  %v5216_v14 = vmul.f32 %v5885_v39, %v1271_v53  ;;  %v5219_v48 = vmul.f32 %v5886_v10, %v1271_v53  ;;  %v5890_v25 = vld [vmem:[#allocation77_spill] sm:$0xff]  ;;  %v5897_v17 = vld [vmem:[#allocation4_spill] sm:$0xff]  ;;  %v5283_v10 = vpop.permute.xlu0 %2231 }
 0x289   :  { %vm1298_vm11 = vcmp.eq.f32.partialorder %v1297_v38, 8.507059e+37  ;;  %v1378_v59 = vmul.f32 %v5887_v3, %v1106_v36  ;;  %v1379_v34 = vmul.f32 %v5888_v7, %v1106_v36  ;;  %v5225_v12 = vmul.f32 %v5889_v1, %v1226_v45  ;;  %v5899_v7 = vld [vmem:[#allocation5_spill] sm:$0xff] }
 0x28a   :  { %v1301_v26 = vsel %vm1298_vm11, %v5068_v55, %v1296_v2  ;;  %v2326_v35 = vadd.f32 %v2325_v37, %v2277_v49  ;;  %v2363_v43 = vadd.f32 %v2362_v52, %v2278_v8  ;;  %v1438_v61 = vpack.c.bf16 %v5219_v48, %v5216_v14 }
 0x28b   :  { %v5230_v30 = vmul.f32 %v5890_v25, %v1301_v26  ;;  %v1427_v58 = vpack.c.bf16 %v1379_v34, %v1378_v59  ;;  %v2279_v11 = vmul.f32 %v5891_v9, %v1378_v59  ;;  %v2280_v20 = vmul.f32 %v5891_v9, %v1379_v34 }
 0x28c   :  { %v5235_v23 = vmul.f32 %v5892_v21, %v1301_v26  ;;  %v5893_v55 = vand.u32 2147483648, %v4789_v19  ;;  %v5894_v37 = vand.u32 2147483648, %v4919_v22  ;;  %v1320_v49 = vsub.f32 1.0, %v5149_v42  ;;  %1470 = vst [vmem:[%s5412_s3 + $0xd0] sm:$0xff] %v1438_v61 }
 0x28d   :  { %v1435_v8 = vpack.c.bf16 %v5225_v12, %v1394_v18  ;;  %vm1308_vm12 = vweird.f32 %v4985_v4  ;;  %1459 = vst [vmem:[%s5412_s3 + $0x78] sm:$0xff] %v1427_v58  ;;  %v2327_v63 = vadd.f32 %v2326_v35, %v2279_v11  ;;  %v2364_v54 = vadd.f32 %v2363_v43, %v2280_v20  ;;  %v5901_v35 = vld [vmem:[#allocation56_spill] sm:$0xff]  ;;  %v5904_v11 = vld [vmem:[#allocation21_spill] sm:$0xff] }
 0x28e   :  { %v1240_v62 = vor.u32 1.1754944e-38, %v5893_v55  ;;  %v5241_v52 = vor.u32 1.1754944e-38, %v5894_v37  ;;  %v1440_v38 = vpack.c.bf16 %v5235_v23, %v5230_v30  ;;  %v5895_v28 = vsub.f32 1.0, %v5052_v56  ;;  %v2212_v55 = vpop.permute.xlu1 %2211 }
 0x28f   :  { %v1306_v45 = vmul.f32 %v5070_v47, %v1305_v50  ;;  %1467 = vst [vmem:[%s5412_s3 + $0xb8] sm:$0xff] %v1435_v8  ;;  %v1232_v41 = vadd.f32 %v4905_v13, %v4992_v32  ;;  %vm1234_vm13 = vweird.f32 %v4905_v13  ;;  %vm1278_vm14 = vweird.f32 %v4919_v22 }
 0x290   :  { %v1276_v42 = vmul.f32 %v5028_v44, %v5895_v28  ;;  %v2328_v53 = vadd.f32 %v2327_v63, %v4800_v0  ;;  %v2365_v56 = vadd.f32 %v2364_v54, %v4804_v27  ;;  %1472 = vst [vmem:[%s5412_s3 + $0xe0] sm:$0xff] %v1440_v38  ;;  %vm1235_vm3 = vmor %vm1233_vm6, %vm1234_vm13  ;;  %v1237_v50 = vand.u32 2147483647, %v4789_v19  ;;  %v5898_v27 = vld [vmem:[#allocation45_spill] sm:$0xff] }
 0x291   :  { %v1392_v32 = vmul.f32 %v5896_v57, %v4894_v33  ;;  %v1321_v2 = vmul.f32 %v5122_v15, %v1320_v49  ;;  %v2289_v36 = vmul.f32 %v5897_v17, %v4736_v51  ;;  %v1236_v0 = vsel %vm1235_vm3, %v4905_v13, %v1232_v41  ;;  %v5900_v13 = vld [vmem:[#allocation52_spill] sm:$0xff] }
 0x292   :  { %v1393_v39 = vmul.f32 %v5898_v27, %v4894_v33  ;;  %v2290_v3 = vmul.f32 %v5897_v17, %v4739_v31  ;;  %vm1238_vm10 = vcmp.eq.f32.partialorder %v1237_v50, 8.507059e+37  ;;  %v2329_v19 = vadd.f32 %v2328_v53, %v4816_v46  ;;  %v5902_v46 = vld [vmem:[#allocation19_spill] sm:$0xff]  ;;  %v5907_v49 = vld [vmem:[#allocation20_spill] sm:$0xff]  ;;  %v5911_v50 = vld [vmem:[#allocation6_spill] sm:$0xff] }
 0x293   :  { %v2366_v59 = vadd.f32 %v2365_v56, %v4825_v60  ;;  %v2295_v34 = vmul.f32 %v5899_v7, %v1394_v18  ;;  %v1241_v26 = vsel %vm1238_vm10, %v1240_v62, %v1236_v0  ;;  %v1307_v51 = vadd.f32 %v5070_v47, %v1306_v45  ;;  %v5903_v60 = vld [vmem:[#allocation104_spill] sm:$0xff]  ;;  %v5906_v62 = vld [vmem:[#allocation102_spill] sm:$0xff]  ;;  %v5910_v53 = vld [vmem:[#allocation87_spill] sm:$0xff] }
 0x294   :  { %v1434_v1 = vpack.c.bf16 %v1393_v39, %v1392_v32  ;;  %vm1323_vm4 = vweird.f32 %v5037_v24  ;;  %v1396_v33 = vmul.f32 %v5900_v13, %v1241_v26  ;;  %v1397_v43 = vmul.f32 %v5901_v35, %v1241_v26  ;;  %v5916_v35 = vld [vmem:[#allocation16_spill] sm:$0xff] }
 0x295   :  { %v2330_v61 = vadd.f32 %v2329_v19, %v4829_v5  ;;  %v2367_v31 = vadd.f32 %v2366_v59, %v4833_v29  ;;  %v2291_v18 = vmul.f32 %v5903_v60, %v5902_v46  ;;  %vm1309_vm8 = vweird.f32 %v5070_v47  ;;  %v5905_v5 = vld [vmem:[#allocation22_spill] sm:$0xff]  ;;  %v2222_v59 = vpop.permute.xlu2 %2221 }
 0x296   :  { %1466 = vst [vmem:[%s5412_s3 + $0xb0] sm:$0xff] %v1434_v1  ;;  %v1312_v25 = vand.u32 2147483647, %v4985_v4  ;;  %v1314_v58 = vand.u32 2147483648, %v4985_v4  ;;  %v1436_v9 = vpack.c.bf16 %v1397_v43, %v1396_v33  ;;  %v2292_v20 = vmul.f32 %v5903_v60, %v5904_v11  ;;  %vm1310_vm5 = vmor %vm1308_vm12, %vm1309_vm8  ;;  %v5914_v1 = vld [vmem:[#allocation69_spill] sm:$0xff] }
 0x297   :  { %v2331_v21 = vadd.f32 %v2330_v61, %v5905_v5  ;;  %v1277_v29 = vadd.f32 %v5028_v44, %v1276_v42  ;;  %v2293_v37 = vmul.f32 %v5906_v62, %v1392_v32  ;;  %v2368_v8 = vadd.f32 %v2367_v31, %v5907_v49 }
 0x298   :  { %v1311_v63 = vsel %vm1310_vm5, %v5070_v47, %v1307_v51  ;;  %v1315_v54 = vor.u32 1.1754944e-38, %v1314_v58  ;;  %1468 = vst [vmem:[%s5412_s3 + $0xc0] sm:$0xff] %v1436_v9  ;;  %vm1313_vm7 = vcmp.eq.f32.partialorder %v1312_v25, 8.507059e+37  ;;  %vm1279_vm9 = vweird.f32 %v5028_v44 }
 0x299   :  { %v2332_v38 = vadd.f32 %v2331_v21, %v2289_v36  ;;  %v1282_v4 = vand.u32 2147483647, %v4919_v22  ;;  %v2369_v28 = vadd.f32 %v2368_v8, %v2290_v3  ;;  %vm5320_vm6 = vmor %vm1278_vm14, %vm1279_vm9  ;;  %v1322_v47 = vadd.f32 %v5122_v15, %v1321_v2  ;;  %v5335_v22 = vpop.xlane.xlu0 %866 }
 0x29a   :  { %v1316_v42 = vsel %vm1313_vm7, %v1315_v54, %v1311_v63  ;;  %vm1324_vm2 = vweird.f32 %v5122_v15  ;;  %v1281_v32 = vsel %vm5320_vm6, %v5028_v44, %v1277_v29  ;;  %v2296_v17 = vmul.f32 %v5899_v7, %v5225_v12  ;;  %v5919_v29 = vld [vmem:[#allocation10_spill] sm:$0xff] }
 0x29b   :  { %v2333_v41 = vadd.f32 %v2332_v38, %v2291_v18  ;;  %v5327_v56 = vmul.f32 %v5910_v53, %v1316_v42  ;;  %v5330_v57 = vmul.f32 %v5911_v50, %v1316_v42  ;;  %v2294_v2 = vmul.f32 %v5906_v62, %v1393_v39  ;;  %vm5348_vm11 = vmor %vm1323_vm4, %vm1324_vm2 }
 0x29c   :  { %v2297_v36 = vmul.f32 %v2212_v55, %v1396_v33  ;;  %v2370_v0 = vadd.f32 %v2369_v28, %v2292_v20  ;;  %vm1283_vm1 = vcmp.eq.f32.partialorder %v1282_v4, 8.507059e+37  ;;  %v1327_v19 = vand.u32 2147483647, %v5037_v24 }
 0x29d   :  { %v2334_v27 = vadd.f32 %v2333_v41, %v2293_v37  ;;  %v1441_v3 = vpack.c.bf16 %v5330_v57, %v5327_v56  ;;  %v1286_v44 = vsel %vm1283_vm1, %v5241_v52, %v1281_v32  ;;  %v1329_v39 = vand.u32 2147483648, %v5037_v24  ;;  %v5915_v52 = vld [vmem:[#allocation70_spill] sm:$0xff] }
 0x29e   :  { %v2371_v26 = vadd.f32 %v2370_v0, %v2294_v2  ;;  %2907 = vrcp.f32 %v5335_v22  ;;  %v1402_v51 = vmul.f32 %v5914_v1, %v1286_v44  ;;  %v1403_v13 = vmul.f32 %v5915_v52, %v1286_v44 }
 0x29f   :  { %v2335_v7 = vadd.f32 %v2334_v27, %v2295_v34  ;;  %1473 = vst [vmem:[%s5412_s3 + $0xe8] sm:$0xff] %v1441_v3  ;;  %v1326_v33 = vsel %vm5348_vm11, %v5122_v15, %v1322_v47  ;;  %v5917_v61 = vrot.slane %v5916_v35, 1  ;;  %v2298_v24 = vmul.f32 %v2212_v55, %v1397_v43  ;;  %v2227_v15 = vpop.permute.xlu1 %2226  ;;  %v5918_v43 = vld [vmem:[#allocation88_spill] sm:$0xff]  ;;  %v5920_v55 = vld [vmem:[#allocation18_spill] sm:$0xff]  ;;  %v2237_v47 = vpop.permute.xlu2 %2236 }
 0x2a0   :  { %v2372_v46 = vadd.f32 %v2371_v26, %v2296_v17  ;;  %v1330_v60 = vor.u32 1.1754944e-38, %v1329_v39  ;;  %v2299_v34 = vmul.f32 %v5208_v6, %v5153_v16  ;;  %v1439_v25 = vpack.c.bf16 %v1403_v13, %v1402_v51 }
 0x2a1   :  { %v2045_v31 = vadd.f32 %v5917_v61, %v5916_v35  ;;  %v2336_v18 = vadd.f32 %v2335_v7, %v2297_v36  ;;  %vm1328_vm12 = vcmp.eq.f32.partialorder %v1327_v19, 8.507059e+37  ;;  %v2300_v58 = vmul.f32 %v5208_v6, %v5160_v40  ;;  %v5923_v7 = vld [vmem:[#allocation15_spill] sm:$0xff] }
 0x2a2   :  { %v2301_v9 = vmul.f32 %v2222_v59, %v5216_v14  ;;  %v2373_v11 = vadd.f32 %v2372_v46, %v2298_v24  ;;  %v1331_v20 = vsel %vm1328_vm12, %v1330_v60, %v1326_v33  ;;  %1471 = vst [vmem:[%s5412_s3 + $0xd8] sm:$0xff] %v1439_v25  ;;  %v5921_v62 = vrot.slane %v5920_v55, 7 }
 0x2a3   :  { %v2337_v5 = vadd.f32 %v2336_v18, %v2299_v34  ;;  %v1408_v21 = vmul.f32 %v5918_v43, %v1331_v20  ;;  %v1409_v16 = vmul.f32 %v5919_v29, %v1331_v20  ;;  %v2302_v40 = vmul.f32 %v2222_v59, %v5219_v48 }
 0x2a4   :  { %v2086_v37 = vsel %vm1809_vm15, %v2045_v31, %v5921_v62  ;;  %v2908_v49 = vpop.eup %2907  ;;  %v2374_v6 = vadd.f32 %v2373_v11, %v2300_v58  ;;  %v2303_v8 = vmul.f32 %v2227_v15, %v1402_v51  ;;  %v2304_v38 = vmul.f32 %v2227_v15, %v1403_v13  ;;  %v5924_v51 = vld [vmem:[#allocation17_spill] sm:$0xff] }
 0x2a5   :  { %2088 = vst.msk [vmem:[%s5413_s5] sm:$0x3] %vm4425_vm0, %v2086_v37  ;;  %v2338_v63 = vadd.f32 %v2337_v5, %v2301_v9  ;;  %v1442_v54 = vpack.c.bf16 %v1409_v16, %v1408_v21  ;;  %v1334_v28 = vmul.f32 %v2908_v49, %v5335_v22  ;;  %v2305_v42 = vmul.f32 %v5283_v10, %v5230_v30 }
 0x2a6   :  { %v2375_v4 = vadd.f32 %v2374_v6, %v2302_v40  ;;  %v2306_v48 = vmul.f32 %v5283_v10, %v5235_v23  ;;  %v1344_v32 = vand.u32 2147483648, %v5335_v22  ;;  %vm1339_vm13 = vweird.f32 %v2908_v49 }
 0x2a7   :  { %v2339_v45 = vadd.f32 %v2338_v63, %v2303_v8  ;;  %1474 = vst [vmem:[%s5412_s3 + $0xf0] sm:$0xff] %v1442_v54  ;;  %v1335_v53 = vsub.f32 1.0, %v1334_v28  ;;  %v1342_v36 = vand.u32 2147483647, %v5335_v22  ;;  %v2307_v30 = vmul.f32 %v2237_v47, %v5327_v56  ;;  %v2242_v27 = vpop.permute.xlu1 %2241 }
 0x2a8   :  { %v2376_v41 = vadd.f32 %v2375_v4, %v2304_v38  ;;  %v2308_v0 = vmul.f32 %v2237_v47, %v5330_v57  ;;  %vm1338_vm14 = vweird.f32 %v5335_v22  ;;  %v1345_v10 = vor.u32 1.1754944e-38, %v1344_v32 }
 0x2a9   :  { %v2340_v50 = vadd.f32 %v2339_v45, %v2305_v42  ;;  %v1336_v2 = vmul.f32 %v2908_v49, %v1335_v53  ;;  %vm1340_vm3 = vmor %vm1338_vm14, %vm1339_vm13  ;;  %vm1343_vm10 = vcmp.eq.f32.partialorder %v1342_v36, 8.507059e+37  ;;  %v2309_v26 = vmul.f32 %v2242_v27, %v1408_v21  ;;  %v2247_v12 = vpop.permute.xlu0 %2246 }
 0x2aa   :  { %v2377_v17 = vadd.f32 %v2376_v41, %v2306_v48  ;;  %v2310_v39 = vmul.f32 %v2242_v27, %v1409_v16 }
 0x2ab   :  { %v1337_v3 = vadd.f32 %v2908_v49, %v1336_v2  ;;  %v2341_v23 = vadd.f32 %v2340_v50, %v2307_v30 }
 0x2ac   :  { %v2378_v19 = vadd.f32 %v2377_v17, %v2308_v0 }
 0x2ad   :  { %v1341_v59 = vsel %vm1340_vm3, %v2908_v49, %v1337_v3  ;;  %v2342_v52 = vadd.f32 %v2341_v23, %v2309_v26 }
 0x2ae   :  { %v1346_v44 = vsel %vm1343_vm10, %v1345_v10, %v1341_v59  ;;  %v2379_v57 = vadd.f32 %v2378_v19, %v2310_v39 }
 0x2af   :  { %v1410_v1 = vmul.f32 %v5923_v7, %v1346_v44  ;;  %v1411_v56 = vmul.f32 %v5924_v51, %v1346_v44 }
 0x2b1   :  { %v1443_v13 = vpack.c.bf16 %v1411_v56, %v1410_v1  ;;  %v2311_v33 = vmul.f32 %v2247_v12, %v1410_v1  ;;  %v2312_v22 = vmul.f32 %v2247_v12, %v1411_v56 }
 0x2b3   :  { %1475 = vst [vmem:[%s5412_s3 + $0xf8] sm:$0xff] %v1443_v13  ;;  %v2343_v35 = vadd.f32 %v2342_v52, %v2311_v33  ;;  %v2380_v61 = vadd.f32 %v2379_v57, %v2312_v22 }
 0x2b5   :  { %v2344_v31 = vrot.slane %v2343_v35, 4  ;;  %v2381_v24 = vrot.slane %v2380_v61, 4 }
 0x2b7   :  { %v2345_v46 = vadd.f32 %v2344_v31, %v2343_v35  ;;  %v2382_v60 = vadd.f32 %v2381_v24, %v2380_v61 }
 0x2b9   :  { %v2346_v34 = vrot.slane %v2345_v46, 2  ;;  %v2383_v18 = vrot.slane %v2382_v60, 2 }
 0x2bb   :  { %v2347_v25 = vadd.f32 %v2346_v34, %v2345_v46  ;;  %v2384_v58 = vadd.f32 %v2383_v18, %v2382_v60 }
 0x2bd   :  { %v2348_v9 = vrot.slane %v2347_v25, 1  ;;  %v2385_v11 = vrot.slane %v2384_v58, 1 }
 0x2bf   :  { %v2386_v15 = vadd.f32 %v2385_v11, %v2384_v58  ;;  %v2349_v20 = vadd.f32 %v2348_v9, %v2347_v25 }
 0x2c1   :  { %v2389_v5 = vrot.slane %v2386_v15, 7 }
 0x2c3   :  { %v2390_v43 = vsel %vm1809_vm15, %v2349_v20, %v2389_v5 }
 0x2c4   :  { %2392 = vst.msk [vmem:[%s5414_s6] sm:$0x3] %vm4425_vm0, %v2390_v43 }

// kernel: walker_visit_losses.5
= control target key start
LH: loop header
LB: loop body
LE: loop exit
PB: predicated region body
PF: predicated region fallthrough
CT: control target
= control target key end

     0   :  { %v2838_v0 = vmov 0.0   ;;  %s4712_s0 = inlined_call_operand.<no memory space> [shape: s32[1], index: 0, kind: input, shape index: {}]   ;;  %s4713_s1 = inlined_call_operand.vmem [shape: bf16[256,256], index: 1, kind: input, shape index: {}]   ;;  %s4714_s2 = inlined_call_operand.vmem [shape: bf16[256,256], index: 2, kind: input, shape index: {}]   ;;  %s4715_s3 = inlined_call_operand.vmem [shape: f32[256,1], index: 3, kind: input, shape index: {}]   ;;  %s4716_s4 = inlined_call_operand.vmem [shape: s32[256,1], index: 4, kind: input, shape index: {}]   ;;  %s4717_s5 = inlined_call_operand.vmem [shape: s32[1,256], index: 5, kind: input, shape index: {}]   ;;  %s4718_s6 = inlined_call_operand.vmem [shape: f32[256,1], index: 6, kind: output, shape index: {}]  }
   0x1   :  { %26 = vst [vmem:[#allocation2 + $0xb0] sm:$0xff] %v2838_v0  ;;  %p2255_p0 = scmp.eq.s32.totalorder %s4712_s0, 0 }
   0x2   :  { %27 = vst [vmem:[#allocation2 + $0x1b0] sm:$0xff] %v2838_v0 }
   0x3   :  { %28 = vst [vmem:[#allocation2 + $0xd8] sm:$0xff] %v2838_v0 }
   0x4   :  { %29 = vst [vmem:[#allocation2 + $0x18] sm:$0xff] %v2838_v0 }
   0x5   :  { %30 = vst [vmem:[#allocation2 + $0x50] sm:$0xff] %v2838_v0 }
   0x6   :  { %31 = vst [vmem:[#allocation2 + $0x168] sm:$0xff] %v2838_v0 }
   0x7   :  { %32 = vst [vmem:[#allocation2 + $0x130] sm:$0xff] %v2838_v0 }
   0x8   :  { %33 = vst [vmem:[#allocation2 + $0x48] sm:$0xff] %v2838_v0 }
   0x9   :  { %34 = vst [vmem:[#allocation2 + $0x180] sm:$0xff] %v2838_v0 }
   0xa   :  { %35 = vst [vmem:[#allocation2 + $0x110] sm:$0xff] %v2838_v0 }
   0xb   :  { %36 = vst [vmem:[#allocation2 + $0x118] sm:$0xff] %v2838_v0 }
   0xc   :  { %37 = vst [vmem:[#allocation2 + $0x98] sm:$0xff] %v2838_v0 }
   0xd   :  { %38 = vst [vmem:[#allocation2 + $0x120] sm:$0xff] %v2838_v0 }
   0xe   :  { %39 = vst [vmem:[#allocation2 + $0x150] sm:$0xff] %v2838_v0 }
   0xf   :  { %40 = vst [vmem:[#allocation2 + $0x108] sm:$0xff] %v2838_v0 }
  0x10   :  { %41 = vst [vmem:[#allocation2 + $0x60] sm:$0xff] %v2838_v0 }
  0x11   :  { %42 = vst [vmem:[#allocation2 + $0xe0] sm:$0xff] %v2838_v0 }
  0x12   :  { %43 = vst [vmem:[#allocation2 + $0x188] sm:$0xff] %v2838_v0 }
  0x13   :  { %44 = vst [vmem:[#allocation2 + $0x138] sm:$0xff] %v2838_v0 }
  0x14   :  { %45 = vst [vmem:[#allocation2 + $0x140] sm:$0xff] %v2838_v0 }
  0x15   :  { %46 = vst [vmem:[#allocation2 + $0x80] sm:$0xff] %v2838_v0 }
  0x16   :  { %47 = vst [vmem:[#allocation2 + $0x1a8] sm:$0xff] %v2838_v0 }
  0x17   :  { %48 = vst [vmem:[#allocation2 + $0x1b8] sm:$0xff] %v2838_v0 }
  0x18   :  { %49 = vst [vmem:[#allocation2 + $0x28] sm:$0xff] %v2838_v0 }
  0x19   :  { %50 = vst [vmem:[#allocation2 + $0x1e8] sm:$0xff] %v2838_v0 }
  0x1a   :  { %51 = vst [vmem:[#allocation2 + $0xf8] sm:$0xff] %v2838_v0 }
  0x1b   :  { %52 = vst [vmem:[#allocation2 + $0x160] sm:$0xff] %v2838_v0 }
  0x1c   :  { %53 = vst [vmem:[#allocation2 + $0x30] sm:$0xff] %v2838_v0 }
  0x1d   :  { %54 = vst [vmem:[#allocation2 + $0x1e0] sm:$0xff] %v2838_v0 }
  0x1e   :  { %55 = vst [vmem:[#allocation2] sm:$0xff] %v2838_v0 }
  0x1f   :  { %56 = vst [vmem:[#allocation2 + $0xf0] sm:$0xff] %v2838_v0 }
  0x20   :  { %57 = vst [vmem:[#allocation2 + $0x8] sm:$0xff] %v2838_v0 }
  0x21   :  { %58 = vst [vmem:[#allocation2 + $0x148] sm:$0xff] %v2838_v0 }
  0x22   :  { %59 = vst [vmem:[#allocation2 + $0x1d0] sm:$0xff] %v2838_v0 }
  0x23   :  { %60 = vst [vmem:[#allocation2 + $0x100] sm:$0xff] %v2838_v0 }
  0x24   :  { %61 = vst [vmem:[#allocation2 + $0xc8] sm:$0xff] %v2838_v0 }
  0x25   :  { %62 = vst [vmem:[#allocation2 + $0x40] sm:$0xff] %v2838_v0 }
  0x26   :  { %63 = vst [vmem:[#allocation2 + $0x1f8] sm:$0xff] %v2838_v0 }
  0x27   :  { %64 = vst [vmem:[#allocation2 + $0x20] sm:$0xff] %v2838_v0 }
  0x28   :  { %65 = vst [vmem:[#allocation2 + $0x128] sm:$0xff] %v2838_v0 }
  0x29   :  { %66 = vst [vmem:[#allocation2 + $0x1a0] sm:$0xff] %v2838_v0 }
  0x2a   :  { %67 = vst [vmem:[#allocation2 + $0x1f0] sm:$0xff] %v2838_v0 }
  0x2b   :  { %68 = vst [vmem:[#allocation2 + $0xe8] sm:$0xff] %v2838_v0 }
  0x2c   :  { %69 = vst [vmem:[#allocation2 + $0x78] sm:$0xff] %v2838_v0 }
  0x2d   :  { %70 = vst [vmem:[#allocation2 + $0x70] sm:$0xff] %v2838_v0 }
  0x2e   :  { %71 = vst [vmem:[#allocation2 + $0x90] sm:$0xff] %v2838_v0 }
  0x2f   :  { %72 = vst [vmem:[#allocation2 + $0x1d8] sm:$0xff] %v2838_v0 }
  0x30   :  { %73 = vst [vmem:[#allocation2 + $0xd0] sm:$0xff] %v2838_v0 }
  0x31   :  { %74 = vst [vmem:[#allocation2 + $0xb8] sm:$0xff] %v2838_v0 }
  0x32   :  { %75 = vst [vmem:[#allocation2 + $0x88] sm:$0xff] %v2838_v0 }
  0x33   :  { %76 = vst [vmem:[#allocation2 + $0xa8] sm:$0xff] %v2838_v0 }
  0x34   :  { %77 = vst [vmem:[#allocation2 + $0x1c8] sm:$0xff] %v2838_v0 }
  0x35   :  { %78 = vst [vmem:[#allocation2 + $0x170] sm:$0xff] %v2838_v0 }
  0x36   :  { %79 = vst [vmem:[#allocation2 + $0x178] sm:$0xff] %v2838_v0 }
  0x37   :  { %80 = vst [vmem:[#allocation2 + $0x68] sm:$0xff] %v2838_v0 }
  0x38   :  { %81 = vst [vmem:[#allocation2 + $0x190] sm:$0xff] %v2838_v0 }
  0x39   :  { %82 = vst [vmem:[#allocation2 + $0x198] sm:$0xff] %v2838_v0 }
  0x3a   :  { %83 = vst [vmem:[#allocation2 + $0x38] sm:$0xff] %v2838_v0 }
  0x3b   :  { %84 = vst [vmem:[#allocation2 + $0xc0] sm:$0xff] %v2838_v0 }
  0x3c   :  { %85 = vst [vmem:[#allocation2 + $0x1c0] sm:$0xff] %v2838_v0  ;;  %95 = sbr.rel (%p2255_p0) target bundleno = 530 (0x212), region = 29 }
  0x3d   :  { %86 = vst [vmem:[#allocation2 + $0x158] sm:$0xff] %v2838_v0 }
  0x3e   :  { %87 = vst [vmem:[#allocation2 + $0x10] sm:$0xff] %v2838_v0 }
  0x3f   :  { %88 = vst [vmem:[#allocation2 + $0x58] sm:$0xff] %v2838_v0 }
  0x40   :  { %89 = vst [vmem:[#allocation2 + $0xa0] sm:$0xff] %v2838_v0 }
  0x41   :  { %v2506_v1 = vld [vmem:[%s4714_s2 + $0x70] sm:$0xf]  ;;  %v2623_v2 = vld [vmem:[%s4714_s2 + $0x74] sm:$0xf0]  ;;  %v2622_v3 = vld [vmem:[%s4714_s2 + $0x74] sm:$0xf] }
  0x42   :  { %v2507_v4 = vor.u32 %v2623_v2, %v2506_v1  ;;  %v2508_v5 = vld [vmem:[%s4714_s2 + $0x78] sm:$0xf0]  ;;  %v2570_v6 = vld [vmem:[%s4714_s2 + $0xf0] sm:$0xf]  ;;  %v2639_v7 = vld [vmem:[%s4714_s2 + $0xf4] sm:$0xf0] }
  0x43   :  { %v2511_v8 = vor.u32 %v2622_v3, %v2508_v5  ;;  %v2571_v9 = vor.u32 %v2639_v7, %v2570_v6  ;;  %v2638_v10 = vld [vmem:[%s4714_s2 + $0xf4] sm:$0xf]  ;;  %v2572_v11 = vld [vmem:[%s4714_s2 + $0xf8] sm:$0xf0]  ;;  %v2498_v13 = vld [vmem:[%s4714_s2 + $0x60] sm:$0xf] }
  0x44   :  { %867 = vmatpush.bf16.xpose.msra.mxu0 %v2507_v4  ;;  %v2575_v12 = vor.u32 %v2638_v10, %v2572_v11  ;;  %v2621_v14 = vld [vmem:[%s4714_s2 + $0x64] sm:$0xf0]  ;;  %v2620_v15 = vld [vmem:[%s4714_s2 + $0x64] sm:$0xf]  ;;  %v2500_v16 = vld [vmem:[%s4714_s2 + $0x68] sm:$0xf0] }
  0x45   :  { %956 = vmatpush.bf16.xpose.msra.mxu1 %v2511_v8  ;;  %1045 = vmatpush.bf16.xpose.msra.mxu2 %v2571_v9  ;;  %v2562_v17 = vld [vmem:[%s4714_s2 + $0xe0] sm:$0xf]  ;;  %v2637_v18 = vld [vmem:[%s4714_s2 + $0xe4] sm:$0xf0]  ;;  %v2636_v19 = vld [vmem:[%s4714_s2 + $0xe4] sm:$0xf]  ;;  %v2499_v21 = vor.u32 %v2621_v14, %v2498_v13  ;;  %v2503_v22 = vor.u32 %v2620_v15, %v2500_v16 }
  0x46   :  { %1134 = vmatpush.bf16.xpose.msra.mxu3 %v2575_v12  ;;  %v2564_v20 = vld [vmem:[%s4714_s2 + $0xe8] sm:$0xf0]  ;;  %v2563_v23 = vor.u32 %v2637_v18, %v2562_v17  ;;  %v2490_v25 = vld [vmem:[%s4714_s2 + $0x50] sm:$0xf]  ;;  %v2619_v26 = vld [vmem:[%s4714_s2 + $0x54] sm:$0xf0] }
  0x47   :  { %v2567_v24 = vor.u32 %v2636_v19, %v2564_v20  ;;  %v2618_v27 = vld [vmem:[%s4714_s2 + $0x54] sm:$0xf]  ;;  %v2492_v28 = vld [vmem:[%s4714_s2 + $0x58] sm:$0xf0]  ;;  %v2554_v29 = vld [vmem:[%s4714_s2 + $0xd0] sm:$0xf]  ;;  %v2491_v33 = vor.u32 %v2619_v26, %v2490_v25 }
  0x48   :  { %v2635_v30 = vld [vmem:[%s4714_s2 + $0xd4] sm:$0xf0]  ;;  %v2634_v31 = vld [vmem:[%s4714_s2 + $0xd4] sm:$0xf]  ;;  %v2556_v32 = vld [vmem:[%s4714_s2 + $0xd8] sm:$0xf0]  ;;  %v2495_v34 = vor.u32 %v2618_v27, %v2492_v28 }
  0x49   :  { %v2555_v35 = vor.u32 %v2635_v30, %v2554_v29  ;;  %v2559_v36 = vor.u32 %v2634_v31, %v2556_v32  ;;  %v2482_v37 = vld [vmem:[%s4714_s2 + $0x40] sm:$0xf]  ;;  %v2617_v38 = vld [vmem:[%s4714_s2 + $0x44] sm:$0xf0]  ;;  %v2616_v39 = vld [vmem:[%s4714_s2 + $0x44] sm:$0xf] }
  0x4a   :  { %v2484_v40 = vld [vmem:[%s4714_s2 + $0x48] sm:$0xf0]  ;;  %v2546_v41 = vld [vmem:[%s4714_s2 + $0xc0] sm:$0xf]  ;;  %v2633_v42 = vld [vmem:[%s4714_s2 + $0xc4] sm:$0xf0]  ;;  %v2483_v45 = vor.u32 %v2617_v38, %v2482_v37 }
  0x4b   :  { %v2632_v43 = vld [vmem:[%s4714_s2 + $0xc4] sm:$0xf]  ;;  %v2548_v44 = vld [vmem:[%s4714_s2 + $0xc8] sm:$0xf0]  ;;  %v2487_v46 = vor.u32 %v2616_v39, %v2484_v40  ;;  %v2547_v47 = vor.u32 %v2633_v42, %v2546_v41  ;;  %v2474_v49 = vld [vmem:[%s4714_s2 + $0x30] sm:$0xf] }
  0x4c   :  { %868 = vmatpush.bf16.xpose.msra.mxu0 %v2499_v21  ;;  %v2551_v48 = vor.u32 %v2632_v43, %v2548_v44  ;;  %v2615_v50 = vld [vmem:[%s4714_s2 + $0x34] sm:$0xf0]  ;;  %v2614_v51 = vld [vmem:[%s4714_s2 + $0x34] sm:$0xf]  ;;  %v2476_v52 = vld [vmem:[%s4714_s2 + $0x38] sm:$0xf0] }
  0x4d   :  { %957 = vmatpush.bf16.xpose.msra.mxu1 %v2503_v22  ;;  %1046 = vmatpush.bf16.xpose.msra.mxu2 %v2563_v23  ;;  %v2538_v53 = vld [vmem:[%s4714_s2 + $0xb0] sm:$0xf]  ;;  %v2631_v54 = vld [vmem:[%s4714_s2 + $0xb4] sm:$0xf0]  ;;  %v2630_v55 = vld [vmem:[%s4714_s2 + $0xb4] sm:$0xf]  ;;  %v2475_v57 = vor.u32 %v2615_v50, %v2474_v49  ;;  %v2479_v58 = vor.u32 %v2614_v51, %v2476_v52 }
  0x4e   :  { %1135 = vmatpush.bf16.xpose.msra.mxu3 %v2567_v24  ;;  %v2540_v56 = vld [vmem:[%s4714_s2 + $0xb8] sm:$0xf0]  ;;  %v2539_v59 = vor.u32 %v2631_v54, %v2538_v53  ;;  %v2466_v61 = vld [vmem:[%s4714_s2 + $0x20] sm:$0xf]  ;;  %v2613_v62 = vld [vmem:[%s4714_s2 + $0x24] sm:$0xf0] }
  0x4f   :  { %v2543_v60 = vor.u32 %v2630_v55, %v2540_v56  ;;  %v2612_v63 = vld [vmem:[%s4714_s2 + $0x24] sm:$0xf]  ;;  %v2468_v0 = vld [vmem:[%s4714_s2 + $0x28] sm:$0xf0]  ;;  %v2530_v1 = vld [vmem:[%s4714_s2 + $0xa0] sm:$0xf]  ;;  %v2467_v5 = vor.u32 %v2613_v62, %v2466_v61 }
  0x50   :  { %v2629_v2 = vld [vmem:[%s4714_s2 + $0xa4] sm:$0xf0]  ;;  %v2628_v3 = vld [vmem:[%s4714_s2 + $0xa4] sm:$0xf]  ;;  %v2532_v4 = vld [vmem:[%s4714_s2 + $0xa8] sm:$0xf0]  ;;  %v2471_v6 = vor.u32 %v2612_v63, %v2468_v0 }
  0x51   :  { %v2531_v7 = vor.u32 %v2629_v2, %v2530_v1  ;;  %v2535_v8 = vor.u32 %v2628_v3, %v2532_v4  ;;  %v2458_v9 = vld [vmem:[%s4714_s2 + $0x10] sm:$0xf]  ;;  %v2611_v10 = vld [vmem:[%s4714_s2 + $0x14] sm:$0xf0]  ;;  %v2610_v11 = vld [vmem:[%s4714_s2 + $0x14] sm:$0xf] }
  0x52   :  { %v2460_v12 = vld [vmem:[%s4714_s2 + $0x18] sm:$0xf0]  ;;  %v2522_v13 = vld [vmem:[%s4714_s2 + $0x90] sm:$0xf]  ;;  %v2627_v14 = vld [vmem:[%s4714_s2 + $0x94] sm:$0xf0]  ;;  %v2459_v17 = vor.u32 %v2611_v10, %v2458_v9 }
  0x53   :  { %v2626_v15 = vld [vmem:[%s4714_s2 + $0x94] sm:$0xf]  ;;  %v2524_v16 = vld [vmem:[%s4714_s2 + $0x98] sm:$0xf0]  ;;  %v2463_v18 = vor.u32 %v2610_v11, %v2460_v12  ;;  %v2523_v19 = vor.u32 %v2627_v14, %v2522_v13  ;;  %v2450_v21 = vld [vmem:[%s4714_s2] sm:$0xf] }
  0x54   :  { %869 = vmatpush.bf16.xpose.msra.mxu0 %v2491_v33  ;;  %v2527_v20 = vor.u32 %v2626_v15, %v2524_v16  ;;  %v2609_v22 = vld [vmem:[%s4714_s2 + $0x4] sm:$0xf0]  ;;  %v2608_v23 = vld [vmem:[%s4714_s2 + $0x4] sm:$0xf]  ;;  %v2452_v25 = vld [vmem:[%s4714_s2 + $0x8] sm:$0xf0] }
  0x55   :  { %958 = vmatpush.bf16.xpose.msra.mxu1 %v2495_v34  ;;  %1047 = vmatpush.bf16.xpose.msra.mxu2 %v2555_v35  ;;  %v160_v24 = vld [vmem:[%s4716_s4] sm:$0xff]  ;;  %v2625_v27 = vld [vmem:[%s4714_s2 + $0x84] sm:$0xf0]  ;;  %v2839_v28 = vmov 0   ;;  %v2516_v30 = vld [vmem:[%s4714_s2 + $0x88] sm:$0xf0]  ;;  %v2451_v31 = vor.u32 %v2609_v22, %v2450_v21  ;;  %v2455_v32 = vor.u32 %v2608_v23, %v2452_v25 }
  0x56   :  { %1136 = vmatpush.bf16.xpose.msra.mxu3 %v2559_v36  ;;  %v2514_v26 = vld [vmem:[%s4714_s2 + $0x80] sm:$0xf]  ;;  %2643 = vset.pattern.permute.xlu0 %v2839_v28  ;;  %v2624_v29 = vld [vmem:[%s4714_s2 + $0x84] sm:$0xf]  ;;  %v2577_v36 = vld [vmem:[%s4713_s1 + $0x4] sm:$0xf0] }
  0x57   :  { %194 = vperm.xlu0 %2643, %v160_v24   ;;  %2644 = vset.pattern.permute.xlu1 %v2839_v28  ;;  %v2515_v33 = vor.u32 %v2625_v27, %v2514_v26  ;;  %v2519_v34 = vor.u32 %v2624_v29, %v2516_v30  ;;  %v2322_v35 = vld [vmem:[%s4713_s1] sm:$0xf]  ;;  %v161_v37 = vld [vmem:[%s4716_s4 + $0x8] sm:$0xff]  ;;  %v2576_v38 = vld [vmem:[%s4713_s1 + $0x4] sm:$0xf] }
  0x58   :  { %2645 = vset.pattern.permute.xlu2 %v2839_v28  ;;  %v2324_v39 = vld [vmem:[%s4713_s1 + $0x8] sm:$0xf0]  ;;  %v2323_v40 = vor.u32 %v2577_v36, %v2322_v35  ;;  %v162_v42 = vld [vmem:[%s4716_s4 + $0x10] sm:$0xff]  ;;  %v163_v43 = vld [vmem:[%s4716_s4 + $0x18] sm:$0xff] }
  0x59   :  { %v2327_v41 = vor.u32 %v2576_v38, %v2324_v39  ;;  %200 = vperm.xlu1 %2644, %v162_v42   ;;  %v2330_v44 = vld [vmem:[%s4713_s1 + $0x10] sm:$0xf]  ;;  %v2338_v50 = vld [vmem:[%s4713_s1 + $0x20] sm:$0xf]  ;;  %v2581_v51 = vld [vmem:[%s4713_s1 + $0x24] sm:$0xf0] }
  0x5a   :  { %v2580_v52 = vld [vmem:[%s4713_s1 + $0x24] sm:$0xf]  ;;  %v2340_v53 = vld [vmem:[%s4713_s1 + $0x28] sm:$0xf0]  ;;  %v2339_v54 = vor.u32 %v2581_v51, %v2338_v50  ;;  %v166_v56 = vld [vmem:[%s4716_s4 + $0x30] sm:$0xff] }
  0x5b   :  { %v2343_v55 = vor.u32 %v2580_v52, %v2340_v53  ;;  %v2582_v61 = vld [vmem:[%s4713_s1 + $0x34] sm:$0xf]  ;;  %v2348_v62 = vld [vmem:[%s4713_s1 + $0x38] sm:$0xf0]  ;;  %v165_v1 = vld [vmem:[%s4716_s4 + $0x28] sm:$0xff] }
  0x5c   :  { %870 = vmatpush.bf16.xpose.msra.mxu0 %v2483_v45  ;;  %v2579_v45 = vld [vmem:[%s4713_s1 + $0x14] sm:$0xf0]  ;;  %v2351_v0 = vor.u32 %v2582_v61, %v2348_v62  ;;  %v169_v2 = vld [vmem:[%s4716_s4 + $0x48] sm:$0xff]  ;;  %v2354_v3 = vld [vmem:[%s4713_s1 + $0x40] sm:$0xf] }
  0x5d   :  { %959 = vmatpush.bf16.xpose.msra.mxu1 %v2487_v46  ;;  %1048 = vmatpush.bf16.xpose.msra.mxu2 %v2547_v47  ;;  %v2578_v46 = vld [vmem:[%s4713_s1 + $0x14] sm:$0xf]  ;;  %v2332_v47 = vld [vmem:[%s4713_s1 + $0x18] sm:$0xf0]  ;;  %v2585_v4 = vld [vmem:[%s4713_s1 + $0x44] sm:$0xf0] }
  0x5e   :  { %1137 = vmatpush.bf16.xpose.msra.mxu3 %v2551_v48  ;;  %v2331_v48 = vor.u32 %v2579_v45, %v2330_v44  ;;  %v2335_v49 = vor.u32 %v2578_v46, %v2332_v47  ;;  %v170_v9 = vld [vmem:[%s4716_s4 + $0x50] sm:$0xff]  ;;  %v2587_v11 = vld [vmem:[%s4713_s1 + $0x54] sm:$0xf0]  ;;  %v2364_v13 = vld [vmem:[%s4713_s1 + $0x58] sm:$0xf0] }
  0x5f   :  { %197 = vperm.xlu0 %2643, %v161_v37   ;;  %v2362_v10 = vld [vmem:[%s4713_s1 + $0x50] sm:$0xf]  ;;  %v2586_v12 = vld [vmem:[%s4713_s1 + $0x54] sm:$0xf]  ;;  %v168_v16 = vld [vmem:[%s4716_s4 + $0x40] sm:$0xff] }
  0x60   :  { %v2363_v14 = vor.u32 %v2587_v11, %v2362_v10  ;;  %v2367_v15 = vor.u32 %v2586_v12, %v2364_v13  ;;  %v2372_v21 = vld [vmem:[%s4713_s1 + $0x68] sm:$0xf0]  ;;  %v171_v25 = vld [vmem:[%s4716_s4 + $0x58] sm:$0xff]  ;;  %v2378_v26 = vld [vmem:[%s4713_s1 + $0x70] sm:$0xf] }
  0x61   :  { %203 = vperm.xlu1 %2644, %v163_v43   ;;  %v173_v24 = vld [vmem:[%s4716_s4 + $0x68] sm:$0xff]  ;;  %v2591_v27 = vld [vmem:[%s4713_s1 + $0x74] sm:$0xf0]  ;;  %v2590_v28 = vld [vmem:[%s4713_s1 + $0x74] sm:$0xf] }
  0x62   :  { %v2380_v29 = vld [vmem:[%s4713_s1 + $0x78] sm:$0xf0]  ;;  %v2379_v30 = vor.u32 %v2591_v27, %v2378_v26  ;;  %v2592_v35 = vld [vmem:[%s4713_s1 + $0x84] sm:$0xf]  ;;  %v2388_v36 = vld [vmem:[%s4713_s1 + $0x88] sm:$0xf0] }
  0x63   :  { %v2391_v39 = vor.u32 %v2592_v35, %v2388_v36  ;;  %v192_v43 = vld [vmem:[%s4717_s5] sm:$0x3]  ;;  %v174_v51 = vld [vmem:[%s4716_s4 + $0x70] sm:$0xff]  ;;  %v179_v52 = vld [vmem:[%s4716_s4 + $0x98] sm:$0xff] }
  0x64   :  { %871 = vmatpush.bf16.xpose.msra.mxu0 %v2475_v57  ;;  %v164_v57 = vld [vmem:[%s4716_s4 + $0x20] sm:$0xff]  ;;  %v3294_v46 = vperm.slane %v192_v43, 0  ;;  %v178_v53 = vld [vmem:[%s4716_s4 + $0x90] sm:$0xff]  ;;  %v185_v36 = vld [vmem:[%s4716_s4 + $0xc8] sm:$0xff] }
  0x65   :  { %960 = vmatpush.bf16.xpose.msra.mxu1 %v2479_v58  ;;  %1049 = vmatpush.bf16.xpose.msra.mxu2 %v2539_v59  ;;  %v167_v58 = vld [vmem:[%s4716_s4 + $0x38] sm:$0xff]  ;;  %v2346_v59 = vld [vmem:[%s4713_s1 + $0x30] sm:$0xf] }
  0x66   :  { %1138 = vmatpush.bf16.xpose.msra.mxu3 %v2543_v60  ;;  %206 = vperm.xlu2 %2645, %v164_v57   ;;  %v2583_v60 = vld [vmem:[%s4713_s1 + $0x34] sm:$0xf0]  ;;  %v182_v13 = vld [vmem:[%s4716_s4 + $0xb0] sm:$0xff] }
  0x67   :  { %212 = vperm.xlu0 %2643, %v166_v56   ;;  %v2347_v63 = vor.u32 %v2583_v60, %v2346_v59  ;;  %v3306_v59 = vperm.slane %v192_v43, 1  ;;  %v2840_v60 = vmov 0.0   ;;  %v484_v26 = vld [vmem:[#allocation2 + $0x1b0] sm:$0xff]  ;;  %v177_v43 = vld [vmem:[%s4716_s4 + $0x88] sm:$0xff] }
  0x69   :  { %215 = vperm.xlu1 %2644, %v167_v58  }
  0x6c   :  { %872 = vmatpush.bf16.xpose.msra.mxu0 %v2467_v5  ;;  %v2584_v5 = vld [vmem:[%s4713_s1 + $0x44] sm:$0xf] }
  0x6d   :  { %961 = vmatpush.bf16.xpose.msra.mxu1 %v2471_v6  ;;  %1050 = vmatpush.bf16.xpose.msra.mxu2 %v2531_v7  ;;  %v2356_v6 = vld [vmem:[%s4713_s1 + $0x48] sm:$0xf0]  ;;  %v2355_v7 = vor.u32 %v2585_v4, %v2354_v3  ;;  %v2594_v3 = vld [vmem:[%s4713_s1 + $0x94] sm:$0xf]  ;;  %v2396_v4 = vld [vmem:[%s4713_s1 + $0x98] sm:$0xf0] }
  0x6e   :  { %1139 = vmatpush.bf16.xpose.msra.mxu3 %v2535_v8  ;;  %209 = vperm.xlu2 %2645, %v165_v1   ;;  %v2359_v8 = vor.u32 %v2584_v5, %v2356_v6  ;;  %v483_v1 = vld [vmem:[#allocation2 + $0xb0] sm:$0xff]  ;;  %v2399_v12 = vor.u32 %v2594_v3, %v2396_v4 }
  0x6f   :  { %221 = vperm.xlu0 %2643, %v169_v2  }
  0x71   :  { %224 = vperm.xlu1 %2644, %v170_v9  }
  0x74   :  { %873 = vmatpush.bf16.xpose.msra.mxu0 %v2459_v17  ;;  %v172_v17 = vld [vmem:[%s4716_s4 + $0x60] sm:$0xff] }
  0x75   :  { %962 = vmatpush.bf16.xpose.msra.mxu1 %v2463_v18  ;;  %1051 = vmatpush.bf16.xpose.msra.mxu2 %v2523_v19  ;;  %v2370_v18 = vld [vmem:[%s4713_s1 + $0x60] sm:$0xf]  ;;  %v2589_v19 = vld [vmem:[%s4713_s1 + $0x64] sm:$0xf0] }
  0x76   :  { %1140 = vmatpush.bf16.xpose.msra.mxu3 %v2527_v20  ;;  %218 = vperm.xlu2 %2645, %v168_v16   ;;  %v2588_v20 = vld [vmem:[%s4713_s1 + $0x64] sm:$0xf]  ;;  %v2371_v22 = vor.u32 %v2589_v19, %v2370_v18 }
  0x77   :  { %230 = vperm.xlu0 %2643, %v172_v17   ;;  %v2375_v23 = vor.u32 %v2588_v20, %v2372_v21 }
  0x79   :  { %233 = vperm.xlu1 %2644, %v173_v24  }
  0x7c   :  { %874 = vmatpush.bf16.xpose.msra.mxu0 %v2451_v31  ;;  %v2383_v31 = vor.u32 %v2590_v28, %v2380_v29  ;;  %v485_v28 = vld [vmem:[#allocation2 + $0xd8] sm:$0xff] }
  0x7d   :  { %963 = vmatpush.bf16.xpose.msra.mxu1 %v2455_v32  ;;  %1052 = vmatpush.bf16.xpose.msra.mxu2 %v2515_v33  ;;  %v175_v32 = vld [vmem:[%s4716_s4 + $0x78] sm:$0xff]  ;;  %v2386_v33 = vld [vmem:[%s4713_s1 + $0x80] sm:$0xf] }
  0x7e   :  { %1141 = vmatpush.bf16.xpose.msra.mxu3 %v2519_v34  ;;  %227 = vperm.xlu2 %2645, %v171_v25   ;;  %v2593_v34 = vld [vmem:[%s4713_s1 + $0x84] sm:$0xf0] }
  0x7f   :  { %239 = vperm.xlu0 %2643, %v175_v32   ;;  %v2387_v37 = vor.u32 %v2593_v34, %v2386_v33 }
  0x83   :  { %875 = vmatmul.bf16.vlgmr.msra.gmra.mxu0 %v2323_v40 }
  0x84   :  { %964 = vmatmul.bf16.vlgmr.msra.gmra.mxu1 %v2327_v41  ;;  %1053 = vmatmul.bf16.vlgmr.msra.gmra.mxu2 %v2323_v40  ;;  %v176_v40 = vld [vmem:[%s4716_s4 + $0x80] sm:$0xff] }
  0x85   :  { %1142 = vmatmul.bf16.vlgmr.msra.gmra.mxu3 %v2327_v41  ;;  %242 = vperm.xlu1 %2644, %v176_v40  }
  0x86   :  { %236 = vperm.xlu2 %2645, %v174_v51   ;;  %v2402_v51 = vld [vmem:[%s4713_s1 + $0xa0] sm:$0xf] }
  0x87   :  { %248 = vperm.xlu0 %2643, %v178_v53  }
  0x8d   :  { %251 = vperm.xlu1 %2644, %v179_v52   ;;  %v2597_v52 = vld [vmem:[%s4713_s1 + $0xa4] sm:$0xf0] }
  0x8e   :  { %245 = vperm.xlu2 %2645, %v177_v43  }
  0x93   :  { %880 = vmatmul.bf16.gmra.mxu0 %v2331_v48 }
  0x94   :  { %969 = vmatmul.bf16.gmra.mxu1 %v2335_v49  ;;  %1058 = vmatmul.bf16.gmra.mxu2 %v2331_v48 }
  0x95   :  { %1147 = vmatmul.bf16.gmra.mxu3 %v2335_v49  ;;  %260 = vperm.xlu1 %2644, %v182_v13  }
  0x9d   :  { %269 = vperm.xlu1 %2644, %v185_v36  }
  0xa3   :  { %885 = vmatmul.bf16.gmra.mxu0 %v2339_v54 }
  0xa4   :  { %974 = vmatmul.bf16.gmra.mxu1 %v2343_v55  ;;  %1063 = vmatmul.bf16.gmra.mxu2 %v2339_v54 }
  0xa5   :  { %1152 = vmatmul.bf16.gmra.mxu3 %v2343_v55 }
  0xb3   :  { %890 = vmatmul.bf16.gmra.mxu0 %v2347_v63 }
  0xb4   :  { %979 = vmatmul.bf16.gmra.mxu1 %v2351_v0  ;;  %1068 = vmatmul.bf16.gmra.mxu2 %v2347_v63  ;;  %v2394_v63 = vld [vmem:[%s4713_s1 + $0x90] sm:$0xf] }
  0xb5   :  { %1157 = vmatmul.bf16.gmra.mxu3 %v2351_v0  ;;  %v2595_v0 = vld [vmem:[%s4713_s1 + $0x94] sm:$0xf0] }
  0xc3   :  { %895 = vmatmul.bf16.gmra.mxu0 %v2355_v7 }
  0xc4   :  { %984 = vmatmul.bf16.gmra.mxu1 %v2359_v8  ;;  %1073 = vmatmul.bf16.gmra.mxu2 %v2355_v7  ;;  %v2395_v7 = vor.u32 %v2595_v0, %v2394_v63  ;;  %v2403_v63 = vor.u32 %v2597_v52, %v2402_v51 }
  0xc5   :  { %1162 = vmatmul.bf16.gmra.mxu3 %v2359_v8 }
  0xc9   :  { %v195_v45 = vpop.permute.xlu0 %194 }
  0xca   :  { %vm291_vm0 = vcmp.eq.s32.totalorder %v195_v45, %v3294_v46  ;;  %vm292_vm1 = vcmp.eq.s32.totalorder %v195_v45, %v3306_v59 }
  0xcb   :  { %v2256_v61 = vsel %vm291_vm0, 1.0, %v2840_v60  ;;  %v2257_v18 = vsel %vm292_vm1, 1.0, %v2840_v60  ;;  %v3331_v24 = vpop.permute.xlu1 %200 }
  0xcc   :  { %vm295_vm4 = vcmp.eq.s32.totalorder %v3331_v24, %v3294_v46  ;;  %vm296_vm5 = vcmp.eq.s32.totalorder %v3331_v24, %v3306_v59 }
  0xd1   :  { %v198_v2 = vpop.permute.xlu0 %197 }
  0xd2   :  { %vm293_vm2 = vcmp.eq.s32.totalorder %v198_v2, %v3294_v46  ;;  %vm294_vm3 = vcmp.eq.s32.totalorder %v198_v2, %v3306_v59 }
  0xd3   :  { %900 = vmatmul.bf16.gmra.mxu0 %v2363_v14 }
  0xd4   :  { %989 = vmatmul.bf16.gmra.mxu1 %v2367_v15  ;;  %1078 = vmatmul.bf16.gmra.mxu2 %v2363_v14  ;;  %v181_v14 = vld [vmem:[%s4716_s4 + $0xa8] sm:$0xff] }
  0xd5   :  { %1167 = vmatmul.bf16.gmra.mxu3 %v2367_v15  ;;  %257 = vperm.xlu0 %2643, %v181_v14  }
  0xe3   :  { %905 = vmatmul.bf16.gmra.mxu0 %v2371_v22 }
  0xe4   :  { %994 = vmatmul.bf16.gmra.mxu1 %v2375_v23  ;;  %1083 = vmatmul.bf16.gmra.mxu2 %v2371_v22 }
  0xe5   :  { %1172 = vmatmul.bf16.gmra.mxu3 %v2375_v23  ;;  %v2258_v23 = vsel %vm293_vm2, 1.0, %v2840_v60 }
  0xf3   :  { %910 = vmatmul.bf16.gmra.mxu0 %v2379_v30 }
  0xf4   :  { %999 = vmatmul.bf16.gmra.mxu1 %v2383_v31  ;;  %1088 = vmatmul.bf16.gmra.mxu2 %v2379_v30 }
  0xf5   :  { %1177 = vmatmul.bf16.gmra.mxu3 %v2383_v31 }
 0x100   :  { %v876_v38 = vpop.f32.mrf.mxu0 }
 0x101   :  { %v877_v41 = vadd.f32 1e-08, %v876_v38  ;;  %v965_v42 = vpop.f32.mrf.mxu1 }
 0x103   :  { %v966_v44 = vadd.f32 %v965_v42, %v877_v41  ;;  %915 = vmatmul.bf16.gmra.mxu0 %v2387_v37  ;;  %v2259_v41 = vsel %vm294_vm3, 1.0, %v2840_v60 }
 0x104   :  { %1004 = vmatmul.bf16.gmra.mxu1 %v2391_v39  ;;  %1093 = vmatmul.bf16.gmra.mxu2 %v2387_v37  ;;  %v184_v37 = vld [vmem:[%s4716_s4 + $0xc0] sm:$0xff] }
 0x105   :  { %2646 = vlog2.f32 %v966_v44  ;;  %1182 = vmatmul.bf16.gmra.mxu3 %v2391_v39  ;;  %266 = vperm.xlu0 %2643, %v184_v37   ;;  %v490_v37 = vld [vmem:[#allocation2 + $0x48] sm:$0xff] }
 0x107   :  { %v1054_v47 = vpop.f32.mrf.mxu2 }
 0x108   :  { %v1055_v48 = vadd.f32 1e-08, %v1054_v47  ;;  %v1143_v49 = vpop.f32.mrf.mxu3  ;;  %v878_v50 = vpop.f32.mrf.mxu0  ;;  %v486_v47 = vld [vmem:[#allocation2 + $0x18] sm:$0xff] }
 0x109   :  { %v879_v54 = vadd.f32 1e-08, %v878_v50  ;;  %v967_v55 = vpop.f32.mrf.mxu1 }
 0x10a   :  { %v1144_v56 = vadd.f32 %v1143_v49, %v1055_v48  ;;  %v2260_v49 = vsel %vm295_vm4, 1.0, %v2840_v60 }
 0x10b   :  { %v2647_v57 = vpop.eup %2646  ;;  %v968_v58 = vadd.f32 %v967_v55, %v879_v54  ;;  %v487_v54 = vld [vmem:[#allocation2 + $0x50] sm:$0xff]  ;;  %v204_v55 = vpop.permute.xlu1 %203 }
 0x10c   :  { %v1224_v62 = vmul.f32 0.6931472, %v2647_v57  ;;  %2648 = vlog2.f32 %v1144_v56  ;;  %v2596_v56 = vld [vmem:[%s4713_s1 + $0xa4] sm:$0xf]  ;;  %v2404_v57 = vld [vmem:[%s4713_s1 + $0xa8] sm:$0xf0]  ;;  %vm297_vm6 = vcmp.eq.s32.totalorder %v204_v55, %v3294_v46  ;;  %vm298_vm7 = vcmp.eq.s32.totalorder %v204_v55, %v3306_v59 }
 0x10d   :  { %2650 = vlog2.f32 %v968_v58  ;;  %v2407_v4 = vor.u32 %v2596_v56, %v2404_v57 }
 0x10e   :  { %v1351_v5 = vmul.f32 %v2256_v61, %v1224_v62 }
 0x10f   :  { %v1056_v6 = vpop.f32.mrf.mxu2 }
 0x110   :  { %v1415_v8 = vadd.f32 %v1351_v5, %v483_v1  ;;  %v1057_v9 = vadd.f32 1e-08, %v1056_v6  ;;  %v1145_v10 = vpop.f32.mrf.mxu3  ;;  %v881_v11 = vpop.f32.mrf.mxu0  ;;  %v188_v5 = vld [vmem:[%s4716_s4 + $0xe0] sm:$0xff]  ;;  %v187_v6 = vld [vmem:[%s4716_s4 + $0xd8] sm:$0xff] }
 0x111   :  { %v882_v15 = vadd.f32 1e-08, %v881_v11  ;;  %v970_v16 = vpop.f32.mrf.mxu1  ;;  %278 = vperm.xlu1 %2644, %v188_v5   ;;  %275 = vperm.xlu0 %2643, %v187_v6  }
 0x112   :  { %v2649_v17 = vpop.eup %2648  ;;  %1479 = vst [vmem:[#allocation2 + $0xb0] sm:$0xff] %v1415_v8  ;;  %v1146_v19 = vadd.f32 %v1145_v10, %v1057_v9  ;;  %v2261_v10 = vsel %vm296_vm5, 1.0, %v2840_v60 }
 0x113   :  { %v2651_v20 = vpop.eup %2650  ;;  %v1226_v21 = vmul.f32 0.6931472, %v2649_v17  ;;  %v971_v22 = vadd.f32 %v970_v16, %v882_v15  ;;  %920 = vmatmul.bf16.gmra.mxu0 %v2395_v7  ;;  %v2262_v15 = vsel %vm297_vm6, 1.0, %v2840_v60  ;;  %v3378_v16 = vpop.permute.xlu2 %206 }
 0x114   :  { %v1228_v25 = vmul.f32 0.6931472, %v2651_v20  ;;  %2652 = vlog2.f32 %v1146_v19  ;;  %1009 = vmatmul.bf16.gmra.mxu1 %v2399_v12  ;;  %1098 = vmatmul.bf16.gmra.mxu2 %v2395_v7  ;;  %v489_v20 = vld [vmem:[#allocation2 + $0x130] sm:$0xff]  ;;  %vm299_vm8 = vcmp.eq.s32.totalorder %v3378_v16, %v3294_v46  ;;  %vm300_vm9 = vcmp.eq.s32.totalorder %v3378_v16, %v3306_v59 }
 0x115   :  { %v1352_v27 = vmul.f32 %v2257_v18, %v1226_v21  ;;  %2654 = vlog2.f32 %v971_v22  ;;  %1187 = vmatmul.bf16.gmra.mxu3 %v2399_v12  ;;  %v488_v18 = vld [vmem:[#allocation2 + $0x168] sm:$0xff] }
 0x116   :  { %v1353_v29 = vmul.f32 %v2258_v23, %v1228_v25 }
 0x117   :  { %v1416_v30 = vadd.f32 %v1352_v27, %v484_v26  ;;  %v1059_v31 = vpop.f32.mrf.mxu2 }
 0x118   :  { %v1417_v32 = vadd.f32 %v1353_v29, %v485_v28  ;;  %v1060_v33 = vadd.f32 1e-08, %v1059_v31  ;;  %v1148_v34 = vpop.f32.mrf.mxu3  ;;  %v883_v35 = vpop.f32.mrf.mxu0  ;;  %v191_v28 = vld [vmem:[%s4716_s4 + $0xf8] sm:$0xff]  ;;  %v190_v29 = vld [vmem:[%s4716_s4 + $0xf0] sm:$0xff] }
 0x119   :  { %1480 = vst [vmem:[#allocation2 + $0x1b0] sm:$0xff] %v1416_v30  ;;  %v884_v38 = vadd.f32 1e-08, %v883_v35  ;;  %v972_v39 = vpop.f32.mrf.mxu1  ;;  %287 = vperm.xlu1 %2644, %v191_v28   ;;  %284 = vperm.xlu0 %2643, %v190_v29  }
 0x11a   :  { %v2653_v40 = vpop.eup %2652  ;;  %1481 = vst [vmem:[#allocation2 + $0xd8] sm:$0xff] %v1417_v32  ;;  %v1149_v42 = vadd.f32 %v1148_v34, %v1060_v33  ;;  %v2263_v33 = vsel %vm298_vm7, 1.0, %v2840_v60 }
 0x11b   :  { %v2655_v44 = vpop.eup %2654  ;;  %v1230_v45 = vmul.f32 0.6931472, %v2653_v40  ;;  %v973_v48 = vadd.f32 %v972_v39, %v884_v38  ;;  %v2264_v39 = vsel %vm299_vm8, 1.0, %v2840_v60 }
 0x11c   :  { %v1232_v50 = vmul.f32 0.6931472, %v2655_v44  ;;  %2656 = vlog2.f32 %v1149_v42  ;;  %v2599_v42 = vld [vmem:[%s4713_s1 + $0xb4] sm:$0xf0]  ;;  %v491_v44 = vld [vmem:[#allocation2 + $0x180] sm:$0xff] }
 0x11d   :  { %v1354_v53 = vmul.f32 %v2259_v41, %v1230_v45  ;;  %2658 = vlog2.f32 %v973_v48  ;;  %v2410_v41 = vld [vmem:[%s4713_s1 + $0xb0] sm:$0xf]  ;;  %v210_v45 = vpop.permute.xlu2 %209  ;;  %v2412_v48 = vld [vmem:[%s4713_s1 + $0xb8] sm:$0xf0] }
 0x11e   :  { %v1355_v58 = vmul.f32 %v2260_v49, %v1232_v50  ;;  %v2411_v52 = vor.u32 %v2599_v42, %v2410_v41  ;;  %vm301_vm10 = vcmp.eq.s32.totalorder %v210_v45, %v3294_v46  ;;  %vm302_vm11 = vcmp.eq.s32.totalorder %v210_v45, %v3306_v59 }
 0x11f   :  { %v1418_v61 = vadd.f32 %v1354_v53, %v486_v47  ;;  %v1061_v62 = vpop.f32.mrf.mxu2  ;;  %v2598_v47 = vld [vmem:[%s4713_s1 + $0xb4] sm:$0xf]  ;;  %v2266_v5 = vsel %vm301_vm10, 1.0, %v2840_v60 }
 0x120   :  { %v1419_v0 = vadd.f32 %v1355_v58, %v487_v54  ;;  %v1062_v1 = vadd.f32 1e-08, %v1061_v62  ;;  %v1150_v2 = vpop.f32.mrf.mxu3  ;;  %v886_v3 = vpop.f32.mrf.mxu0  ;;  %v2415_v57 = vor.u32 %v2598_v47, %v2412_v48  ;;  %v180_v58 = vld [vmem:[%s4716_s4 + $0xa0] sm:$0xff]  ;;  %v186_v47 = vld [vmem:[%s4716_s4 + $0xd0] sm:$0xff] }
 0x121   :  { %1482 = vst [vmem:[#allocation2 + $0x18] sm:$0xff] %v1418_v61  ;;  %v887_v7 = vadd.f32 1e-08, %v886_v3  ;;  %v975_v8 = vpop.f32.mrf.mxu1  ;;  %254 = vperm.xlu2 %2645, %v180_v58   ;;  %v496_v58 = vld [vmem:[#allocation2 + $0x150] sm:$0xff] }
 0x122   :  { %v2657_v9 = vpop.eup %2656  ;;  %1483 = vst [vmem:[#allocation2 + $0x50] sm:$0xff] %v1419_v0  ;;  %v1151_v11 = vadd.f32 %v1150_v2, %v1062_v1  ;;  %v2265_v0 = vsel %vm300_vm9, 1.0, %v2840_v60 }
 0x123   :  { %v2659_v12 = vpop.eup %2658  ;;  %v1234_v13 = vmul.f32 0.6931472, %v2657_v9  ;;  %v976_v14 = vadd.f32 %v975_v8, %v887_v7  ;;  %925 = vmatmul.bf16.gmra.mxu0 %v2403_v63  ;;  %v492_v7 = vld [vmem:[#allocation2 + $0x110] sm:$0xff]  ;;  %v493_v9 = vld [vmem:[#allocation2 + $0x118] sm:$0xff] }
 0x124   :  { %v1236_v17 = vmul.f32 0.6931472, %v2659_v12  ;;  %2660 = vlog2.f32 %v1151_v11  ;;  %1014 = vmatmul.bf16.gmra.mxu1 %v2407_v4  ;;  %1103 = vmatmul.bf16.gmra.mxu2 %v2403_v63 }
 0x125   :  { %v1356_v19 = vmul.f32 %v2261_v10, %v1234_v13  ;;  %2662 = vlog2.f32 %v976_v14  ;;  %1192 = vmatmul.bf16.gmra.mxu3 %v2407_v4  ;;  %v213_v10 = vpop.permute.xlu0 %212 }
 0x126   :  { %v1357_v21 = vmul.f32 %v2262_v15, %v1236_v17  ;;  %vm303_vm12 = vcmp.eq.s32.totalorder %v213_v10, %v3294_v46  ;;  %vm304_vm13 = vcmp.eq.s32.totalorder %v213_v10, %v3306_v59 }
 0x127   :  { %v1420_v22 = vadd.f32 %v1356_v19, %v488_v18  ;;  %v1064_v23 = vpop.f32.mrf.mxu2  ;;  %v183_v18 = vld [vmem:[%s4716_s4 + $0xb8] sm:$0xff]  ;;  %v2268_v28 = vsel %vm303_vm12, 1.0, %v2840_v60 }
 0x128   :  { %v1421_v24 = vadd.f32 %v1357_v21, %v489_v20  ;;  %v1065_v25 = vadd.f32 1e-08, %v1064_v23  ;;  %v1153_v26 = vpop.f32.mrf.mxu3  ;;  %v888_v27 = vpop.f32.mrf.mxu0 }
 0x129   :  { %1484 = vst [vmem:[#allocation2 + $0x168] sm:$0xff] %v1420_v22  ;;  %v889_v30 = vadd.f32 1e-08, %v888_v27  ;;  %v977_v31 = vpop.f32.mrf.mxu1  ;;  %263 = vperm.xlu2 %2645, %v183_v18   ;;  %v2267_v22 = vsel %vm302_vm11, 1.0, %v2840_v60 }
 0x12a   :  { %v2661_v32 = vpop.eup %2660  ;;  %1485 = vst [vmem:[#allocation2 + $0x130] sm:$0xff] %v1421_v24  ;;  %v1154_v34 = vadd.f32 %v1153_v26, %v1065_v25  ;;  %v494_v26 = vld [vmem:[#allocation2 + $0x98] sm:$0xff] }
 0x12b   :  { %v2663_v35 = vpop.eup %2662  ;;  %v1238_v36 = vmul.f32 0.6931472, %v2661_v32  ;;  %v978_v38 = vadd.f32 %v977_v31, %v889_v30  ;;  %v2418_v30 = vld [vmem:[%s4713_s1 + $0xc0] sm:$0xf]  ;;  %v2601_v31 = vld [vmem:[%s4713_s1 + $0xc4] sm:$0xf0] }
 0x12c   :  { %v1240_v40 = vmul.f32 0.6931472, %v2663_v35  ;;  %2664 = vlog2.f32 %v1154_v34  ;;  %v216_v34 = vpop.permute.xlu1 %215  ;;  %v2600_v35 = vld [vmem:[%s4713_s1 + $0xc4] sm:$0xf] }
 0x12d   :  { %v1358_v43 = vmul.f32 %v2263_v33, %v1238_v36  ;;  %2666 = vlog2.f32 %v978_v38  ;;  %v495_v33 = vld [vmem:[#allocation2 + $0x120] sm:$0xff]  ;;  %v2420_v36 = vld [vmem:[%s4713_s1 + $0xc8] sm:$0xf0]  ;;  %vm305_vm14 = vcmp.eq.s32.totalorder %v216_v34, %v3294_v46  ;;  %vm306_vm15 = vcmp.eq.s32.totalorder %v216_v34, %v3306_v59 }
 0x12e   :  { %v1359_v49 = vmul.f32 %v2264_v39, %v1240_v40  ;;  %v2419_v40 = vor.u32 %v2601_v31, %v2418_v30  ;;  %v2423_v45 = vor.u32 %v2600_v35, %v2420_v36 }
 0x12f   :  { %v1422_v50 = vadd.f32 %v1358_v43, %v490_v37  ;;  %v1066_v51 = vpop.f32.mrf.mxu2 }
 0x130   :  { %v1423_v53 = vadd.f32 %v1359_v49, %v491_v44  ;;  %v1067_v54 = vadd.f32 1e-08, %v1066_v51  ;;  %v1155_v55 = vpop.f32.mrf.mxu3  ;;  %v891_v56 = vpop.f32.mrf.mxu0 }
 0x131   :  { %1486 = vst [vmem:[#allocation2 + $0x48] sm:$0xff] %v1422_v50  ;;  %v892_v61 = vadd.f32 1e-08, %v891_v56  ;;  %v980_v62 = vpop.f32.mrf.mxu1  ;;  %272 = vperm.xlu2 %2645, %v186_v47   ;;  %v2270_v56 = vsel %vm305_vm14, 1.0, %v2840_v60 }
 0x132   :  { %v2665_v63 = vpop.eup %2664  ;;  %1487 = vst [vmem:[#allocation2 + $0x180] sm:$0xff] %v1423_v53  ;;  %v1156_v1 = vadd.f32 %v1155_v55, %v1067_v54 }
 0x133   :  { %v2667_v2 = vpop.eup %2666  ;;  %v1242_v3 = vmul.f32 0.6931472, %v2665_v63  ;;  %v981_v4 = vadd.f32 %v980_v62, %v892_v61  ;;  %930 = vmatmul.bf16.gmra.mxu0 %v2411_v52  ;;  %v497_v62 = vld [vmem:[#allocation2 + $0x108] sm:$0xff]  ;;  %v219_v63 = vpop.permute.xlu2 %218 }
 0x134   :  { %v1244_v6 = vmul.f32 0.6931472, %v2667_v2  ;;  %2668 = vlog2.f32 %v1156_v1  ;;  %1019 = vmatmul.bf16.gmra.mxu1 %v2415_v57  ;;  %1108 = vmatmul.bf16.gmra.mxu2 %v2411_v52  ;;  %v2269_v52 = vsel %vm304_vm13, 1.0, %v2840_v60  ;;  %vm307_vm0 = vcmp.eq.s32.totalorder %v219_v63, %v3294_v46 }
 0x135   :  { %v1360_v8 = vmul.f32 %v2265_v0, %v1242_v3  ;;  %2670 = vlog2.f32 %v981_v4  ;;  %1197 = vmatmul.bf16.gmra.mxu3 %v2415_v57  ;;  %vm308_vm1 = vcmp.eq.s32.totalorder %v219_v63, %v3306_v59 }
 0x136   :  { %v1361_v11 = vmul.f32 %v2266_v5, %v1244_v6 }
 0x137   :  { %v1424_v12 = vadd.f32 %v1360_v8, %v492_v7  ;;  %v1069_v13 = vpop.f32.mrf.mxu2  ;;  %v189_v7 = vld [vmem:[%s4716_s4 + $0xe8] sm:$0xff] }
 0x138   :  { %v1425_v14 = vadd.f32 %v1361_v11, %v493_v9  ;;  %v1070_v15 = vadd.f32 1e-08, %v1069_v13  ;;  %v1158_v16 = vpop.f32.mrf.mxu3  ;;  %v893_v17 = vpop.f32.mrf.mxu0  ;;  %v2271_v11 = vsel %vm306_vm15, 1.0, %v2840_v60 }
 0x139   :  { %1488 = vst [vmem:[#allocation2 + $0x110] sm:$0xff] %v1424_v12  ;;  %v894_v19 = vadd.f32 1e-08, %v893_v17  ;;  %v982_v20 = vpop.f32.mrf.mxu1  ;;  %281 = vperm.xlu2 %2645, %v189_v7   ;;  %v2272_v17 = vsel %vm307_vm0, 1.0, %v2840_v60  ;;  %v2605_v7 = vld [vmem:[%s4713_s1 + $0xe4] sm:$0xf0] }
 0x13a   :  { %v2669_v21 = vpop.eup %2668  ;;  %1489 = vst [vmem:[#allocation2 + $0x118] sm:$0xff] %v1425_v14  ;;  %v1159_v23 = vadd.f32 %v1158_v16, %v1070_v15  ;;  %v498_v15 = vld [vmem:[#allocation2 + $0x60] sm:$0xff] }
 0x13b   :  { %v2671_v24 = vpop.eup %2670  ;;  %v1246_v25 = vmul.f32 0.6931472, %v2669_v21  ;;  %v983_v27 = vadd.f32 %v982_v20, %v894_v19  ;;  %v2426_v19 = vld [vmem:[%s4713_s1 + $0xd0] sm:$0xf]  ;;  %v2603_v20 = vld [vmem:[%s4713_s1 + $0xd4] sm:$0xf0] }
 0x13c   :  { %v1248_v29 = vmul.f32 0.6931472, %v2671_v24  ;;  %2672 = vlog2.f32 %v1159_v23  ;;  %v222_v23 = vpop.permute.xlu0 %221  ;;  %v2602_v24 = vld [vmem:[%s4713_s1 + $0xd4] sm:$0xf] }
 0x13d   :  { %v1362_v32 = vmul.f32 %v2267_v22, %v1246_v25  ;;  %2674 = vlog2.f32 %v983_v27  ;;  %v499_v22 = vld [vmem:[#allocation2 + $0xe0] sm:$0xff]  ;;  %v2428_v25 = vld [vmem:[%s4713_s1 + $0xd8] sm:$0xf0]  ;;  %vm309_vm2 = vcmp.eq.s32.totalorder %v222_v23, %v3294_v46  ;;  %vm310_vm3 = vcmp.eq.s32.totalorder %v222_v23, %v3306_v59 }
 0x13e   :  { %v1363_v37 = vmul.f32 %v2268_v28, %v1248_v29  ;;  %v2427_v29 = vor.u32 %v2603_v20, %v2426_v19  ;;  %v2431_v34 = vor.u32 %v2602_v24, %v2428_v25 }
 0x13f   :  { %v1426_v38 = vadd.f32 %v1362_v32, %v494_v26  ;;  %v1071_v39 = vpop.f32.mrf.mxu2 }
 0x140   :  { %v1072_v41 = vadd.f32 1e-08, %v1071_v39  ;;  %v1160_v42 = vpop.f32.mrf.mxu3  ;;  %v896_v43 = vpop.f32.mrf.mxu0  ;;  %v1427_v44 = vadd.f32 %v1363_v37, %v495_v33  ;;  %v2273_v39 = vsel %vm308_vm1, 1.0, %v2840_v60 }
 0x141   :  { %1490 = vst [vmem:[#allocation2 + $0x98] sm:$0xff] %v1426_v38  ;;  %v897_v48 = vadd.f32 1e-08, %v896_v43  ;;  %v985_v49 = vpop.f32.mrf.mxu1  ;;  %v2274_v43 = vsel %vm309_vm2, 1.0, %v2840_v60 }
 0x142   :  { %v2673_v50 = vpop.eup %2672  ;;  %v1161_v51 = vadd.f32 %v1160_v42, %v1072_v41  ;;  %1491 = vst [vmem:[#allocation2 + $0x120] sm:$0xff] %v1427_v44 }
 0x143   :  { %v2675_v53 = vpop.eup %2674  ;;  %v1250_v54 = vmul.f32 0.6931472, %v2673_v50  ;;  %v986_v55 = vadd.f32 %v985_v49, %v897_v48  ;;  %935 = vmatmul.bf16.gmra.mxu0 %v2419_v40  ;;  %v501_v48 = vld [vmem:[#allocation2 + $0x138] sm:$0xff]  ;;  %v225_v49 = vpop.permute.xlu1 %224 }
 0x144   :  { %v1252_v57 = vmul.f32 0.6931472, %v2675_v53  ;;  %2676 = vlog2.f32 %v1161_v51  ;;  %1024 = vmatmul.bf16.gmra.mxu1 %v2423_v45  ;;  %1113 = vmatmul.bf16.gmra.mxu2 %v2419_v40  ;;  %vm311_vm4 = vcmp.eq.s32.totalorder %v225_v49, %v3294_v46  ;;  %vm312_vm5 = vcmp.eq.s32.totalorder %v225_v49, %v3306_v59 }
 0x145   :  { %2678 = vlog2.f32 %v986_v55  ;;  %v1364_v61 = vmul.f32 %v2269_v52, %v1250_v54  ;;  %1202 = vmatmul.bf16.gmra.mxu3 %v2423_v45  ;;  %v500_v45 = vld [vmem:[#allocation2 + $0x188] sm:$0xff] }
 0x146   :  { %v1365_v0 = vmul.f32 %v2270_v56, %v1252_v57 }
 0x147   :  { %v1428_v1 = vadd.f32 %v1364_v61, %v496_v58  ;;  %v1074_v2 = vpop.f32.mrf.mxu2 }
 0x148   :  { %v1429_v3 = vadd.f32 %v1365_v0, %v497_v62  ;;  %v1075_v4 = vadd.f32 1e-08, %v1074_v2  ;;  %v1163_v5 = vpop.f32.mrf.mxu3  ;;  %v898_v6 = vpop.f32.mrf.mxu0  ;;  %v2275_v62 = vsel %vm310_vm3, 1.0, %v2840_v60  ;;  %v502_v2 = vld [vmem:[#allocation2 + $0x140] sm:$0xff] }
 0x149   :  { %1492 = vst [vmem:[#allocation2 + $0x150] sm:$0xff] %v1428_v1  ;;  %v899_v8 = vadd.f32 1e-08, %v898_v6  ;;  %v987_v9 = vpop.f32.mrf.mxu1  ;;  %v2434_v6 = vld [vmem:[%s4713_s1 + $0xe0] sm:$0xf] }
 0x14a   :  { %v2677_v10 = vpop.eup %2676  ;;  %1493 = vst [vmem:[#allocation2 + $0x108] sm:$0xff] %v1429_v3  ;;  %v1164_v12 = vadd.f32 %v1163_v5, %v1075_v4  ;;  %v2276_v4 = vsel %vm311_vm4, 1.0, %v2840_v60 }
 0x14b   :  { %v2679_v13 = vpop.eup %2678  ;;  %v1254_v14 = vmul.f32 0.6931472, %v2677_v10  ;;  %v988_v16 = vadd.f32 %v987_v9, %v899_v8  ;;  %v503_v9 = vld [vmem:[#allocation2 + $0x80] sm:$0xff]  ;;  %v228_v10 = vpop.permute.xlu2 %227 }
 0x14c   :  { %v1256_v18 = vmul.f32 0.6931472, %v2679_v13  ;;  %2680 = vlog2.f32 %v1164_v12  ;;  %v2436_v12 = vld [vmem:[%s4713_s1 + $0xe8] sm:$0xf0]  ;;  %vm313_vm6 = vcmp.eq.s32.totalorder %v228_v10, %v3294_v46  ;;  %vm314_vm7 = vcmp.eq.s32.totalorder %v228_v10, %v3306_v59 }
 0x14d   :  { %v1366_v21 = vmul.f32 %v2271_v11, %v1254_v14  ;;  %2682 = vlog2.f32 %v988_v16  ;;  %v2604_v11 = vld [vmem:[%s4713_s1 + $0xe4] sm:$0xf]  ;;  %v2435_v16 = vor.u32 %v2605_v7, %v2434_v6 }
 0x14e   :  { %v1367_v26 = vmul.f32 %v2272_v17, %v1256_v18 }
 0x14f   :  { %v1430_v27 = vadd.f32 %v1366_v21, %v498_v15  ;;  %v1076_v28 = vpop.f32.mrf.mxu2  ;;  %v2439_v21 = vor.u32 %v2604_v11, %v2436_v12 }
 0x150   :  { %v1077_v30 = vadd.f32 1e-08, %v1076_v28  ;;  %v1165_v31 = vpop.f32.mrf.mxu3  ;;  %v901_v32 = vpop.f32.mrf.mxu0  ;;  %v1431_v33 = vadd.f32 %v1367_v26, %v499_v22  ;;  %v2277_v26 = vsel %vm312_vm5, 1.0, %v2840_v60 }
 0x151   :  { %1494 = vst [vmem:[#allocation2 + $0x60] sm:$0xff] %v1430_v27  ;;  %v902_v35 = vadd.f32 1e-08, %v901_v32  ;;  %v990_v36 = vpop.f32.mrf.mxu1  ;;  %v504_v32 = vld [vmem:[#allocation2 + $0x1a8] sm:$0xff] }
 0x152   :  { %v2681_v37 = vpop.eup %2680  ;;  %v1166_v38 = vadd.f32 %v1165_v31, %v1077_v30  ;;  %1495 = vst [vmem:[#allocation2 + $0xe0] sm:$0xff] %v1431_v33  ;;  %v2278_v30 = vsel %vm313_vm6, 1.0, %v2840_v60 }
 0x153   :  { %v2683_v40 = vpop.eup %2682  ;;  %v1258_v41 = vmul.f32 0.6931472, %v2681_v37  ;;  %v991_v42 = vadd.f32 %v990_v36, %v902_v35  ;;  %940 = vmatmul.bf16.gmra.mxu0 %v2427_v29  ;;  %v231_v35 = vpop.permute.xlu0 %230 }
 0x154   :  { %v1260_v44 = vmul.f32 0.6931472, %v2683_v40  ;;  %2684 = vlog2.f32 %v1166_v38  ;;  %1029 = vmatmul.bf16.gmra.mxu1 %v2431_v34  ;;  %1118 = vmatmul.bf16.gmra.mxu2 %v2427_v29  ;;  %vm315_vm8 = vcmp.eq.s32.totalorder %v231_v35, %v3294_v46  ;;  %vm316_vm9 = vcmp.eq.s32.totalorder %v231_v35, %v3306_v59 }
 0x155   :  { %2686 = vlog2.f32 %v991_v42  ;;  %v1368_v47 = vmul.f32 %v2273_v39, %v1258_v41  ;;  %1207 = vmatmul.bf16.gmra.mxu3 %v2431_v34  ;;  %v505_v34 = vld [vmem:[#allocation2 + $0x1b8] sm:$0xff] }
 0x156   :  { %v1369_v50 = vmul.f32 %v2274_v43, %v1260_v44 }
 0x157   :  { %v1432_v51 = vadd.f32 %v1368_v47, %v500_v45  ;;  %v1079_v52 = vpop.f32.mrf.mxu2  ;;  %v2279_v47 = vsel %vm314_vm7, 1.0, %v2840_v60 }
 0x158   :  { %v1433_v53 = vadd.f32 %v1369_v50, %v501_v48  ;;  %v1080_v54 = vadd.f32 1e-08, %v1079_v52  ;;  %v1168_v55 = vpop.f32.mrf.mxu3  ;;  %v903_v56 = vpop.f32.mrf.mxu0 }
 0x159   :  { %1496 = vst [vmem:[#allocation2 + $0x188] sm:$0xff] %v1432_v51  ;;  %v904_v57 = vadd.f32 1e-08, %v903_v56  ;;  %v992_v58 = vpop.f32.mrf.mxu1  ;;  %v506_v51 = vld [vmem:[#allocation2 + $0x28] sm:$0xff]  ;;  %v2607_v56 = vld [vmem:[%s4713_s1 + $0xf4] sm:$0xf0] }
 0x15a   :  { %v2685_v61 = vpop.eup %2684  ;;  %1497 = vst [vmem:[#allocation2 + $0x138] sm:$0xff] %v1433_v53  ;;  %v1169_v63 = vadd.f32 %v1168_v55, %v1080_v54  ;;  %v2280_v53 = vsel %vm315_vm8, 1.0, %v2840_v60  ;;  %v2442_v55 = vld [vmem:[%s4713_s1 + $0xf0] sm:$0xf] }
 0x15b   :  { %v2687_v0 = vpop.eup %2686  ;;  %v1262_v1 = vmul.f32 0.6931472, %v2685_v61  ;;  %v993_v3 = vadd.f32 %v992_v58, %v904_v57  ;;  %v507_v58 = vld [vmem:[#allocation2 + $0x1e8] sm:$0xff]  ;;  %v234_v61 = vpop.permute.xlu1 %233 }
 0x15c   :  { %v1264_v5 = vmul.f32 0.6931472, %v2687_v0  ;;  %2688 = vlog2.f32 %v1169_v63  ;;  %v2444_v63 = vld [vmem:[%s4713_s1 + $0xf8] sm:$0xf0]  ;;  %vm317_vm10 = vcmp.eq.s32.totalorder %v234_v61, %v3294_v46  ;;  %vm318_vm11 = vcmp.eq.s32.totalorder %v234_v61, %v3306_v59 }
 0x15d   :  { %v1370_v8 = vmul.f32 %v2275_v62, %v1262_v1  ;;  %2690 = vlog2.f32 %v993_v3  ;;  %v2606_v62 = vld [vmem:[%s4713_s1 + $0xf4] sm:$0xf]  ;;  %v2443_v3 = vor.u32 %v2607_v56, %v2442_v55 }
 0x15e   :  { %v1371_v13 = vmul.f32 %v2276_v4, %v1264_v5 }
 0x15f   :  { %v1434_v14 = vadd.f32 %v1370_v8, %v502_v2  ;;  %v1081_v15 = vpop.f32.mrf.mxu2  ;;  %v2447_v8 = vor.u32 %v2606_v62, %v2444_v63 }
 0x160   :  { %v1082_v17 = vadd.f32 1e-08, %v1081_v15  ;;  %v1170_v18 = vpop.f32.mrf.mxu3  ;;  %v906_v19 = vpop.f32.mrf.mxu0  ;;  %v1435_v20 = vadd.f32 %v1371_v13, %v503_v9  ;;  %v2281_v13 = vsel %vm316_vm9, 1.0, %v2840_v60 }
 0x161   :  { %1498 = vst [vmem:[#allocation2 + $0x140] sm:$0xff] %v1434_v14  ;;  %v907_v22 = vadd.f32 1e-08, %v906_v19  ;;  %v995_v23 = vpop.f32.mrf.mxu1  ;;  %v508_v19 = vld [vmem:[#allocation2 + $0xf8] sm:$0xff] }
 0x162   :  { %v2689_v24 = vpop.eup %2688  ;;  %v1171_v25 = vadd.f32 %v1170_v18, %v1082_v17  ;;  %1499 = vst [vmem:[#allocation2 + $0x80] sm:$0xff] %v1435_v20  ;;  %v2282_v17 = vsel %vm317_vm10, 1.0, %v2840_v60 }
 0x163   :  { %v2691_v27 = vpop.eup %2690  ;;  %v1266_v28 = vmul.f32 0.6931472, %v2689_v24  ;;  %v996_v29 = vadd.f32 %v995_v23, %v907_v22  ;;  %945 = vmatmul.bf16.gmra.mxu0 %v2435_v16  ;;  %v237_v22 = vpop.permute.xlu2 %236 }
 0x164   :  { %v1268_v31 = vmul.f32 0.6931472, %v2691_v27  ;;  %2692 = vlog2.f32 %v1171_v25  ;;  %1034 = vmatmul.bf16.gmra.mxu1 %v2439_v21  ;;  %1123 = vmatmul.bf16.gmra.mxu2 %v2435_v16  ;;  %vm319_vm12 = vcmp.eq.s32.totalorder %v237_v22, %v3294_v46  ;;  %vm320_vm13 = vcmp.eq.s32.totalorder %v237_v22, %v3306_v59 }
 0x165   :  { %2694 = vlog2.f32 %v996_v29  ;;  %v1372_v33 = vmul.f32 %v2277_v26, %v1266_v28  ;;  %1212 = vmatmul.bf16.gmra.mxu3 %v2439_v21  ;;  %v509_v21 = vld [vmem:[#allocation2 + $0x160] sm:$0xff]  ;;  %v2285_v56 = vsel %vm320_vm13, 1.0, %v2840_v60 }
 0x166   :  { %v1373_v36 = vmul.f32 %v2278_v30, %v1268_v31 }
 0x167   :  { %v1436_v37 = vadd.f32 %v1372_v33, %v504_v32  ;;  %v1084_v38 = vpop.f32.mrf.mxu2  ;;  %v2283_v33 = vsel %vm318_vm11, 1.0, %v2840_v60 }
 0x168   :  { %v1437_v39 = vadd.f32 %v1373_v36, %v505_v34  ;;  %v1085_v40 = vadd.f32 1e-08, %v1084_v38  ;;  %v1173_v41 = vpop.f32.mrf.mxu3  ;;  %v908_v42 = vpop.f32.mrf.mxu0  ;;  %v2284_v38 = vsel %vm319_vm12, 1.0, %v2840_v60 }
 0x169   :  { %1500 = vst [vmem:[#allocation2 + $0x1a8] sm:$0xff] %v1436_v37  ;;  %v909_v43 = vadd.f32 1e-08, %v908_v42  ;;  %v997_v44 = vpop.f32.mrf.mxu1  ;;  %v511_v42 = vld [vmem:[#allocation2 + $0x1e0] sm:$0xff] }
 0x16a   :  { %v2693_v45 = vpop.eup %2692  ;;  %1501 = vst [vmem:[#allocation2 + $0x1b8] sm:$0xff] %v1437_v39  ;;  %v1174_v48 = vadd.f32 %v1173_v41, %v1085_v40  ;;  %v510_v40 = vld [vmem:[#allocation2 + $0x30] sm:$0xff] }
 0x16b   :  { %v2695_v49 = vpop.eup %2694  ;;  %v1270_v50 = vmul.f32 0.6931472, %v2693_v45  ;;  %v998_v52 = vadd.f32 %v997_v44, %v909_v43  ;;  %v240_v43 = vpop.permute.xlu0 %239 }
 0x16c   :  { %v1272_v54 = vmul.f32 0.6931472, %v2695_v49  ;;  %2696 = vlog2.f32 %v1174_v48  ;;  %vm321_vm14 = vcmp.eq.s32.totalorder %v240_v43, %v3294_v46  ;;  %vm322_vm15 = vcmp.eq.s32.totalorder %v240_v43, %v3306_v59 }
 0x16d   :  { %v1374_v57 = vmul.f32 %v2279_v47, %v1270_v50  ;;  %2698 = vlog2.f32 %v998_v52  ;;  %v2286_v62 = vsel %vm321_vm14, 1.0, %v2840_v60 }
 0x16e   :  { %v1375_v0 = vmul.f32 %v2280_v53, %v1272_v54 }
 0x16f   :  { %v1438_v1 = vadd.f32 %v1374_v57, %v506_v51  ;;  %v1086_v2 = vpop.f32.mrf.mxu2 }
 0x170   :  { %v1087_v4 = vadd.f32 1e-08, %v1086_v2  ;;  %v1175_v5 = vpop.f32.mrf.mxu3  ;;  %v911_v6 = vpop.f32.mrf.mxu0  ;;  %v1439_v7 = vadd.f32 %v1375_v0, %v507_v58  ;;  %v512_v0 = vld [vmem:[#allocation2] sm:$0xff]  ;;  %v513_v2 = vld [vmem:[#allocation2 + $0xf0] sm:$0xff] }
 0x171   :  { %1502 = vst [vmem:[#allocation2 + $0x28] sm:$0xff] %v1438_v1  ;;  %v912_v9 = vadd.f32 1e-08, %v911_v6  ;;  %v1000_v10 = vpop.f32.mrf.mxu1 }
 0x172   :  { %v2697_v11 = vpop.eup %2696  ;;  %v1176_v12 = vadd.f32 %v1175_v5, %v1087_v4  ;;  %1503 = vst [vmem:[#allocation2 + $0x1e8] sm:$0xff] %v1439_v7 }
 0x173   :  { %v2699_v14 = vpop.eup %2698  ;;  %v1274_v15 = vmul.f32 0.6931472, %v2697_v11  ;;  %v1001_v16 = vadd.f32 %v1000_v10, %v912_v9  ;;  %950 = vmatmul.bf16.gmra.mxu0 %v2443_v3 }
 0x174   :  { %v1276_v18 = vmul.f32 0.6931472, %v2699_v14  ;;  %2700 = vlog2.f32 %v1176_v12  ;;  %1039 = vmatmul.bf16.gmra.mxu1 %v2447_v8  ;;  %1128 = vmatmul.bf16.gmra.mxu2 %v2443_v3  ;;  %v243_v3 = vpop.permute.xlu1 %242  ;;  %v2287_v14 = vsel %vm322_vm15, 1.0, %v2840_v60 }
 0x175   :  { %2702 = vlog2.f32 %v1001_v16  ;;  %v1376_v20 = vmul.f32 %v2281_v13, %v1274_v15  ;;  %1217 = vmatmul.bf16.gmra.mxu3 %v2447_v8  ;;  %vm323_vm0 = vcmp.eq.s32.totalorder %v243_v3, %v3294_v46  ;;  %vm324_vm1 = vcmp.eq.s32.totalorder %v243_v3, %v3306_v59 }
 0x176   :  { %v1377_v23 = vmul.f32 %v2282_v17, %v1276_v18 }
 0x177   :  { %v1440_v24 = vadd.f32 %v1376_v20, %v508_v19  ;;  %v1089_v25 = vpop.f32.mrf.mxu2  ;;  %v2288_v19 = vsel %vm323_vm0, 1.0, %v2840_v60 }
 0x178   :  { %v1441_v26 = vadd.f32 %v1377_v23, %v509_v21  ;;  %v1090_v27 = vadd.f32 1e-08, %v1089_v25  ;;  %v1178_v28 = vpop.f32.mrf.mxu3  ;;  %v913_v29 = vpop.f32.mrf.mxu0  ;;  %v514_v21 = vld [vmem:[#allocation2 + $0x8] sm:$0xff] }
 0x179   :  { %1504 = vst [vmem:[#allocation2 + $0xf8] sm:$0xff] %v1440_v24  ;;  %v914_v30 = vadd.f32 1e-08, %v913_v29  ;;  %v1002_v31 = vpop.f32.mrf.mxu1  ;;  %v515_v23 = vld [vmem:[#allocation2 + $0x148] sm:$0xff]  ;;  %v246_v24 = vpop.permute.xlu2 %245 }
 0x17a   :  { %v2701_v32 = vpop.eup %2700  ;;  %1505 = vst [vmem:[#allocation2 + $0x160] sm:$0xff] %v1441_v26  ;;  %v1179_v34 = vadd.f32 %v1178_v28, %v1090_v27  ;;  %vm325_vm2 = vcmp.eq.s32.totalorder %v246_v24, %v3294_v46  ;;  %vm326_vm3 = vcmp.eq.s32.totalorder %v246_v24, %v3306_v59  ;;  %v521_v24 = vld [vmem:[#allocation2 + $0x20] sm:$0xff] }
 0x17b   :  { %v2703_v35 = vpop.eup %2702  ;;  %v1278_v36 = vmul.f32 0.6931472, %v2701_v32  ;;  %v1003_v37 = vadd.f32 %v1002_v31, %v914_v30 }
 0x17c   :  { %v1280_v39 = vmul.f32 0.6931472, %v2703_v35  ;;  %2704 = vlog2.f32 %v1179_v34 }
 0x17d   :  { %v1378_v41 = vmul.f32 %v2283_v33, %v1278_v36  ;;  %2706 = vlog2.f32 %v1003_v37  ;;  %v2289_v36 = vsel %vm324_vm1, 1.0, %v2840_v60 }
 0x17e   :  { %v1379_v44 = vmul.f32 %v2284_v38, %v1280_v39 }
 0x17f   :  { %v1442_v45 = vadd.f32 %v1378_v41, %v510_v40  ;;  %v1091_v47 = vpop.f32.mrf.mxu2  ;;  %v2290_v40 = vsel %vm325_vm2, 1.0, %v2840_v60 }
 0x180   :  { %v1092_v48 = vadd.f32 1e-08, %v1091_v47  ;;  %v1180_v49 = vpop.f32.mrf.mxu3  ;;  %v916_v50 = vpop.f32.mrf.mxu0  ;;  %v1443_v51 = vadd.f32 %v1379_v44, %v511_v42  ;;  %v516_v42 = vld [vmem:[#allocation2 + $0x1d0] sm:$0xff]  ;;  %v517_v44 = vld [vmem:[#allocation2 + $0x100] sm:$0xff] }
 0x181   :  { %1506 = vst [vmem:[#allocation2 + $0x30] sm:$0xff] %v1442_v45  ;;  %v917_v52 = vadd.f32 1e-08, %v916_v50  ;;  %v1005_v53 = vpop.f32.mrf.mxu1 }
 0x182   :  { %v2705_v54 = vpop.eup %2704  ;;  %v1181_v55 = vadd.f32 %v1180_v49, %v1092_v48  ;;  %1507 = vst [vmem:[#allocation2 + $0x1e0] sm:$0xff] %v1443_v51  ;;  %v249_v49 = vpop.permute.xlu0 %248 }
 0x183   :  { %v2707_v57 = vpop.eup %2706  ;;  %v1282_v58 = vmul.f32 0.6931472, %v2705_v54  ;;  %v1006_v61 = vadd.f32 %v1005_v53, %v917_v52  ;;  %vm327_vm4 = vcmp.eq.s32.totalorder %v249_v49, %v3294_v46  ;;  %vm328_vm5 = vcmp.eq.s32.totalorder %v249_v49, %v3306_v59 }
 0x184   :  { %v1284_v63 = vmul.f32 0.6931472, %v2707_v57  ;;  %2708 = vlog2.f32 %v1181_v55  ;;  %v2291_v57 = vsel %vm326_vm3, 1.0, %v2840_v60 }
 0x185   :  { %2710 = vlog2.f32 %v1006_v61  ;;  %v1380_v1 = vmul.f32 %v2285_v56, %v1282_v58 }
 0x186   :  { %v1381_v4 = vmul.f32 %v2286_v62, %v1284_v63 }
 0x187   :  { %v1444_v5 = vadd.f32 %v1380_v1, %v512_v0  ;;  %v1094_v6 = vpop.f32.mrf.mxu2  ;;  %v2292_v0 = vsel %vm327_vm4, 1.0, %v2840_v60 }
 0x188   :  { %v1445_v7 = vadd.f32 %v1381_v4, %v513_v2  ;;  %v1095_v8 = vadd.f32 1e-08, %v1094_v6  ;;  %v1183_v9 = vpop.f32.mrf.mxu3  ;;  %v918_v10 = vpop.f32.mrf.mxu0  ;;  %v518_v2 = vld [vmem:[#allocation2 + $0xc8] sm:$0xff]  ;;  %v519_v4 = vld [vmem:[#allocation2 + $0x40] sm:$0xff] }
 0x189   :  { %1508 = vst [vmem:[#allocation2] sm:$0xff] %v1444_v5  ;;  %v919_v11 = vadd.f32 1e-08, %v918_v10  ;;  %v1007_v12 = vpop.f32.mrf.mxu1 }
 0x18a   :  { %v2709_v13 = vpop.eup %2708  ;;  %1509 = vst [vmem:[#allocation2 + $0xf0] sm:$0xff] %v1445_v7  ;;  %v1184_v15 = vadd.f32 %v1183_v9, %v1095_v8  ;;  %v252_v7 = vpop.permute.xlu1 %251 }
 0x18b   :  { %v2711_v16 = vpop.eup %2710  ;;  %v1286_v17 = vmul.f32 0.6931472, %v2709_v13  ;;  %v1008_v18 = vadd.f32 %v1007_v12, %v919_v11  ;;  %vm329_vm6 = vcmp.eq.s32.totalorder %v252_v7, %v3294_v46  ;;  %vm330_vm7 = vcmp.eq.s32.totalorder %v252_v7, %v3306_v59 }
 0x18c   :  { %v1288_v20 = vmul.f32 0.6931472, %v2711_v16  ;;  %2712 = vlog2.f32 %v1184_v15  ;;  %v2293_v16 = vsel %vm328_vm5, 1.0, %v2840_v60 }
 0x18d   :  { %v1382_v22 = vmul.f32 %v2287_v14, %v1286_v17  ;;  %2714 = vlog2.f32 %v1008_v18 }
 0x18e   :  { %v1383_v25 = vmul.f32 %v2288_v19, %v1288_v20  ;;  %v2294_v20 = vsel %vm329_vm6, 1.0, %v2840_v60 }
 0x18f   :  { %v1446_v26 = vadd.f32 %v1382_v22, %v514_v21  ;;  %v1096_v27 = vpop.f32.mrf.mxu2 }
 0x190   :  { %v1097_v28 = vadd.f32 1e-08, %v1096_v27  ;;  %v1185_v29 = vpop.f32.mrf.mxu3  ;;  %v921_v30 = vpop.f32.mrf.mxu0  ;;  %v1447_v31 = vadd.f32 %v1383_v25, %v515_v23  ;;  %v520_v23 = vld [vmem:[#allocation2 + $0x1f8] sm:$0xff] }
 0x191   :  { %1510 = vst [vmem:[#allocation2 + $0x8] sm:$0xff] %v1446_v26  ;;  %v922_v32 = vadd.f32 1e-08, %v921_v30  ;;  %v1010_v33 = vpop.f32.mrf.mxu1 }
 0x192   :  { %v2713_v34 = vpop.eup %2712  ;;  %v1186_v35 = vadd.f32 %v1185_v29, %v1097_v28  ;;  %1511 = vst [vmem:[#allocation2 + $0x148] sm:$0xff] %v1447_v31  ;;  %v255_v29 = vpop.permute.xlu2 %254 }
 0x193   :  { %v2715_v37 = vpop.eup %2714  ;;  %v1290_v38 = vmul.f32 0.6931472, %v2713_v34  ;;  %v1011_v39 = vadd.f32 %v1010_v33, %v922_v32  ;;  %vm331_vm8 = vcmp.eq.s32.totalorder %v255_v29, %v3294_v46  ;;  %vm332_vm9 = vcmp.eq.s32.totalorder %v255_v29, %v3306_v59 }
 0x194   :  { %v1292_v41 = vmul.f32 0.6931472, %v2715_v37  ;;  %2716 = vlog2.f32 %v1186_v35  ;;  %v2295_v37 = vsel %vm330_vm7, 1.0, %v2840_v60 }
 0x195   :  { %2718 = vlog2.f32 %v1011_v39  ;;  %v1384_v43 = vmul.f32 %v2289_v36, %v1290_v38 }
 0x196   :  { %v1385_v45 = vmul.f32 %v2290_v40, %v1292_v41 }
 0x197   :  { %v1448_v47 = vadd.f32 %v1384_v43, %v516_v42  ;;  %v1099_v48 = vpop.f32.mrf.mxu2  ;;  %v2296_v42 = vsel %vm331_vm8, 1.0, %v2840_v60  ;;  %v522_v43 = vld [vmem:[#allocation2 + $0x128] sm:$0xff] }
 0x198   :  { %v1449_v50 = vadd.f32 %v1385_v45, %v517_v44  ;;  %v1100_v51 = vadd.f32 1e-08, %v1099_v48  ;;  %v1188_v52 = vpop.f32.mrf.mxu3  ;;  %v923_v53 = vpop.f32.mrf.mxu0 }
 0x199   :  { %1512 = vst [vmem:[#allocation2 + $0x1d0] sm:$0xff] %v1448_v47  ;;  %v924_v54 = vadd.f32 1e-08, %v923_v53  ;;  %v1012_v55 = vpop.f32.mrf.mxu1  ;;  %v523_v47 = vld [vmem:[#allocation2 + $0x1a0] sm:$0xff] }
 0x19a   :  { %v2717_v56 = vpop.eup %2716  ;;  %1513 = vst [vmem:[#allocation2 + $0x100] sm:$0xff] %v1449_v50  ;;  %v1189_v58 = vadd.f32 %v1188_v52, %v1100_v51  ;;  %v258_v50 = vpop.permute.xlu0 %257 }
 0x19b   :  { %v2719_v61 = vpop.eup %2718  ;;  %v1294_v62 = vmul.f32 0.6931472, %v2717_v56  ;;  %v1013_v63 = vadd.f32 %v1012_v55, %v924_v54  ;;  %vm333_vm10 = vcmp.eq.s32.totalorder %v258_v50, %v3294_v46  ;;  %vm334_vm11 = vcmp.eq.s32.totalorder %v258_v50, %v3306_v59 }
 0x19c   :  { %v1296_v1 = vmul.f32 0.6931472, %v2719_v61  ;;  %2720 = vlog2.f32 %v1189_v58  ;;  %v2297_v61 = vsel %vm332_vm9, 1.0, %v2840_v60 }
 0x19d   :  { %v1386_v3 = vmul.f32 %v2291_v57, %v1294_v62  ;;  %2722 = vlog2.f32 %v1013_v63 }
 0x19e   :  { %v1387_v5 = vmul.f32 %v2292_v0, %v1296_v1  ;;  %v2298_v0 = vsel %vm333_vm10, 1.0, %v2840_v60 }
 0x19f   :  { %v1450_v6 = vadd.f32 %v1386_v3, %v518_v2  ;;  %v1101_v8 = vpop.f32.mrf.mxu2 }
 0x1a0   :  { %v1451_v9 = vadd.f32 %v1387_v5, %v519_v4  ;;  %v1102_v10 = vadd.f32 1e-08, %v1101_v8  ;;  %v1190_v11 = vpop.f32.mrf.mxu3  ;;  %v926_v12 = vpop.f32.mrf.mxu0  ;;  %v524_v4 = vld [vmem:[#allocation2 + $0x1f0] sm:$0xff]  ;;  %v525_v5 = vld [vmem:[#allocation2 + $0xe8] sm:$0xff] }
 0x1a1   :  { %1514 = vst [vmem:[#allocation2 + $0xc8] sm:$0xff] %v1450_v6  ;;  %v927_v13 = vadd.f32 1e-08, %v926_v12  ;;  %v1015_v14 = vpop.f32.mrf.mxu1 }
 0x1a2   :  { %v2721_v15 = vpop.eup %2720  ;;  %1515 = vst [vmem:[#allocation2 + $0x40] sm:$0xff] %v1451_v9  ;;  %v1191_v17 = vadd.f32 %v1190_v11, %v1102_v10 }
 0x1a3   :  { %v2723_v18 = vpop.eup %2722  ;;  %v1298_v19 = vmul.f32 0.6931472, %v2721_v15  ;;  %v1016_v21 = vadd.f32 %v1015_v14, %v927_v13  ;;  %v261_v14 = vpop.permute.xlu1 %260 }
 0x1a4   :  { %v1300_v22 = vmul.f32 0.6931472, %v2723_v18  ;;  %2724 = vlog2.f32 %v1191_v17  ;;  %vm335_vm12 = vcmp.eq.s32.totalorder %v261_v14, %v3294_v46  ;;  %v2299_v18 = vsel %vm334_vm11, 1.0, %v2840_v60 }
 0x1a5   :  { %v1388_v25 = vmul.f32 %v2293_v16, %v1298_v19  ;;  %2726 = vlog2.f32 %v1016_v21  ;;  %vm336_vm13 = vcmp.eq.s32.totalorder %v261_v14, %v3306_v59 }
 0x1a6   :  { %v1389_v26 = vmul.f32 %v2294_v20, %v1300_v22 }
 0x1a7   :  { %v1452_v27 = vadd.f32 %v1388_v25, %v520_v23  ;;  %v1104_v28 = vpop.f32.mrf.mxu2  ;;  %v526_v23 = vld [vmem:[#allocation2 + $0x78] sm:$0xff]  ;;  %v2300_v25 = vsel %vm335_vm12, 1.0, %v2840_v60 }
 0x1a8   :  { %v1453_v30 = vadd.f32 %v1389_v26, %v521_v24  ;;  %v1105_v31 = vadd.f32 1e-08, %v1104_v28  ;;  %v1193_v32 = vpop.f32.mrf.mxu3  ;;  %v928_v33 = vpop.f32.mrf.mxu0 }
 0x1a9   :  { %1516 = vst [vmem:[#allocation2 + $0x1f8] sm:$0xff] %v1452_v27  ;;  %v929_v34 = vadd.f32 1e-08, %v928_v33  ;;  %v1017_v35 = vpop.f32.mrf.mxu1  ;;  %v527_v27 = vld [vmem:[#allocation2 + $0x70] sm:$0xff] }
 0x1aa   :  { %v2725_v36 = vpop.eup %2724  ;;  %1517 = vst [vmem:[#allocation2 + $0x20] sm:$0xff] %v1453_v30  ;;  %v1194_v38 = vadd.f32 %v1193_v32, %v1105_v31 }
 0x1ab   :  { %v2727_v39 = vpop.eup %2726  ;;  %v1302_v40 = vmul.f32 0.6931472, %v2725_v36  ;;  %v1018_v41 = vadd.f32 %v1017_v35, %v929_v34  ;;  %v264_v35 = vpop.permute.xlu2 %263 }
 0x1ac   :  { %v1304_v44 = vmul.f32 0.6931472, %v2727_v39  ;;  %2728 = vlog2.f32 %v1194_v38  ;;  %vm337_vm14 = vcmp.eq.s32.totalorder %v264_v35, %v3294_v46  ;;  %vm338_vm15 = vcmp.eq.s32.totalorder %v264_v35, %v3306_v59 }
 0x1ad   :  { %v1390_v45 = vmul.f32 %v2295_v37, %v1302_v40  ;;  %2730 = vlog2.f32 %v1018_v41 }
 0x1ae   :  { %v1391_v48 = vmul.f32 %v2296_v42, %v1304_v44  ;;  %v528_v44 = vld [vmem:[#allocation2 + $0x90] sm:$0xff] }
 0x1af   :  { %v1454_v49 = vadd.f32 %v1390_v45, %v522_v43  ;;  %v1106_v51 = vpop.f32.mrf.mxu2  ;;  %v2301_v43 = vsel %vm336_vm13, 1.0, %v2840_v60 }
 0x1b0   :  { %v1455_v52 = vadd.f32 %v1391_v48, %v523_v47  ;;  %v1107_v53 = vadd.f32 1e-08, %v1106_v51  ;;  %v1195_v54 = vpop.f32.mrf.mxu3  ;;  %v931_v55 = vpop.f32.mrf.mxu0  ;;  %v2302_v47 = vsel %vm337_vm14, 1.0, %v2840_v60 }
 0x1b1   :  { %1518 = vst [vmem:[#allocation2 + $0x128] sm:$0xff] %v1454_v49  ;;  %v932_v56 = vadd.f32 1e-08, %v931_v55  ;;  %v1020_v57 = vpop.f32.mrf.mxu1  ;;  %v529_v49 = vld [vmem:[#allocation2 + $0x1d8] sm:$0xff] }
 0x1b2   :  { %v2729_v58 = vpop.eup %2728  ;;  %1519 = vst [vmem:[#allocation2 + $0x1a0] sm:$0xff] %v1455_v52  ;;  %v1196_v62 = vadd.f32 %v1195_v54, %v1107_v53 }
 0x1b3   :  { %v2731_v63 = vpop.eup %2730  ;;  %v1306_v1 = vmul.f32 0.6931472, %v2729_v58  ;;  %v1021_v2 = vadd.f32 %v1020_v57, %v932_v56  ;;  %v267_v57 = vpop.permute.xlu0 %266 }
 0x1b4   :  { %v1308_v3 = vmul.f32 0.6931472, %v2731_v63  ;;  %2732 = vlog2.f32 %v1196_v62  ;;  %vm339_vm0 = vcmp.eq.s32.totalorder %v267_v57, %v3294_v46  ;;  %vm340_vm1 = vcmp.eq.s32.totalorder %v267_v57, %v3306_v59 }
 0x1b5   :  { %v1392_v6 = vmul.f32 %v2297_v61, %v1306_v1  ;;  %2734 = vlog2.f32 %v1021_v2 }
 0x1b6   :  { %v1393_v7 = vmul.f32 %v2298_v0, %v1308_v3  ;;  %v2303_v3 = vsel %vm338_vm15, 1.0, %v2840_v60 }
 0x1b7   :  { %v1456_v8 = vadd.f32 %v1392_v6, %v524_v4  ;;  %v1109_v9 = vpop.f32.mrf.mxu2  ;;  %v530_v4 = vld [vmem:[#allocation2 + $0xd0] sm:$0xff]  ;;  %v2304_v6 = vsel %vm339_vm0, 1.0, %v2840_v60 }
 0x1b8   :  { %v1457_v10 = vadd.f32 %v1393_v7, %v525_v5  ;;  %v1110_v11 = vadd.f32 1e-08, %v1109_v9  ;;  %v1198_v12 = vpop.f32.mrf.mxu3  ;;  %v933_v13 = vpop.f32.mrf.mxu0 }
 0x1b9   :  { %1520 = vst [vmem:[#allocation2 + $0x1f0] sm:$0xff] %v1456_v8  ;;  %v934_v15 = vadd.f32 1e-08, %v933_v13  ;;  %v1022_v16 = vpop.f32.mrf.mxu1  ;;  %v531_v8 = vld [vmem:[#allocation2 + $0xb8] sm:$0xff] }
 0x1ba   :  { %v2733_v17 = vpop.eup %2732  ;;  %1521 = vst [vmem:[#allocation2 + $0xe8] sm:$0xff] %v1457_v10  ;;  %v1199_v19 = vadd.f32 %v1198_v12, %v1110_v11 }
 0x1bb   :  { %v2735_v20 = vpop.eup %2734  ;;  %v1310_v21 = vmul.f32 0.6931472, %v2733_v17  ;;  %v1023_v22 = vadd.f32 %v1022_v16, %v934_v15  ;;  %v270_v16 = vpop.permute.xlu1 %269 }
 0x1bc   :  { %v1312_v24 = vmul.f32 0.6931472, %v2735_v20  ;;  %2736 = vlog2.f32 %v1199_v19  ;;  %vm341_vm2 = vcmp.eq.s32.totalorder %v270_v16, %v3294_v46  ;;  %vm342_vm3 = vcmp.eq.s32.totalorder %v270_v16, %v3306_v59 }
 0x1bd   :  { %v1394_v26 = vmul.f32 %v2299_v18, %v1310_v21  ;;  %2738 = vlog2.f32 %v1023_v22 }
 0x1be   :  { %v1395_v28 = vmul.f32 %v2300_v25, %v1312_v24  ;;  %v2305_v24 = vsel %vm340_vm1, 1.0, %v2840_v60  ;;  %v532_v25 = vld [vmem:[#allocation2 + $0x88] sm:$0xff] }
 0x1bf   :  { %v1458_v29 = vadd.f32 %v1394_v26, %v526_v23  ;;  %v1111_v30 = vpop.f32.mrf.mxu2 }
 0x1c0   :  { %v1459_v31 = vadd.f32 %v1395_v28, %v527_v27  ;;  %v1112_v32 = vadd.f32 1e-08, %v1111_v30  ;;  %v1200_v33 = vpop.f32.mrf.mxu3  ;;  %v936_v34 = vpop.f32.mrf.mxu0  ;;  %v2306_v27 = vsel %vm341_vm2, 1.0, %v2840_v60 }
 0x1c1   :  { %1522 = vst [vmem:[#allocation2 + $0x78] sm:$0xff] %v1458_v29  ;;  %v937_v36 = vadd.f32 1e-08, %v936_v34  ;;  %v1025_v37 = vpop.f32.mrf.mxu1  ;;  %v533_v29 = vld [vmem:[#allocation2 + $0xa8] sm:$0xff] }
 0x1c2   :  { %v2737_v38 = vpop.eup %2736  ;;  %1523 = vst [vmem:[#allocation2 + $0x70] sm:$0xff] %v1459_v31  ;;  %v1201_v39 = vadd.f32 %v1200_v33, %v1112_v32 }
 0x1c3   :  { %v2739_v40 = vpop.eup %2738  ;;  %v1314_v41 = vmul.f32 0.6931472, %v2737_v38  ;;  %v1026_v42 = vadd.f32 %v1025_v37, %v937_v36  ;;  %v273_v37 = vpop.permute.xlu2 %272 }
 0x1c4   :  { %v1316_v45 = vmul.f32 0.6931472, %v2739_v40  ;;  %2740 = vlog2.f32 %v1201_v39  ;;  %vm343_vm4 = vcmp.eq.s32.totalorder %v273_v37, %v3294_v46  ;;  %vm344_vm5 = vcmp.eq.s32.totalorder %v273_v37, %v3306_v59 }
 0x1c5   :  { %v1396_v48 = vmul.f32 %v2301_v43, %v1314_v41  ;;  %2742 = vlog2.f32 %v1026_v42 }
 0x1c6   :  { %v1397_v50 = vmul.f32 %v2302_v47, %v1316_v45  ;;  %v2307_v45 = vsel %vm342_vm3, 1.0, %v2840_v60  ;;  %v534_v47 = vld [vmem:[#allocation2 + $0x1c8] sm:$0xff] }
 0x1c7   :  { %v1460_v51 = vadd.f32 %v1396_v48, %v528_v44  ;;  %v1114_v52 = vpop.f32.mrf.mxu2 }
 0x1c8   :  { %v1461_v53 = vadd.f32 %v1397_v50, %v529_v49  ;;  %v1115_v54 = vadd.f32 1e-08, %v1114_v52  ;;  %v1203_v55 = vpop.f32.mrf.mxu3  ;;  %v938_v56 = vpop.f32.mrf.mxu0  ;;  %v2308_v49 = vsel %vm343_vm4, 1.0, %v2840_v60 }
 0x1c9   :  { %1524 = vst [vmem:[#allocation2 + $0x90] sm:$0xff] %v1460_v51  ;;  %v939_v58 = vadd.f32 1e-08, %v938_v56  ;;  %v1027_v61 = vpop.f32.mrf.mxu1  ;;  %v535_v51 = vld [vmem:[#allocation2 + $0x170] sm:$0xff] }
 0x1ca   :  { %v2741_v62 = vpop.eup %2740  ;;  %1525 = vst [vmem:[#allocation2 + $0x1d8] sm:$0xff] %v1461_v53  ;;  %v1204_v63 = vadd.f32 %v1203_v55, %v1115_v54 }
 0x1cb   :  { %v2743_v0 = vpop.eup %2742  ;;  %v1318_v1 = vmul.f32 0.6931472, %v2741_v62  ;;  %v1028_v2 = vadd.f32 %v1027_v61, %v939_v58  ;;  %v276_v61 = vpop.permute.xlu0 %275 }
 0x1cc   :  { %v1320_v5 = vmul.f32 0.6931472, %v2743_v0  ;;  %2744 = vlog2.f32 %v1204_v63  ;;  %vm345_vm6 = vcmp.eq.s32.totalorder %v276_v61, %v3294_v46  ;;  %vm346_vm7 = vcmp.eq.s32.totalorder %v276_v61, %v3306_v59 }
 0x1cd   :  { %v1398_v7 = vmul.f32 %v2303_v3, %v1318_v1  ;;  %2746 = vlog2.f32 %v1028_v2 }
 0x1ce   :  { %v1399_v9 = vmul.f32 %v2304_v6, %v1320_v5  ;;  %v2309_v5 = vsel %vm344_vm5, 1.0, %v2840_v60  ;;  %v536_v6 = vld [vmem:[#allocation2 + $0x178] sm:$0xff] }
 0x1cf   :  { %v1462_v10 = vadd.f32 %v1398_v7, %v530_v4  ;;  %v1116_v11 = vpop.f32.mrf.mxu2 }
 0x1d0   :  { %v1463_v12 = vadd.f32 %v1399_v9, %v531_v8  ;;  %v1117_v13 = vadd.f32 1e-08, %v1116_v11  ;;  %v1205_v14 = vpop.f32.mrf.mxu3  ;;  %v941_v15 = vpop.f32.mrf.mxu0  ;;  %v2310_v8 = vsel %vm345_vm6, 1.0, %v2840_v60 }
 0x1d1   :  { %1526 = vst [vmem:[#allocation2 + $0xd0] sm:$0xff] %v1462_v10  ;;  %v942_v17 = vadd.f32 1e-08, %v941_v15  ;;  %v1030_v18 = vpop.f32.mrf.mxu1  ;;  %v537_v10 = vld [vmem:[#allocation2 + $0x68] sm:$0xff] }
 0x1d2   :  { %v2745_v19 = vpop.eup %2744  ;;  %1527 = vst [vmem:[#allocation2 + $0xb8] sm:$0xff] %v1463_v12  ;;  %v1206_v20 = vadd.f32 %v1205_v14, %v1117_v13 }
 0x1d3   :  { %v2747_v21 = vpop.eup %2746  ;;  %v1322_v22 = vmul.f32 0.6931472, %v2745_v19  ;;  %v1031_v23 = vadd.f32 %v1030_v18, %v942_v17  ;;  %v279_v18 = vpop.permute.xlu1 %278 }
 0x1d4   :  { %v1324_v26 = vmul.f32 0.6931472, %v2747_v21  ;;  %2748 = vlog2.f32 %v1206_v20  ;;  %vm347_vm8 = vcmp.eq.s32.totalorder %v279_v18, %v3294_v46  ;;  %vm348_vm9 = vcmp.eq.s32.totalorder %v279_v18, %v3306_v59 }
 0x1d5   :  { %v1400_v28 = vmul.f32 %v2305_v24, %v1322_v22  ;;  %2750 = vlog2.f32 %v1031_v23 }
 0x1d6   :  { %v1401_v30 = vmul.f32 %v2306_v27, %v1324_v26  ;;  %v2311_v26 = vsel %vm346_vm7, 1.0, %v2840_v60  ;;  %v538_v27 = vld [vmem:[#allocation2 + $0x190] sm:$0xff] }
 0x1d7   :  { %v1464_v31 = vadd.f32 %v1400_v28, %v532_v25  ;;  %v1119_v32 = vpop.f32.mrf.mxu2 }
 0x1d8   :  { %v1465_v33 = vadd.f32 %v1401_v30, %v533_v29  ;;  %v1120_v34 = vadd.f32 1e-08, %v1119_v32  ;;  %v1208_v35 = vpop.f32.mrf.mxu3  ;;  %v943_v36 = vpop.f32.mrf.mxu0  ;;  %v2312_v29 = vsel %vm347_vm8, 1.0, %v2840_v60 }
 0x1d9   :  { %1528 = vst [vmem:[#allocation2 + $0x88] sm:$0xff] %v1464_v31  ;;  %v944_v38 = vadd.f32 1e-08, %v943_v36  ;;  %v1032_v39 = vpop.f32.mrf.mxu1  ;;  %v539_v31 = vld [vmem:[#allocation2 + $0x198] sm:$0xff] }
 0x1da   :  { %v2749_v40 = vpop.eup %2748  ;;  %1529 = vst [vmem:[#allocation2 + $0xa8] sm:$0xff] %v1465_v33  ;;  %v1209_v41 = vadd.f32 %v1208_v35, %v1120_v34  ;;  %v282_v33 = vpop.permute.xlu2 %281 }
 0x1db   :  { %v2751_v42 = vpop.eup %2750  ;;  %v1326_v43 = vmul.f32 0.6931472, %v2749_v40  ;;  %v1033_v44 = vadd.f32 %v1032_v39, %v944_v38  ;;  %vm349_vm10 = vcmp.eq.s32.totalorder %v282_v33, %v3294_v46  ;;  %vm350_vm11 = vcmp.eq.s32.totalorder %v282_v33, %v3306_v59 }
 0x1dc   :  { %v1328_v48 = vmul.f32 0.6931472, %v2751_v42  ;;  %2752 = vlog2.f32 %v1209_v41 }
 0x1dd   :  { %v1402_v50 = vmul.f32 %v2307_v45, %v1326_v43  ;;  %2754 = vlog2.f32 %v1033_v44 }
 0x1de   :  { %v1403_v52 = vmul.f32 %v2308_v49, %v1328_v48  ;;  %v2313_v48 = vsel %vm348_vm9, 1.0, %v2840_v60  ;;  %v540_v49 = vld [vmem:[#allocation2 + $0x38] sm:$0xff] }
 0x1df   :  { %v1466_v53 = vadd.f32 %v1402_v50, %v534_v47  ;;  %v1121_v54 = vpop.f32.mrf.mxu2 }
 0x1e0   :  { %v1467_v55 = vadd.f32 %v1403_v52, %v535_v51  ;;  %v1122_v56 = vadd.f32 1e-08, %v1121_v54  ;;  %v1210_v57 = vpop.f32.mrf.mxu3  ;;  %v946_v58 = vpop.f32.mrf.mxu0  ;;  %v2314_v51 = vsel %vm349_vm10, 1.0, %v2840_v60 }
 0x1e1   :  { %1530 = vst [vmem:[#allocation2 + $0x1c8] sm:$0xff] %v1466_v53  ;;  %v947_v62 = vadd.f32 1e-08, %v946_v58  ;;  %v1035_v63 = vpop.f32.mrf.mxu1  ;;  %v541_v53 = vld [vmem:[#allocation2 + $0xc0] sm:$0xff] }
 0x1e2   :  { %v2753_v0 = vpop.eup %2752  ;;  %1531 = vst [vmem:[#allocation2 + $0x170] sm:$0xff] %v1467_v55  ;;  %v1211_v1 = vadd.f32 %v1210_v57, %v1122_v56  ;;  %v285_v55 = vpop.permute.xlu0 %284 }
 0x1e3   :  { %v2755_v2 = vpop.eup %2754  ;;  %v1330_v3 = vmul.f32 0.6931472, %v2753_v0  ;;  %v1036_v4 = vadd.f32 %v1035_v63, %v947_v62  ;;  %vm351_vm12 = vcmp.eq.s32.totalorder %v285_v55, %v3294_v46  ;;  %vm352_vm13 = vcmp.eq.s32.totalorder %v285_v55, %v3306_v59 }
 0x1e4   :  { %v1332_v7 = vmul.f32 0.6931472, %v2755_v2  ;;  %2756 = vlog2.f32 %v1211_v1 }
 0x1e5   :  { %v1404_v9 = vmul.f32 %v2309_v5, %v1330_v3  ;;  %2758 = vlog2.f32 %v1036_v4 }
 0x1e6   :  { %v1405_v11 = vmul.f32 %v2310_v8, %v1332_v7  ;;  %v2315_v7 = vsel %vm350_vm11, 1.0, %v2840_v60  ;;  %v542_v8 = vld [vmem:[#allocation2 + $0x1c0] sm:$0xff] }
 0x1e7   :  { %v1468_v12 = vadd.f32 %v1404_v9, %v536_v6  ;;  %v1124_v13 = vpop.f32.mrf.mxu2 }
 0x1e8   :  { %v1469_v14 = vadd.f32 %v1405_v11, %v537_v10  ;;  %v1125_v15 = vadd.f32 1e-08, %v1124_v13  ;;  %v1213_v16 = vpop.f32.mrf.mxu3  ;;  %v948_v17 = vpop.f32.mrf.mxu0  ;;  %v2316_v10 = vsel %vm351_vm12, 1.0, %v2840_v60 }
 0x1e9   :  { %1532 = vst [vmem:[#allocation2 + $0x178] sm:$0xff] %v1468_v12  ;;  %v949_v19 = vadd.f32 1e-08, %v948_v17  ;;  %v1037_v20 = vpop.f32.mrf.mxu1  ;;  %v543_v12 = vld [vmem:[#allocation2 + $0x158] sm:$0xff] }
 0x1ea   :  { %v2757_v21 = vpop.eup %2756  ;;  %1533 = vst [vmem:[#allocation2 + $0x68] sm:$0xff] %v1469_v14  ;;  %v1214_v22 = vadd.f32 %v1213_v16, %v1125_v15  ;;  %v288_v14 = vpop.permute.xlu1 %287 }
 0x1eb   :  { %v2759_v23 = vpop.eup %2758  ;;  %v1334_v24 = vmul.f32 0.6931472, %v2757_v21  ;;  %v1038_v25 = vadd.f32 %v1037_v20, %v949_v19  ;;  %vm353_vm14 = vcmp.eq.s32.totalorder %v288_v14, %v3294_v46  ;;  %vm354_vm15 = vcmp.eq.s32.totalorder %v288_v14, %v3306_v59 }
 0x1ec   :  { %v1336_v28 = vmul.f32 0.6931472, %v2759_v23  ;;  %2760 = vlog2.f32 %v1214_v22 }
 0x1ed   :  { %v1406_v30 = vmul.f32 %v2311_v26, %v1334_v24  ;;  %2762 = vlog2.f32 %v1038_v25  ;;  %v2317_v24 = vsel %vm352_vm13, 1.0, %v2840_v60  ;;  %v544_v25 = vld [vmem:[#allocation2 + $0x10] sm:$0xff] }
 0x1ee   :  { %v1407_v32 = vmul.f32 %v2312_v29, %v1336_v28  ;;  %v545_v29 = vld [vmem:[#allocation2 + $0x58] sm:$0xff] }
 0x1ef   :  { %v1470_v34 = vadd.f32 %v1406_v30, %v538_v27  ;;  %v1126_v35 = vpop.f32.mrf.mxu2  ;;  %v2318_v27 = vsel %vm353_vm14, 1.0, %v2840_v60 }
 0x1f0   :  { %v1471_v36 = vadd.f32 %v1407_v32, %v539_v31  ;;  %v1127_v37 = vadd.f32 1e-08, %v1126_v35  ;;  %v1215_v38 = vpop.f32.mrf.mxu3  ;;  %v951_v39 = vpop.f32.mrf.mxu0  ;;  %v546_v35 = vld [vmem:[#allocation2 + $0xa0] sm:$0xff] }
 0x1f1   :  { %1534 = vst [vmem:[#allocation2 + $0x190] sm:$0xff] %v1470_v34  ;;  %v952_v40 = vadd.f32 1e-08, %v951_v39  ;;  %v1040_v41 = vpop.f32.mrf.mxu1  ;;  %v2319_v34 = vsel %vm354_vm15, 1.0, %v2840_v60 }
 0x1f2   :  { %v2761_v42 = vpop.eup %2760  ;;  %1535 = vst [vmem:[#allocation2 + $0x198] sm:$0xff] %v1471_v36  ;;  %v1216_v43 = vadd.f32 %v1215_v38, %v1127_v37 }
 0x1f3   :  { %v2763_v44 = vpop.eup %2762  ;;  %v1338_v45 = vmul.f32 0.6931472, %v2761_v42  ;;  %v1041_v47 = vadd.f32 %v1040_v41, %v952_v40 }
 0x1f4   :  { %v1340_v50 = vmul.f32 0.6931472, %v2763_v44  ;;  %2764 = vlog2.f32 %v1216_v43 }
 0x1f5   :  { %v1408_v52 = vmul.f32 %v2313_v48, %v1338_v45  ;;  %2766 = vlog2.f32 %v1041_v47 }
 0x1f6   :  { %v1409_v54 = vmul.f32 %v2314_v51, %v1340_v50 }
 0x1f7   :  { %v1472_v56 = vadd.f32 %v1408_v52, %v540_v49  ;;  %v1129_v57 = vpop.f32.mrf.mxu2 }
 0x1f8   :  { %v1473_v58 = vadd.f32 %v1409_v54, %v541_v53  ;;  %v1130_v61 = vadd.f32 1e-08, %v1129_v57  ;;  %v1218_v62 = vpop.f32.mrf.mxu3  ;;  %v953_v63 = vpop.f32.mrf.mxu0 }
 0x1f9   :  { %1536 = vst [vmem:[#allocation2 + $0x38] sm:$0xff] %v1472_v56  ;;  %v954_v0 = vadd.f32 1e-08, %v953_v63  ;;  %v1042_v3 = vpop.f32.mrf.mxu1 }
 0x1fa   :  { %v2765_v1 = vpop.eup %2764  ;;  %1537 = vst [vmem:[#allocation2 + $0xc0] sm:$0xff] %v1473_v58  ;;  %v1219_v2 = vadd.f32 %v1218_v62, %v1130_v61 }
 0x1fb   :  { %v2767_v4 = vpop.eup %2766  ;;  %v1342_v5 = vmul.f32 0.6931472, %v2765_v1  ;;  %v1043_v6 = vadd.f32 %v1042_v3, %v954_v0 }
 0x1fc   :  { %v1344_v9 = vmul.f32 0.6931472, %v2767_v4  ;;  %2768 = vlog2.f32 %v1219_v2 }
 0x1fd   :  { %v1410_v11 = vmul.f32 %v2315_v7, %v1342_v5  ;;  %2770 = vlog2.f32 %v1043_v6 }
 0x1fe   :  { %v1411_v13 = vmul.f32 %v2316_v10, %v1344_v9 }
 0x1ff   :  { %v1474_v15 = vadd.f32 %v1410_v11, %v542_v8  ;;  %v1131_v16 = vpop.f32.mrf.mxu2 }
 0x200   :  { %v1475_v17 = vadd.f32 %v1411_v13, %v543_v12  ;;  %v1132_v18 = vadd.f32 1e-08, %v1131_v16  ;;  %v1220_v19 = vpop.f32.mrf.mxu3 }
 0x201   :  { %1538 = vst [vmem:[#allocation2 + $0x1c0] sm:$0xff] %v1474_v15 }
 0x202   :  { %v2769_v20 = vpop.eup %2768  ;;  %1539 = vst [vmem:[#allocation2 + $0x158] sm:$0xff] %v1475_v17  ;;  %v1221_v21 = vadd.f32 %v1220_v19, %v1132_v18 }
 0x203   :  { %v2771_v22 = vpop.eup %2770  ;;  %v1346_v23 = vmul.f32 0.6931472, %v2769_v20 }
 0x204   :  { %v1348_v26 = vmul.f32 0.6931472, %v2771_v22  ;;  %2772 = vlog2.f32 %v1221_v21 }
 0x205   :  { %v1412_v28 = vmul.f32 %v2317_v24, %v1346_v23 }
 0x206   :  { %v1413_v30 = vmul.f32 %v2318_v27, %v1348_v26 }
 0x207   :  { %v1476_v31 = vadd.f32 %v1412_v28, %v544_v25 }
 0x208   :  { %v1477_v32 = vadd.f32 %v1413_v30, %v545_v29 }
 0x209   :  { %1540 = vst [vmem:[#allocation2 + $0x10] sm:$0xff] %v1476_v31 }
 0x20a   :  { %v2773_v46 = vpop.eup %2772  ;;  %1541 = vst [vmem:[#allocation2 + $0x58] sm:$0xff] %v1477_v32 }
 0x20b   :  { %v1350_v33 = vmul.f32 0.6931472, %v2773_v46 }
 0x20d   :  { %v1414_v36 = vmul.f32 %v2319_v34, %v1350_v33 }
 0x20f   :  { %v1478_v37 = vadd.f32 %v1414_v36, %v546_v35 }
 0x211   :  { %1542 = vst [vmem:[#allocation2 + $0xa0] sm:$0xff] %v1478_v37 }
 0x212 PF:  { %v1550_v38 = vld [vmem:[#allocation2 + $0x50] sm:$0xff]  ;;  %v1551_v39 = vld [vmem:[#allocation2 + $0x168] sm:$0xff]  ;;  %v1554_v43 = vld [vmem:[#allocation2 + $0x180] sm:$0xff] }
 0x213   :  { %v1546_v40 = vld [vmem:[#allocation2 + $0xb0] sm:$0xff]  ;;  %v1616_v41 = vadd.f32 %v1551_v39, %v1550_v38  ;;  %v1553_v48 = vld [vmem:[#allocation2 + $0x48] sm:$0xff]  ;;  %v1548_v60 = vld [vmem:[#allocation2 + $0xd8] sm:$0xff] }
 0x214   :  { %v1547_v42 = vld [vmem:[#allocation2 + $0x1b0] sm:$0xff]  ;;  %v1549_v49 = vld [vmem:[#allocation2 + $0x18] sm:$0xff]  ;;  %v1560_v55 = vld [vmem:[#allocation2 + $0x108] sm:$0xff] }
 0x215   :  { %v1555_v44 = vld [vmem:[#allocation2 + $0x110] sm:$0xff]  ;;  %v1610_v45 = vadd.f32 %v1547_v42, %v1546_v40  ;;  %1617 = vadd.xlane.f32.xlu1 %v1616_v41  ;;  %v1556_v50 = vld [vmem:[#allocation2 + $0x118] sm:$0xff]  ;;  %v1613_v53 = vadd.f32 %v1549_v49, %v1548_v60  ;;  %v1561_v56 = vld [vmem:[#allocation2 + $0x60] sm:$0xff] }
 0x216   :  { %v1622_v59 = vadd.f32 %v1555_v44, %v1554_v43  ;;  %v1552_v47 = vld [vmem:[#allocation2 + $0x130] sm:$0xff]  ;;  %v1557_v51 = vld [vmem:[#allocation2 + $0x98] sm:$0xff]  ;;  %v1558_v57 = vld [vmem:[#allocation2 + $0x120] sm:$0xff]  ;;  %v1631_v63 = vadd.f32 %v1561_v56, %v1560_v55 }
 0x217   :  { %1611 = vadd.xlane.f32.xlu0 %v1610_v45  ;;  %v1619_v52 = vadd.f32 %v1553_v48, %v1552_v47  ;;  %v1625_v54 = vadd.f32 %v1557_v51, %v1556_v50  ;;  %v1559_v58 = vld [vmem:[#allocation2 + $0x150] sm:$0xff]  ;;  %v1562_v61 = vld [vmem:[#allocation2 + $0xe0] sm:$0xff]  ;;  %v1563_v62 = vld [vmem:[#allocation2 + $0x188] sm:$0xff] }
 0x218   :  { %1623 = vadd.xlane.f32.xlu2 %v1622_v59  ;;  %v1628_v0 = vadd.f32 %v1559_v58, %v1558_v57  ;;  %v1634_v1 = vadd.f32 %v1563_v62, %v1562_v61  ;;  %v1566_v2 = vld [vmem:[#allocation2 + $0x80] sm:$0xff]  ;;  %v1567_v3 = vld [vmem:[#allocation2 + $0x1a8] sm:$0xff]  ;;  %v1564_v4 = vld [vmem:[#allocation2 + $0x138] sm:$0xff] }
 0x219   :  { %v1565_v5 = vld [vmem:[#allocation2 + $0x140] sm:$0xff]  ;;  %v1568_v6 = vld [vmem:[#allocation2 + $0x1b8] sm:$0xff]  ;;  %v1569_v7 = vld [vmem:[#allocation2 + $0x28] sm:$0xff]  ;;  %v1640_v8 = vadd.f32 %v1567_v3, %v1566_v2 }
 0x21a   :  { %v1637_v9 = vadd.f32 %v1565_v5, %v1564_v4  ;;  %v1643_v10 = vadd.f32 %v1569_v7, %v1568_v6  ;;  %v1572_v11 = vld [vmem:[#allocation2 + $0x160] sm:$0xff]  ;;  %v1573_v12 = vld [vmem:[#allocation2 + $0x30] sm:$0xff]  ;;  %v1570_v13 = vld [vmem:[#allocation2 + $0x1e8] sm:$0xff] }
 0x21b   :  { %v1571_v14 = vld [vmem:[#allocation2 + $0xf8] sm:$0xff]  ;;  %v1574_v15 = vld [vmem:[#allocation2 + $0x1e0] sm:$0xff]  ;;  %v1649_v17 = vadd.f32 %v1573_v12, %v1572_v11  ;;  %v1578_v20 = vld [vmem:[#allocation2 + $0x148] sm:$0xff] }
 0x21c   :  { %v1575_v16 = vld [vmem:[#allocation2] sm:$0xff]  ;;  %v1646_v18 = vadd.f32 %v1571_v14, %v1570_v13  ;;  %v1579_v21 = vld [vmem:[#allocation2 + $0x1d0] sm:$0xff]  ;;  %v1577_v23 = vld [vmem:[#allocation2 + $0x8] sm:$0xff] }
 0x21d   :  { %1620 = vadd.xlane.f32.xlu1 %v1619_v52  ;;  %v1652_v19 = vadd.f32 %v1575_v16, %v1574_v15  ;;  %v1576_v22 = vld [vmem:[#allocation2 + $0xf0] sm:$0xff]  ;;  %v1580_v24 = vld [vmem:[#allocation2 + $0x100] sm:$0xff]  ;;  %v1581_v25 = vld [vmem:[#allocation2 + $0xc8] sm:$0xff]  ;;  %v1658_v26 = vadd.f32 %v1579_v21, %v1578_v20 }
 0x21e   :  { %v1655_v27 = vadd.f32 %v1577_v23, %v1576_v22  ;;  %v1661_v28 = vadd.f32 %v1581_v25, %v1580_v24  ;;  %v1584_v29 = vld [vmem:[#allocation2 + $0x20] sm:$0xff]  ;;  %v1585_v30 = vld [vmem:[#allocation2 + $0x128] sm:$0xff]  ;;  %v1583_v32 = vld [vmem:[#allocation2 + $0x1f8] sm:$0xff] }
 0x21f   :  { %1614 = vadd.xlane.f32.xlu0 %v1613_v53  ;;  %v1582_v31 = vld [vmem:[#allocation2 + $0x40] sm:$0xff]  ;;  %v1587_v33 = vld [vmem:[#allocation2 + $0x1f0] sm:$0xff]  ;;  %v1667_v34 = vadd.f32 %v1585_v30, %v1584_v29  ;;  %v1588_v39 = vld [vmem:[#allocation2 + $0xe8] sm:$0xff] }
 0x220   :  { %1626 = vadd.xlane.f32.xlu2 %v1625_v54  ;;  %v1586_v46 = vld [vmem:[#allocation2 + $0x1a0] sm:$0xff]  ;;  %v1664_v35 = vadd.f32 %v1583_v32, %v1582_v31  ;;  %v1590_v37 = vld [vmem:[#allocation2 + $0x70] sm:$0xff]  ;;  %v1589_v40 = vld [vmem:[#allocation2 + $0x78] sm:$0xff] }
 0x221   :  { %v1670_v36 = vadd.f32 %v1587_v33, %v1586_v46  ;;  %v1591_v38 = vld [vmem:[#allocation2 + $0x90] sm:$0xff]  ;;  %v1592_v41 = vld [vmem:[#allocation2 + $0x1d8] sm:$0xff]  ;;  %v1673_v44 = vadd.f32 %v1589_v40, %v1588_v39  ;;  %v1596_v59 = vld [vmem:[#allocation2 + $0xa8] sm:$0xff] }
 0x222   :  { %v1593_v42 = vld [vmem:[#allocation2 + $0xd0] sm:$0xff]  ;;  %v1676_v43 = vadd.f32 %v1591_v38, %v1590_v37  ;;  %v1597_v47 = vld [vmem:[#allocation2 + $0x1c8] sm:$0xff]  ;;  %v1594_v48 = vld [vmem:[#allocation2 + $0xb8] sm:$0xff] }
 0x223   :  { %v1679_v45 = vadd.f32 %v1593_v42, %v1592_v41  ;;  %v1595_v60 = vld [vmem:[#allocation2 + $0x88] sm:$0xff]  ;;  %v1598_v49 = vld [vmem:[#allocation2 + $0x170] sm:$0xff]  ;;  %v1599_v50 = vld [vmem:[#allocation2 + $0x178] sm:$0xff]  ;;  %v1685_v51 = vadd.f32 %v1597_v47, %v1596_v59 }
 0x224   :  { %v1682_v52 = vadd.f32 %v1595_v60, %v1594_v48  ;;  %v1688_v53 = vadd.f32 %v1599_v50, %v1598_v49  ;;  %v3580_v54 = vld [vmem:[%s4715_s3 + $0x10] sm:$0xff]  ;;  %v1602_v55 = vld [vmem:[#allocation2 + $0x198] sm:$0xff]  ;;  %v1600_v57 = vld [vmem:[#allocation2 + $0x68] sm:$0xff] }
 0x225   :  { %1632 = vadd.xlane.f32.xlu1 %v1631_v63  ;;  %v1603_v56 = vld [vmem:[#allocation2 + $0x38] sm:$0xff]  ;;  %v1601_v58 = vld [vmem:[#allocation2 + $0x190] sm:$0xff]  ;;  %v1604_v61 = vld [vmem:[#allocation2 + $0xc0] sm:$0xff]  ;;  %2774 = vrcp.f32 %v3580_v54  ;;  %vm1773_vm0 = vweird.f32 %v3580_v54  ;;  %v1777_v21 = vand.u32 2147483647, %v3580_v54 }
 0x226   :  { %v1605_v62 = vld [vmem:[#allocation2 + $0x1c0] sm:$0xff]  ;;  %v1608_v4 = vld [vmem:[#allocation2 + $0x58] sm:$0xff]  ;;  %v3608_v12 = vld [vmem:[%s4715_s3 + $0x8] sm:$0xff] }
 0x227   :  { %1629 = vadd.xlane.f32.xlu0 %v1628_v0  ;;  %v3586_v63 = vld [vmem:[%s4715_s3] sm:$0xff]  ;;  %v1694_v0 = vadd.f32 %v1603_v56, %v1602_v55  ;;  %v1697_v2 = vadd.f32 %v1605_v62, %v1604_v61  ;;  %v1606_v7 = vld [vmem:[#allocation2 + $0x158] sm:$0xff]  ;;  %v3627_v23 = vld [vmem:[%s4715_s3 + $0x28] sm:$0xff]  ;;  %vm3661_vm5 = vcmp.eq.f32.partialorder %v1777_v21, 8.507059e+37  ;;  %vm1758_vm15 = vweird.f32 %v3608_v12 }
 0x228   :  { %1635 = vadd.xlane.f32.xlu2 %v1634_v1  ;;  %2776 = vrcp.f32 %v3586_v63  ;;  %v1691_v1 = vadd.f32 %v1601_v58, %v1600_v57  ;;  %v1609_v5 = vld [vmem:[#allocation2 + $0xa0] sm:$0xff]  ;;  %v3603_v11 = vld [vmem:[%s4715_s3 + $0x18] sm:$0xff]  ;;  %v3637_v25 = vld [vmem:[%s4715_s3 + $0x30] sm:$0xff]  ;;  %vm1743_vm2 = vweird.f32 %v3586_v63  ;;  %v1749_v33 = vand.u32 2147483648, %v3586_v63 }
 0x229   :  { %v1703_v13 = vadd.f32 %v1609_v5, %v1608_v4  ;;  %v3632_v24 = vld [vmem:[%s4715_s3 + $0x38] sm:$0xff]  ;;  %v1747_v40 = vand.u32 2147483647, %v3586_v63  ;;  %vm1788_vm9 = vweird.f32 %v3603_v11  ;;  %v3689_v60 = vld [vmem:[%s4715_s3 + $0x40] sm:$0xff]  ;;  %v1762_v5 = vand.u32 2147483647, %v3608_v12 }
 0x22a   :  { %v1750_v48 = vor.u32 1.1754944e-38, %v1749_v33 }
 0x22b   :  { %v3589_v3 = vpop.eup %2774  ;;  %vm3713_vm12 = vcmp.eq.f32.partialorder %v1747_v40, 8.507059e+37 }
 0x22c   :  { %vm1774_vm1 = vweird.f32 %v3589_v3 }
 0x22d   :  { %1641 = vadd.xlane.f32.xlu1 %v1640_v8  ;;  %v1607_v8 = vld [vmem:[#allocation2 + $0x10] sm:$0xff]  ;;  %vm3657_vm4 = vmor %vm1773_vm0, %vm1774_vm1 }
 0x22e   :  { %v3591_v6 = vpop.eup %2776  ;;  %v1700_v15 = vadd.f32 %v1607_v8, %v1606_v7 }
 0x22f   :  { %1638 = vadd.xlane.f32.xlu0 %v1637_v9  ;;  %v1769_v9 = vmul.f32 %v3589_v3, %v3580_v54  ;;  %v1739_v14 = vmul.f32 %v3591_v6, %v3586_v63  ;;  %vm1744_vm3 = vweird.f32 %v3591_v6 }
 0x230   :  { %1644 = vadd.xlane.f32.xlu2 %v1643_v10  ;;  %v3598_v10 = vld [vmem:[%s4715_s3 + $0x20] sm:$0xff]  ;;  %vm3667_vm6 = vmor %vm1743_vm2, %vm1744_vm3  ;;  %vm3767_vm3 = vcmp.eq.f32.partialorder %v1762_v5, 8.507059e+37 }
 0x231   :  { %2778 = vrcp.f32 %v3598_v10  ;;  %v1770_v16 = vsub.f32 1.0, %v1769_v9  ;;  %vm1803_vm7 = vweird.f32 %v3598_v10 }
 0x232   :  { %2780 = vrcp.f32 %v3603_v11 }
 0x233   :  { %2782 = vrcp.f32 %v3608_v12  ;;  %v1771_v20 = vmul.f32 %v3589_v3, %v1770_v16 }
 0x234   :  { %2784 = vrcp.f32 %v3627_v23 }
 0x235   :  { %1650 = vadd.xlane.f32.xlu1 %v1649_v17  ;;  %v1740_v17 = vsub.f32 1.0, %v1739_v14  ;;  %2786 = vrcp.f32 %v3632_v24  ;;  %v1772_v46 = vadd.f32 %v3589_v3, %v1771_v20  ;;  %v1822_v14 = vand.u32 2147483647, %v3627_v23 }
 0x236   :  { %2788 = vrcp.f32 %v3637_v25 }
 0x237   :  { %1647 = vadd.xlane.f32.xlu0 %v1646_v18  ;;  %v3615_v18 = vpop.eup %2778  ;;  %v1776_v47 = vsel %vm3657_vm4, %v3589_v3, %v1772_v46  ;;  %2790 = vrcp.f32 %v3689_v60  ;;  %vm1818_vm4 = vweird.f32 %v3627_v23  ;;  %v1854_v46 = vand.u32 2147483648, %v3632_v24 }
 0x238   :  { %1653 = vadd.xlane.f32.xlu2 %v1652_v19  ;;  %v3617_v19 = vpop.eup %2780  ;;  %v1799_v22 = vmul.f32 %v3615_v18, %v3598_v10  ;;  %vm1804_vm8 = vweird.f32 %v3615_v18 }
 0x239   :  { %v1784_v29 = vmul.f32 %v3617_v19, %v3603_v11  ;;  %vm1789_vm10 = vweird.f32 %v3617_v19  ;;  %vm3703_vm11 = vmor %vm1803_vm7, %vm1804_vm8  ;;  %vm3789_vm7 = vcmp.eq.f32.partialorder %v1822_v14, 8.507059e+37 }
 0x23a   :  { %v1800_v30 = vsub.f32 1.0, %v1799_v22  ;;  %vm3725_vm14 = vmor %vm1788_vm9, %vm1789_vm10  ;;  %vm1833_vm10 = vweird.f32 %v3637_v25 }
 0x23b   :  { %v1785_v31 = vsub.f32 1.0, %v1784_v29 }
 0x23c   :  { %v1801_v37 = vmul.f32 %v3615_v18, %v1800_v30  ;;  %v3786_v30 = vld [vmem:[%s4715_s3 + $0x50] sm:$0xff] }
 0x23d   :  { %1659 = vadd.xlane.f32.xlu1 %v1658_v26  ;;  %v3639_v26 = vpop.eup %2782  ;;  %v1786_v41 = vmul.f32 %v3617_v19, %v1785_v31  ;;  %2792 = vrcp.f32 %v3786_v30 }
 0x23e   :  { %v1754_v32 = vmul.f32 %v3639_v26, %v3608_v12  ;;  %v3674_v42 = vpop.eup %2784  ;;  %vm1759_vm0 = vweird.f32 %v3639_v26 }
 0x23f   :  { %1656 = vadd.xlane.f32.xlu0 %v1655_v27  ;;  %v1779_v27 = vand.u32 2147483648, %v3580_v54  ;;  %v3679_v59 = vpop.eup %2786  ;;  %v1787_v55 = vadd.f32 %v3617_v19, %v1786_v41  ;;  %v1814_v57 = vmul.f32 %v3674_v42, %v3627_v23  ;;  %vm3749_vm2 = vmor %vm1758_vm15, %vm1759_vm0  ;;  %vm2218_vm15 = vcmask 7168  }
 0x240   :  { %1662 = vadd.xlane.f32.xlu2 %v1661_v28  ;;  %v1741_v28 = vmul.f32 %v3591_v6, %v1740_v17  ;;  %v3691_v49 = vpop.eup %2788  ;;  %v1844_v58 = vmul.f32 %v3679_v59, %v3632_v24  ;;  %vm1849_vm8 = vweird.f32 %v3679_v59 }
 0x241   :  { %v1780_v38 = vor.u32 1.1754944e-38, %v1779_v27  ;;  %v1791_v7 = vsel %vm3725_vm14, %v3617_v19, %v1787_v55  ;;  %v3759_v16 = vpop.eup %2790  ;;  %v1824_v27 = vand.u32 2147483648, %v3627_v23  ;;  %v1852_v23 = vand.u32 2147483647, %v3632_v24 }
 0x242   :  { %v1845_v9 = vsub.f32 1.0, %v1844_v58  ;;  %v1859_v29 = vmul.f32 %v3759_v16, %v3689_v60  ;;  %vm1864_vm14 = vweird.f32 %v3759_v16  ;;  %v1899_v55 = vand.u32 2147483648, %v3786_v30 }
 0x244   :  { %v1846_v22 = vmul.f32 %v3679_v59, %v1845_v9  ;;  %v1860_v33 = vsub.f32 1.0, %v1859_v29 }
 0x245   :  { %1668 = vadd.xlane.f32.xlu1 %v1667_v34  ;;  %v3805_v34 = vld [vmem:[%s4715_s3 + $0x48] sm:$0xff] }
 0x246   :  { %v1861_v41 = vmul.f32 %v3759_v16, %v1860_v33  ;;  %2794 = vrcp.f32 %v3805_v34  ;;  %v1884_v58 = vand.u32 2147483648, %v3805_v34 }
 0x247   :  { %1665 = vadd.xlane.f32.xlu0 %v1664_v35  ;;  %v1847_v35 = vadd.f32 %v3679_v59, %v1846_v22 }
 0x248   :  { %1671 = vadd.xlane.f32.xlu2 %v1670_v36  ;;  %v1742_v36 = vadd.f32 %v3591_v6, %v1741_v28 }
 0x24a   :  { %v1746_v50 = vsel %vm3667_vm6, %v3591_v6, %v1742_v36  ;;  %v1764_v6 = vand.u32 2147483648, %v3608_v12  ;;  %vm1848_vm6 = vweird.f32 %v3632_v24  ;;  %v1837_v36 = vand.u32 2147483647, %v3637_v25 }
 0x24b   :  { %v3755_v12 = vsel %vm3713_vm12, %v1750_v48, %v1746_v50  ;;  %vm3818_vm12 = vmor %vm1848_vm6, %vm1849_vm8  ;;  %v3847_v48 = vld [vmem:[%s4715_s3 + $0x60] sm:$0xff]  ;;  %v1855_v50 = vor.u32 1.1754944e-38, %v1854_v46  ;;  %vm1878_vm6 = vweird.f32 %v3805_v34 }
 0x24c   :  { %v1765_v20 = vor.u32 1.1754944e-38, %v1764_v6  ;;  %v1882_v6 = vand.u32 2147483647, %v3805_v34 }
 0x24d   :  { %1677 = vadd.xlane.f32.xlu1 %v1676_v43  ;;  %v1807_v43 = vand.u32 2147483647, %v3598_v10 }
 0x24f   :  { %1674 = vadd.xlane.f32.xlu0 %v1673_v44  ;;  %v1809_v44 = vand.u32 2147483648, %v3598_v10  ;;  %vm3717_vm13 = vcmp.eq.f32.partialorder %v1807_v43, 8.507059e+37  ;;  %v3747_v10 = vsel %vm3661_vm5, %v1780_v38, %v1776_v47  ;;  %vm1819_vm5 = vweird.f32 %v3674_v42  ;;  %v3814_v38 = vld [vmem:[%s4715_s3 + $0x58] sm:$0xff]  ;;  %v3829_v43 = vld [vmem:[%s4715_s3 + $0x68] sm:$0xff] }
 0x250   :  { %1680 = vadd.xlane.f32.xlu2 %v1679_v45  ;;  %v1755_v45 = vsub.f32 1.0, %v1754_v32  ;;  %vm3795_vm9 = vmor %vm1818_vm4, %vm1819_vm5  ;;  %v1869_v47 = vand.u32 2147483648, %v3689_v60  ;;  %2796 = vrcp.f32 %v3814_v38  ;;  %vm1838_vm4 = vcmp.eq.f32.partialorder %v1837_v36, 8.507059e+37  ;;  %v3938_v32 = vld [vmem:[%s4715_s3 + $0x70] sm:$0xff] }
 0x251   :  { %v1810_v63 = vor.u32 1.1754944e-38, %v1809_v44  ;;  %v1825_v44 = vor.u32 1.1754944e-38, %v1824_v27  ;;  %2798 = vrcp.f32 %v3829_v43  ;;  %v1914_v33 = vand.u32 2147483648, %v3814_v38 }
 0x252   :  { %v1756_v56 = vmul.f32 %v3639_v26, %v1755_v45  ;;  %2800 = vrcp.f32 %v3847_v48  ;;  %v1942_v36 = vand.u32 2147483647, %v3829_v43 }
 0x253   :  { %2802 = vrcp.f32 %v3938_v32 }
 0x254   :  { %v3743_v8 = vadd.f32 %v3639_v26, %v1756_v56 }
 0x255   :  { %1686 = vadd.xlane.f32.xlu1 %v1685_v51  ;;  %v1802_v51 = vadd.f32 %v3615_v18, %v1801_v37  ;;  %v1839_v37 = vand.u32 2147483648, %v3637_v25 }
 0x256   :  { %v1761_v21 = vsel %vm3749_vm2, %v3639_v26, %v3743_v8 }
 0x257   :  { %1683 = vadd.xlane.f32.xlu0 %v1682_v52  ;;  %v1792_v52 = vand.u32 2147483647, %v3603_v11  ;;  %v1806_v3 = vsel %vm3703_vm11, %v3615_v18, %v1802_v51  ;;  %vm1834_vm11 = vweird.f32 %v3691_v49  ;;  %v1867_v51 = vand.u32 2147483647, %v3689_v60 }
 0x258   :  { %1689 = vadd.xlane.f32.xlu2 %v1688_v53  ;;  %v1794_v53 = vand.u32 2147483648, %v3603_v11  ;;  %v3763_v17 = vsel %vm3717_vm13, %v1810_v63, %v1806_v3  ;;  %vm1863_vm13 = vweird.f32 %v3689_v60  ;;  %vm3838_vm0 = vmor %vm1833_vm10, %vm1834_vm11  ;;  %v3873_v60 = vsel %vm3767_vm3, %v1765_v20, %v1761_v21 }
 0x259   :  { %vm1793_vm1 = vcmp.eq.f32.partialorder %v1792_v52, 8.507059e+37  ;;  %v1840_v52 = vor.u32 1.1754944e-38, %v1839_v37  ;;  %vm3859_vm2 = vmor %vm1863_vm13, %vm1864_vm14  ;;  %vm1868_vm5 = vcmp.eq.f32.partialorder %v1867_v51, 8.507059e+37  ;;  %vm1893_vm3 = vweird.f32 %v3786_v30 }
 0x25a   :  { %v1795_v4 = vor.u32 1.1754944e-38, %v1794_v53  ;;  %v3905_v11 = vor.u32 1.1754944e-38, %v1884_v58  ;;  %v1912_v21 = vand.u32 2147483647, %v3814_v38  ;;  %vm3929_vm10 = vcmp.eq.f32.partialorder %v1882_v6, 8.507059e+37 }
 0x25b   :  { %v1929_v58 = vand.u32 2147483648, %v3847_v48 }
 0x25c   :  { %v3765_v18 = vsel %vm1793_vm1, %v1795_v4, %v1791_v7  ;;  %vm1853_vm1 = vcmp.eq.f32.partialorder %v1852_v23, 8.507059e+37  ;;  %v3896_v4 = vor.u32 1.1754944e-38, %v1899_v55 }
 0x25d   :  { %1695 = vadd.xlane.f32.xlu1 %v1694_v0 }
 0x25f   :  { %1692 = vadd.xlane.f32.xlu0 %v1691_v1  ;;  %v1815_v1 = vsub.f32 1.0, %v1814_v57  ;;  %v1870_v57 = vor.u32 1.1754944e-38, %v1869_v47 }
 0x260   :  { %1698 = vadd.xlane.f32.xlu2 %v1697_v2  ;;  %v1829_v2 = vmul.f32 %v3691_v49, %v3637_v25  ;;  %v1851_v25 = vsel %vm3818_vm12, %v3679_v59, %v1847_v35  ;;  %v3869_v59 = vpop.eup %2792  ;;  %vm1938_vm12 = vweird.f32 %v3829_v43 }
 0x261   :  { %v3880_v61 = vsel %vm1853_vm1, %v1855_v50, %v1851_v25  ;;  %v1889_v62 = vmul.f32 %v3869_v59, %v3786_v30  ;;  %v3887_v63 = vpop.eup %2794  ;;  %v1927_v25 = vand.u32 2147483647, %v3847_v48 }
 0x262   :  { %v1874_v5 = vmul.f32 %v3887_v63, %v3805_v34  ;;  %vm1879_vm11 = vweird.f32 %v3887_v63  ;;  %v1915_v34 = vor.u32 1.1754944e-38, %v1914_v33  ;;  %v4117_v33 = vld [vmem:[%s4715_s3 + $0x90] sm:$0xff] }
 0x263   :  { %v1890_v3 = vsub.f32 1.0, %v1889_v62  ;;  %vm3972_vm1 = vmor %vm1878_vm6, %vm1879_vm11  ;;  %vm4007_vm6 = vcmp.eq.f32.partialorder %v1942_v36, 8.507059e+37  ;;  %vm4057_vm11 = vcmp.eq.f32.partialorder %v1927_v25, 8.507059e+37 }
 0x264   :  { %v1875_v20 = vsub.f32 1.0, %v1874_v5 }
 0x265   :  { %1704 = vadd.xlane.f32.xlu1 %v1703_v13  ;;  %v1816_v13 = vmul.f32 %v3674_v42, %v1815_v1  ;;  %v1897_v1 = vand.u32 2147483647, %v3786_v30  ;;  %v1891_v29 = vmul.f32 %v3869_v59, %v1890_v3 }
 0x267   :  { %1701 = vadd.xlane.f32.xlu0 %v1700_v15  ;;  %v1830_v15 = vsub.f32 1.0, %v1829_v2  ;;  %v1817_v26 = vadd.f32 %v3674_v42, %v1816_v13  ;;  %v3894_v2 = vpop.eup %2796  ;;  %vm3919_vm8 = vcmp.eq.f32.partialorder %v1897_v1, 8.507059e+37  ;;  %v1892_v39 = vadd.f32 %v3869_v59, %v1891_v29 }
 0x268   :  { %v3901_v7 = vpop.eup %2798  ;;  %v1904_v13 = vmul.f32 %v3894_v2, %v3814_v38  ;;  %vm1909_vm13 = vweird.f32 %v3894_v2 }
 0x269   :  { %v1831_v28 = vmul.f32 %v3691_v49, %v1830_v15  ;;  %v1821_v24 = vsel %vm3795_vm9, %v3674_v42, %v1817_v26  ;;  %v1862_v42 = vadd.f32 %v3759_v16, %v1861_v41  ;;  %v3910_v14 = vpop.eup %2800  ;;  %v1934_v22 = vmul.f32 %v3901_v7, %v3829_v43 }
 0x26a   :  { %v3877_v56 = vsel %vm3789_vm7, %v1825_v44, %v1821_v24  ;;  %vm1908_vm7 = vweird.f32 %v3814_v38  ;;  %v1905_v31 = vsub.f32 1.0, %v1904_v13  ;;  %vm1894_vm9 = vweird.f32 %v3869_v59  ;;  %v4040_v5 = vpop.eup %2802 }
 0x26b   :  { %v1832_v40 = vadd.f32 %v3691_v49, %v1831_v28  ;;  %v1919_v23 = vmul.f32 %v3910_v14, %v3847_v48  ;;  %vm3960_vm14 = vmor %vm1893_vm3, %vm1894_vm9  ;;  %v1944_v41 = vand.u32 2147483648, %v3829_v43  ;;  %v1949_v13 = vmul.f32 %v4040_v5, %v3938_v32 }
 0x26c   :  { %v1906_v46 = vmul.f32 %v3894_v2, %v1905_v31  ;;  %v1896_v62 = vsel %vm3960_vm14, %v3869_v59, %v1892_v39  ;;  %v4038_v59 = vld [vmem:[%s4715_s3 + $0x88] sm:$0xff] }
 0x26d   :  { %v1836_v54 = vsel %vm3838_vm0, %v3691_v49, %v1832_v40  ;;  %v1866_v49 = vsel %vm3859_vm2, %v3759_v16, %v1862_v42  ;;  %v1920_v37 = vsub.f32 1.0, %v1919_v23  ;;  %vm1939_vm0 = vweird.f32 %v3901_v7 }
 0x26e   :  { %v3889_v0 = vsel %vm1838_vm4, %v1840_v52, %v1836_v54  ;;  %v3903_v9 = vsel %vm1868_vm5, %v1870_v57, %v1866_v49  ;;  %v1907_v30 = vadd.f32 %v3894_v2, %v1906_v46  ;;  %vm3977_vm2 = vcmp.eq.f32.partialorder %v1912_v21, 8.507059e+37  ;;  %vm3986_vm4 = vmor %vm1908_vm7, %vm1909_vm13  ;;  %v3996_v52 = vld [vmem:[%s4715_s3 + $0x80] sm:$0xff] }
 0x26f   :  { %v1921_v47 = vmul.f32 %v3910_v14, %v1920_v37  ;;  %vm1923_vm5 = vweird.f32 %v3847_v48  ;;  %vm4003_vm3 = vmor %vm1938_vm12, %vm1939_vm0  ;;  %vm1924_vm7 = vweird.f32 %v3910_v14  ;;  %v1945_v1 = vor.u32 1.1754944e-38, %v1944_v41 }
 0x270   :  { %2804 = vrcp.f32 %v3996_v52  ;;  %vm4053_vm9 = vmor %vm1923_vm5, %vm1924_vm7  ;;  %v4070_v48 = vsel %vm3919_vm8, %v3896_v4, %v1896_v62  ;;  %vm1953_vm8 = vweird.f32 %v3938_v32  ;;  %v1987_v29 = vand.u32 2147483647, %v3996_v52 }
 0x271   :  { %vm1954_vm13 = vweird.f32 %v4040_v5  ;;  %vm1998_vm0 = vweird.f32 %v4038_v59 }
 0x276   :  { %v4104_v26 = vpop.eup %2804 }
 0x277   :  { %v1979_v37 = vmul.f32 %v4104_v26, %v3996_v52  ;;  %vm1984_vm5 = vweird.f32 %v4104_v26 }
 0x288   :  { %v1618_v8 = vpop.xlane.xlu1 %1617 }
 0x289   :  { %v1782_v15 = vmul.f32 %v3747_v10, %v1618_v8  ;;  %v1876_v10 = vmul.f32 %v3887_v63, %v1875_v20  ;;  %v1959_v8 = vand.u32 2147483648, %v3938_v32 }
 0x28a   :  { %v1612_v16 = vpop.xlane.xlu0 %1611 }
 0x28b   :  { %v1624_v19 = vpop.xlane.xlu2 %1623  ;;  %v1752_v27 = vmul.f32 %v3755_v12, %v1612_v16  ;;  %2221 = vst.msk [vmem:[%s4718_s6 + $0x10] sm:$0xff] %vm2218_vm15, %v1782_v15  ;;  %v1877_v24 = vadd.f32 %v3887_v63, %v1876_v10  ;;  %v1957_v15 = vand.u32 2147483647, %v3938_v32  ;;  %v4078_v16 = vld [vmem:[%s4715_s3 + $0x98] sm:$0xff]  ;;  %v4172_v32 = vld [vmem:[%s4715_s3 + $0xa0] sm:$0xff] }
 0x28c   :  { %v1812_v28 = vmul.f32 %v3763_v17, %v1624_v19  ;;  %v1935_v17 = vsub.f32 1.0, %v1934_v22  ;;  %v1950_v22 = vsub.f32 1.0, %v1949_v13  ;;  %v2034_v62 = vand.u32 2147483648, %v4078_v16 }
 0x28d   :  { %2219 = vst.msk [vmem:[%s4718_s6] sm:$0xff] %vm2218_vm15, %v1752_v27  ;;  %v1881_v3 = vsel %vm3972_vm1, %v3887_v63, %v1877_v24  ;;  %vm4108_vm12 = vcmp.eq.f32.partialorder %v1957_v15, 8.507059e+37  ;;  %v1980_v24 = vsub.f32 1.0, %v1979_v37  ;;  %vm4154_vm1 = vmor %vm1953_vm8, %vm1954_vm13  ;;  %v2017_v15 = vand.u32 2147483647, %v4117_v33 }
 0x28e   :  { %2223 = vst.msk [vmem:[%s4718_s6 + $0x20] sm:$0xff] %vm2218_vm15, %v1812_v28  ;;  %v1936_v35 = vmul.f32 %v3901_v7, %v1935_v17  ;;  %v4083_v19 = vsel %vm3929_vm10, %v3905_v11, %v1881_v3  ;;  %v1989_v11 = vand.u32 2147483648, %v3996_v52  ;;  %v4099_v28 = vor.u32 1.1754944e-38, %v1959_v8 }
 0x28f   :  { %vm1983_vm10 = vweird.f32 %v3996_v52  ;;  %v1981_v25 = vmul.f32 %v4104_v26, %v1980_v24 }
 0x290   :  { %v1621_v50 = vpop.xlane.xlu1 %1620  ;;  %v1937_v51 = vadd.f32 %v3901_v7, %v1936_v35  ;;  %v4134_v40 = vor.u32 1.1754944e-38, %v1989_v11 }
 0x291   :  { %v1797_v53 = vmul.f32 %v3765_v18, %v1621_v50  ;;  %v4016_v18 = vld [vmem:[%s4715_s3 + $0x78] sm:$0xff] }
 0x292   :  { %v1615_v54 = vpop.xlane.xlu0 %1614  ;;  %v1941_v63 = vsel %vm4003_vm3, %v3901_v7, %v1937_v51  ;;  %2806 = vrcp.f32 %v4016_v18  ;;  %v1930_v7 = vor.u32 1.1754944e-38, %v1929_v58  ;;  %v1972_v23 = vand.u32 2147483647, %v4016_v18 }
 0x293   :  { %v1627_v38 = vpop.xlane.xlu2 %1626  ;;  %v1767_v49 = vmul.f32 %v3873_v60, %v1615_v54  ;;  %2222 = vst.msk [vmem:[%s4718_s6 + $0x18] sm:$0xff] %vm2218_vm15, %v1797_v53  ;;  %v1911_v60 = vsel %vm3986_vm4, %v3894_v2, %v1907_v30  ;;  %2808 = vrcp.f32 %v4038_v59  ;;  %v4093_v20 = vsel %vm4007_vm6, %v1945_v1, %v1941_v63  ;;  %vm4195_vm6 = vmor %vm1983_vm10, %vm1984_vm5 }
 0x294   :  { %v1827_v43 = vmul.f32 %v3877_v56, %v1627_v38  ;;  %v1922_v56 = vadd.f32 %v3910_v14, %v1921_v47  ;;  %v4087_v4 = vsel %vm3977_vm2, %v1915_v34, %v1911_v60  ;;  %2810 = vrcp.f32 %v4078_v16 }
 0x295   :  { %2220 = vst.msk [vmem:[%s4718_s6 + $0x8] sm:$0xff] %vm2218_vm15, %v1767_v49  ;;  %v1974_v46 = vand.u32 2147483648, %v4016_v18  ;;  %vm1968_vm14 = vweird.f32 %v4016_v18  ;;  %2812 = vrcp.f32 %v4117_v33  ;;  %vm4158_vm2 = vcmp.eq.f32.partialorder %v1987_v29, 8.507059e+37 }
 0x296   :  { %2224 = vst.msk [vmem:[%s4718_s6 + $0x28] sm:$0xff] %vm2218_vm15, %v1827_v43  ;;  %v1926_v21 = vsel %vm4053_vm9, %v3910_v14, %v1922_v56  ;;  %v1951_v14 = vmul.f32 %v4040_v5, %v1950_v22  ;;  %vm4162_vm4 = vcmp.eq.f32.partialorder %v1972_v23, 8.507059e+37  ;;  %v2002_v34 = vand.u32 2147483647, %v4038_v59  ;;  %v4279_v23 = vld [vmem:[%s4715_s3 + $0xa8] sm:$0xff] }
 0x297   :  { %v4132_v39 = vsel %vm4057_vm11, %v1930_v7, %v1926_v21  ;;  %v1975_v50 = vor.u32 1.1754944e-38, %v1974_v46  ;;  %v2004_v53 = vand.u32 2147483648, %v4038_v59  ;;  %v2032_v54 = vand.u32 2147483647, %v4078_v16 }
 0x298   :  { %v1633_v27 = vpop.xlane.xlu1 %1632  ;;  %v4119_v35 = vpop.eup %2806  ;;  %v1952_v41 = vadd.f32 %v4040_v5, %v1951_v14  ;;  %v1982_v43 = vadd.f32 %v4104_v26, %v1981_v25  ;;  %2814 = vrcp.f32 %v4172_v32  ;;  %vm2028_vm11 = vweird.f32 %v4078_v16 }
 0x299   :  { %v1857_v31 = vmul.f32 %v3880_v61, %v1633_v27  ;;  %vm1969_vm3 = vweird.f32 %v4119_v35  ;;  %vm4219_vm8 = vcmp.eq.f32.partialorder %v2002_v34, 8.507059e+37  ;;  %v2005_v13 = vor.u32 1.1754944e-38, %v2004_v53 }
 0x29a   :  { %v1630_v10 = vpop.xlane.xlu0 %1629  ;;  %v1956_v49 = vsel %vm4154_vm1, %v4040_v5, %v1952_v41  ;;  %vm4209_vm7 = vmor %vm1968_vm14, %vm1969_vm3  ;;  %vm4238_vm10 = vcmp.eq.f32.partialorder %v2032_v54, 8.507059e+37  ;;  %v1986_v27 = vsel %vm4195_vm6, %v4104_v26, %v1982_v43  ;;  %vm2013_vm14 = vweird.f32 %v4117_v33 }
 0x29b   :  { %v1636_v12 = vpop.xlane.xlu2 %1635  ;;  %v1842_v61 = vmul.f32 %v3889_v0, %v1630_v10  ;;  %2226 = vst.msk [vmem:[%s4718_s6 + $0x38] sm:$0xff] %vm2218_vm15, %v1857_v31  ;;  %v1964_v0 = vmul.f32 %v4119_v35, %v4016_v18  ;;  %v2035_v31 = vor.u32 1.1754944e-38, %v2034_v62  ;;  %v2019_v26 = vand.u32 2147483648, %v4117_v33 }
 0x29c   :  { %v1872_v36 = vmul.f32 %v3903_v9, %v1636_v12  ;;  %v4139_v9 = vpop.eup %2808  ;;  %v2047_v30 = vand.u32 2147483647, %v4172_v32 }
 0x29d   :  { %2225 = vst.msk [vmem:[%s4718_s6 + $0x30] sm:$0xff] %vm2218_vm15, %v1842_v61  ;;  %v1965_v45 = vsub.f32 1.0, %v1964_v0  ;;  %v1994_v42 = vmul.f32 %v4139_v9, %v4038_v59  ;;  %v4174_v51 = vpop.eup %2810  ;;  %vm1999_vm9 = vweird.f32 %v4139_v9  ;;  %v2020_v34 = vor.u32 1.1754944e-38, %v2019_v26 }
 0x29e   :  { %2227 = vst.msk [vmem:[%s4718_s6 + $0x40] sm:$0xff] %vm2218_vm15, %v1872_v36  ;;  %v2024_v57 = vmul.f32 %v4174_v51, %v4078_v16  ;;  %v4201_v6 = vpop.eup %2812  ;;  %vm2029_vm13 = vweird.f32 %v4174_v51 }
 0x29f   :  { %v1966_v38 = vmul.f32 %v4119_v35, %v1965_v45  ;;  %v1995_v55 = vsub.f32 1.0, %v1994_v42  ;;  %v2009_v11 = vmul.f32 %v4201_v6, %v4117_v33  ;;  %v4263_v10 = vpop.eup %2814  ;;  %vm2014_vm1 = vweird.f32 %v4201_v6  ;;  %vm4293_vm5 = vmor %vm2028_vm11, %vm2029_vm13 }
 0x2a0   :  { %v1642_v58 = vpop.xlane.xlu1 %1641  ;;  %v2025_v2 = vsub.f32 1.0, %v2024_v57  ;;  %v2039_v17 = vmul.f32 %v4263_v10, %v4172_v32  ;;  %v2049_v45 = vand.u32 2147483648, %v4172_v32  ;;  %vm2044_vm3 = vweird.f32 %v4263_v10 }
 0x2a1   :  { %v1902_v1 = vmul.f32 %v4070_v48, %v1642_v58  ;;  %v1967_v5 = vadd.f32 %v4119_v35, %v1966_v38  ;;  %v1996_v63 = vmul.f32 %v4139_v9, %v1995_v55  ;;  %v2010_v12 = vsub.f32 1.0, %v2009_v11 }
 0x2a2   :  { %v1639_v3 = vpop.xlane.xlu0 %1638  ;;  %v2026_v18 = vmul.f32 %v4174_v51, %v2025_v2  ;;  %v2040_v44 = vsub.f32 1.0, %v2039_v17  ;;  %v2050_v62 = vor.u32 1.1754944e-38, %v2049_v45 }
 0x2a3   :  { %v1645_v60 = vpop.xlane.xlu2 %1644  ;;  %v1887_v8 = vmul.f32 %v4083_v19, %v1639_v3  ;;  %2229 = vst.msk [vmem:[%s4718_s6 + $0x50] sm:$0xff] %vm2218_vm15, %v1902_v1  ;;  %v4228_v19 = vld [vmem:[%s4715_s3 + $0xb0] sm:$0xff]  ;;  %v1997_v21 = vadd.f32 %v4139_v9, %v1996_v63  ;;  %v2011_v0 = vmul.f32 %v4201_v6, %v2010_v12  ;;  %v2062_v3 = vand.u32 2147483647, %v4279_v23 }
 0x2a4   :  { %v1917_v48 = vmul.f32 %v4087_v4, %v1645_v60  ;;  %v1961_v4 = vsel %vm4108_vm12, %v4099_v28, %v1956_v49  ;;  %v1971_v28 = vsel %vm4209_vm7, %v4119_v35, %v1967_v5  ;;  %vm4258_vm12 = vmor %vm1998_vm0, %vm1999_vm9  ;;  %2816 = vrcp.f32 %v4228_v19  ;;  %v4502_v49 = vld [vmem:[%s4715_s3 + $0xd8] sm:$0xff] }
 0x2a5   :  { %2228 = vst.msk [vmem:[%s4718_s6 + $0x48] sm:$0xff] %vm2218_vm15, %v1887_v8  ;;  %v2027_v14 = vadd.f32 %v4174_v51, %v2026_v18  ;;  %vm4270_vm0 = vcmp.eq.f32.partialorder %v2017_v15, 8.507059e+37  ;;  %v1991_v35 = vsel %vm4158_vm2, %v4134_v40, %v1986_v27  ;;  %v1976_v61 = vsel %vm4162_vm4, %v1975_v50, %v1971_v28  ;;  %vm4312_vm2 = vmor %vm2013_vm14, %vm2014_vm1  ;;  %v4390_v15 = vld [vmem:[%s4715_s3 + $0xc0] sm:$0xff] }
 0x2a6   :  { %2230 = vst.msk [vmem:[%s4718_s6 + $0x58] sm:$0xff] %vm2218_vm15, %v1917_v48  ;;  %v2001_v36 = vsel %vm4258_vm12, %v4139_v9, %v1997_v21  ;;  %v4304_v9 = vld [vmem:[%s4715_s3 + $0xb8] sm:$0xff]  ;;  %v2012_v50 = vadd.f32 %v4201_v6, %v2011_v0  ;;  %2818 = vrcp.f32 %v4279_v23  ;;  %v2041_v42 = vmul.f32 %v4263_v10, %v2040_v44 }
 0x2a7   :  { %vm2043_vm4 = vweird.f32 %v4172_v32  ;;  %v2077_v25 = vand.u32 2147483647, %v4228_v19  ;;  %v2079_v53 = vand.u32 2147483648, %v4228_v19  ;;  %2820 = vrcp.f32 %v4304_v9 }
 0x2a8   :  { %v1651_v46 = vpop.xlane.xlu1 %1650  ;;  %v2006_v54 = vsel %vm4219_vm8, %v2005_v13, %v2001_v36  ;;  %v2016_v38 = vsel %vm4312_vm2, %v4201_v6, %v2012_v50  ;;  %v2042_v55 = vadd.f32 %v4263_v10, %v2041_v42  ;;  %vm4357_vm6 = vmor %vm2043_vm4, %vm2044_vm3  ;;  %vm4361_vm7 = vcmp.eq.f32.partialorder %v2047_v30, 8.507059e+37 }
 0x2a9   :  { %v1947_v41 = vmul.f32 %v4093_v20, %v1651_v46  ;;  %vm2073_vm9 = vweird.f32 %v4228_v19  ;;  %v2064_v60 = vand.u32 2147483648, %v4279_v23  ;;  %v2021_v5 = vsel %vm4270_vm0, %v2020_v34, %v2016_v38 }
 0x2aa   :  { %v1648_v40 = vpop.xlane.xlu0 %1647  ;;  %v4327_v33 = vpop.eup %2816  ;;  %vm4373_vm11 = vcmp.eq.f32.partialorder %v2077_v25, 8.507059e+37  ;;  %v4377_v2 = vor.u32 1.1754944e-38, %v2079_v53  ;;  %vm2058_vm8 = vweird.f32 %v4279_v23  ;;  %v2092_v6 = vand.u32 2147483647, %v4304_v9 }
 0x2ab   :  { %v1654_v24 = vpop.xlane.xlu2 %1653  ;;  %v1932_v16 = vmul.f32 %v4132_v39, %v1648_v40  ;;  %2232 = vst.msk [vmem:[%s4718_s6 + $0x68] sm:$0xff] %vm2218_vm15, %v1947_v41  ;;  %v2031_v39 = vsel %vm4293_vm5, %v4174_v51, %v2027_v14  ;;  %v4339_v51 = vld [vmem:[%s4715_s3 + $0xc8] sm:$0xff]  ;;  %v2069_v57 = vmul.f32 %v4327_v33, %v4228_v19  ;;  %v2046_v7 = vsel %vm4357_vm6, %v4263_v10, %v2042_v55 }
 0x2ac   :  { %v1962_v47 = vmul.f32 %v1961_v4, %v1654_v24  ;;  %v2036_v58 = vsel %vm4238_vm10, %v2035_v31, %v2031_v39  ;;  %2822 = vrcp.f32 %v4339_v51  ;;  %v4369_v56 = vpop.eup %2818  ;;  %vm2074_vm10 = vweird.f32 %v4327_v33 }
 0x2ad   :  { %2231 = vst.msk [vmem:[%s4718_s6 + $0x60] sm:$0xff] %vm2218_vm15, %v1932_v16  ;;  %v2070_v1 = vsub.f32 1.0, %v2069_v57  ;;  %v2054_v18 = vmul.f32 %v4369_v56, %v4279_v23  ;;  %v4392_v4 = vpop.eup %2820  ;;  %v2094_v11 = vand.u32 2147483648, %v4304_v9  ;;  %vm4400_vm12 = vcmp.eq.f32.partialorder %v2062_v3, 8.507059e+37  ;;  %vm4431_vm1 = vmor %vm2073_vm9, %vm2074_vm10 }
 0x2ae   :  { %2233 = vst.msk [vmem:[%s4718_s6 + $0x70] sm:$0xff] %vm2218_vm15, %v1962_v47  ;;  %v4404_v29 = vor.u32 1.1754944e-38, %v2064_v60  ;;  %v2084_v31 = vmul.f32 %v4392_v4, %v4304_v9  ;;  %vm2088_vm13 = vweird.f32 %v4304_v9  ;;  %v2051_v10 = vsel %vm4361_vm7, %v2050_v62, %v2046_v7 }
 0x2af   :  { %v2071_v13 = vmul.f32 %v4327_v33, %v2070_v1  ;;  %v2055_v27 = vsub.f32 1.0, %v2054_v18  ;;  %vm4416_vm14 = vcmp.eq.f32.partialorder %v2092_v6, 8.507059e+37  ;;  %2824 = vrcp.f32 %v4390_v15 }
 0x2b0   :  { %v1660_v32 = vpop.xlane.xlu1 %1659  ;;  %vm2059_vm0 = vweird.f32 %v4369_v56  ;;  %v2085_v46 = vsub.f32 1.0, %v2084_v31  ;;  %vm2089_vm5 = vweird.f32 %v4392_v4  ;;  %v2095_v36 = vor.u32 1.1754944e-38, %v2094_v11 }
 0x2b1   :  { %v1992_v8 = vmul.f32 %v1991_v35, %v1660_v32  ;;  %v2072_v12 = vadd.f32 %v4327_v33, %v2071_v13  ;;  %v2056_v17 = vmul.f32 %v4369_v56, %v2055_v27  ;;  %v2122_v35 = vand.u32 2147483647, %v4339_v51  ;;  %vm4456_vm3 = vmor %vm2058_vm8, %vm2059_vm0 }
 0x2b2   :  { %v1657_v48 = vpop.xlane.xlu0 %1656  ;;  %v4421_v14 = vpop.eup %2822  ;;  %vm2118_vm2 = vweird.f32 %v4339_v51  ;;  %v2086_v0 = vmul.f32 %v4392_v4, %v2085_v46  ;;  %v2124_v41 = vand.u32 2147483648, %v4339_v51  ;;  %vm2103_vm4 = vweird.f32 %v4390_v15  ;;  %vm4467_vm6 = vmor %vm2088_vm13, %vm2089_vm5 }
 0x2b3   :  { %v1663_v52 = vpop.xlane.xlu2 %1662  ;;  %v1977_v21 = vmul.f32 %v1976_v61, %v1657_v48  ;;  %2235 = vst.msk [vmem:[%s4718_s6 + $0x80] sm:$0xff] %vm2218_vm15, %v1992_v8  ;;  %v4441_v61 = vld [vmem:[%s4715_s3 + $0xd0] sm:$0xff]  ;;  %v2114_v19 = vmul.f32 %v4421_v14, %v4339_v51  ;;  %v2057_v37 = vadd.f32 %v4369_v56, %v2056_v17  ;;  %v2076_v24 = vsel %vm4431_vm1, %v4327_v33, %v2072_v12  ;;  %v4480_v33 = vld [vmem:[%s4715_s3 + $0xe0] sm:$0xff] }
 0x2b4   :  { %v2007_v22 = vmul.f32 %v2006_v54, %v1663_v52  ;;  %v2107_v45 = vand.u32 2147483647, %v4390_v15  ;;  %2826 = vrcp.f32 %v4441_v61  ;;  %v2087_v20 = vadd.f32 %v4392_v4, %v2086_v0 }
 0x2b5   :  { %2234 = vst.msk [vmem:[%s4718_s6 + $0x78] sm:$0xff] %vm2218_vm15, %v1977_v21  ;;  %v2115_v30 = vsub.f32 1.0, %v2114_v19  ;;  %vm2119_vm7 = vweird.f32 %v4421_v14  ;;  %vm4472_vm9 = vcmp.eq.f32.partialorder %v2122_v35, 8.507059e+37  ;;  %v2109_v42 = vand.u32 2147483648, %v4390_v15  ;;  %v4482_v34 = vpop.eup %2824 }
 0x2b6   :  { %2236 = vst.msk [vmem:[%s4718_s6 + $0x88] sm:$0xff] %vm2218_vm15, %v2007_v22  ;;  %v2137_v54 = vand.u32 2147483647, %v4441_v61  ;;  %v2081_v38 = vsel %vm4373_vm11, %v4377_v2, %v2076_v24  ;;  %v2061_v55 = vsel %vm4456_vm3, %v4369_v56, %v2057_v37  ;;  %v2099_v57 = vmul.f32 %v4482_v34, %v4390_v15  ;;  %vm4521_vm11 = vmor %vm2118_vm2, %vm2119_vm7  ;;  %v4542_v2 = vld [vmem:[%s4715_s3 + $0xe8] sm:$0xff]  ;;  %v4566_v15 = vld [vmem:[%s4715_s3 + $0xf8] sm:$0xff] }
 0x2b7   :  { %v2116_v53 = vmul.f32 %v4421_v14, %v2115_v30  ;;  %v2091_v43 = vsel %vm4467_vm6, %v4392_v4, %v2087_v20  ;;  %v2125_v1 = vor.u32 1.1754944e-38, %v2124_v41  ;;  %2828 = vrcp.f32 %v4480_v33 }
 0x2b8   :  { %v1669_v40 = vpop.xlane.xlu1 %1668  ;;  %v2100_v60 = vsub.f32 1.0, %v2099_v57  ;;  %vm2104_vm8 = vweird.f32 %v4482_v34  ;;  %vm4526_vm10 = vcmp.eq.f32.partialorder %v2107_v45, 8.507059e+37  ;;  %v2110_v32 = vor.u32 1.1754944e-38, %v2109_v42 }
 0x2b9   :  { %v2037_v16 = vmul.f32 %v2036_v58, %v1669_v40  ;;  %v2139_v58 = vand.u32 2147483648, %v4441_v61  ;;  %v2117_v62 = vadd.f32 %v4421_v14, %v2116_v53  ;;  %v2066_v63 = vsel %vm4400_vm12, %v4404_v29, %v2061_v55  ;;  %vm4555_vm12 = vmor %vm2103_vm4, %vm2104_vm8 }
 0x2ba   :  { %v1666_v47 = vpop.xlane.xlu0 %1665  ;;  %vm2133_vm13 = vweird.f32 %v4441_v61  ;;  %vm4534_vm1 = vcmp.eq.f32.partialorder %v2137_v54, 8.507059e+37  ;;  %2830 = vrcp.f32 %v4502_v49  ;;  %v2096_v6 = vsel %vm4416_vm14, %v2095_v36, %v2091_v43 }
 0x2bb   :  { %v1672_v50 = vpop.xlane.xlu2 %1671  ;;  %v2022_v9 = vmul.f32 %v2021_v5, %v1666_v47  ;;  %2238 = vst.msk [vmem:[%s4718_s6 + $0x98] sm:$0xff] %vm2218_vm15, %v2037_v16  ;;  %v2827_v5 = vpop.eup %2826  ;;  %v2101_v8 = vmul.f32 %v4482_v34, %v2100_v60  ;;  %v2140_v52 = vor.u32 1.1754944e-38, %v2139_v58  ;;  %v2121_v13 = vsel %vm4521_vm11, %v4421_v14, %v2117_v62 }
 0x2bc   :  { %v2052_v25 = vmul.f32 %v2051_v10, %v1672_v50  ;;  %v2129_v48 = vmul.f32 %v2827_v5, %v4441_v61  ;;  %vm2134_vm0 = vweird.f32 %v2827_v5  ;;  %v2167_v4 = vand.u32 2147483647, %v4480_v33  ;;  %v4620_v50 = vld [vmem:[%s4715_s3 + $0xf0] sm:$0xff] }
 0x2bd   :  { %2237 = vst.msk [vmem:[%s4718_s6 + $0x90] sm:$0xff] %vm2218_vm15, %v2022_v9  ;;  %v2169_v21 = vand.u32 2147483648, %v4480_v33  ;;  %v2102_v28 = vadd.f32 %v4482_v34, %v2101_v8  ;;  %2832 = vrcp.f32 %v4542_v2  ;;  %v4568_v31 = vpop.eup %2828  ;;  %vm2163_vm14 = vweird.f32 %v4480_v33  ;;  %vm4591_vm2 = vmor %vm2133_vm13, %vm2134_vm0 }
 0x2be   :  { %2239 = vst.msk [vmem:[%s4718_s6 + $0xa0] sm:$0xff] %vm2218_vm15, %v2052_v25  ;;  %v2130_v29 = vsub.f32 1.0, %v2129_v48  ;;  %v2152_v26 = vand.u32 2147483647, %v4502_v49  ;;  %v2159_v17 = vmul.f32 %v4568_v31, %v4480_v33  ;;  %vm2148_vm5 = vweird.f32 %v4502_v49 }
 0x2bf   :  { %v2106_v14 = vsel %vm4555_vm12, %v4482_v34, %v2102_v28  ;;  %v2126_v35 = vsel %vm4472_vm9, %v2125_v1, %v2121_v13  ;;  %vm4595_vm4 = vcmp.eq.f32.partialorder %v2167_v4, 8.507059e+37  ;;  %v2170_v37 = vor.u32 1.1754944e-38, %v2169_v21 }
 0x2c0   :  { %v1678_v7 = vpop.xlane.xlu1 %1677  ;;  %v2131_v59 = vmul.f32 %v2827_v5, %v2130_v29  ;;  %v2831_v46 = vpop.eup %2830  ;;  %2834 = vrcp.f32 %v4566_v15  ;;  %v2160_v41 = vsub.f32 1.0, %v2159_v17  ;;  %vm2164_vm3 = vweird.f32 %v4568_v31 }
 0x2c1   :  { %v2082_v22 = vmul.f32 %v2081_v38, %v1678_v7  ;;  %v2144_v61 = vmul.f32 %v2831_v46, %v4502_v49  ;;  %v2111_v40 = vsel %vm4526_vm10, %v2110_v32, %v2106_v14  ;;  %vm4608_vm6 = vcmp.eq.f32.partialorder %v2152_v26, 8.507059e+37  ;;  %vm4626_vm11 = vmor %vm2163_vm14, %vm2164_vm3 }
 0x2c2   :  { %v1675_v11 = vpop.xlane.xlu0 %1674  ;;  %v2132_v0 = vadd.f32 %v2827_v5, %v2131_v59  ;;  %v2154_v44 = vand.u32 2147483648, %v4502_v49  ;;  %vm2178_vm7 = vweird.f32 %v4542_v2  ;;  %v2161_v16 = vmul.f32 %v4568_v31, %v2160_v41 }
 0x2c3   :  { %v1681_v27 = vpop.xlane.xlu2 %1680  ;;  %v2067_v10 = vmul.f32 %v2066_v63, %v1675_v11  ;;  %2241 = vst.msk [vmem:[%s4718_s6 + $0xb0] sm:$0xff] %vm2218_vm15, %v2082_v22  ;;  %v2833_v30 = vpop.eup %2832  ;;  %v2145_v47 = vsub.f32 1.0, %v2144_v61  ;;  %vm2149_vm9 = vweird.f32 %v2831_v46  ;;  %v2182_v34 = vand.u32 2147483647, %v4542_v2 }
 0x2c4   :  { %v2097_v12 = vmul.f32 %v2096_v6, %v1681_v27  ;;  %v2136_v45 = vsel %vm4591_vm2, %v2827_v5, %v2132_v0  ;;  %v2174_v42 = vmul.f32 %v2833_v30, %v4542_v2  ;;  %v2184_v9 = vand.u32 2147483648, %v4542_v2  ;;  %vm4637_vm10 = vmor %vm2148_vm5, %vm2149_vm9 }
 0x2c5   :  { %2240 = vst.msk [vmem:[%s4718_s6 + $0xa8] sm:$0xff] %vm2218_vm15, %v2067_v10  ;;  %v2141_v23 = vsel %vm4534_vm1, %v2140_v52, %v2136_v45  ;;  %v2162_v38 = vadd.f32 %v4568_v31, %v2161_v16  ;;  %v2146_v55 = vmul.f32 %v2831_v46, %v2145_v47  ;;  %vm2179_vm8 = vweird.f32 %v2833_v30 }
 0x2c6   :  { %2242 = vst.msk [vmem:[%s4718_s6 + $0xb8] sm:$0xff] %vm2218_vm15, %v2097_v12  ;;  %v2835_v57 = vpop.eup %2834  ;;  %v2175_v62 = vsub.f32 1.0, %v2174_v42  ;;  %2836 = vrcp.f32 %v4620_v50  ;;  %v2155_v60 = vor.u32 1.1754944e-38, %v2154_v44  ;;  %v2185_v32 = vor.u32 1.1754944e-38, %v2184_v9  ;;  %vm4665_vm13 = vmor %vm2178_vm7, %vm2179_vm8 }
 0x2c7   :  { %v2166_v1 = vsel %vm4626_vm11, %v4568_v31, %v2162_v38  ;;  %v2147_v3 = vadd.f32 %v2831_v46, %v2146_v55  ;;  %v2204_v49 = vmul.f32 %v2835_v57, %v4566_v15  ;;  %v2212_v5 = vand.u32 2147483647, %v4566_v15 }
 0x2c8   :  { %v1687_v20 = vpop.xlane.xlu1 %1686  ;;  %v2176_v56 = vmul.f32 %v2833_v30, %v2175_v62  ;;  %v2214_v63 = vand.u32 2147483648, %v4566_v15  ;;  %vm2208_vm1 = vweird.f32 %v4566_v15  ;;  %vm2209_vm12 = vweird.f32 %v2835_v57 }
 0x2c9   :  { %v2127_v25 = vmul.f32 %v2126_v35, %v1687_v20  ;;  %v2151_v51 = vsel %vm4637_vm10, %v2831_v46, %v2147_v3  ;;  %v2205_v8 = vsub.f32 1.0, %v2204_v49  ;;  %v2171_v48 = vsel %vm4595_vm4, %v2170_v37, %v2166_v1  ;;  %vm4676_vm14 = vmor %vm2208_vm1, %vm2209_vm12 }
 0x2ca   :  { %v1684_v53 = vpop.xlane.xlu0 %1683  ;;  %v2177_v52 = vadd.f32 %v2833_v30, %v2176_v56  ;;  %vm2183_vm0 = vcmp.eq.f32.partialorder %v2182_v34, 8.507059e+37  ;;  %v2156_v7 = vsel %vm4608_vm6, %v2155_v60, %v2151_v51  ;;  %vm4680_vm5 = vcmp.eq.f32.partialorder %v2212_v5, 8.507059e+37 }
 0x2cb   :  { %v1690_v54 = vpop.xlane.xlu2 %1689  ;;  %v2112_v58 = vmul.f32 %v2111_v40, %v1684_v53  ;;  %2244 = vst.msk [vmem:[%s4718_s6 + $0xc8] sm:$0xff] %vm2218_vm15, %v2127_v25  ;;  %v2206_v13 = vmul.f32 %v2835_v57, %v2205_v8  ;;  %v2215_v11 = vor.u32 1.1754944e-38, %v2214_v63  ;;  %vm2193_vm2 = vweird.f32 %v4620_v50 }
 0x2cc   :  { %v2142_v33 = vmul.f32 %v2141_v23, %v1690_v54  ;;  %v2837_v18 = vpop.eup %2836  ;;  %v2181_v2 = vsel %vm4665_vm13, %v2833_v30, %v2177_v52  ;;  %v2199_v14 = vand.u32 2147483648, %v4620_v50  ;;  %v2197_v46 = vand.u32 2147483647, %v4620_v50 }
 0x2cd   :  { %2243 = vst.msk [vmem:[%s4718_s6 + $0xc0] sm:$0xff] %vm2218_vm15, %v2112_v58  ;;  %v2186_v29 = vsel %vm2183_vm0, %v2185_v32, %v2181_v2  ;;  %v2207_v31 = vadd.f32 %v2835_v57, %v2206_v13  ;;  %v2189_v10 = vmul.f32 %v2837_v18, %v4620_v50  ;;  %vm2194_vm4 = vweird.f32 %v2837_v18 }
 0x2ce   :  { %2245 = vst.msk [vmem:[%s4718_s6 + $0xd0] sm:$0xff] %vm2218_vm15, %v2142_v33  ;;  %vm2195_vm3 = vmor %vm2193_vm2, %vm2194_vm4  ;;  %v2200_v19 = vor.u32 1.1754944e-38, %v2199_v14  ;;  %vm2198_vm6 = vcmp.eq.f32.partialorder %v2197_v46, 8.507059e+37 }
 0x2cf   :  { %v2211_v59 = vsel %vm4676_vm14, %v2835_v57, %v2207_v31  ;;  %v2190_v17 = vsub.f32 1.0, %v2189_v10 }
 0x2d0   :  { %v1696_v4 = vpop.xlane.xlu1 %1695  ;;  %v2216_v36 = vsel %vm4680_vm5, %v2215_v11, %v2211_v59 }
 0x2d1   :  { %v2172_v27 = vmul.f32 %v2171_v48, %v1696_v4  ;;  %v2191_v35 = vmul.f32 %v2837_v18, %v2190_v17 }
 0x2d2   :  { %v1693_v28 = vpop.xlane.xlu0 %1692 }
 0x2d3   :  { %v1699_v15 = vpop.xlane.xlu2 %1698  ;;  %v2157_v12 = vmul.f32 %v2156_v7, %v1693_v28  ;;  %2247 = vst.msk [vmem:[%s4718_s6 + $0xe0] sm:$0xff] %vm2218_vm15, %v2172_v27  ;;  %v2192_v37 = vadd.f32 %v2837_v18, %v2191_v35 }
 0x2d4   :  { %v2187_v26 = vmul.f32 %v2186_v29, %v1699_v15 }
 0x2d5   :  { %2246 = vst.msk [vmem:[%s4718_s6 + $0xd8] sm:$0xff] %vm2218_vm15, %v2157_v12  ;;  %v2196_v61 = vsel %vm2195_vm3, %v2837_v18, %v2192_v37 }
 0x2d6   :  { %2248 = vst.msk [vmem:[%s4718_s6 + $0xe8] sm:$0xff] %vm2218_vm15, %v2187_v26  ;;  %v2201_v24 = vsel %vm2198_vm6, %v2200_v19, %v2196_v61 }
 0x2d8   :  { %v1705_v0 = vpop.xlane.xlu1 %1704 }
 0x2d9   :  { %v2217_v41 = vmul.f32 %v2216_v36, %v1705_v0 }
 0x2da   :  { %v1702_v40 = vpop.xlane.xlu0 %1701 }
 0x2db   :  { %2250 = vst.msk [vmem:[%s4718_s6 + $0xf8] sm:$0xff] %vm2218_vm15, %v2217_v41  ;;  %v2202_v44 = vmul.f32 %v2201_v24, %v1702_v40 }
 0x2dd   :  { %2249 = vst.msk [vmem:[%s4718_s6 + $0xf0] sm:$0xff] %vm2218_vm15, %v2202_v44 }

</bundles_post_ra>
